<compile_context>
chip_gen: v5e
topology: v5e:2x2
jax: 0.10.0
libtpu: 0.0.40
codegen_flags: <defaults>
</compile_context>

<pallas_src>
import jax
import jax.numpy as jnp
from jax.experimental import pallas as pl
from jax.experimental.pallas import tpu as pltpu

# ---------------- synthetic mini-BERT config ----------------
VOCAB = 100
MAX_POS = 32
TYPE_VOCAB = 2
HIDDEN = 64
N_LAYERS = 4              # 5 hidden states (embeddings + 4 layers); last 4 are concatenated
N_HEADS = 4
HEAD_DIM = HIDDEN // N_HEADS
INTERMEDIATE = 128
PRE_CLS_DIM = 768         # hard-coded 768 in the torch module
N_CLASSES = 3
CLS_PAD = 128             # lane-dense padded classifier width
LN_EPS = 1e-12
NEG_BIG = -1e9            # bias for padded classifier columns (vanishes under log_softmax)

SMALL_W = 3 * HIDDEN      # 192: packed bias/LN row width (widest small vector = bqkv)
GLOBAL_ROWS = 3           # emb_ln_g, emb_ln_b, bcls_pad
ROWS_PER_LAYER = 8        # bqkv, bo, ln1_g, ln1_b, bff1, bff2, ln2_g, ln2_b


def _full_spec(shape):
    """BlockSpec covering the whole array (grid=(1,))."""
    zeros = (0,) * len(shape)
    return pl.BlockSpec(shape, lambda i: zeros)


# ---------------- fully fused forward kernel ----------------
def _fused_forward_kernel(
    emb_ref, mask_ref, small_ref,
    wqkv_ref, wo_ref, wff1_ref, wff2_ref, bpre_ref,
    wpre_hbm_ref, wcls_hbm_ref,
    o_ref,
    wpre_vmem, wcls_vmem, dma_sem,
):
    B, S = mask_ref.shape
    scale = 1.0 / (HEAD_DIM ** 0.5)

    # Kick off the classification-head weight DMAs immediately; they overlap with the
    # 4 encoder layers and are only awaited right before the head matmuls.
    wpre_copy = pltpu.make_async_copy(wpre_hbm_ref, wpre_vmem, dma_sem.at[0])
    wcls_copy = pltpu.make_async_copy(wcls_hbm_ref, wcls_vmem, dma_sem.at[1])
    wpre_copy.start()
    wcls_copy.start()

    smalls = small_ref[...]                                # [35, 192] f32 packed biases

    def srow(r, w):                                        # prefix lane slice, offset 0
        return smalls[r:r + 1, :w]                         # [1, w]

    def layernorm(x, g, b):
        mu = jnp.mean(x, axis=-1, keepdims=True)
        xc = x - mu
        var = jnp.mean(xc * xc, axis=-1, keepdims=True)
        return xc * jax.lax.rsqrt(var + LN_EPS) * g + b

    def bf(x):
        return x.astype(jnp.bfloat16)

    mask_bias = mask_ref[...].reshape(B, 1, S)             # [B, 1, S] additive mask
    x = layernorm(emb_ref[...], srow(0, HIDDEN), srow(1, HIDDEN))   # [B*S, H] f32

    layer_outputs = []
    for l in range(N_LAYERS):
        r = GLOBAL_ROWS + l * ROWS_PER_LAYER
        bqkv = srow(r + 0, 3 * HIDDEN)
        b_o = srow(r + 1, HIDDEN)
        ln1g = srow(r + 2, HIDDEN)
        ln1b = srow(r + 3, HIDDEN)
        bff1 = srow(r + 4, INTERMEDIATE)
        bff2 = srow(r + 5, HIDDEN)
        ln2g = srow(r + 6, HIDDEN)
        ln2b = srow(r + 7, HIDDEN)

        # ---- fused QKV projection: one bf16 MXU pass, f32 accumulation ----
        qkv = jnp.dot(bf(x), wqkv_ref[l], preferred_element_type=jnp.float32) + bqkv

        # ---- multi-head self-attention: batched-over-B einsums, static head loop ----
        wo_l = wo_ref[l]                                   # [H, H] bf16
        attn = None
        for h in range(N_HEADS):
            c = h * HEAD_DIM
            qh = qkv[:, 0 * HIDDEN + c:0 * HIDDEN + c + HEAD_DIM].reshape(B, S, HEAD_DIM)
            kh = qkv[:, 1 * HIDDEN + c:1 * HIDDEN + c + HEAD_DIM].reshape(B, S, HEAD_DIM)
            vh = qkv[:, 2 * HIDDEN + c:2 * HIDDEN + c + HEAD_DIM].reshape(B, S, HEAD_DIM)

            s = jnp.einsum('bqd,bkd->bqk', qh, kh,
                           preferred_element_type=jnp.float32) * scale + mask_bias
            s = s - jnp.max(s, axis=-1, keepdims=True)
            p = jnp.exp(s)
            p = p * pl.reciprocal(jnp.sum(p, axis=-1, keepdims=True), approx=True)
            ctx = jnp.einsum('bqk,bkd->bqd', p, vh,
                             preferred_element_type=jnp.float32)          # [B, S, D]

            # fold the per-head output projection in (no lane concatenate of heads)
            contrib = jnp.dot(bf(ctx.reshape(B * S, HEAD_DIM)),
                              wo_l[c:c + HEAD_DIM, :],
                              preferred_element_type=jnp.float32)         # [B*S, H]
            attn = contrib if attn is None else attn + contrib
        attn = attn + b_o

        x = layernorm(attn + x, ln1g, ln1b)

        ff = jnp.dot(bf(x), wff1_ref[l], preferred_element_type=jnp.float32) + bff1
        # TODO(synk): HF BERT uses exact erf GELU; tanh approximation used here.
        ff = jax.nn.gelu(ff, approximate=True)
        ff = jnp.dot(bf(ff), wff2_ref[l], preferred_element_type=jnp.float32) + bff2
        x = layernorm(ff + x, ln2g, ln2b)
        layer_outputs.append(x)

    # ---- classification head on the CLS rows only (token 0 of each sequence) ----
    wpre_copy.wait()
    wcls_copy.wait()

    # pooled = [hs[-1], hs[-2], hs[-3], hs[-4]] @ w_pre  computed as a sum of 4
    # block matmuls (w_pre rows 64j:64(j+1) <-> layer_outputs[-1-j]); no lane concat.
    h1 = None
    for j in range(4):
        lo = layer_outputs[N_LAYERS - 1 - j]
        cls_j = jnp.concatenate([lo[b * S:b * S + 1, :] for b in range(B)], axis=0)  # [B, H]
        contrib = jnp.dot(bf(cls_j), wpre_vmem[j], preferred_element_type=jnp.float32)
        h1 = contrib if h1 is None else h1 + contrib
    h1 = jnp.maximum(h1 + bpre_ref[...], 0.0)              # ReLU; dropout = identity at eval

    logits = jnp.dot(bf(h1), wcls_vmem[...],
                     preferred_element_type=jnp.float32) + srow(2, CLS_PAD)   # [B, CLS_PAD]
    z = logits - jnp.max(logits, axis=-1, keepdims=True)
    lse = jnp.log(jnp.sum(jnp.exp(z), axis=-1, keepdims=True))
    o_ref[...] = (z - lse).astype(o_ref.dtype)             # [B, CLS_PAD]


# ---------------- parameter init (deterministic, synthetic) ----------------
def init_params(key):
    def normal(k, shape):
        return (jax.random.normal(k, shape, jnp.float32) * 0.02).astype(jnp.float32)

    keys = jax.random.split(key, 8 + N_LAYERS)
    params = {
        "word_emb": normal(keys[0], (VOCAB, HIDDEN)),
        "pos_emb": normal(keys[1], (MAX_POS, HIDDEN)),
        "type_emb": normal(keys[2], (TYPE_VOCAB, HIDDEN)),
        "emb_ln_g": jnp.ones((HIDDEN,), jnp.float32),
        "emb_ln_b": jnp.zeros((HIDDEN,), jnp.float32),
        "w_pre": normal(keys[3], (4 * HIDDEN, PRE_CLS_DIM)),
        "b_pre": jnp.zeros((PRE_CLS_DIM,), jnp.float32),
        "w_cls": normal(keys[4], (PRE_CLS_DIM, N_CLASSES)),
        "b_cls": jnp.zeros((N_CLASSES,), jnp.float32),
        "layers": [],
    }
    for l in range(N_LAYERS):
        lk = jax.random.split(keys[8 + l], 6)
        params["layers"].append({
            "wq": normal(lk[0], (HIDDEN, HIDDEN)), "bq": jnp.zeros((HIDDEN,), jnp.float32),
            "wk": normal(lk[1], (HIDDEN, HIDDEN)), "bk": jnp.zeros((HIDDEN,), jnp.float32),
            "wv": normal(lk[2], (HIDDEN, HIDDEN)), "bv": jnp.zeros((HIDDEN,), jnp.float32),
            "wo": normal(lk[3], (HIDDEN, HIDDEN)), "bo": jnp.zeros((HIDDEN,), jnp.float32),
            "ln1_g": jnp.ones((HIDDEN,), jnp.float32), "ln1_b": jnp.zeros((HIDDEN,), jnp.float32),
            "w_ff1": normal(lk[4], (HIDDEN, INTERMEDIATE)), "b_ff1": jnp.zeros((INTERMEDIATE,), jnp.float32),
            "w_ff2": normal(lk[5], (INTERMEDIATE, HIDDEN)), "b_ff2": jnp.zeros((HIDDEN,), jnp.float32),
            "ln2_g": jnp.ones((HIDDEN,), jnp.float32), "ln2_b": jnp.zeros((HIDDEN,), jnp.float32),
        })
    return params


# ---------------- full forward: matches ModelForClassification.forward ----------------
@jax.jit
def model_forward(params, input_ids, attention_mask):
    B, S = input_ids.shape

    # embedding lookups are plain-JAX glue (gathers)
    # TODO(synk): token_type_ids are assumed all-zero (matches default HF call).
    we = params["word_emb"][input_ids]                       # [B, S, H]
    pe = params["pos_emb"][jnp.arange(S)][None, :, :]        # [1, S, H]
    te = params["type_emb"][0][None, None, :]                # [1, 1, H]
    emb = (we + pe + te).reshape(B * S, HIDDEN).astype(jnp.float32)
    mask_add = (1.0 - attention_mask.astype(jnp.float32)) * -1e4          # [B, S]

    L = params["layers"]

    # --- pack all tiny bias / LayerNorm vectors into one [35, 192] array (one DMA) ---
    def _row(v):
        v = jnp.asarray(v, jnp.float32)
        return jnp.pad(v, (0, SMALL_W - v.shape[0]))[None, :]

    bcls_pad = jnp.full((CLS_PAD,), NEG_BIG, jnp.float32).at[:N_CLASSES].set(params["b_cls"])
    small_rows = [_row(params["emb_ln_g"]), _row(params["emb_ln_b"]), _row(bcls_pad)]
    for lp in L:
        small_rows += [
            _row(jnp.concatenate([lp["bq"], lp["bk"], lp["bv"]])),
            _row(lp["bo"]), _row(lp["ln1_g"]), _row(lp["ln1_b"]),
            _row(lp["b_ff1"]), _row(lp["b_ff2"]), _row(lp["ln2_g"]), _row(lp["ln2_b"]),
        ]
    small = jnp.concatenate(small_rows, axis=0)              # [3 + 8*L, 192] f32

    # --- stacked bf16 matmul weights (halved HBM traffic, native MXU datapath) ---
    tobf = lambda a: a.astype(jnp.bfloat16)
    wqkv = tobf(jnp.stack([jnp.concatenate([lp["wq"], lp["wk"], lp["wv"]], axis=1) for lp in L]))
    wo = tobf(jnp.stack([lp["wo"] for lp in L]))
    wff1 = tobf(jnp.stack([lp["w_ff1"] for lp in L]))
    wff2 = tobf(jnp.stack([lp["w_ff2"] for lp in L]))

    # classification-head weights stay in HBM (memory_space=pl.ANY) and are DMA'd
    # asynchronously inside the kernel, overlapped with the encoder layers.
    wpre_blocks = tobf(params["w_pre"].reshape(4, HIDDEN, PRE_CLS_DIM))   # [4, 64, 768]
    wcls_pad = tobf(jnp.zeros((PRE_CLS_DIM, CLS_PAD), jnp.float32)
                    .at[:, :N_CLASSES].set(params["w_cls"]))              # [768, 128]
    bpre = params["b_pre"][None, :]                                       # [1, 768] f32

    vmem_inputs = [emb, mask_add, small, wqkv, wo, wff1, wff2, bpre]
    hbm_inputs = [wpre_blocks, wcls_pad]

    in_specs = ([_full_spec(a.shape) for a in vmem_inputs]
                + [pl.BlockSpec(memory_space=pl.ANY)] * len(hbm_inputs))

    out = pl.pallas_call(
        _fused_forward_kernel,
        grid=(1,),
        in_specs=in_specs,
        out_specs=_full_spec((B, CLS_PAD)),
        out_shape=jax.ShapeDtypeStruct((B, CLS_PAD), jnp.float32),
        scratch_shapes=[
            pltpu.VMEM((4, HIDDEN, PRE_CLS_DIM), jnp.bfloat16),   # w_pre blocks
            pltpu.VMEM((PRE_CLS_DIM, CLS_PAD), jnp.bfloat16),     # padded classifier
            pltpu.SemaphoreType.DMA((2,)),
        ],
        compiler_params=pltpu.CompilerParams(dimension_semantics=("arbitrary",)),
    )(*vmem_inputs, *hbm_inputs)

    # real classes only (padded columns carried NEG_BIG logits)
    return out[:, :N_CLASSES]


if __name__ == "__main__":
    key = jax.random.PRNGKey(0)
    pkey, dkey = jax.random.split(key)
    params = init_params(pkey)

    B, S = 2, 8
    input_ids = jax.random.randint(dkey, (B, S), 0, VOCAB, dtype=jnp.int32)
    attention_mask = jnp.ones((B, S), dtype=jnp.int32)

    out = model_forward(params, input_ids, attention_mask)
    out = jax.block_until_ready(out)

    assert out.shape == (B, N_CLASSES)
    # log-softmax rows should (approximately) exponentiate-sum to 1
    assert bool(jnp.all(jnp.abs(jnp.sum(jnp.exp(out), axis=1) - 1.0) < 1e-4))
    print("KERNEL_OK")
</pallas_src>

<mosaic_0001>
module attributes {stable_mosaic.version = 11 : i64} {
  func.func @_fused_forward_kernel(%arg0: i32, %arg1: memref<16x64xf32, #tpu.memory_space<vmem>>, %arg2: memref<2x8xf32, #tpu.memory_space<vmem>>, %arg3: memref<35x192xf32, #tpu.memory_space<vmem>>, %arg4: memref<4x64x192xbf16, #tpu.memory_space<vmem>>, %arg5: memref<4x64x64xbf16, #tpu.memory_space<vmem>>, %arg6: memref<4x64x128xbf16, #tpu.memory_space<vmem>>, %arg7: memref<4x128x64xbf16, #tpu.memory_space<vmem>>, %arg8: memref<1x768xf32, #tpu.memory_space<vmem>>, %arg9: memref<4x64x768xbf16, #tpu.memory_space<any>>, %arg10: memref<768x128xbf16, #tpu.memory_space<any>>, %arg11: memref<2x128xf32, #tpu.memory_space<vmem>>, %arg12: memref<4x64x768xbf16, #tpu.memory_space<vmem>>, %arg13: memref<768x128xbf16, #tpu.memory_space<vmem>>, %arg14: memref<2x!tpu.dma_semaphore, #tpu.memory_space<semaphore_mem>>) attributes {dimension_semantics = [#tpu.dimension_semantics<arbitrary>], iteration_bounds = array<i64: 1>, scalar_prefetch = 0 : i64, scratch_operands = 3 : i64, tpu.core_type = #tpu.core_type<tc>, window_params = [{pipeline_mode = #tpu.pipeline_mode<synchronous>, transform_indices = @transform_0, window_bounds = array<i64: 16, 64>}, {pipeline_mode = #tpu.pipeline_mode<synchronous>, transform_indices = @transform_1, window_bounds = array<i64: 2, 8>}, {pipeline_mode = #tpu.pipeline_mode<synchronous>, transform_indices = @transform_2, window_bounds = array<i64: 35, 192>}, {pipeline_mode = #tpu.pipeline_mode<synchronous>, transform_indices = @transform_3, window_bounds = array<i64: 4, 64, 192>}, {pipeline_mode = #tpu.pipeline_mode<synchronous>, transform_indices = @transform_4, window_bounds = array<i64: 4, 64, 64>}, {pipeline_mode = #tpu.pipeline_mode<synchronous>, transform_indices = @transform_5, window_bounds = array<i64: 4, 64, 128>}, {pipeline_mode = #tpu.pipeline_mode<synchronous>, transform_indices = @transform_6, window_bounds = array<i64: 4, 128, 64>}, {pipeline_mode = #tpu.pipeline_mode<synchronous>, transform_indices = @transform_7, window_bounds = array<i64: 1, 768>}, {}, {}, {pipeline_mode = #tpu.pipeline_mode<synchronous>, transform_indices = @transform_10, window_bounds = array<i64: 2, 128>}]} {
    %c0_i32 = arith.constant 0 : i32
    %0 = tpu.memref_slice %arg14[%c0_i32] : memref<2x!tpu.dma_semaphore, #tpu.memory_space<semaphore_mem>> -> memref<1x!tpu.dma_semaphore, #tpu.memory_space<semaphore_mem>>
    %1 = tpu.memref_squeeze %0 : memref<1x!tpu.dma_semaphore, #tpu.memory_space<semaphore_mem>> -> memref<!tpu.dma_semaphore, #tpu.memory_space<semaphore_mem>>
    tpu.enqueue_dma source(%arg9 : memref<4x64x768xbf16, #tpu.memory_space<any>>) target(%arg12 : memref<4x64x768xbf16, #tpu.memory_space<vmem>>) target_semaphore(%1 : memref<!tpu.dma_semaphore, #tpu.memory_space<semaphore_mem>>)
    %c1_i32 = arith.constant 1 : i32
    %2 = tpu.memref_slice %arg14[%c1_i32] : memref<2x!tpu.dma_semaphore, #tpu.memory_space<semaphore_mem>> -> memref<1x!tpu.dma_semaphore, #tpu.memory_space<semaphore_mem>>
    %3 = tpu.memref_squeeze %2 : memref<1x!tpu.dma_semaphore, #tpu.memory_space<semaphore_mem>> -> memref<!tpu.dma_semaphore, #tpu.memory_space<semaphore_mem>>
    tpu.enqueue_dma source(%arg10 : memref<768x128xbf16, #tpu.memory_space<any>>) target(%arg13 : memref<768x128xbf16, #tpu.memory_space<vmem>>) target_semaphore(%3 : memref<!tpu.dma_semaphore, #tpu.memory_space<semaphore_mem>>)
    %c0 = arith.constant 0 : index
    %c0_0 = arith.constant 0 : index
    %4 = vector.load %arg3[%c0, %c0_0] : memref<35x192xf32, #tpu.memory_space<vmem>>, vector<35x192xf32>
    %c0_1 = arith.constant 0 : index
    %c0_2 = arith.constant 0 : index
    %5 = vector.load %arg2[%c0_1, %c0_2] : memref<2x8xf32, #tpu.memory_space<vmem>>, vector<2x8xf32>
    %6 = vector.shape_cast %5 : vector<2x8xf32> to vector<2x1x8xf32>
    %c0_3 = arith.constant 0 : index
    %c0_4 = arith.constant 0 : index
    %7 = vector.load %arg1[%c0_3, %c0_4] : memref<16x64xf32, #tpu.memory_space<vmem>>, vector<16x64xf32>
    %8 = vector.extract_strided_slice %4 {offsets = [0, 0], sizes = [1, 64], strides = [1, 1]} : vector<35x192xf32> to vector<1x64xf32>
    %9 = vector.extract_strided_slice %4 {offsets = [1, 0], sizes = [1, 64], strides = [1, 1]} : vector<35x192xf32> to vector<1x64xf32>
    %cst = arith.constant dense<0.000000e+00> : vector<16xf32>
    %10 = vector.multi_reduction <add>, %7, %cst [1] : vector<16x64xf32> to vector<16xf32>
    %11 = vector.shape_cast %10 : vector<16xf32> to vector<16x1xf32>
    %cst_5 = arith.constant 6.400000e+01 : f32
    %12 = vector.broadcast %cst_5 : f32 to vector<16x1xf32>
    %13 = arith.divf %11, %12 : vector<16x1xf32>
    %14 = vector.broadcast %13 : vector<16x1xf32> to vector<16x64xf32>
    %15 = arith.subf %7, %14 : vector<16x64xf32>
    %16 = arith.mulf %15, %15 : vector<16x64xf32>
    %cst_6 = arith.constant dense<0.000000e+00> : vector<16xf32>
    %17 = vector.multi_reduction <add>, %16, %cst_6 [1] : vector<16x64xf32> to vector<16xf32>
    %18 = vector.shape_cast %17 : vector<16xf32> to vector<16x1xf32>
    %cst_7 = arith.constant 6.400000e+01 : f32
    %19 = vector.broadcast %cst_7 : f32 to vector<16x1xf32>
    %20 = arith.divf %18, %19 : vector<16x1xf32>
    %cst_8 = arith.constant 9.99999996E-13 : f32
    %21 = vector.broadcast %cst_8 : f32 to vector<16x1xf32>
    %22 = arith.addf %20, %21 : vector<16x1xf32>
    %23 = math.rsqrt %22 : vector<16x1xf32>
    %24 = vector.broadcast %23 : vector<16x1xf32> to vector<16x64xf32>
    %25 = arith.mulf %15, %24 : vector<16x64xf32>
    %26 = vector.broadcast %8 : vector<1x64xf32> to vector<16x64xf32>
    %27 = arith.mulf %25, %26 : vector<16x64xf32>
    %28 = vector.broadcast %9 : vector<1x64xf32> to vector<16x64xf32>
    %29 = arith.addf %27, %28 : vector<16x64xf32>
    %30 = vector.extract_strided_slice %4 {offsets = [3, 0], sizes = [1, 192], strides = [1, 1]} : vector<35x192xf32> to vector<1x192xf32>
    %31 = vector.extract_strided_slice %4 {offsets = [4, 0], sizes = [1, 64], strides = [1, 1]} : vector<35x192xf32> to vector<1x64xf32>
    %32 = vector.extract_strided_slice %4 {offsets = [5, 0], sizes = [1, 64], strides = [1, 1]} : vector<35x192xf32> to vector<1x64xf32>
    %33 = vector.extract_strided_slice %4 {offsets = [6, 0], sizes = [1, 64], strides = [1, 1]} : vector<35x192xf32> to vector<1x64xf32>
    %34 = vector.extract_strided_slice %4 {offsets = [7, 0], sizes = [1, 128], strides = [1, 1]} : vector<35x192xf32> to vector<1x128xf32>
    %35 = vector.extract_strided_slice %4 {offsets = [8, 0], sizes = [1, 64], strides = [1, 1]} : vector<35x192xf32> to vector<1x64xf32>
    %36 = vector.extract_strided_slice %4 {offsets = [9, 0], sizes = [1, 64], strides = [1, 1]} : vector<35x192xf32> to vector<1x64xf32>
    %37 = vector.extract_strided_slice %4 {offsets = [10, 0], sizes = [1, 64], strides = [1, 1]} : vector<35x192xf32> to vector<1x64xf32>
    %38 = arith.truncf %29 : vector<16x64xf32> to vector<16x64xbf16>
    %c0_9 = arith.constant 0 : index
    %c0_10 = arith.constant 0 : index
    %c0_11 = arith.constant 0 : index
    %39 = vector.load %arg4[%c0_9, %c0_10, %c0_11] : memref<4x64x192xbf16, #tpu.memory_space<vmem>>, vector<1x64x192xbf16>
    %40 = vector.shape_cast %39 : vector<1x64x192xbf16> to vector<64x192xbf16>
    %cst_12 = arith.constant dense<0.000000e+00> : vector<16x192xf32>
    %41 = tpu.matmul %38, %40, %cst_12 {dimension_numbers = #tpu.dot_dimension_numbers<[1], [0], [0], [1], [0, 0, 1, 1], [], []>} : vector<16x64xbf16>, vector<64x192xbf16>, vector<16x192xf32> -> vector<16x192xf32>
    %42 = vector.broadcast %30 : vector<1x192xf32> to vector<16x192xf32>
    %43 = arith.addf %41, %42 : vector<16x192xf32>
    %c0_13 = arith.constant 0 : index
    %c0_14 = arith.constant 0 : index
    %c0_15 = arith.constant 0 : index
    %44 = vector.load %arg5[%c0_13, %c0_14, %c0_15] : memref<4x64x64xbf16, #tpu.memory_space<vmem>>, vector<1x64x64xbf16>
    %45 = vector.shape_cast %44 : vector<1x64x64xbf16> to vector<64x64xbf16>
    %46 = vector.extract_strided_slice %43 {offsets = [0, 0], sizes = [16, 16], strides = [1, 1]} : vector<16x192xf32> to vector<16x16xf32>
    %47 = vector.shape_cast %46 : vector<16x16xf32> to vector<2x8x16xf32>
    %48 = vector.extract_strided_slice %43 {offsets = [0, 64], sizes = [16, 16], strides = [1, 1]} : vector<16x192xf32> to vector<16x16xf32>
    %49 = vector.shape_cast %48 : vector<16x16xf32> to vector<2x8x16xf32>
    %50 = vector.extract_strided_slice %43 {offsets = [0, 128], sizes = [16, 16], strides = [1, 1]} : vector<16x192xf32> to vector<16x16xf32>
    %51 = vector.shape_cast %50 : vector<16x16xf32> to vector<2x8x16xf32>
    "tpu.trace_start"() <{level = 10 : i32, message = "bqd,bkd->bqk"}> : () -> ()
    %cst_16 = arith.constant dense<0.000000e+00> : vector<2x8x8xf32>
    %52 = tpu.matmul %47, %49, %cst_16 {dimension_numbers = #tpu.dot_dimension_numbers<[2], [2], [1], [1], [0, 0, 0, 1, 1, 1], [0], [0]>} : vector<2x8x16xf32>, vector<2x8x16xf32>, vector<2x8x8xf32> -> vector<2x8x8xf32>
    "tpu.trace_stop"() : () -> ()
    %cst_17 = arith.constant 2.500000e-01 : f32
    %53 = vector.broadcast %cst_17 : f32 to vector<2x8x8xf32>
    %54 = arith.mulf %52, %53 : vector<2x8x8xf32>
    %55 = vector.broadcast %6 : vector<2x1x8xf32> to vector<2x8x8xf32>
    %56 = arith.addf %54, %55 : vector<2x8x8xf32>
    %cst_18 = arith.constant dense<0xFF800000> : vector<2x8xf32>
    %57 = vector.multi_reduction <maximumf>, %56, %cst_18 [2] : vector<2x8x8xf32> to vector<2x8xf32>
    %58 = vector.shape_cast %57 : vector<2x8xf32> to vector<2x8x1xf32>
    %59 = vector.broadcast %58 : vector<2x8x1xf32> to vector<2x8x8xf32>
    %60 = arith.subf %56, %59 : vector<2x8x8xf32>
    %61 = math.exp %60 : vector<2x8x8xf32>
    %cst_19 = arith.constant dense<0.000000e+00> : vector<2x8xf32>
    %62 = vector.multi_reduction <add>, %61, %cst_19 [2] : vector<2x8x8xf32> to vector<2x8xf32>
    %63 = vector.shape_cast %62 : vector<2x8xf32> to vector<2x8x1xf32>
    %64 = tpu.reciprocal %63 {approx = true} : vector<2x8x1xf32> -> vector<2x8x1xf32>
    %65 = vector.broadcast %64 : vector<2x8x1xf32> to vector<2x8x8xf32>
    %66 = arith.mulf %61, %65 : vector<2x8x8xf32>
    "tpu.trace_start"() <{level = 10 : i32, message = "bqk,bkd->bqd"}> : () -> ()
    %cst_20 = arith.constant dense<0.000000e+00> : vector<2x8x16xf32>
    %67 = tpu.matmul %66, %51, %cst_20 {dimension_numbers = #tpu.dot_dimension_numbers<[2], [1], [1], [2], [0, 0, 0, 1, 1, 2], [0], [0]>} : vector<2x8x8xf32>, vector<2x8x16xf32>, vector<2x8x16xf32> -> vector<2x8x16xf32>
    "tpu.trace_stop"() : () -> ()
    %68 = vector.shape_cast %67 : vector<2x8x16xf32> to vector<16x16xf32>
    %69 = arith.truncf %68 : vector<16x16xf32> to vector<16x16xbf16>
    %70 = vector.extract_strided_slice %45 {offsets = [0, 0], sizes = [16, 64], strides = [1, 1]} : vector<64x64xbf16> to vector<16x64xbf16>
    %cst_21 = arith.constant dense<0.000000e+00> : vector<16x64xf32>
    %71 = tpu.matmul %69, %70, %cst_21 {dimension_numbers = #tpu.dot_dimension_numbers<[1], [0], [0], [1], [0, 0, 1, 1], [], []>} : vector<16x16xbf16>, vector<16x64xbf16>, vector<16x64xf32> -> vector<16x64xf32>
    %72 = vector.extract_strided_slice %43 {offsets = [0, 16], sizes = [16, 16], strides = [1, 1]} : vector<16x192xf32> to vector<16x16xf32>
    %73 = vector.shape_cast %72 : vector<16x16xf32> to vector<2x8x16xf32>
    %74 = vector.extract_strided_slice %43 {offsets = [0, 80], sizes = [16, 16], strides = [1, 1]} : vector<16x192xf32> to vector<16x16xf32>
    %75 = vector.shape_cast %74 : vector<16x16xf32> to vector<2x8x16xf32>
    %76 = vector.extract_strided_slice %43 {offsets = [0, 144], sizes = [16, 16], strides = [1, 1]} : vector<16x192xf32> to vector<16x16xf32>
    %77 = vector.shape_cast %76 : vector<16x16xf32> to vector<2x8x16xf32>
    "tpu.trace_start"() <{level = 10 : i32, message = "bqd,bkd->bqk"}> : () -> ()
    %cst_22 = arith.constant dense<0.000000e+00> : vector<2x8x8xf32>
    %78 = tpu.matmul %73, %75, %cst_22 {dimension_numbers = #tpu.dot_dimension_numbers<[2], [2], [1], [1], [0, 0, 0, 1, 1, 1], [0], [0]>} : vector<2x8x16xf32>, vector<2x8x16xf32>, vector<2x8x8xf32> -> vector<2x8x8xf32>
    "tpu.trace_stop"() : () -> ()
    %cst_23 = arith.constant 2.500000e-01 : f32
    %79 = vector.broadcast %cst_23 : f32 to vector<2x8x8xf32>
    %80 = arith.mulf %78, %79 : vector<2x8x8xf32>
    %81 = vector.broadcast %6 : vector<2x1x8xf32> to vector<2x8x8xf32>
    %82 = arith.addf %80, %81 : vector<2x8x8xf32>
    %cst_24 = arith.constant dense<0xFF800000> : vector<2x8xf32>
    %83 = vector.multi_reduction <maximumf>, %82, %cst_24 [2] : vector<2x8x8xf32> to vector<2x8xf32>
    %84 = vector.shape_cast %83 : vector<2x8xf32> to vector<2x8x1xf32>
    %85 = vector.broadcast %84 : vector<2x8x1xf32> to vector<2x8x8xf32>
    %86 = arith.subf %82, %85 : vector<2x8x8xf32>
    %87 = math.exp %86 : vector<2x8x8xf32>
    %cst_25 = arith.constant dense<0.000000e+00> : vector<2x8xf32>
    %88 = vector.multi_reduction <add>, %87, %cst_25 [2] : vector<2x8x8xf32> to vector<2x8xf32>
    %89 = vector.shape_cast %88 : vector<2x8xf32> to vector<2x8x1xf32>
    %90 = tpu.reciprocal %89 {approx = true} : vector<2x8x1xf32> -> vector<2x8x1xf32>
    %91 = vector.broadcast %90 : vector<2x8x1xf32> to vector<2x8x8xf32>
    %92 = arith.mulf %87, %91 : vector<2x8x8xf32>
    "tpu.trace_start"() <{level = 10 : i32, message = "bqk,bkd->bqd"}> : () -> ()
    %cst_26 = arith.constant dense<0.000000e+00> : vector<2x8x16xf32>
    %93 = tpu.matmul %92, %77, %cst_26 {dimension_numbers = #tpu.dot_dimension_numbers<[2], [1], [1], [2], [0, 0, 0, 1, 1, 2], [0], [0]>} : vector<2x8x8xf32>, vector<2x8x16xf32>, vector<2x8x16xf32> -> vector<2x8x16xf32>
    "tpu.trace_stop"() : () -> ()
    %94 = vector.shape_cast %93 : vector<2x8x16xf32> to vector<16x16xf32>
    %95 = arith.truncf %94 : vector<16x16xf32> to vector<16x16xbf16>
    %96 = vector.extract_strided_slice %45 {offsets = [16, 0], sizes = [16, 64], strides = [1, 1]} : vector<64x64xbf16> to vector<16x64xbf16>
    %cst_27 = arith.constant dense<0.000000e+00> : vector<16x64xf32>
    %97 = tpu.matmul %95, %96, %cst_27 {dimension_numbers = #tpu.dot_dimension_numbers<[1], [0], [0], [1], [0, 0, 1, 1], [], []>} : vector<16x16xbf16>, vector<16x64xbf16>, vector<16x64xf32> -> vector<16x64xf32>
    %98 = arith.addf %71, %97 : vector<16x64xf32>
    %99 = vector.extract_strided_slice %43 {offsets = [0, 32], sizes = [16, 16], strides = [1, 1]} : vector<16x192xf32> to vector<16x16xf32>
    %100 = vector.shape_cast %99 : vector<16x16xf32> to vector<2x8x16xf32>
    %101 = vector.extract_strided_slice %43 {offsets = [0, 96], sizes = [16, 16], strides = [1, 1]} : vector<16x192xf32> to vector<16x16xf32>
    %102 = vector.shape_cast %101 : vector<16x16xf32> to vector<2x8x16xf32>
    %103 = vector.extract_strided_slice %43 {offsets = [0, 160], sizes = [16, 16], strides = [1, 1]} : vector<16x192xf32> to vector<16x16xf32>
    %104 = vector.shape_cast %103 : vector<16x16xf32> to vector<2x8x16xf32>
    "tpu.trace_start"() <{level = 10 : i32, message = "bqd,bkd->bqk"}> : () -> ()
    %cst_28 = arith.constant dense<0.000000e+00> : vector<2x8x8xf32>
    %105 = tpu.matmul %100, %102, %cst_28 {dimension_numbers = #tpu.dot_dimension_numbers<[2], [2], [1], [1], [0, 0, 0, 1, 1, 1], [0], [0]>} : vector<2x8x16xf32>, vector<2x8x16xf32>, vector<2x8x8xf32> -> vector<2x8x8xf32>
    "tpu.trace_stop"() : () -> ()
    %cst_29 = arith.constant 2.500000e-01 : f32
    %106 = vector.broadcast %cst_29 : f32 to vector<2x8x8xf32>
    %107 = arith.mulf %105, %106 : vector<2x8x8xf32>
    %108 = vector.broadcast %6 : vector<2x1x8xf32> to vector<2x8x8xf32>
    %109 = arith.addf %107, %108 : vector<2x8x8xf32>
    %cst_30 = arith.constant dense<0xFF800000> : vector<2x8xf32>
    %110 = vector.multi_reduction <maximumf>, %109, %cst_30 [2] : vector<2x8x8xf32> to vector<2x8xf32>
    %111 = vector.shape_cast %110 : vector<2x8xf32> to vector<2x8x1xf32>
    %112 = vector.broadcast %111 : vector<2x8x1xf32> to vector<2x8x8xf32>
    %113 = arith.subf %109, %112 : vector<2x8x8xf32>
    %114 = math.exp %113 : vector<2x8x8xf32>
    %cst_31 = arith.constant dense<0.000000e+00> : vector<2x8xf32>
    %115 = vector.multi_reduction <add>, %114, %cst_31 [2] : vector<2x8x8xf32> to vector<2x8xf32>
    %116 = vector.shape_cast %115 : vector<2x8xf32> to vector<2x8x1xf32>
    %117 = tpu.reciprocal %116 {approx = true} : vector<2x8x1xf32> -> vector<2x8x1xf32>
    %118 = vector.broadcast %117 : vector<2x8x1xf32> to vector<2x8x8xf32>
    %119 = arith.mulf %114, %118 : vector<2x8x8xf32>
    "tpu.trace_start"() <{level = 10 : i32, message = "bqk,bkd->bqd"}> : () -> ()
    %cst_32 = arith.constant dense<0.000000e+00> : vector<2x8x16xf32>
    %120 = tpu.matmul %119, %104, %cst_32 {dimension_numbers = #tpu.dot_dimension_numbers<[2], [1], [1], [2], [0, 0, 0, 1, 1, 2], [0], [0]>} : vector<2x8x8xf32>, vector<2x8x16xf32>, vector<2x8x16xf32> -> vector<2x8x16xf32>
    "tpu.trace_stop"() : () -> ()
    %121 = vector.shape_cast %120 : vector<2x8x16xf32> to vector<16x16xf32>
    %122 = arith.truncf %121 : vector<16x16xf32> to vector<16x16xbf16>
    %123 = vector.extract_strided_slice %45 {offsets = [32, 0], sizes = [16, 64], strides = [1, 1]} : vector<64x64xbf16> to vector<16x64xbf16>
    %cst_33 = arith.constant dense<0.000000e+00> : vector<16x64xf32>
    %124 = tpu.matmul %122, %123, %cst_33 {dimension_numbers = #tpu.dot_dimension_numbers<[1], [0], [0], [1], [0, 0, 1, 1], [], []>} : vector<16x16xbf16>, vector<16x64xbf16>, vector<16x64xf32> -> vector<16x64xf32>
    %125 = arith.addf %98, %124 : vector<16x64xf32>
    %126 = vector.extract_strided_slice %43 {offsets = [0, 48], sizes = [16, 16], strides = [1, 1]} : vector<16x192xf32> to vector<16x16xf32>
    %127 = vector.shape_cast %126 : vector<16x16xf32> to vector<2x8x16xf32>
    %128 = vector.extract_strided_slice %43 {offsets = [0, 112], sizes = [16, 16], strides = [1, 1]} : vector<16x192xf32> to vector<16x16xf32>
    %129 = vector.shape_cast %128 : vector<16x16xf32> to vector<2x8x16xf32>
    %130 = vector.extract_strided_slice %43 {offsets = [0, 176], sizes = [16, 16], strides = [1, 1]} : vector<16x192xf32> to vector<16x16xf32>
    %131 = vector.shape_cast %130 : vector<16x16xf32> to vector<2x8x16xf32>
    "tpu.trace_start"() <{level = 10 : i32, message = "bqd,bkd->bqk"}> : () -> ()
    %cst_34 = arith.constant dense<0.000000e+00> : vector<2x8x8xf32>
    %132 = tpu.matmul %127, %129, %cst_34 {dimension_numbers = #tpu.dot_dimension_numbers<[2], [2], [1], [1], [0, 0, 0, 1, 1, 1], [0], [0]>} : vector<2x8x16xf32>, vector<2x8x16xf32>, vector<2x8x8xf32> -> vector<2x8x8xf32>
    "tpu.trace_stop"() : () -> ()
    %cst_35 = arith.constant 2.500000e-01 : f32
    %133 = vector.broadcast %cst_35 : f32 to vector<2x8x8xf32>
    %134 = arith.mulf %132, %133 : vector<2x8x8xf32>
    %135 = vector.broadcast %6 : vector<2x1x8xf32> to vector<2x8x8xf32>
    %136 = arith.addf %134, %135 : vector<2x8x8xf32>
    %cst_36 = arith.constant dense<0xFF800000> : vector<2x8xf32>
    %137 = vector.multi_reduction <maximumf>, %136, %cst_36 [2] : vector<2x8x8xf32> to vector<2x8xf32>
    %138 = vector.shape_cast %137 : vector<2x8xf32> to vector<2x8x1xf32>
    %139 = vector.broadcast %138 : vector<2x8x1xf32> to vector<2x8x8xf32>
    %140 = arith.subf %136, %139 : vector<2x8x8xf32>
    %141 = math.exp %140 : vector<2x8x8xf32>
    %cst_37 = arith.constant dense<0.000000e+00> : vector<2x8xf32>
    %142 = vector.multi_reduction <add>, %141, %cst_37 [2] : vector<2x8x8xf32> to vector<2x8xf32>
    %143 = vector.shape_cast %142 : vector<2x8xf32> to vector<2x8x1xf32>
    %144 = tpu.reciprocal %143 {approx = true} : vector<2x8x1xf32> -> vector<2x8x1xf32>
    %145 = vector.broadcast %144 : vector<2x8x1xf32> to vector<2x8x8xf32>
    %146 = arith.mulf %141, %145 : vector<2x8x8xf32>
    "tpu.trace_start"() <{level = 10 : i32, message = "bqk,bkd->bqd"}> : () -> ()
    %cst_38 = arith.constant dense<0.000000e+00> : vector<2x8x16xf32>
    %147 = tpu.matmul %146, %131, %cst_38 {dimension_numbers = #tpu.dot_dimension_numbers<[2], [1], [1], [2], [0, 0, 0, 1, 1, 2], [0], [0]>} : vector<2x8x8xf32>, vector<2x8x16xf32>, vector<2x8x16xf32> -> vector<2x8x16xf32>
    "tpu.trace_stop"() : () -> ()
    %148 = vector.shape_cast %147 : vector<2x8x16xf32> to vector<16x16xf32>
    %149 = arith.truncf %148 : vector<16x16xf32> to vector<16x16xbf16>
    %150 = vector.extract_strided_slice %45 {offsets = [48, 0], sizes = [16, 64], strides = [1, 1]} : vector<64x64xbf16> to vector<16x64xbf16>
    %cst_39 = arith.constant dense<0.000000e+00> : vector<16x64xf32>
    %151 = tpu.matmul %149, %150, %cst_39 {dimension_numbers = #tpu.dot_dimension_numbers<[1], [0], [0], [1], [0, 0, 1, 1], [], []>} : vector<16x16xbf16>, vector<16x64xbf16>, vector<16x64xf32> -> vector<16x64xf32>
    %152 = arith.addf %125, %151 : vector<16x64xf32>
    %153 = vector.broadcast %31 : vector<1x64xf32> to vector<16x64xf32>
    %154 = arith.addf %152, %153 : vector<16x64xf32>
    %155 = arith.addf %154, %29 : vector<16x64xf32>
    %cst_40 = arith.constant dense<0.000000e+00> : vector<16xf32>
    %156 = vector.multi_reduction <add>, %155, %cst_40 [1] : vector<16x64xf32> to vector<16xf32>
    %157 = vector.shape_cast %156 : vector<16xf32> to vector<16x1xf32>
    %cst_41 = arith.constant 6.400000e+01 : f32
    %158 = vector.broadcast %cst_41 : f32 to vector<16x1xf32>
    %159 = arith.divf %157, %158 : vector<16x1xf32>
    %160 = vector.broadcast %159 : vector<16x1xf32> to vector<16x64xf32>
    %161 = arith.subf %155, %160 : vector<16x64xf32>
    %162 = arith.mulf %161, %161 : vector<16x64xf32>
    %cst_42 = arith.constant dense<0.000000e+00> : vector<16xf32>
    %163 = vector.multi_reduction <add>, %162, %cst_42 [1] : vector<16x64xf32> to vector<16xf32>
    %164 = vector.shape_cast %163 : vector<16xf32> to vector<16x1xf32>
    %cst_43 = arith.constant 6.400000e+01 : f32
    %165 = vector.broadcast %cst_43 : f32 to vector<16x1xf32>
    %166 = arith.divf %164, %165 : vector<16x1xf32>
    %cst_44 = arith.constant 9.99999996E-13 : f32
    %167 = vector.broadcast %cst_44 : f32 to vector<16x1xf32>
    %168 = arith.addf %166, %167 : vector<16x1xf32>
    %169 = math.rsqrt %168 : vector<16x1xf32>
    %170 = vector.broadcast %169 : vector<16x1xf32> to vector<16x64xf32>
    %171 = arith.mulf %161, %170 : vector<16x64xf32>
    %172 = vector.broadcast %32 : vector<1x64xf32> to vector<16x64xf32>
    %173 = arith.mulf %171, %172 : vector<16x64xf32>
    %174 = vector.broadcast %33 : vector<1x64xf32> to vector<16x64xf32>
    %175 = arith.addf %173, %174 : vector<16x64xf32>
    %176 = arith.truncf %175 : vector<16x64xf32> to vector<16x64xbf16>
    %c0_45 = arith.constant 0 : index
    %c0_46 = arith.constant 0 : index
    %c0_47 = arith.constant 0 : index
    %177 = vector.load %arg6[%c0_45, %c0_46, %c0_47] : memref<4x64x128xbf16, #tpu.memory_space<vmem>>, vector<1x64x128xbf16>
    %178 = vector.shape_cast %177 : vector<1x64x128xbf16> to vector<64x128xbf16>
    %cst_48 = arith.constant dense<0.000000e+00> : vector<16x128xf32>
    %179 = tpu.matmul %176, %178, %cst_48 {dimension_numbers = #tpu.dot_dimension_numbers<[1], [0], [0], [1], [0, 0, 1, 1], [], []>} : vector<16x64xbf16>, vector<64x128xbf16>, vector<16x128xf32> -> vector<16x128xf32>
    %180 = vector.broadcast %34 : vector<1x128xf32> to vector<16x128xf32>
    %181 = arith.addf %179, %180 : vector<16x128xf32>
    %182 = arith.mulf %181, %181 : vector<16x128xf32>
    %183 = arith.mulf %181, %182 : vector<16x128xf32>
    %cst_49 = arith.constant 4.471500e-02 : f32
    %184 = vector.broadcast %cst_49 : f32 to vector<16x128xf32>
    %185 = arith.mulf %184, %183 : vector<16x128xf32>
    %186 = arith.addf %181, %185 : vector<16x128xf32>
    %cst_50 = arith.constant 0.797884583 : f32
    %187 = vector.broadcast %cst_50 : f32 to vector<16x128xf32>
    %188 = arith.mulf %187, %186 : vector<16x128xf32>
    %189 = math.tanh %188 : vector<16x128xf32>
    %cst_51 = arith.constant 1.000000e+00 : f32
    %190 = vector.broadcast %cst_51 : f32 to vector<16x128xf32>
    %191 = arith.addf %190, %189 : vector<16x128xf32>
    %cst_52 = arith.constant 5.000000e-01 : f32
    %192 = vector.broadcast %cst_52 : f32 to vector<16x128xf32>
    %193 = arith.mulf %192, %191 : vector<16x128xf32>
    %194 = arith.mulf %181, %193 : vector<16x128xf32>
    %195 = arith.truncf %194 : vector<16x128xf32> to vector<16x128xbf16>
    %c0_53 = arith.constant 0 : index
    %c0_54 = arith.constant 0 : index
    %c0_55 = arith.constant 0 : index
    %196 = vector.load %arg7[%c0_53, %c0_54, %c0_55] : memref<4x128x64xbf16, #tpu.memory_space<vmem>>, vector<1x128x64xbf16>
    %197 = vector.shape_cast %196 : vector<1x128x64xbf16> to vector<128x64xbf16>
    %cst_56 = arith.constant dense<0.000000e+00> : vector<16x64xf32>
    %198 = tpu.matmul %195, %197, %cst_56 {dimension_numbers = #tpu.dot_dimension_numbers<[1], [0], [0], [1], [0, 0, 1, 1], [], []>} : vector<16x128xbf16>, vector<128x64xbf16>, vector<16x64xf32> -> vector<16x64xf32>
    %199 = vector.broadcast %35 : vector<1x64xf32> to vector<16x64xf32>
    %200 = arith.addf %198, %199 : vector<16x64xf32>
    %201 = arith.addf %200, %175 : vector<16x64xf32>
    %cst_57 = arith.constant dense<0.000000e+00> : vector<16xf32>
    %202 = vector.multi_reduction <add>, %201, %cst_57 [1] : vector<16x64xf32> to vector<16xf32>
    %203 = vector.shape_cast %202 : vector<16xf32> to vector<16x1xf32>
    %cst_58 = arith.constant 6.400000e+01 : f32
    %204 = vector.broadcast %cst_58 : f32 to vector<16x1xf32>
    %205 = arith.divf %203, %204 : vector<16x1xf32>
    %206 = vector.broadcast %205 : vector<16x1xf32> to vector<16x64xf32>
    %207 = arith.subf %201, %206 : vector<16x64xf32>
    %208 = arith.mulf %207, %207 : vector<16x64xf32>
    %cst_59 = arith.constant dense<0.000000e+00> : vector<16xf32>
    %209 = vector.multi_reduction <add>, %208, %cst_59 [1] : vector<16x64xf32> to vector<16xf32>
    %210 = vector.shape_cast %209 : vector<16xf32> to vector<16x1xf32>
    %cst_60 = arith.constant 6.400000e+01 : f32
    %211 = vector.broadcast %cst_60 : f32 to vector<16x1xf32>
    %212 = arith.divf %210, %211 : vector<16x1xf32>
    %cst_61 = arith.constant 9.99999996E-13 : f32
    %213 = vector.broadcast %cst_61 : f32 to vector<16x1xf32>
    %214 = arith.addf %212, %213 : vector<16x1xf32>
    %215 = math.rsqrt %214 : vector<16x1xf32>
    %216 = vector.broadcast %215 : vector<16x1xf32> to vector<16x64xf32>
    %217 = arith.mulf %207, %216 : vector<16x64xf32>
    %218 = vector.broadcast %36 : vector<1x64xf32> to vector<16x64xf32>
    %219 = arith.mulf %217, %218 : vector<16x64xf32>
    %220 = vector.broadcast %37 : vector<1x64xf32> to vector<16x64xf32>
    %221 = arith.addf %219, %220 : vector<16x64xf32>
    %222 = vector.extract_strided_slice %4 {offsets = [11, 0], sizes = [1, 192], strides = [1, 1]} : vector<35x192xf32> to vector<1x192xf32>
    %223 = vector.extract_strided_slice %4 {offsets = [12, 0], sizes = [1, 64], strides = [1, 1]} : vector<35x192xf32> to vector<1x64xf32>
    %224 = vector.extract_strided_slice %4 {offsets = [13, 0], sizes = [1, 64], strides = [1, 1]} : vector<35x192xf32> to vector<1x64xf32>
    %225 = vector.extract_strided_slice %4 {offsets = [14, 0], sizes = [1, 64], strides = [1, 1]} : vector<35x192xf32> to vector<1x64xf32>
    %226 = vector.extract_strided_slice %4 {offsets = [15, 0], sizes = [1, 128], strides = [1, 1]} : vector<35x192xf32> to vector<1x128xf32>
    %227 = vector.extract_strided_slice %4 {offsets = [16, 0], sizes = [1, 64], strides = [1, 1]} : vector<35x192xf32> to vector<1x64xf32>
    %228 = vector.extract_strided_slice %4 {offsets = [17, 0], sizes = [1, 64], strides = [1, 1]} : vector<35x192xf32> to vector<1x64xf32>
    %229 = vector.extract_strided_slice %4 {offsets = [18, 0], sizes = [1, 64], strides = [1, 1]} : vector<35x192xf32> to vector<1x64xf32>
    %230 = arith.truncf %221 : vector<16x64xf32> to vector<16x64xbf16>
    %c1 = arith.constant 1 : index
    %c0_62 = arith.constant 0 : index
    %c0_63 = arith.constant 0 : index
    %231 = vector.load %arg4[%c1, %c0_62, %c0_63] : memref<4x64x192xbf16, #tpu.memory_space<vmem>>, vector<1x64x192xbf16>
    %232 = vector.shape_cast %231 : vector<1x64x192xbf16> to vector<64x192xbf16>
    %cst_64 = arith.constant dense<0.000000e+00> : vector<16x192xf32>
    %233 = tpu.matmul %230, %232, %cst_64 {dimension_numbers = #tpu.dot_dimension_numbers<[1], [0], [0], [1], [0, 0, 1, 1], [], []>} : vector<16x64xbf16>, vector<64x192xbf16>, vector<16x192xf32> -> vector<16x192xf32>
    %234 = vector.broadcast %222 : vector<1x192xf32> to vector<16x192xf32>
    %235 = arith.addf %233, %234 : vector<16x192xf32>
    %c1_65 = arith.constant 1 : index
    %c0_66 = arith.constant 0 : index
    %c0_67 = arith.constant 0 : index
    %236 = vector.load %arg5[%c1_65, %c0_66, %c0_67] : memref<4x64x64xbf16, #tpu.memory_space<vmem>>, vector<1x64x64xbf16>
    %237 = vector.shape_cast %236 : vector<1x64x64xbf16> to vector<64x64xbf16>
    %238 = vector.extract_strided_slice %235 {offsets = [0, 0], sizes = [16, 16], strides = [1, 1]} : vector<16x192xf32> to vector<16x16xf32>
    %239 = vector.shape_cast %238 : vector<16x16xf32> to vector<2x8x16xf32>
    %240 = vector.extract_strided_slice %235 {offsets = [0, 64], sizes = [16, 16], strides = [1, 1]} : vector<16x192xf32> to vector<16x16xf32>
    %241 = vector.shape_cast %240 : vector<16x16xf32> to vector<2x8x16xf32>
    %242 = vector.extract_strided_slice %235 {offsets = [0, 128], sizes = [16, 16], strides = [1, 1]} : vector<16x192xf32> to vector<16x16xf32>
    %243 = vector.shape_cast %242 : vector<16x16xf32> to vector<2x8x16xf32>
    "tpu.trace_start"() <{level = 10 : i32, message = "bqd,bkd->bqk"}> : () -> ()
    %cst_68 = arith.constant dense<0.000000e+00> : vector<2x8x8xf32>
    %244 = tpu.matmul %239, %241, %cst_68 {dimension_numbers = #tpu.dot_dimension_numbers<[2], [2], [1], [1], [0, 0, 0, 1, 1, 1], [0], [0]>} : vector<2x8x16xf32>, vector<2x8x16xf32>, vector<2x8x8xf32> -> vector<2x8x8xf32>
    "tpu.trace_stop"() : () -> ()
    %cst_69 = arith.constant 2.500000e-01 : f32
    %245 = vector.broadcast %cst_69 : f32 to vector<2x8x8xf32>
    %246 = arith.mulf %244, %245 : vector<2x8x8xf32>
    %247 = vector.broadcast %6 : vector<2x1x8xf32> to vector<2x8x8xf32>
    %248 = arith.addf %246, %247 : vector<2x8x8xf32>
    %cst_70 = arith.constant dense<0xFF800000> : vector<2x8xf32>
    %249 = vector.multi_reduction <maximumf>, %248, %cst_70 [2] : vector<2x8x8xf32> to vector<2x8xf32>
    %250 = vector.shape_cast %249 : vector<2x8xf32> to vector<2x8x1xf32>
    %251 = vector.broadcast %250 : vector<2x8x1xf32> to vector<2x8x8xf32>
    %252 = arith.subf %248, %251 : vector<2x8x8xf32>
    %253 = math.exp %252 : vector<2x8x8xf32>
    %cst_71 = arith.constant dense<0.000000e+00> : vector<2x8xf32>
    %254 = vector.multi_reduction <add>, %253, %cst_71 [2] : vector<2x8x8xf32> to vector<2x8xf32>
    %255 = vector.shape_cast %254 : vector<2x8xf32> to vector<2x8x1xf32>
    %256 = tpu.reciprocal %255 {approx = true} : vector<2x8x1xf32> -> vector<2x8x1xf32>
    %257 = vector.broadcast %256 : vector<2x8x1xf32> to vector<2x8x8xf32>
    %258 = arith.mulf %253, %257 : vector<2x8x8xf32>
    "tpu.trace_start"() <{level = 10 : i32, message = "bqk,bkd->bqd"}> : () -> ()
    %cst_72 = arith.constant dense<0.000000e+00> : vector<2x8x16xf32>
    %259 = tpu.matmul %258, %243, %cst_72 {dimension_numbers = #tpu.dot_dimension_numbers<[2], [1], [1], [2], [0, 0, 0, 1, 1, 2], [0], [0]>} : vector<2x8x8xf32>, vector<2x8x16xf32>, vector<2x8x16xf32> -> vector<2x8x16xf32>
    "tpu.trace_stop"() : () -> ()
    %260 = vector.shape_cast %259 : vector<2x8x16xf32> to vector<16x16xf32>
    %261 = arith.truncf %260 : vector<16x16xf32> to vector<16x16xbf16>
    %262 = vector.extract_strided_slice %237 {offsets = [0, 0], sizes = [16, 64], strides = [1, 1]} : vector<64x64xbf16> to vector<16x64xbf16>
    %cst_73 = arith.constant dense<0.000000e+00> : vector<16x64xf32>
    %263 = tpu.matmul %261, %262, %cst_73 {dimension_numbers = #tpu.dot_dimension_numbers<[1], [0], [0], [1], [0, 0, 1, 1], [], []>} : vector<16x16xbf16>, vector<16x64xbf16>, vector<16x64xf32> -> vector<16x64xf32>
    %264 = vector.extract_strided_slice %235 {offsets = [0, 16], sizes = [16, 16], strides = [1, 1]} : vector<16x192xf32> to vector<16x16xf32>
    %265 = vector.shape_cast %264 : vector<16x16xf32> to vector<2x8x16xf32>
    %266 = vector.extract_strided_slice %235 {offsets = [0, 80], sizes = [16, 16], strides = [1, 1]} : vector<16x192xf32> to vector<16x16xf32>
    %267 = vector.shape_cast %266 : vector<16x16xf32> to vector<2x8x16xf32>
    %268 = vector.extract_strided_slice %235 {offsets = [0, 144], sizes = [16, 16], strides = [1, 1]} : vector<16x192xf32> to vector<16x16xf32>
    %269 = vector.shape_cast %268 : vector<16x16xf32> to vector<2x8x16xf32>
    "tpu.trace_start"() <{level = 10 : i32, message = "bqd,bkd->bqk"}> : () -> ()
    %cst_74 = arith.constant dense<0.000000e+00> : vector<2x8x8xf32>
    %270 = tpu.matmul %265, %267, %cst_74 {dimension_numbers = #tpu.dot_dimension_numbers<[2], [2], [1], [1], [0, 0, 0, 1, 1, 1], [0], [0]>} : vector<2x8x16xf32>, vector<2x8x16xf32>, vector<2x8x8xf32> -> vector<2x8x8xf32>
    "tpu.trace_stop"() : () -> ()
    %cst_75 = arith.constant 2.500000e-01 : f32
    %271 = vector.broadcast %cst_75 : f32 to vector<2x8x8xf32>
    %272 = arith.mulf %270, %271 : vector<2x8x8xf32>
    %273 = vector.broadcast %6 : vector<2x1x8xf32> to vector<2x8x8xf32>
    %274 = arith.addf %272, %273 : vector<2x8x8xf32>
    %cst_76 = arith.constant dense<0xFF800000> : vector<2x8xf32>
    %275 = vector.multi_reduction <maximumf>, %274, %cst_76 [2] : vector<2x8x8xf32> to vector<2x8xf32>
    %276 = vector.shape_cast %275 : vector<2x8xf32> to vector<2x8x1xf32>
    %277 = vector.broadcast %276 : vector<2x8x1xf32> to vector<2x8x8xf32>
    %278 = arith.subf %274, %277 : vector<2x8x8xf32>
    %279 = math.exp %278 : vector<2x8x8xf32>
    %cst_77 = arith.constant dense<0.000000e+00> : vector<2x8xf32>
    %280 = vector.multi_reduction <add>, %279, %cst_77 [2] : vector<2x8x8xf32> to vector<2x8xf32>
    %281 = vector.shape_cast %280 : vector<2x8xf32> to vector<2x8x1xf32>
    %282 = tpu.reciprocal %281 {approx = true} : vector<2x8x1xf32> -> vector<2x8x1xf32>
    %283 = vector.broadcast %282 : vector<2x8x1xf32> to vector<2x8x8xf32>
    %284 = arith.mulf %279, %283 : vector<2x8x8xf32>
    "tpu.trace_start"() <{level = 10 : i32, message = "bqk,bkd->bqd"}> : () -> ()
    %cst_78 = arith.constant dense<0.000000e+00> : vector<2x8x16xf32>
    %285 = tpu.matmul %284, %269, %cst_78 {dimension_numbers = #tpu.dot_dimension_numbers<[2], [1], [1], [2], [0, 0, 0, 1, 1, 2], [0], [0]>} : vector<2x8x8xf32>, vector<2x8x16xf32>, vector<2x8x16xf32> -> vector<2x8x16xf32>
    "tpu.trace_stop"() : () -> ()
    %286 = vector.shape_cast %285 : vector<2x8x16xf32> to vector<16x16xf32>
    %287 = arith.truncf %286 : vector<16x16xf32> to vector<16x16xbf16>
    %288 = vector.extract_strided_slice %237 {offsets = [16, 0], sizes = [16, 64], strides = [1, 1]} : vector<64x64xbf16> to vector<16x64xbf16>
    %cst_79 = arith.constant dense<0.000000e+00> : vector<16x64xf32>
    %289 = tpu.matmul %287, %288, %cst_79 {dimension_numbers = #tpu.dot_dimension_numbers<[1], [0], [0], [1], [0, 0, 1, 1], [], []>} : vector<16x16xbf16>, vector<16x64xbf16>, vector<16x64xf32> -> vector<16x64xf32>
    %290 = arith.addf %263, %289 : vector<16x64xf32>
    %291 = vector.extract_strided_slice %235 {offsets = [0, 32], sizes = [16, 16], strides = [1, 1]} : vector<16x192xf32> to vector<16x16xf32>
    %292 = vector.shape_cast %291 : vector<16x16xf32> to vector<2x8x16xf32>
    %293 = vector.extract_strided_slice %235 {offsets = [0, 96], sizes = [16, 16], strides = [1, 1]} : vector<16x192xf32> to vector<16x16xf32>
    %294 = vector.shape_cast %293 : vector<16x16xf32> to vector<2x8x16xf32>
    %295 = vector.extract_strided_slice %235 {offsets = [0, 160], sizes = [16, 16], strides = [1, 1]} : vector<16x192xf32> to vector<16x16xf32>
    %296 = vector.shape_cast %295 : vector<16x16xf32> to vector<2x8x16xf32>
    "tpu.trace_start"() <{level = 10 : i32, message = "bqd,bkd->bqk"}> : () -> ()
    %cst_80 = arith.constant dense<0.000000e+00> : vector<2x8x8xf32>
    %297 = tpu.matmul %292, %294, %cst_80 {dimension_numbers = #tpu.dot_dimension_numbers<[2], [2], [1], [1], [0, 0, 0, 1, 1, 1], [0], [0]>} : vector<2x8x16xf32>, vector<2x8x16xf32>, vector<2x8x8xf32> -> vector<2x8x8xf32>
    "tpu.trace_stop"() : () -> ()
    %cst_81 = arith.constant 2.500000e-01 : f32
    %298 = vector.broadcast %cst_81 : f32 to vector<2x8x8xf32>
    %299 = arith.mulf %297, %298 : vector<2x8x8xf32>
    %300 = vector.broadcast %6 : vector<2x1x8xf32> to vector<2x8x8xf32>
    %301 = arith.addf %299, %300 : vector<2x8x8xf32>
    %cst_82 = arith.constant dense<0xFF800000> : vector<2x8xf32>
    %302 = vector.multi_reduction <maximumf>, %301, %cst_82 [2] : vector<2x8x8xf32> to vector<2x8xf32>
    %303 = vector.shape_cast %302 : vector<2x8xf32> to vector<2x8x1xf32>
    %304 = vector.broadcast %303 : vector<2x8x1xf32> to vector<2x8x8xf32>
    %305 = arith.subf %301, %304 : vector<2x8x8xf32>
    %306 = math.exp %305 : vector<2x8x8xf32>
    %cst_83 = arith.constant dense<0.000000e+00> : vector<2x8xf32>
    %307 = vector.multi_reduction <add>, %306, %cst_83 [2] : vector<2x8x8xf32> to vector<2x8xf32>
    %308 = vector.shape_cast %307 : vector<2x8xf32> to vector<2x8x1xf32>
    %309 = tpu.reciprocal %308 {approx = true} : vector<2x8x1xf32> -> vector<2x8x1xf32>
    %310 = vector.broadcast %309 : vector<2x8x1xf32> to vector<2x8x8xf32>
    %311 = arith.mulf %306, %310 : vector<2x8x8xf32>
    "tpu.trace_start"() <{level = 10 : i32, message = "bqk,bkd->bqd"}> : () -> ()
    %cst_84 = arith.constant dense<0.000000e+00> : vector<2x8x16xf32>
    %312 = tpu.matmul %311, %296, %cst_84 {dimension_numbers = #tpu.dot_dimension_numbers<[2], [1], [1], [2], [0, 0, 0, 1, 1, 2], [0], [0]>} : vector<2x8x8xf32>, vector<2x8x16xf32>, vector<2x8x16xf32> -> vector<2x8x16xf32>
    "tpu.trace_stop"() : () -> ()
    %313 = vector.shape_cast %312 : vector<2x8x16xf32> to vector<16x16xf32>
    %314 = arith.truncf %313 : vector<16x16xf32> to vector<16x16xbf16>
    %315 = vector.extract_strided_slice %237 {offsets = [32, 0], sizes = [16, 64], strides = [1, 1]} : vector<64x64xbf16> to vector<16x64xbf16>
    %cst_85 = arith.constant dense<0.000000e+00> : vector<16x64xf32>
    %316 = tpu.matmul %314, %315, %cst_85 {dimension_numbers = #tpu.dot_dimension_numbers<[1], [0], [0], [1], [0, 0, 1, 1], [], []>} : vector<16x16xbf16>, vector<16x64xbf16>, vector<16x64xf32> -> vector<16x64xf32>
    %317 = arith.addf %290, %316 : vector<16x64xf32>
    %318 = vector.extract_strided_slice %235 {offsets = [0, 48], sizes = [16, 16], strides = [1, 1]} : vector<16x192xf32> to vector<16x16xf32>
    %319 = vector.shape_cast %318 : vector<16x16xf32> to vector<2x8x16xf32>
    %320 = vector.extract_strided_slice %235 {offsets = [0, 112], sizes = [16, 16], strides = [1, 1]} : vector<16x192xf32> to vector<16x16xf32>
    %321 = vector.shape_cast %320 : vector<16x16xf32> to vector<2x8x16xf32>
    %322 = vector.extract_strided_slice %235 {offsets = [0, 176], sizes = [16, 16], strides = [1, 1]} : vector<16x192xf32> to vector<16x16xf32>
    %323 = vector.shape_cast %322 : vector<16x16xf32> to vector<2x8x16xf32>
    "tpu.trace_start"() <{level = 10 : i32, message = "bqd,bkd->bqk"}> : () -> ()
    %cst_86 = arith.constant dense<0.000000e+00> : vector<2x8x8xf32>
    %324 = tpu.matmul %319, %321, %cst_86 {dimension_numbers = #tpu.dot_dimension_numbers<[2], [2], [1], [1], [0, 0, 0, 1, 1, 1], [0], [0]>} : vector<2x8x16xf32>, vector<2x8x16xf32>, vector<2x8x8xf32> -> vector<2x8x8xf32>
    "tpu.trace_stop"() : () -> ()
    %cst_87 = arith.constant 2.500000e-01 : f32
    %325 = vector.broadcast %cst_87 : f32 to vector<2x8x8xf32>
    %326 = arith.mulf %324, %325 : vector<2x8x8xf32>
    %327 = vector.broadcast %6 : vector<2x1x8xf32> to vector<2x8x8xf32>
    %328 = arith.addf %326, %327 : vector<2x8x8xf32>
    %cst_88 = arith.constant dense<0xFF800000> : vector<2x8xf32>
    %329 = vector.multi_reduction <maximumf>, %328, %cst_88 [2] : vector<2x8x8xf32> to vector<2x8xf32>
    %330 = vector.shape_cast %329 : vector<2x8xf32> to vector<2x8x1xf32>
    %331 = vector.broadcast %330 : vector<2x8x1xf32> to vector<2x8x8xf32>
    %332 = arith.subf %328, %331 : vector<2x8x8xf32>
    %333 = math.exp %332 : vector<2x8x8xf32>
    %cst_89 = arith.constant dense<0.000000e+00> : vector<2x8xf32>
    %334 = vector.multi_reduction <add>, %333, %cst_89 [2] : vector<2x8x8xf32> to vector<2x8xf32>
    %335 = vector.shape_cast %334 : vector<2x8xf32> to vector<2x8x1xf32>
    %336 = tpu.reciprocal %335 {approx = true} : vector<2x8x1xf32> -> vector<2x8x1xf32>
    %337 = vector.broadcast %336 : vector<2x8x1xf32> to vector<2x8x8xf32>
    %338 = arith.mulf %333, %337 : vector<2x8x8xf32>
    "tpu.trace_start"() <{level = 10 : i32, message = "bqk,bkd->bqd"}> : () -> ()
    %cst_90 = arith.constant dense<0.000000e+00> : vector<2x8x16xf32>
    %339 = tpu.matmul %338, %323, %cst_90 {dimension_numbers = #tpu.dot_dimension_numbers<[2], [1], [1], [2], [0, 0, 0, 1, 1, 2], [0], [0]>} : vector<2x8x8xf32>, vector<2x8x16xf32>, vector<2x8x16xf32> -> vector<2x8x16xf32>
    "tpu.trace_stop"() : () -> ()
    %340 = vector.shape_cast %339 : vector<2x8x16xf32> to vector<16x16xf32>
    %341 = arith.truncf %340 : vector<16x16xf32> to vector<16x16xbf16>
    %342 = vector.extract_strided_slice %237 {offsets = [48, 0], sizes = [16, 64], strides = [1, 1]} : vector<64x64xbf16> to vector<16x64xbf16>
    %cst_91 = arith.constant dense<0.000000e+00> : vector<16x64xf32>
    %343 = tpu.matmul %341, %342, %cst_91 {dimension_numbers = #tpu.dot_dimension_numbers<[1], [0], [0], [1], [0, 0, 1, 1], [], []>} : vector<16x16xbf16>, vector<16x64xbf16>, vector<16x64xf32> -> vector<16x64xf32>
    %344 = arith.addf %317, %343 : vector<16x64xf32>
    %345 = vector.broadcast %223 : vector<1x64xf32> to vector<16x64xf32>
    %346 = arith.addf %344, %345 : vector<16x64xf32>
    %347 = arith.addf %346, %221 : vector<16x64xf32>
    %cst_92 = arith.constant dense<0.000000e+00> : vector<16xf32>
    %348 = vector.multi_reduction <add>, %347, %cst_92 [1] : vector<16x64xf32> to vector<16xf32>
    %349 = vector.shape_cast %348 : vector<16xf32> to vector<16x1xf32>
    %cst_93 = arith.constant 6.400000e+01 : f32
    %350 = vector.broadcast %cst_93 : f32 to vector<16x1xf32>
    %351 = arith.divf %349, %350 : vector<16x1xf32>
    %352 = vector.broadcast %351 : vector<16x1xf32> to vector<16x64xf32>
    %353 = arith.subf %347, %352 : vector<16x64xf32>
    %354 = arith.mulf %353, %353 : vector<16x64xf32>
    %cst_94 = arith.constant dense<0.000000e+00> : vector<16xf32>
    %355 = vector.multi_reduction <add>, %354, %cst_94 [1] : vector<16x64xf32> to vector<16xf32>
    %356 = vector.shape_cast %355 : vector<16xf32> to vector<16x1xf32>
    %cst_95 = arith.constant 6.400000e+01 : f32
    %357 = vector.broadcast %cst_95 : f32 to vector<16x1xf32>
    %358 = arith.divf %356, %357 : vector<16x1xf32>
    %cst_96 = arith.constant 9.99999996E-13 : f32
    %359 = vector.broadcast %cst_96 : f32 to vector<16x1xf32>
    %360 = arith.addf %358, %359 : vector<16x1xf32>
    %361 = math.rsqrt %360 : vector<16x1xf32>
    %362 = vector.broadcast %361 : vector<16x1xf32> to vector<16x64xf32>
    %363 = arith.mulf %353, %362 : vector<16x64xf32>
    %364 = vector.broadcast %224 : vector<1x64xf32> to vector<16x64xf32>
    %365 = arith.mulf %363, %364 : vector<16x64xf32>
    %366 = vector.broadcast %225 : vector<1x64xf32> to vector<16x64xf32>
    %367 = arith.addf %365, %366 : vector<16x64xf32>
    %368 = arith.truncf %367 : vector<16x64xf32> to vector<16x64xbf16>
    %c1_97 = arith.constant 1 : index
    %c0_98 = arith.constant 0 : index
    %c0_99 = arith.constant 0 : index
    %369 = vector.load %arg6[%c1_97, %c0_98, %c0_99] : memref<4x64x128xbf16, #tpu.memory_space<vmem>>, vector<1x64x128xbf16>
    %370 = vector.shape_cast %369 : vector<1x64x128xbf16> to vector<64x128xbf16>
    %cst_100 = arith.constant dense<0.000000e+00> : vector<16x128xf32>
    %371 = tpu.matmul %368, %370, %cst_100 {dimension_numbers = #tpu.dot_dimension_numbers<[1], [0], [0], [1], [0, 0, 1, 1], [], []>} : vector<16x64xbf16>, vector<64x128xbf16>, vector<16x128xf32> -> vector<16x128xf32>
    %372 = vector.broadcast %226 : vector<1x128xf32> to vector<16x128xf32>
    %373 = arith.addf %371, %372 : vector<16x128xf32>
    %374 = arith.mulf %373, %373 : vector<16x128xf32>
    %375 = arith.mulf %373, %374 : vector<16x128xf32>
    %cst_101 = arith.constant 4.471500e-02 : f32
    %376 = vector.broadcast %cst_101 : f32 to vector<16x128xf32>
    %377 = arith.mulf %376, %375 : vector<16x128xf32>
    %378 = arith.addf %373, %377 : vector<16x128xf32>
    %cst_102 = arith.constant 0.797884583 : f32
    %379 = vector.broadcast %cst_102 : f32 to vector<16x128xf32>
    %380 = arith.mulf %379, %378 : vector<16x128xf32>
    %381 = math.tanh %380 : vector<16x128xf32>
    %cst_103 = arith.constant 1.000000e+00 : f32
    %382 = vector.broadcast %cst_103 : f32 to vector<16x128xf32>
    %383 = arith.addf %382, %381 : vector<16x128xf32>
    %cst_104 = arith.constant 5.000000e-01 : f32
    %384 = vector.broadcast %cst_104 : f32 to vector<16x128xf32>
    %385 = arith.mulf %384, %383 : vector<16x128xf32>
    %386 = arith.mulf %373, %385 : vector<16x128xf32>
    %387 = arith.truncf %386 : vector<16x128xf32> to vector<16x128xbf16>
    %c1_105 = arith.constant 1 : index
    %c0_106 = arith.constant 0 : index
    %c0_107 = arith.constant 0 : index
    %388 = vector.load %arg7[%c1_105, %c0_106, %c0_107] : memref<4x128x64xbf16, #tpu.memory_space<vmem>>, vector<1x128x64xbf16>
    %389 = vector.shape_cast %388 : vector<1x128x64xbf16> to vector<128x64xbf16>
    %cst_108 = arith.constant dense<0.000000e+00> : vector<16x64xf32>
    %390 = tpu.matmul %387, %389, %cst_108 {dimension_numbers = #tpu.dot_dimension_numbers<[1], [0], [0], [1], [0, 0, 1, 1], [], []>} : vector<16x128xbf16>, vector<128x64xbf16>, vector<16x64xf32> -> vector<16x64xf32>
    %391 = vector.broadcast %227 : vector<1x64xf32> to vector<16x64xf32>
    %392 = arith.addf %390, %391 : vector<16x64xf32>
    %393 = arith.addf %392, %367 : vector<16x64xf32>
    %cst_109 = arith.constant dense<0.000000e+00> : vector<16xf32>
    %394 = vector.multi_reduction <add>, %393, %cst_109 [1] : vector<16x64xf32> to vector<16xf32>
    %395 = vector.shape_cast %394 : vector<16xf32> to vector<16x1xf32>
    %cst_110 = arith.constant 6.400000e+01 : f32
    %396 = vector.broadcast %cst_110 : f32 to vector<16x1xf32>
    %397 = arith.divf %395, %396 : vector<16x1xf32>
    %398 = vector.broadcast %397 : vector<16x1xf32> to vector<16x64xf32>
    %399 = arith.subf %393, %398 : vector<16x64xf32>
    %400 = arith.mulf %399, %399 : vector<16x64xf32>
    %cst_111 = arith.constant dense<0.000000e+00> : vector<16xf32>
    %401 = vector.multi_reduction <add>, %400, %cst_111 [1] : vector<16x64xf32> to vector<16xf32>
    %402 = vector.shape_cast %401 : vector<16xf32> to vector<16x1xf32>
    %cst_112 = arith.constant 6.400000e+01 : f32
    %403 = vector.broadcast %cst_112 : f32 to vector<16x1xf32>
    %404 = arith.divf %402, %403 : vector<16x1xf32>
    %cst_113 = arith.constant 9.99999996E-13 : f32
    %405 = vector.broadcast %cst_113 : f32 to vector<16x1xf32>
    %406 = arith.addf %404, %405 : vector<16x1xf32>
    %407 = math.rsqrt %406 : vector<16x1xf32>
    %408 = vector.broadcast %407 : vector<16x1xf32> to vector<16x64xf32>
    %409 = arith.mulf %399, %408 : vector<16x64xf32>
    %410 = vector.broadcast %228 : vector<1x64xf32> to vector<16x64xf32>
    %411 = arith.mulf %409, %410 : vector<16x64xf32>
    %412 = vector.broadcast %229 : vector<1x64xf32> to vector<16x64xf32>
    %413 = arith.addf %411, %412 : vector<16x64xf32>
    %414 = vector.extract_strided_slice %4 {offsets = [19, 0], sizes = [1, 192], strides = [1, 1]} : vector<35x192xf32> to vector<1x192xf32>
    %415 = vector.extract_strided_slice %4 {offsets = [20, 0], sizes = [1, 64], strides = [1, 1]} : vector<35x192xf32> to vector<1x64xf32>
    %416 = vector.extract_strided_slice %4 {offsets = [21, 0], sizes = [1, 64], strides = [1, 1]} : vector<35x192xf32> to vector<1x64xf32>
    %417 = vector.extract_strided_slice %4 {offsets = [22, 0], sizes = [1, 64], strides = [1, 1]} : vector<35x192xf32> to vector<1x64xf32>
    %418 = vector.extract_strided_slice %4 {offsets = [23, 0], sizes = [1, 128], strides = [1, 1]} : vector<35x192xf32> to vector<1x128xf32>
    %419 = vector.extract_strided_slice %4 {offsets = [24, 0], sizes = [1, 64], strides = [1, 1]} : vector<35x192xf32> to vector<1x64xf32>
    %420 = vector.extract_strided_slice %4 {offsets = [25, 0], sizes = [1, 64], strides = [1, 1]} : vector<35x192xf32> to vector<1x64xf32>
    %421 = vector.extract_strided_slice %4 {offsets = [26, 0], sizes = [1, 64], strides = [1, 1]} : vector<35x192xf32> to vector<1x64xf32>
    %422 = arith.truncf %413 : vector<16x64xf32> to vector<16x64xbf16>
    %c2 = arith.constant 2 : index
    %c0_114 = arith.constant 0 : index
    %c0_115 = arith.constant 0 : index
    %423 = vector.load %arg4[%c2, %c0_114, %c0_115] : memref<4x64x192xbf16, #tpu.memory_space<vmem>>, vector<1x64x192xbf16>
    %424 = vector.shape_cast %423 : vector<1x64x192xbf16> to vector<64x192xbf16>
    %cst_116 = arith.constant dense<0.000000e+00> : vector<16x192xf32>
    %425 = tpu.matmul %422, %424, %cst_116 {dimension_numbers = #tpu.dot_dimension_numbers<[1], [0], [0], [1], [0, 0, 1, 1], [], []>} : vector<16x64xbf16>, vector<64x192xbf16>, vector<16x192xf32> -> vector<16x192xf32>
    %426 = vector.broadcast %414 : vector<1x192xf32> to vector<16x192xf32>
    %427 = arith.addf %425, %426 : vector<16x192xf32>
    %c2_117 = arith.constant 2 : index
    %c0_118 = arith.constant 0 : index
    %c0_119 = arith.constant 0 : index
    %428 = vector.load %arg5[%c2_117, %c0_118, %c0_119] : memref<4x64x64xbf16, #tpu.memory_space<vmem>>, vector<1x64x64xbf16>
    %429 = vector.shape_cast %428 : vector<1x64x64xbf16> to vector<64x64xbf16>
    %430 = vector.extract_strided_slice %427 {offsets = [0, 0], sizes = [16, 16], strides = [1, 1]} : vector<16x192xf32> to vector<16x16xf32>
    %431 = vector.shape_cast %430 : vector<16x16xf32> to vector<2x8x16xf32>
    %432 = vector.extract_strided_slice %427 {offsets = [0, 64], sizes = [16, 16], strides = [1, 1]} : vector<16x192xf32> to vector<16x16xf32>
    %433 = vector.shape_cast %432 : vector<16x16xf32> to vector<2x8x16xf32>
    %434 = vector.extract_strided_slice %427 {offsets = [0, 128], sizes = [16, 16], strides = [1, 1]} : vector<16x192xf32> to vector<16x16xf32>
    %435 = vector.shape_cast %434 : vector<16x16xf32> to vector<2x8x16xf32>
    "tpu.trace_start"() <{level = 10 : i32, message = "bqd,bkd->bqk"}> : () -> ()
    %cst_120 = arith.constant dense<0.000000e+00> : vector<2x8x8xf32>
    %436 = tpu.matmul %431, %433, %cst_120 {dimension_numbers = #tpu.dot_dimension_numbers<[2], [2], [1], [1], [0, 0, 0, 1, 1, 1], [0], [0]>} : vector<2x8x16xf32>, vector<2x8x16xf32>, vector<2x8x8xf32> -> vector<2x8x8xf32>
    "tpu.trace_stop"() : () -> ()
    %cst_121 = arith.constant 2.500000e-01 : f32
    %437 = vector.broadcast %cst_121 : f32 to vector<2x8x8xf32>
    %438 = arith.mulf %436, %437 : vector<2x8x8xf32>
    %439 = vector.broadcast %6 : vector<2x1x8xf32> to vector<2x8x8xf32>
    %440 = arith.addf %438, %439 : vector<2x8x8xf32>
    %cst_122 = arith.constant dense<0xFF800000> : vector<2x8xf32>
    %441 = vector.multi_reduction <maximumf>, %440, %cst_122 [2] : vector<2x8x8xf32> to vector<2x8xf32>
    %442 = vector.shape_cast %441 : vector<2x8xf32> to vector<2x8x1xf32>
    %443 = vector.broadcast %442 : vector<2x8x1xf32> to vector<2x8x8xf32>
    %444 = arith.subf %440, %443 : vector<2x8x8xf32>
    %445 = math.exp %444 : vector<2x8x8xf32>
    %cst_123 = arith.constant dense<0.000000e+00> : vector<2x8xf32>
    %446 = vector.multi_reduction <add>, %445, %cst_123 [2] : vector<2x8x8xf32> to vector<2x8xf32>
    %447 = vector.shape_cast %446 : vector<2x8xf32> to vector<2x8x1xf32>
    %448 = tpu.reciprocal %447 {approx = true} : vector<2x8x1xf32> -> vector<2x8x1xf32>
    %449 = vector.broadcast %448 : vector<2x8x1xf32> to vector<2x8x8xf32>
    %450 = arith.mulf %445, %449 : vector<2x8x8xf32>
    "tpu.trace_start"() <{level = 10 : i32, message = "bqk,bkd->bqd"}> : () -> ()
    %cst_124 = arith.constant dense<0.000000e+00> : vector<2x8x16xf32>
    %451 = tpu.matmul %450, %435, %cst_124 {dimension_numbers = #tpu.dot_dimension_numbers<[2], [1], [1], [2], [0, 0, 0, 1, 1, 2], [0], [0]>} : vector<2x8x8xf32>, vector<2x8x16xf32>, vector<2x8x16xf32> -> vector<2x8x16xf32>
    "tpu.trace_stop"() : () -> ()
    %452 = vector.shape_cast %451 : vector<2x8x16xf32> to vector<16x16xf32>
    %453 = arith.truncf %452 : vector<16x16xf32> to vector<16x16xbf16>
    %454 = vector.extract_strided_slice %429 {offsets = [0, 0], sizes = [16, 64], strides = [1, 1]} : vector<64x64xbf16> to vector<16x64xbf16>
    %cst_125 = arith.constant dense<0.000000e+00> : vector<16x64xf32>
    %455 = tpu.matmul %453, %454, %cst_125 {dimension_numbers = #tpu.dot_dimension_numbers<[1], [0], [0], [1], [0, 0, 1, 1], [], []>} : vector<16x16xbf16>, vector<16x64xbf16>, vector<16x64xf32> -> vector<16x64xf32>
    %456 = vector.extract_strided_slice %427 {offsets = [0, 16], sizes = [16, 16], strides = [1, 1]} : vector<16x192xf32> to vector<16x16xf32>
    %457 = vector.shape_cast %456 : vector<16x16xf32> to vector<2x8x16xf32>
    %458 = vector.extract_strided_slice %427 {offsets = [0, 80], sizes = [16, 16], strides = [1, 1]} : vector<16x192xf32> to vector<16x16xf32>
    %459 = vector.shape_cast %458 : vector<16x16xf32> to vector<2x8x16xf32>
    %460 = vector.extract_strided_slice %427 {offsets = [0, 144], sizes = [16, 16], strides = [1, 1]} : vector<16x192xf32> to vector<16x16xf32>
    %461 = vector.shape_cast %460 : vector<16x16xf32> to vector<2x8x16xf32>
    "tpu.trace_start"() <{level = 10 : i32, message = "bqd,bkd->bqk"}> : () -> ()
    %cst_126 = arith.constant dense<0.000000e+00> : vector<2x8x8xf32>
    %462 = tpu.matmul %457, %459, %cst_126 {dimension_numbers = #tpu.dot_dimension_numbers<[2], [2], [1], [1], [0, 0, 0, 1, 1, 1], [0], [0]>} : vector<2x8x16xf32>, vector<2x8x16xf32>, vector<2x8x8xf32> -> vector<2x8x8xf32>
    "tpu.trace_stop"() : () -> ()
    %cst_127 = arith.constant 2.500000e-01 : f32
    %463 = vector.broadcast %cst_127 : f32 to vector<2x8x8xf32>
    %464 = arith.mulf %462, %463 : vector<2x8x8xf32>
    %465 = vector.broadcast %6 : vector<2x1x8xf32> to vector<2x8x8xf32>
    %466 = arith.addf %464, %465 : vector<2x8x8xf32>
    %cst_128 = arith.constant dense<0xFF800000> : vector<2x8xf32>
    %467 = vector.multi_reduction <maximumf>, %466, %cst_128 [2] : vector<2x8x8xf32> to vector<2x8xf32>
    %468 = vector.shape_cast %467 : vector<2x8xf32> to vector<2x8x1xf32>
    %469 = vector.broadcast %468 : vector<2x8x1xf32> to vector<2x8x8xf32>
    %470 = arith.subf %466, %469 : vector<2x8x8xf32>
    %471 = math.exp %470 : vector<2x8x8xf32>
    %cst_129 = arith.constant dense<0.000000e+00> : vector<2x8xf32>
    %472 = vector.multi_reduction <add>, %471, %cst_129 [2] : vector<2x8x8xf32> to vector<2x8xf32>
    %473 = vector.shape_cast %472 : vector<2x8xf32> to vector<2x8x1xf32>
    %474 = tpu.reciprocal %473 {approx = true} : vector<2x8x1xf32> -> vector<2x8x1xf32>
    %475 = vector.broadcast %474 : vector<2x8x1xf32> to vector<2x8x8xf32>
    %476 = arith.mulf %471, %475 : vector<2x8x8xf32>
    "tpu.trace_start"() <{level = 10 : i32, message = "bqk,bkd->bqd"}> : () -> ()
    %cst_130 = arith.constant dense<0.000000e+00> : vector<2x8x16xf32>
    %477 = tpu.matmul %476, %461, %cst_130 {dimension_numbers = #tpu.dot_dimension_numbers<[2], [1], [1], [2], [0, 0, 0, 1, 1, 2], [0], [0]>} : vector<2x8x8xf32>, vector<2x8x16xf32>, vector<2x8x16xf32> -> vector<2x8x16xf32>
    "tpu.trace_stop"() : () -> ()
    %478 = vector.shape_cast %477 : vector<2x8x16xf32> to vector<16x16xf32>
    %479 = arith.truncf %478 : vector<16x16xf32> to vector<16x16xbf16>
    %480 = vector.extract_strided_slice %429 {offsets = [16, 0], sizes = [16, 64], strides = [1, 1]} : vector<64x64xbf16> to vector<16x64xbf16>
    %cst_131 = arith.constant dense<0.000000e+00> : vector<16x64xf32>
    %481 = tpu.matmul %479, %480, %cst_131 {dimension_numbers = #tpu.dot_dimension_numbers<[1], [0], [0], [1], [0, 0, 1, 1], [], []>} : vector<16x16xbf16>, vector<16x64xbf16>, vector<16x64xf32> -> vector<16x64xf32>
    %482 = arith.addf %455, %481 : vector<16x64xf32>
    %483 = vector.extract_strided_slice %427 {offsets = [0, 32], sizes = [16, 16], strides = [1, 1]} : vector<16x192xf32> to vector<16x16xf32>
    %484 = vector.shape_cast %483 : vector<16x16xf32> to vector<2x8x16xf32>
    %485 = vector.extract_strided_slice %427 {offsets = [0, 96], sizes = [16, 16], strides = [1, 1]} : vector<16x192xf32> to vector<16x16xf32>
    %486 = vector.shape_cast %485 : vector<16x16xf32> to vector<2x8x16xf32>
    %487 = vector.extract_strided_slice %427 {offsets = [0, 160], sizes = [16, 16], strides = [1, 1]} : vector<16x192xf32> to vector<16x16xf32>
    %488 = vector.shape_cast %487 : vector<16x16xf32> to vector<2x8x16xf32>
    "tpu.trace_start"() <{level = 10 : i32, message = "bqd,bkd->bqk"}> : () -> ()
    %cst_132 = arith.constant dense<0.000000e+00> : vector<2x8x8xf32>
    %489 = tpu.matmul %484, %486, %cst_132 {dimension_numbers = #tpu.dot_dimension_numbers<[2], [2], [1], [1], [0, 0, 0, 1, 1, 1], [0], [0]>} : vector<2x8x16xf32>, vector<2x8x16xf32>, vector<2x8x8xf32> -> vector<2x8x8xf32>
    "tpu.trace_stop"() : () -> ()
    %cst_133 = arith.constant 2.500000e-01 : f32
    %490 = vector.broadcast %cst_133 : f32 to vector<2x8x8xf32>
    %491 = arith.mulf %489, %490 : vector<2x8x8xf32>
    %492 = vector.broadcast %6 : vector<2x1x8xf32> to vector<2x8x8xf32>
    %493 = arith.addf %491, %492 : vector<2x8x8xf32>
    %cst_134 = arith.constant dense<0xFF800000> : vector<2x8xf32>
    %494 = vector.multi_reduction <maximumf>, %493, %cst_134 [2] : vector<2x8x8xf32> to vector<2x8xf32>
    %495 = vector.shape_cast %494 : vector<2x8xf32> to vector<2x8x1xf32>
    %496 = vector.broadcast %495 : vector<2x8x1xf32> to vector<2x8x8xf32>
    %497 = arith.subf %493, %496 : vector<2x8x8xf32>
    %498 = math.exp %497 : vector<2x8x8xf32>
    %cst_135 = arith.constant dense<0.000000e+00> : vector<2x8xf32>
    %499 = vector.multi_reduction <add>, %498, %cst_135 [2] : vector<2x8x8xf32> to vector<2x8xf32>
    %500 = vector.shape_cast %499 : vector<2x8xf32> to vector<2x8x1xf32>
    %501 = tpu.reciprocal %500 {approx = true} : vector<2x8x1xf32> -> vector<2x8x1xf32>
    %502 = vector.broadcast %501 : vector<2x8x1xf32> to vector<2x8x8xf32>
    %503 = arith.mulf %498, %502 : vector<2x8x8xf32>
    "tpu.trace_start"() <{level = 10 : i32, message = "bqk,bkd->bqd"}> : () -> ()
    %cst_136 = arith.constant dense<0.000000e+00> : vector<2x8x16xf32>
    %504 = tpu.matmul %503, %488, %cst_136 {dimension_numbers = #tpu.dot_dimension_numbers<[2], [1], [1], [2], [0, 0, 0, 1, 1, 2], [0], [0]>} : vector<2x8x8xf32>, vector<2x8x16xf32>, vector<2x8x16xf32> -> vector<2x8x16xf32>
    "tpu.trace_stop"() : () -> ()
    %505 = vector.shape_cast %504 : vector<2x8x16xf32> to vector<16x16xf32>
    %506 = arith.truncf %505 : vector<16x16xf32> to vector<16x16xbf16>
    %507 = vector.extract_strided_slice %429 {offsets = [32, 0], sizes = [16, 64], strides = [1, 1]} : vector<64x64xbf16> to vector<16x64xbf16>
    %cst_137 = arith.constant dense<0.000000e+00> : vector<16x64xf32>
    %508 = tpu.matmul %506, %507, %cst_137 {dimension_numbers = #tpu.dot_dimension_numbers<[1], [0], [0], [1], [0, 0, 1, 1], [], []>} : vector<16x16xbf16>, vector<16x64xbf16>, vector<16x64xf32> -> vector<16x64xf32>
    %509 = arith.addf %482, %508 : vector<16x64xf32>
    %510 = vector.extract_strided_slice %427 {offsets = [0, 48], sizes = [16, 16], strides = [1, 1]} : vector<16x192xf32> to vector<16x16xf32>
    %511 = vector.shape_cast %510 : vector<16x16xf32> to vector<2x8x16xf32>
    %512 = vector.extract_strided_slice %427 {offsets = [0, 112], sizes = [16, 16], strides = [1, 1]} : vector<16x192xf32> to vector<16x16xf32>
    %513 = vector.shape_cast %512 : vector<16x16xf32> to vector<2x8x16xf32>
    %514 = vector.extract_strided_slice %427 {offsets = [0, 176], sizes = [16, 16], strides = [1, 1]} : vector<16x192xf32> to vector<16x16xf32>
    %515 = vector.shape_cast %514 : vector<16x16xf32> to vector<2x8x16xf32>
    "tpu.trace_start"() <{level = 10 : i32, message = "bqd,bkd->bqk"}> : () -> ()
    %cst_138 = arith.constant dense<0.000000e+00> : vector<2x8x8xf32>
    %516 = tpu.matmul %511, %513, %cst_138 {dimension_numbers = #tpu.dot_dimension_numbers<[2], [2], [1], [1], [0, 0, 0, 1, 1, 1], [0], [0]>} : vector<2x8x16xf32>, vector<2x8x16xf32>, vector<2x8x8xf32> -> vector<2x8x8xf32>
    "tpu.trace_stop"() : () -> ()
    %cst_139 = arith.constant 2.500000e-01 : f32
    %517 = vector.broadcast %cst_139 : f32 to vector<2x8x8xf32>
    %518 = arith.mulf %516, %517 : vector<2x8x8xf32>
    %519 = vector.broadcast %6 : vector<2x1x8xf32> to vector<2x8x8xf32>
    %520 = arith.addf %518, %519 : vector<2x8x8xf32>
    %cst_140 = arith.constant dense<0xFF800000> : vector<2x8xf32>
    %521 = vector.multi_reduction <maximumf>, %520, %cst_140 [2] : vector<2x8x8xf32> to vector<2x8xf32>
    %522 = vector.shape_cast %521 : vector<2x8xf32> to vector<2x8x1xf32>
    %523 = vector.broadcast %522 : vector<2x8x1xf32> to vector<2x8x8xf32>
    %524 = arith.subf %520, %523 : vector<2x8x8xf32>
    %525 = math.exp %524 : vector<2x8x8xf32>
    %cst_141 = arith.constant dense<0.000000e+00> : vector<2x8xf32>
    %526 = vector.multi_reduction <add>, %525, %cst_141 [2] : vector<2x8x8xf32> to vector<2x8xf32>
    %527 = vector.shape_cast %526 : vector<2x8xf32> to vector<2x8x1xf32>
    %528 = tpu.reciprocal %527 {approx = true} : vector<2x8x1xf32> -> vector<2x8x1xf32>
    %529 = vector.broadcast %528 : vector<2x8x1xf32> to vector<2x8x8xf32>
    %530 = arith.mulf %525, %529 : vector<2x8x8xf32>
    "tpu.trace_start"() <{level = 10 : i32, message = "bqk,bkd->bqd"}> : () -> ()
    %cst_142 = arith.constant dense<0.000000e+00> : vector<2x8x16xf32>
    %531 = tpu.matmul %530, %515, %cst_142 {dimension_numbers = #tpu.dot_dimension_numbers<[2], [1], [1], [2], [0, 0, 0, 1, 1, 2], [0], [0]>} : vector<2x8x8xf32>, vector<2x8x16xf32>, vector<2x8x16xf32> -> vector<2x8x16xf32>
    "tpu.trace_stop"() : () -> ()
    %532 = vector.shape_cast %531 : vector<2x8x16xf32> to vector<16x16xf32>
    %533 = arith.truncf %532 : vector<16x16xf32> to vector<16x16xbf16>
    %534 = vector.extract_strided_slice %429 {offsets = [48, 0], sizes = [16, 64], strides = [1, 1]} : vector<64x64xbf16> to vector<16x64xbf16>
    %cst_143 = arith.constant dense<0.000000e+00> : vector<16x64xf32>
    %535 = tpu.matmul %533, %534, %cst_143 {dimension_numbers = #tpu.dot_dimension_numbers<[1], [0], [0], [1], [0, 0, 1, 1], [], []>} : vector<16x16xbf16>, vector<16x64xbf16>, vector<16x64xf32> -> vector<16x64xf32>
    %536 = arith.addf %509, %535 : vector<16x64xf32>
    %537 = vector.broadcast %415 : vector<1x64xf32> to vector<16x64xf32>
    %538 = arith.addf %536, %537 : vector<16x64xf32>
    %539 = arith.addf %538, %413 : vector<16x64xf32>
    %cst_144 = arith.constant dense<0.000000e+00> : vector<16xf32>
    %540 = vector.multi_reduction <add>, %539, %cst_144 [1] : vector<16x64xf32> to vector<16xf32>
    %541 = vector.shape_cast %540 : vector<16xf32> to vector<16x1xf32>
    %cst_145 = arith.constant 6.400000e+01 : f32
    %542 = vector.broadcast %cst_145 : f32 to vector<16x1xf32>
    %543 = arith.divf %541, %542 : vector<16x1xf32>
    %544 = vector.broadcast %543 : vector<16x1xf32> to vector<16x64xf32>
    %545 = arith.subf %539, %544 : vector<16x64xf32>
    %546 = arith.mulf %545, %545 : vector<16x64xf32>
    %cst_146 = arith.constant dense<0.000000e+00> : vector<16xf32>
    %547 = vector.multi_reduction <add>, %546, %cst_146 [1] : vector<16x64xf32> to vector<16xf32>
    %548 = vector.shape_cast %547 : vector<16xf32> to vector<16x1xf32>
    %cst_147 = arith.constant 6.400000e+01 : f32
    %549 = vector.broadcast %cst_147 : f32 to vector<16x1xf32>
    %550 = arith.divf %548, %549 : vector<16x1xf32>
    %cst_148 = arith.constant 9.99999996E-13 : f32
    %551 = vector.broadcast %cst_148 : f32 to vector<16x1xf32>
    %552 = arith.addf %550, %551 : vector<16x1xf32>
    %553 = math.rsqrt %552 : vector<16x1xf32>
    %554 = vector.broadcast %553 : vector<16x1xf32> to vector<16x64xf32>
    %555 = arith.mulf %545, %554 : vector<16x64xf32>
    %556 = vector.broadcast %416 : vector<1x64xf32> to vector<16x64xf32>
    %557 = arith.mulf %555, %556 : vector<16x64xf32>
    %558 = vector.broadcast %417 : vector<1x64xf32> to vector<16x64xf32>
    %559 = arith.addf %557, %558 : vector<16x64xf32>
    %560 = arith.truncf %559 : vector<16x64xf32> to vector<16x64xbf16>
    %c2_149 = arith.constant 2 : index
    %c0_150 = arith.constant 0 : index
    %c0_151 = arith.constant 0 : index
    %561 = vector.load %arg6[%c2_149, %c0_150, %c0_151] : memref<4x64x128xbf16, #tpu.memory_space<vmem>>, vector<1x64x128xbf16>
    %562 = vector.shape_cast %561 : vector<1x64x128xbf16> to vector<64x128xbf16>
    %cst_152 = arith.constant dense<0.000000e+00> : vector<16x128xf32>
    %563 = tpu.matmul %560, %562, %cst_152 {dimension_numbers = #tpu.dot_dimension_numbers<[1], [0], [0], [1], [0, 0, 1, 1], [], []>} : vector<16x64xbf16>, vector<64x128xbf16>, vector<16x128xf32> -> vector<16x128xf32>
    %564 = vector.broadcast %418 : vector<1x128xf32> to vector<16x128xf32>
    %565 = arith.addf %563, %564 : vector<16x128xf32>
    %566 = arith.mulf %565, %565 : vector<16x128xf32>
    %567 = arith.mulf %565, %566 : vector<16x128xf32>
    %cst_153 = arith.constant 4.471500e-02 : f32
    %568 = vector.broadcast %cst_153 : f32 to vector<16x128xf32>
    %569 = arith.mulf %568, %567 : vector<16x128xf32>
    %570 = arith.addf %565, %569 : vector<16x128xf32>
    %cst_154 = arith.constant 0.797884583 : f32
    %571 = vector.broadcast %cst_154 : f32 to vector<16x128xf32>
    %572 = arith.mulf %571, %570 : vector<16x128xf32>
    %573 = math.tanh %572 : vector<16x128xf32>
    %cst_155 = arith.constant 1.000000e+00 : f32
    %574 = vector.broadcast %cst_155 : f32 to vector<16x128xf32>
    %575 = arith.addf %574, %573 : vector<16x128xf32>
    %cst_156 = arith.constant 5.000000e-01 : f32
    %576 = vector.broadcast %cst_156 : f32 to vector<16x128xf32>
    %577 = arith.mulf %576, %575 : vector<16x128xf32>
    %578 = arith.mulf %565, %577 : vector<16x128xf32>
    %579 = arith.truncf %578 : vector<16x128xf32> to vector<16x128xbf16>
    %c2_157 = arith.constant 2 : index
    %c0_158 = arith.constant 0 : index
    %c0_159 = arith.constant 0 : index
    %580 = vector.load %arg7[%c2_157, %c0_158, %c0_159] : memref<4x128x64xbf16, #tpu.memory_space<vmem>>, vector<1x128x64xbf16>
    %581 = vector.shape_cast %580 : vector<1x128x64xbf16> to vector<128x64xbf16>
    %cst_160 = arith.constant dense<0.000000e+00> : vector<16x64xf32>
    %582 = tpu.matmul %579, %581, %cst_160 {dimension_numbers = #tpu.dot_dimension_numbers<[1], [0], [0], [1], [0, 0, 1, 1], [], []>} : vector<16x128xbf16>, vector<128x64xbf16>, vector<16x64xf32> -> vector<16x64xf32>
    %583 = vector.broadcast %419 : vector<1x64xf32> to vector<16x64xf32>
    %584 = arith.addf %582, %583 : vector<16x64xf32>
    %585 = arith.addf %584, %559 : vector<16x64xf32>
    %cst_161 = arith.constant dense<0.000000e+00> : vector<16xf32>
    %586 = vector.multi_reduction <add>, %585, %cst_161 [1] : vector<16x64xf32> to vector<16xf32>
    %587 = vector.shape_cast %586 : vector<16xf32> to vector<16x1xf32>
    %cst_162 = arith.constant 6.400000e+01 : f32
    %588 = vector.broadcast %cst_162 : f32 to vector<16x1xf32>
    %589 = arith.divf %587, %588 : vector<16x1xf32>
    %590 = vector.broadcast %589 : vector<16x1xf32> to vector<16x64xf32>
    %591 = arith.subf %585, %590 : vector<16x64xf32>
    %592 = arith.mulf %591, %591 : vector<16x64xf32>
    %cst_163 = arith.constant dense<0.000000e+00> : vector<16xf32>
    %593 = vector.multi_reduction <add>, %592, %cst_163 [1] : vector<16x64xf32> to vector<16xf32>
    %594 = vector.shape_cast %593 : vector<16xf32> to vector<16x1xf32>
    %cst_164 = arith.constant 6.400000e+01 : f32
    %595 = vector.broadcast %cst_164 : f32 to vector<16x1xf32>
    %596 = arith.divf %594, %595 : vector<16x1xf32>
    %cst_165 = arith.constant 9.99999996E-13 : f32
    %597 = vector.broadcast %cst_165 : f32 to vector<16x1xf32>
    %598 = arith.addf %596, %597 : vector<16x1xf32>
    %599 = math.rsqrt %598 : vector<16x1xf32>
    %600 = vector.broadcast %599 : vector<16x1xf32> to vector<16x64xf32>
    %601 = arith.mulf %591, %600 : vector<16x64xf32>
    %602 = vector.broadcast %420 : vector<1x64xf32> to vector<16x64xf32>
    %603 = arith.mulf %601, %602 : vector<16x64xf32>
    %604 = vector.broadcast %421 : vector<1x64xf32> to vector<16x64xf32>
    %605 = arith.addf %603, %604 : vector<16x64xf32>
    %606 = vector.extract_strided_slice %4 {offsets = [27, 0], sizes = [1, 192], strides = [1, 1]} : vector<35x192xf32> to vector<1x192xf32>
    %607 = vector.extract_strided_slice %4 {offsets = [28, 0], sizes = [1, 64], strides = [1, 1]} : vector<35x192xf32> to vector<1x64xf32>
    %608 = vector.extract_strided_slice %4 {offsets = [29, 0], sizes = [1, 64], strides = [1, 1]} : vector<35x192xf32> to vector<1x64xf32>
    %609 = vector.extract_strided_slice %4 {offsets = [30, 0], sizes = [1, 64], strides = [1, 1]} : vector<35x192xf32> to vector<1x64xf32>
    %610 = vector.extract_strided_slice %4 {offsets = [31, 0], sizes = [1, 128], strides = [1, 1]} : vector<35x192xf32> to vector<1x128xf32>
    %611 = vector.extract_strided_slice %4 {offsets = [32, 0], sizes = [1, 64], strides = [1, 1]} : vector<35x192xf32> to vector<1x64xf32>
    %612 = vector.extract_strided_slice %4 {offsets = [33, 0], sizes = [1, 64], strides = [1, 1]} : vector<35x192xf32> to vector<1x64xf32>
    %613 = vector.extract_strided_slice %4 {offsets = [34, 0], sizes = [1, 64], strides = [1, 1]} : vector<35x192xf32> to vector<1x64xf32>
    %614 = arith.truncf %605 : vector<16x64xf32> to vector<16x64xbf16>
    %c3 = arith.constant 3 : index
    %c0_166 = arith.constant 0 : index
    %c0_167 = arith.constant 0 : index
    %615 = vector.load %arg4[%c3, %c0_166, %c0_167] : memref<4x64x192xbf16, #tpu.memory_space<vmem>>, vector<1x64x192xbf16>
    %616 = vector.shape_cast %615 : vector<1x64x192xbf16> to vector<64x192xbf16>
    %cst_168 = arith.constant dense<0.000000e+00> : vector<16x192xf32>
    %617 = tpu.matmul %614, %616, %cst_168 {dimension_numbers = #tpu.dot_dimension_numbers<[1], [0], [0], [1], [0, 0, 1, 1], [], []>} : vector<16x64xbf16>, vector<64x192xbf16>, vector<16x192xf32> -> vector<16x192xf32>
    %618 = vector.broadcast %606 : vector<1x192xf32> to vector<16x192xf32>
    %619 = arith.addf %617, %618 : vector<16x192xf32>
    %c3_169 = arith.constant 3 : index
    %c0_170 = arith.constant 0 : index
    %c0_171 = arith.constant 0 : index
    %620 = vector.load %arg5[%c3_169, %c0_170, %c0_171] : memref<4x64x64xbf16, #tpu.memory_space<vmem>>, vector<1x64x64xbf16>
    %621 = vector.shape_cast %620 : vector<1x64x64xbf16> to vector<64x64xbf16>
    %622 = vector.extract_strided_slice %619 {offsets = [0, 0], sizes = [16, 16], strides = [1, 1]} : vector<16x192xf32> to vector<16x16xf32>
    %623 = vector.shape_cast %622 : vector<16x16xf32> to vector<2x8x16xf32>
    %624 = vector.extract_strided_slice %619 {offsets = [0, 64], sizes = [16, 16], strides = [1, 1]} : vector<16x192xf32> to vector<16x16xf32>
    %625 = vector.shape_cast %624 : vector<16x16xf32> to vector<2x8x16xf32>
    %626 = vector.extract_strided_slice %619 {offsets = [0, 128], sizes = [16, 16], strides = [1, 1]} : vector<16x192xf32> to vector<16x16xf32>
    %627 = vector.shape_cast %626 : vector<16x16xf32> to vector<2x8x16xf32>
    "tpu.trace_start"() <{level = 10 : i32, message = "bqd,bkd->bqk"}> : () -> ()
    %cst_172 = arith.constant dense<0.000000e+00> : vector<2x8x8xf32>
    %628 = tpu.matmul %623, %625, %cst_172 {dimension_numbers = #tpu.dot_dimension_numbers<[2], [2], [1], [1], [0, 0, 0, 1, 1, 1], [0], [0]>} : vector<2x8x16xf32>, vector<2x8x16xf32>, vector<2x8x8xf32> -> vector<2x8x8xf32>
    "tpu.trace_stop"() : () -> ()
    %cst_173 = arith.constant 2.500000e-01 : f32
    %629 = vector.broadcast %cst_173 : f32 to vector<2x8x8xf32>
    %630 = arith.mulf %628, %629 : vector<2x8x8xf32>
    %631 = vector.broadcast %6 : vector<2x1x8xf32> to vector<2x8x8xf32>
    %632 = arith.addf %630, %631 : vector<2x8x8xf32>
    %cst_174 = arith.constant dense<0xFF800000> : vector<2x8xf32>
    %633 = vector.multi_reduction <maximumf>, %632, %cst_174 [2] : vector<2x8x8xf32> to vector<2x8xf32>
    %634 = vector.shape_cast %633 : vector<2x8xf32> to vector<2x8x1xf32>
    %635 = vector.broadcast %634 : vector<2x8x1xf32> to vector<2x8x8xf32>
    %636 = arith.subf %632, %635 : vector<2x8x8xf32>
    %637 = math.exp %636 : vector<2x8x8xf32>
    %cst_175 = arith.constant dense<0.000000e+00> : vector<2x8xf32>
    %638 = vector.multi_reduction <add>, %637, %cst_175 [2] : vector<2x8x8xf32> to vector<2x8xf32>
    %639 = vector.shape_cast %638 : vector<2x8xf32> to vector<2x8x1xf32>
    %640 = tpu.reciprocal %639 {approx = true} : vector<2x8x1xf32> -> vector<2x8x1xf32>
    %641 = vector.broadcast %640 : vector<2x8x1xf32> to vector<2x8x8xf32>
    %642 = arith.mulf %637, %641 : vector<2x8x8xf32>
    "tpu.trace_start"() <{level = 10 : i32, message = "bqk,bkd->bqd"}> : () -> ()
    %cst_176 = arith.constant dense<0.000000e+00> : vector<2x8x16xf32>
    %643 = tpu.matmul %642, %627, %cst_176 {dimension_numbers = #tpu.dot_dimension_numbers<[2], [1], [1], [2], [0, 0, 0, 1, 1, 2], [0], [0]>} : vector<2x8x8xf32>, vector<2x8x16xf32>, vector<2x8x16xf32> -> vector<2x8x16xf32>
    "tpu.trace_stop"() : () -> ()
    %644 = vector.shape_cast %643 : vector<2x8x16xf32> to vector<16x16xf32>
    %645 = arith.truncf %644 : vector<16x16xf32> to vector<16x16xbf16>
    %646 = vector.extract_strided_slice %621 {offsets = [0, 0], sizes = [16, 64], strides = [1, 1]} : vector<64x64xbf16> to vector<16x64xbf16>
    %cst_177 = arith.constant dense<0.000000e+00> : vector<16x64xf32>
    %647 = tpu.matmul %645, %646, %cst_177 {dimension_numbers = #tpu.dot_dimension_numbers<[1], [0], [0], [1], [0, 0, 1, 1], [], []>} : vector<16x16xbf16>, vector<16x64xbf16>, vector<16x64xf32> -> vector<16x64xf32>
    %648 = vector.extract_strided_slice %619 {offsets = [0, 16], sizes = [16, 16], strides = [1, 1]} : vector<16x192xf32> to vector<16x16xf32>
    %649 = vector.shape_cast %648 : vector<16x16xf32> to vector<2x8x16xf32>
    %650 = vector.extract_strided_slice %619 {offsets = [0, 80], sizes = [16, 16], strides = [1, 1]} : vector<16x192xf32> to vector<16x16xf32>
    %651 = vector.shape_cast %650 : vector<16x16xf32> to vector<2x8x16xf32>
    %652 = vector.extract_strided_slice %619 {offsets = [0, 144], sizes = [16, 16], strides = [1, 1]} : vector<16x192xf32> to vector<16x16xf32>
    %653 = vector.shape_cast %652 : vector<16x16xf32> to vector<2x8x16xf32>
    "tpu.trace_start"() <{level = 10 : i32, message = "bqd,bkd->bqk"}> : () -> ()
    %cst_178 = arith.constant dense<0.000000e+00> : vector<2x8x8xf32>
    %654 = tpu.matmul %649, %651, %cst_178 {dimension_numbers = #tpu.dot_dimension_numbers<[2], [2], [1], [1], [0, 0, 0, 1, 1, 1], [0], [0]>} : vector<2x8x16xf32>, vector<2x8x16xf32>, vector<2x8x8xf32> -> vector<2x8x8xf32>
    "tpu.trace_stop"() : () -> ()
    %cst_179 = arith.constant 2.500000e-01 : f32
    %655 = vector.broadcast %cst_179 : f32 to vector<2x8x8xf32>
    %656 = arith.mulf %654, %655 : vector<2x8x8xf32>
    %657 = vector.broadcast %6 : vector<2x1x8xf32> to vector<2x8x8xf32>
    %658 = arith.addf %656, %657 : vector<2x8x8xf32>
    %cst_180 = arith.constant dense<0xFF800000> : vector<2x8xf32>
    %659 = vector.multi_reduction <maximumf>, %658, %cst_180 [2] : vector<2x8x8xf32> to vector<2x8xf32>
    %660 = vector.shape_cast %659 : vector<2x8xf32> to vector<2x8x1xf32>
    %661 = vector.broadcast %660 : vector<2x8x1xf32> to vector<2x8x8xf32>
    %662 = arith.subf %658, %661 : vector<2x8x8xf32>
    %663 = math.exp %662 : vector<2x8x8xf32>
    %cst_181 = arith.constant dense<0.000000e+00> : vector<2x8xf32>
    %664 = vector.multi_reduction <add>, %663, %cst_181 [2] : vector<2x8x8xf32> to vector<2x8xf32>
    %665 = vector.shape_cast %664 : vector<2x8xf32> to vector<2x8x1xf32>
    %666 = tpu.reciprocal %665 {approx = true} : vector<2x8x1xf32> -> vector<2x8x1xf32>
    %667 = vector.broadcast %666 : vector<2x8x1xf32> to vector<2x8x8xf32>
    %668 = arith.mulf %663, %667 : vector<2x8x8xf32>
    "tpu.trace_start"() <{level = 10 : i32, message = "bqk,bkd->bqd"}> : () -> ()
    %cst_182 = arith.constant dense<0.000000e+00> : vector<2x8x16xf32>
    %669 = tpu.matmul %668, %653, %cst_182 {dimension_numbers = #tpu.dot_dimension_numbers<[2], [1], [1], [2], [0, 0, 0, 1, 1, 2], [0], [0]>} : vector<2x8x8xf32>, vector<2x8x16xf32>, vector<2x8x16xf32> -> vector<2x8x16xf32>
    "tpu.trace_stop"() : () -> ()
    %670 = vector.shape_cast %669 : vector<2x8x16xf32> to vector<16x16xf32>
    %671 = arith.truncf %670 : vector<16x16xf32> to vector<16x16xbf16>
    %672 = vector.extract_strided_slice %621 {offsets = [16, 0], sizes = [16, 64], strides = [1, 1]} : vector<64x64xbf16> to vector<16x64xbf16>
    %cst_183 = arith.constant dense<0.000000e+00> : vector<16x64xf32>
    %673 = tpu.matmul %671, %672, %cst_183 {dimension_numbers = #tpu.dot_dimension_numbers<[1], [0], [0], [1], [0, 0, 1, 1], [], []>} : vector<16x16xbf16>, vector<16x64xbf16>, vector<16x64xf32> -> vector<16x64xf32>
    %674 = arith.addf %647, %673 : vector<16x64xf32>
    %675 = vector.extract_strided_slice %619 {offsets = [0, 32], sizes = [16, 16], strides = [1, 1]} : vector<16x192xf32> to vector<16x16xf32>
    %676 = vector.shape_cast %675 : vector<16x16xf32> to vector<2x8x16xf32>
    %677 = vector.extract_strided_slice %619 {offsets = [0, 96], sizes = [16, 16], strides = [1, 1]} : vector<16x192xf32> to vector<16x16xf32>
    %678 = vector.shape_cast %677 : vector<16x16xf32> to vector<2x8x16xf32>
    %679 = vector.extract_strided_slice %619 {offsets = [0, 160], sizes = [16, 16], strides = [1, 1]} : vector<16x192xf32> to vector<16x16xf32>
    %680 = vector.shape_cast %679 : vector<16x16xf32> to vector<2x8x16xf32>
    "tpu.trace_start"() <{level = 10 : i32, message = "bqd,bkd->bqk"}> : () -> ()
    %cst_184 = arith.constant dense<0.000000e+00> : vector<2x8x8xf32>
    %681 = tpu.matmul %676, %678, %cst_184 {dimension_numbers = #tpu.dot_dimension_numbers<[2], [2], [1], [1], [0, 0, 0, 1, 1, 1], [0], [0]>} : vector<2x8x16xf32>, vector<2x8x16xf32>, vector<2x8x8xf32> -> vector<2x8x8xf32>
    "tpu.trace_stop"() : () -> ()
    %cst_185 = arith.constant 2.500000e-01 : f32
    %682 = vector.broadcast %cst_185 : f32 to vector<2x8x8xf32>
    %683 = arith.mulf %681, %682 : vector<2x8x8xf32>
    %684 = vector.broadcast %6 : vector<2x1x8xf32> to vector<2x8x8xf32>
    %685 = arith.addf %683, %684 : vector<2x8x8xf32>
    %cst_186 = arith.constant dense<0xFF800000> : vector<2x8xf32>
    %686 = vector.multi_reduction <maximumf>, %685, %cst_186 [2] : vector<2x8x8xf32> to vector<2x8xf32>
    %687 = vector.shape_cast %686 : vector<2x8xf32> to vector<2x8x1xf32>
    %688 = vector.broadcast %687 : vector<2x8x1xf32> to vector<2x8x8xf32>
    %689 = arith.subf %685, %688 : vector<2x8x8xf32>
    %690 = math.exp %689 : vector<2x8x8xf32>
    %cst_187 = arith.constant dense<0.000000e+00> : vector<2x8xf32>
    %691 = vector.multi_reduction <add>, %690, %cst_187 [2] : vector<2x8x8xf32> to vector<2x8xf32>
    %692 = vector.shape_cast %691 : vector<2x8xf32> to vector<2x8x1xf32>
    %693 = tpu.reciprocal %692 {approx = true} : vector<2x8x1xf32> -> vector<2x8x1xf32>
    %694 = vector.broadcast %693 : vector<2x8x1xf32> to vector<2x8x8xf32>
    %695 = arith.mulf %690, %694 : vector<2x8x8xf32>
    "tpu.trace_start"() <{level = 10 : i32, message = "bqk,bkd->bqd"}> : () -> ()
    %cst_188 = arith.constant dense<0.000000e+00> : vector<2x8x16xf32>
    %696 = tpu.matmul %695, %680, %cst_188 {dimension_numbers = #tpu.dot_dimension_numbers<[2], [1], [1], [2], [0, 0, 0, 1, 1, 2], [0], [0]>} : vector<2x8x8xf32>, vector<2x8x16xf32>, vector<2x8x16xf32> -> vector<2x8x16xf32>
    "tpu.trace_stop"() : () -> ()
    %697 = vector.shape_cast %696 : vector<2x8x16xf32> to vector<16x16xf32>
    %698 = arith.truncf %697 : vector<16x16xf32> to vector<16x16xbf16>
    %699 = vector.extract_strided_slice %621 {offsets = [32, 0], sizes = [16, 64], strides = [1, 1]} : vector<64x64xbf16> to vector<16x64xbf16>
    %cst_189 = arith.constant dense<0.000000e+00> : vector<16x64xf32>
    %700 = tpu.matmul %698, %699, %cst_189 {dimension_numbers = #tpu.dot_dimension_numbers<[1], [0], [0], [1], [0, 0, 1, 1], [], []>} : vector<16x16xbf16>, vector<16x64xbf16>, vector<16x64xf32> -> vector<16x64xf32>
    %701 = arith.addf %674, %700 : vector<16x64xf32>
    %702 = vector.extract_strided_slice %619 {offsets = [0, 48], sizes = [16, 16], strides = [1, 1]} : vector<16x192xf32> to vector<16x16xf32>
    %703 = vector.shape_cast %702 : vector<16x16xf32> to vector<2x8x16xf32>
    %704 = vector.extract_strided_slice %619 {offsets = [0, 112], sizes = [16, 16], strides = [1, 1]} : vector<16x192xf32> to vector<16x16xf32>
    %705 = vector.shape_cast %704 : vector<16x16xf32> to vector<2x8x16xf32>
    %706 = vector.extract_strided_slice %619 {offsets = [0, 176], sizes = [16, 16], strides = [1, 1]} : vector<16x192xf32> to vector<16x16xf32>
    %707 = vector.shape_cast %706 : vector<16x16xf32> to vector<2x8x16xf32>
    "tpu.trace_start"() <{level = 10 : i32, message = "bqd,bkd->bqk"}> : () -> ()
    %cst_190 = arith.constant dense<0.000000e+00> : vector<2x8x8xf32>
    %708 = tpu.matmul %703, %705, %cst_190 {dimension_numbers = #tpu.dot_dimension_numbers<[2], [2], [1], [1], [0, 0, 0, 1, 1, 1], [0], [0]>} : vector<2x8x16xf32>, vector<2x8x16xf32>, vector<2x8x8xf32> -> vector<2x8x8xf32>
    "tpu.trace_stop"() : () -> ()
    %cst_191 = arith.constant 2.500000e-01 : f32
    %709 = vector.broadcast %cst_191 : f32 to vector<2x8x8xf32>
    %710 = arith.mulf %708, %709 : vector<2x8x8xf32>
    %711 = vector.broadcast %6 : vector<2x1x8xf32> to vector<2x8x8xf32>
    %712 = arith.addf %710, %711 : vector<2x8x8xf32>
    %cst_192 = arith.constant dense<0xFF800000> : vector<2x8xf32>
    %713 = vector.multi_reduction <maximumf>, %712, %cst_192 [2] : vector<2x8x8xf32> to vector<2x8xf32>
    %714 = vector.shape_cast %713 : vector<2x8xf32> to vector<2x8x1xf32>
    %715 = vector.broadcast %714 : vector<2x8x1xf32> to vector<2x8x8xf32>
    %716 = arith.subf %712, %715 : vector<2x8x8xf32>
    %717 = math.exp %716 : vector<2x8x8xf32>
    %cst_193 = arith.constant dense<0.000000e+00> : vector<2x8xf32>
    %718 = vector.multi_reduction <add>, %717, %cst_193 [2] : vector<2x8x8xf32> to vector<2x8xf32>
    %719 = vector.shape_cast %718 : vector<2x8xf32> to vector<2x8x1xf32>
    %720 = tpu.reciprocal %719 {approx = true} : vector<2x8x1xf32> -> vector<2x8x1xf32>
    %721 = vector.broadcast %720 : vector<2x8x1xf32> to vector<2x8x8xf32>
    %722 = arith.mulf %717, %721 : vector<2x8x8xf32>
    "tpu.trace_start"() <{level = 10 : i32, message = "bqk,bkd->bqd"}> : () -> ()
    %cst_194 = arith.constant dense<0.000000e+00> : vector<2x8x16xf32>
    %723 = tpu.matmul %722, %707, %cst_194 {dimension_numbers = #tpu.dot_dimension_numbers<[2], [1], [1], [2], [0, 0, 0, 1, 1, 2], [0], [0]>} : vector<2x8x8xf32>, vector<2x8x16xf32>, vector<2x8x16xf32> -> vector<2x8x16xf32>
    "tpu.trace_stop"() : () -> ()
    %724 = vector.shape_cast %723 : vector<2x8x16xf32> to vector<16x16xf32>
    %725 = arith.truncf %724 : vector<16x16xf32> to vector<16x16xbf16>
    %726 = vector.extract_strided_slice %621 {offsets = [48, 0], sizes = [16, 64], strides = [1, 1]} : vector<64x64xbf16> to vector<16x64xbf16>
    %cst_195 = arith.constant dense<0.000000e+00> : vector<16x64xf32>
    %727 = tpu.matmul %725, %726, %cst_195 {dimension_numbers = #tpu.dot_dimension_numbers<[1], [0], [0], [1], [0, 0, 1, 1], [], []>} : vector<16x16xbf16>, vector<16x64xbf16>, vector<16x64xf32> -> vector<16x64xf32>
    %728 = arith.addf %701, %727 : vector<16x64xf32>
    %729 = vector.broadcast %607 : vector<1x64xf32> to vector<16x64xf32>
    %730 = arith.addf %728, %729 : vector<16x64xf32>
    %731 = arith.addf %730, %605 : vector<16x64xf32>
    %cst_196 = arith.constant dense<0.000000e+00> : vector<16xf32>
    %732 = vector.multi_reduction <add>, %731, %cst_196 [1] : vector<16x64xf32> to vector<16xf32>
    %733 = vector.shape_cast %732 : vector<16xf32> to vector<16x1xf32>
    %cst_197 = arith.constant 6.400000e+01 : f32
    %734 = vector.broadcast %cst_197 : f32 to vector<16x1xf32>
    %735 = arith.divf %733, %734 : vector<16x1xf32>
    %736 = vector.broadcast %735 : vector<16x1xf32> to vector<16x64xf32>
    %737 = arith.subf %731, %736 : vector<16x64xf32>
    %738 = arith.mulf %737, %737 : vector<16x64xf32>
    %cst_198 = arith.constant dense<0.000000e+00> : vector<16xf32>
    %739 = vector.multi_reduction <add>, %738, %cst_198 [1] : vector<16x64xf32> to vector<16xf32>
    %740 = vector.shape_cast %739 : vector<16xf32> to vector<16x1xf32>
    %cst_199 = arith.constant 6.400000e+01 : f32
    %741 = vector.broadcast %cst_199 : f32 to vector<16x1xf32>
    %742 = arith.divf %740, %741 : vector<16x1xf32>
    %cst_200 = arith.constant 9.99999996E-13 : f32
    %743 = vector.broadcast %cst_200 : f32 to vector<16x1xf32>
    %744 = arith.addf %742, %743 : vector<16x1xf32>
    %745 = math.rsqrt %744 : vector<16x1xf32>
    %746 = vector.broadcast %745 : vector<16x1xf32> to vector<16x64xf32>
    %747 = arith.mulf %737, %746 : vector<16x64xf32>
    %748 = vector.broadcast %608 : vector<1x64xf32> to vector<16x64xf32>
    %749 = arith.mulf %747, %748 : vector<16x64xf32>
    %750 = vector.broadcast %609 : vector<1x64xf32> to vector<16x64xf32>
    %751 = arith.addf %749, %750 : vector<16x64xf32>
    %752 = arith.truncf %751 : vector<16x64xf32> to vector<16x64xbf16>
    %c3_201 = arith.constant 3 : index
    %c0_202 = arith.constant 0 : index
    %c0_203 = arith.constant 0 : index
    %753 = vector.load %arg6[%c3_201, %c0_202, %c0_203] : memref<4x64x128xbf16, #tpu.memory_space<vmem>>, vector<1x64x128xbf16>
    %754 = vector.shape_cast %753 : vector<1x64x128xbf16> to vector<64x128xbf16>
    %cst_204 = arith.constant dense<0.000000e+00> : vector<16x128xf32>
    %755 = tpu.matmul %752, %754, %cst_204 {dimension_numbers = #tpu.dot_dimension_numbers<[1], [0], [0], [1], [0, 0, 1, 1], [], []>} : vector<16x64xbf16>, vector<64x128xbf16>, vector<16x128xf32> -> vector<16x128xf32>
    %756 = vector.broadcast %610 : vector<1x128xf32> to vector<16x128xf32>
    %757 = arith.addf %755, %756 : vector<16x128xf32>
    %758 = arith.mulf %757, %757 : vector<16x128xf32>
    %759 = arith.mulf %757, %758 : vector<16x128xf32>
    %cst_205 = arith.constant 4.471500e-02 : f32
    %760 = vector.broadcast %cst_205 : f32 to vector<16x128xf32>
    %761 = arith.mulf %760, %759 : vector<16x128xf32>
    %762 = arith.addf %757, %761 : vector<16x128xf32>
    %cst_206 = arith.constant 0.797884583 : f32
    %763 = vector.broadcast %cst_206 : f32 to vector<16x128xf32>
    %764 = arith.mulf %763, %762 : vector<16x128xf32>
    %765 = math.tanh %764 : vector<16x128xf32>
    %cst_207 = arith.constant 1.000000e+00 : f32
    %766 = vector.broadcast %cst_207 : f32 to vector<16x128xf32>
    %767 = arith.addf %766, %765 : vector<16x128xf32>
    %cst_208 = arith.constant 5.000000e-01 : f32
    %768 = vector.broadcast %cst_208 : f32 to vector<16x128xf32>
    %769 = arith.mulf %768, %767 : vector<16x128xf32>
    %770 = arith.mulf %757, %769 : vector<16x128xf32>
    %771 = arith.truncf %770 : vector<16x128xf32> to vector<16x128xbf16>
    %c3_209 = arith.constant 3 : index
    %c0_210 = arith.constant 0 : index
    %c0_211 = arith.constant 0 : index
    %772 = vector.load %arg7[%c3_209, %c0_210, %c0_211] : memref<4x128x64xbf16, #tpu.memory_space<vmem>>, vector<1x128x64xbf16>
    %773 = vector.shape_cast %772 : vector<1x128x64xbf16> to vector<128x64xbf16>
    %cst_212 = arith.constant dense<0.000000e+00> : vector<16x64xf32>
    %774 = tpu.matmul %771, %773, %cst_212 {dimension_numbers = #tpu.dot_dimension_numbers<[1], [0], [0], [1], [0, 0, 1, 1], [], []>} : vector<16x128xbf16>, vector<128x64xbf16>, vector<16x64xf32> -> vector<16x64xf32>
    %775 = vector.broadcast %611 : vector<1x64xf32> to vector<16x64xf32>
    %776 = arith.addf %774, %775 : vector<16x64xf32>
    %777 = arith.addf %776, %751 : vector<16x64xf32>
    %cst_213 = arith.constant dense<0.000000e+00> : vector<16xf32>
    %778 = vector.multi_reduction <add>, %777, %cst_213 [1] : vector<16x64xf32> to vector<16xf32>
    %779 = vector.shape_cast %778 : vector<16xf32> to vector<16x1xf32>
    %cst_214 = arith.constant 6.400000e+01 : f32
    %780 = vector.broadcast %cst_214 : f32 to vector<16x1xf32>
    %781 = arith.divf %779, %780 : vector<16x1xf32>
    %782 = vector.broadcast %781 : vector<16x1xf32> to vector<16x64xf32>
    %783 = arith.subf %777, %782 : vector<16x64xf32>
    %784 = arith.mulf %783, %783 : vector<16x64xf32>
    %cst_215 = arith.constant dense<0.000000e+00> : vector<16xf32>
    %785 = vector.multi_reduction <add>, %784, %cst_215 [1] : vector<16x64xf32> to vector<16xf32>
    %786 = vector.shape_cast %785 : vector<16xf32> to vector<16x1xf32>
    %cst_216 = arith.constant 6.400000e+01 : f32
    %787 = vector.broadcast %cst_216 : f32 to vector<16x1xf32>
    %788 = arith.divf %786, %787 : vector<16x1xf32>
    %cst_217 = arith.constant 9.99999996E-13 : f32
    %789 = vector.broadcast %cst_217 : f32 to vector<16x1xf32>
    %790 = arith.addf %788, %789 : vector<16x1xf32>
    %791 = math.rsqrt %790 : vector<16x1xf32>
    %792 = vector.broadcast %791 : vector<16x1xf32> to vector<16x64xf32>
    %793 = arith.mulf %783, %792 : vector<16x64xf32>
    %794 = vector.broadcast %612 : vector<1x64xf32> to vector<16x64xf32>
    %795 = arith.mulf %793, %794 : vector<16x64xf32>
    %796 = vector.broadcast %613 : vector<1x64xf32> to vector<16x64xf32>
    %797 = arith.addf %795, %796 : vector<16x64xf32>
    %c0_i32_218 = arith.constant 0 : i32
    %798 = tpu.memref_slice %arg14[%c0_i32_218] : memref<2x!tpu.dma_semaphore, #tpu.memory_space<semaphore_mem>> -> memref<1x!tpu.dma_semaphore, #tpu.memory_space<semaphore_mem>>
    %799 = tpu.memref_squeeze %798 : memref<1x!tpu.dma_semaphore, #tpu.memory_space<semaphore_mem>> -> memref<!tpu.dma_semaphore, #tpu.memory_space<semaphore_mem>>
    tpu.wait_dma2 semaphore(%799 : memref<!tpu.dma_semaphore, #tpu.memory_space<semaphore_mem>>) src(%arg9 : memref<4x64x768xbf16, #tpu.memory_space<any>>) dst(%arg12 : memref<4x64x768xbf16, #tpu.memory_space<vmem>>)
    %c1_i32_219 = arith.constant 1 : i32
    %800 = tpu.memref_slice %arg14[%c1_i32_219] : memref<2x!tpu.dma_semaphore, #tpu.memory_space<semaphore_mem>> -> memref<1x!tpu.dma_semaphore, #tpu.memory_space<semaphore_mem>>
    %801 = tpu.memref_squeeze %800 : memref<1x!tpu.dma_semaphore, #tpu.memory_space<semaphore_mem>> -> memref<!tpu.dma_semaphore, #tpu.memory_space<semaphore_mem>>
    tpu.wait_dma2 semaphore(%801 : memref<!tpu.dma_semaphore, #tpu.memory_space<semaphore_mem>>) src(%arg10 : memref<768x128xbf16, #tpu.memory_space<any>>) dst(%arg13 : memref<768x128xbf16, #tpu.memory_space<vmem>>)
    %802 = vector.extract_strided_slice %797 {offsets = [0, 0], sizes = [1, 64], strides = [1, 1]} : vector<16x64xf32> to vector<1x64xf32>
    %803 = vector.extract_strided_slice %797 {offsets = [8, 0], sizes = [1, 64], strides = [1, 1]} : vector<16x64xf32> to vector<1x64xf32>
    %804 = tpu.concatenate %802, %803 in 0 : vector<1x64xf32>, vector<1x64xf32> -> vector<2x64xf32>
    %805 = arith.truncf %804 : vector<2x64xf32> to vector<2x64xbf16>
    %c0_220 = arith.constant 0 : index
    %c0_221 = arith.constant 0 : index
    %c0_222 = arith.constant 0 : index
    %806 = vector.load %arg12[%c0_220, %c0_221, %c0_222] : memref<4x64x768xbf16, #tpu.memory_space<vmem>>, vector<1x64x768xbf16>
    %807 = vector.shape_cast %806 : vector<1x64x768xbf16> to vector<64x768xbf16>
    %cst_223 = arith.constant dense<0.000000e+00> : vector<2x768xf32>
    %808 = tpu.matmul %805, %807, %cst_223 {dimension_numbers = #tpu.dot_dimension_numbers<[1], [0], [0], [1], [0, 0, 1, 1], [], []>} : vector<2x64xbf16>, vector<64x768xbf16>, vector<2x768xf32> -> vector<2x768xf32>
    %809 = vector.extract_strided_slice %605 {offsets = [0, 0], sizes = [1, 64], strides = [1, 1]} : vector<16x64xf32> to vector<1x64xf32>
    %810 = vector.extract_strided_slice %605 {offsets = [8, 0], sizes = [1, 64], strides = [1, 1]} : vector<16x64xf32> to vector<1x64xf32>
    %811 = tpu.concatenate %809, %810 in 0 : vector<1x64xf32>, vector<1x64xf32> -> vector<2x64xf32>
    %812 = arith.truncf %811 : vector<2x64xf32> to vector<2x64xbf16>
    %c1_224 = arith.constant 1 : index
    %c0_225 = arith.constant 0 : index
    %c0_226 = arith.constant 0 : index
    %813 = vector.load %arg12[%c1_224, %c0_225, %c0_226] : memref<4x64x768xbf16, #tpu.memory_space<vmem>>, vector<1x64x768xbf16>
    %814 = vector.shape_cast %813 : vector<1x64x768xbf16> to vector<64x768xbf16>
    %cst_227 = arith.constant dense<0.000000e+00> : vector<2x768xf32>
    %815 = tpu.matmul %812, %814, %cst_227 {dimension_numbers = #tpu.dot_dimension_numbers<[1], [0], [0], [1], [0, 0, 1, 1], [], []>} : vector<2x64xbf16>, vector<64x768xbf16>, vector<2x768xf32> -> vector<2x768xf32>
    %816 = arith.addf %808, %815 : vector<2x768xf32>
    %817 = vector.extract_strided_slice %413 {offsets = [0, 0], sizes = [1, 64], strides = [1, 1]} : vector<16x64xf32> to vector<1x64xf32>
    %818 = vector.extract_strided_slice %413 {offsets = [8, 0], sizes = [1, 64], strides = [1, 1]} : vector<16x64xf32> to vector<1x64xf32>
    %819 = tpu.concatenate %817, %818 in 0 : vector<1x64xf32>, vector<1x64xf32> -> vector<2x64xf32>
    %820 = arith.truncf %819 : vector<2x64xf32> to vector<2x64xbf16>
    %c2_228 = arith.constant 2 : index
    %c0_229 = arith.constant 0 : index
    %c0_230 = arith.constant 0 : index
    %821 = vector.load %arg12[%c2_228, %c0_229, %c0_230] : memref<4x64x768xbf16, #tpu.memory_space<vmem>>, vector<1x64x768xbf16>
    %822 = vector.shape_cast %821 : vector<1x64x768xbf16> to vector<64x768xbf16>
    %cst_231 = arith.constant dense<0.000000e+00> : vector<2x768xf32>
    %823 = tpu.matmul %820, %822, %cst_231 {dimension_numbers = #tpu.dot_dimension_numbers<[1], [0], [0], [1], [0, 0, 1, 1], [], []>} : vector<2x64xbf16>, vector<64x768xbf16>, vector<2x768xf32> -> vector<2x768xf32>
    %824 = arith.addf %816, %823 : vector<2x768xf32>
    %825 = vector.extract_strided_slice %221 {offsets = [0, 0], sizes = [1, 64], strides = [1, 1]} : vector<16x64xf32> to vector<1x64xf32>
    %826 = vector.extract_strided_slice %221 {offsets = [8, 0], sizes = [1, 64], strides = [1, 1]} : vector<16x64xf32> to vector<1x64xf32>
    %827 = tpu.concatenate %825, %826 in 0 : vector<1x64xf32>, vector<1x64xf32> -> vector<2x64xf32>
    %828 = arith.truncf %827 : vector<2x64xf32> to vector<2x64xbf16>
    %c3_232 = arith.constant 3 : index
    %c0_233 = arith.constant 0 : index
    %c0_234 = arith.constant 0 : index
    %829 = vector.load %arg12[%c3_232, %c0_233, %c0_234] : memref<4x64x768xbf16, #tpu.memory_space<vmem>>, vector<1x64x768xbf16>
    %830 = vector.shape_cast %829 : vector<1x64x768xbf16> to vector<64x768xbf16>
    %cst_235 = arith.constant dense<0.000000e+00> : vector<2x768xf32>
    %831 = tpu.matmul %828, %830, %cst_235 {dimension_numbers = #tpu.dot_dimension_numbers<[1], [0], [0], [1], [0, 0, 1, 1], [], []>} : vector<2x64xbf16>, vector<64x768xbf16>, vector<2x768xf32> -> vector<2x768xf32>
    %832 = arith.addf %824, %831 : vector<2x768xf32>
    %c0_236 = arith.constant 0 : index
    %c0_237 = arith.constant 0 : index
    %833 = vector.load %arg8[%c0_236, %c0_237] : memref<1x768xf32, #tpu.memory_space<vmem>>, vector<1x768xf32>
    %834 = vector.broadcast %833 : vector<1x768xf32> to vector<2x768xf32>
    %835 = arith.addf %832, %834 : vector<2x768xf32>
    %cst_238 = arith.constant 0.000000e+00 : f32
    %836 = vector.broadcast %cst_238 : f32 to vector<2x768xf32>
    %837 = arith.maximumf %835, %836 : vector<2x768xf32>
    %838 = arith.truncf %837 : vector<2x768xf32> to vector<2x768xbf16>
    %c0_239 = arith.constant 0 : index
    %c0_240 = arith.constant 0 : index
    %839 = vector.load %arg13[%c0_239, %c0_240] : memref<768x128xbf16, #tpu.memory_space<vmem>>, vector<768x128xbf16>
    %cst_241 = arith.constant dense<0.000000e+00> : vector<2x128xf32>
    %840 = tpu.matmul %838, %839, %cst_241 {dimension_numbers = #tpu.dot_dimension_numbers<[1], [0], [0], [1], [0, 0, 1, 1], [], []>} : vector<2x768xbf16>, vector<768x128xbf16>, vector<2x128xf32> -> vector<2x128xf32>
    %841 = vector.extract_strided_slice %4 {offsets = [2, 0], sizes = [1, 128], strides = [1, 1]} : vector<35x192xf32> to vector<1x128xf32>
    %842 = vector.broadcast %841 : vector<1x128xf32> to vector<2x128xf32>
    %843 = arith.addf %840, %842 : vector<2x128xf32>
    %cst_242 = arith.constant dense<0xFF800000> : vector<2xf32>
    %844 = vector.multi_reduction <maximumf>, %843, %cst_242 [1] : vector<2x128xf32> to vector<2xf32>
    %845 = vector.shape_cast %844 : vector<2xf32> to vector<2x1xf32>
    %846 = vector.broadcast %845 : vector<2x1xf32> to vector<2x128xf32>
    %847 = arith.subf %843, %846 : vector<2x128xf32>
    %848 = math.exp %847 : vector<2x128xf32>
    %cst_243 = arith.constant dense<0.000000e+00> : vector<2xf32>
    %849 = vector.multi_reduction <add>, %848, %cst_243 [1] : vector<2x128xf32> to vector<2xf32>
    %850 = vector.shape_cast %849 : vector<2xf32> to vector<2x1xf32>
    %851 = math.log %850 : vector<2x1xf32>
    %852 = vector.broadcast %851 : vector<2x1xf32> to vector<2x128xf32>
    %853 = arith.subf %847, %852 : vector<2x128xf32>
    %c0_244 = arith.constant 0 : index
    %c0_245 = arith.constant 0 : index
    %854 = vector.load %arg11[%c0_244, %c0_245] : memref<2x128xf32, #tpu.memory_space<vmem>>, vector<2x128xf32>
    tpu.vector_store %arg11[%c0_244, %c0_245], %853 {strides = array<i32>} : memref<2x128xf32, #tpu.memory_space<vmem>>, vector<2x128xf32>,
    return
  }
  func.func @transform_0(%arg0: i32) -> (i32, i32) {
    %c0_i32 = arith.constant 0 : i32
    %c0_i32_0 = arith.constant 0 : i32
    %c0_i32_1 = arith.constant 0 : i32
    return %c0_i32, %c0_i32_0 : i32, i32
  }
  func.func @transform_1(%arg0: i32) -> (i32, i32) {
    %c0_i32 = arith.constant 0 : i32
    %c0_i32_0 = arith.constant 0 : i32
    %c0_i32_1 = arith.constant 0 : i32
    return %c0_i32, %c0_i32_0 : i32, i32
  }
  func.func @transform_2(%arg0: i32) -> (i32, i32) {
    %c0_i32 = arith.constant 0 : i32
    %c0_i32_0 = arith.constant 0 : i32
    %c0_i32_1 = arith.constant 0 : i32
    return %c0_i32, %c0_i32_0 : i32, i32
  }
  func.func @transform_3(%arg0: i32) -> (i32, i32, i32) {
    %c0_i32 = arith.constant 0 : i32
    %c0_i32_0 = arith.constant 0 : i32
    %c0_i32_1 = arith.constant 0 : i32
    %c0_i32_2 = arith.constant 0 : i32
    return %c0_i32, %c0_i32_0, %c0_i32_1 : i32, i32, i32
  }
  func.func @transform_4(%arg0: i32) -> (i32, i32, i32) {
    %c0_i32 = arith.constant 0 : i32
    %c0_i32_0 = arith.constant 0 : i32
    %c0_i32_1 = arith.constant 0 : i32
    %c0_i32_2 = arith.constant 0 : i32
    return %c0_i32, %c0_i32_0, %c0_i32_1 : i32, i32, i32
  }
  func.func @transform_5(%arg0: i32) -> (i32, i32, i32) {
    %c0_i32 = arith.constant 0 : i32
    %c0_i32_0 = arith.constant 0 : i32
    %c0_i32_1 = arith.constant 0 : i32
    %c0_i32_2 = arith.constant 0 : i32
    return %c0_i32, %c0_i32_0, %c0_i32_1 : i32, i32, i32
  }
  func.func @transform_6(%arg0: i32) -> (i32, i32, i32) {
    %c0_i32 = arith.constant 0 : i32
    %c0_i32_0 = arith.constant 0 : i32
    %c0_i32_1 = arith.constant 0 : i32
    %c0_i32_2 = arith.constant 0 : i32
    return %c0_i32, %c0_i32_0, %c0_i32_1 : i32, i32, i32
  }
  func.func @transform_7(%arg0: i32) -> (i32, i32) {
    %c0_i32 = arith.constant 0 : i32
    %c0_i32_0 = arith.constant 0 : i32
    %c0_i32_1 = arith.constant 0 : i32
    return %c0_i32, %c0_i32_0 : i32, i32
  }
  func.func @transform_10(%arg0: i32) -> (i32, i32) {
    %c0_i32 = arith.constant 0 : i32
    %c0_i32_0 = arith.constant 0 : i32
    %c0_i32_1 = arith.constant 0 : i32
    return %c0_i32, %c0_i32_0 : i32, i32
  }
}

</mosaic_0001>

<bundles_post_ra>
// kernel: model_forward.1
= control target key start
LH: loop header
LB: loop body
LE: loop exit
PB: predicated region body
PF: predicated region fallthrough
CT: control target
= control target key end

     0   :  { %15 = vsyncpa [#allocation6], 0  ;;  %s9231_s0 = inlined_call_operand.vmem [shape: f32[16,64], index: 0, kind: input, shape index: {}]   ;;  %s9232_s1 = inlined_call_operand.vmem [shape: f32[2,8], index: 1, kind: input, shape index: {}]   ;;  %s9233_s2 = inlined_call_operand.vmem [shape: f32[35,192], index: 2, kind: input, shape index: {}]   ;;  %s9234_s3 = inlined_call_operand.vmem [shape: bf16[4,64,192], index: 3, kind: input, shape index: {}]   ;;  %s9235_s4 = inlined_call_operand.vmem [shape: bf16[4,64,64], index: 4, kind: input, shape index: {}]   ;;  %s9236_s5 = inlined_call_operand.vmem [shape: bf16[4,64,128], index: 5, kind: input, shape index: {}]   ;;  %s9237_s6 = inlined_call_operand.vmem [shape: bf16[4,128,64], index: 6, kind: input, shape index: {}]   ;;  %s9238_s7 = inlined_call_operand.vmem [shape: f32[1,768], index: 7, kind: input, shape index: {}]   ;;  %s9239_s8 = inlined_call_operand.vmem [shape: bf16[4,64,768], index: 8, kind: input, shape index: {}]   ;;  %s9240_s9 = inlined_call_operand.vmem [shape: bf16[768,128], index: 9, kind: input, shape index: {}]   ;;  %s9241_s10 = inlined_call_operand.hbm [shape: f32[2,128], index: 10, kind: output, shape index: {}]  }
   0x1   :  { %v43_v0 = vld [vmem:[%s9239_s8] sm:$0xff]  ;;  %v45_v1 = vld [vmem:[%s9239_s8 + $0x8] sm:$0xff]  ;;  %v47_v2 = vld [vmem:[%s9239_s8 + $0x10] sm:$0xff] }
   0x2   :  { %44 = vst [vmem:[#allocation2] sm:$0xff] %v43_v0  ;;  %v49_v3 = vld [vmem:[%s9239_s8 + $0x18] sm:$0xff]  ;;  %v51_v4 = vld [vmem:[%s9239_s8 + $0x20] sm:$0xff]  ;;  %v53_v5 = vld [vmem:[%s9239_s8 + $0x28] sm:$0xff] }
   0x3   :  { %46 = vst [vmem:[#allocation2 + $0x8] sm:$0xff] %v45_v1  ;;  %v55_v6 = vld [vmem:[%s9239_s8 + $0x30] sm:$0xff]  ;;  %v57_v7 = vld [vmem:[%s9239_s8 + $0x38] sm:$0xff]  ;;  %v59_v8 = vld [vmem:[%s9239_s8 + $0x40] sm:$0xff] }
   0x4   :  { %48 = vst [vmem:[#allocation2 + $0x10] sm:$0xff] %v47_v2  ;;  %v61_v9 = vld [vmem:[%s9239_s8 + $0x48] sm:$0xff]  ;;  %v63_v10 = vld [vmem:[%s9239_s8 + $0x50] sm:$0xff]  ;;  %v65_v11 = vld [vmem:[%s9239_s8 + $0x58] sm:$0xff] }
   0x5   :  { %50 = vst [vmem:[#allocation2 + $0x18] sm:$0xff] %v49_v3  ;;  %v67_v12 = vld [vmem:[%s9239_s8 + $0x60] sm:$0xff]  ;;  %v69_v13 = vld [vmem:[%s9239_s8 + $0x68] sm:$0xff]  ;;  %v71_v14 = vld [vmem:[%s9239_s8 + $0x70] sm:$0xff] }
   0x6   :  { %52 = vst [vmem:[#allocation2 + $0x20] sm:$0xff] %v51_v4  ;;  %v73_v15 = vld [vmem:[%s9239_s8 + $0x78] sm:$0xff]  ;;  %v75_v16 = vld [vmem:[%s9239_s8 + $0x80] sm:$0xff]  ;;  %v77_v17 = vld [vmem:[%s9239_s8 + $0x88] sm:$0xff] }
   0x7   :  { %54 = vst [vmem:[#allocation2 + $0x28] sm:$0xff] %v53_v5  ;;  %v79_v18 = vld [vmem:[%s9239_s8 + $0x90] sm:$0xff]  ;;  %v81_v19 = vld [vmem:[%s9239_s8 + $0x98] sm:$0xff]  ;;  %v83_v20 = vld [vmem:[%s9239_s8 + $0xa0] sm:$0xff] }
   0x8   :  { %56 = vst [vmem:[#allocation2 + $0x30] sm:$0xff] %v55_v6  ;;  %v85_v21 = vld [vmem:[%s9239_s8 + $0xa8] sm:$0xff]  ;;  %v87_v22 = vld [vmem:[%s9239_s8 + $0xb0] sm:$0xff]  ;;  %v89_v23 = vld [vmem:[%s9239_s8 + $0xb8] sm:$0xff] }
   0x9   :  { %58 = vst [vmem:[#allocation2 + $0x38] sm:$0xff] %v57_v7  ;;  %v91_v24 = vld [vmem:[%s9239_s8 + $0xc0] sm:$0xff]  ;;  %v93_v25 = vld [vmem:[%s9239_s8 + $0xc8] sm:$0xff]  ;;  %v95_v26 = vld [vmem:[%s9239_s8 + $0xd0] sm:$0xff] }
   0xa   :  { %60 = vst [vmem:[#allocation2 + $0x40] sm:$0xff] %v59_v8  ;;  %v97_v27 = vld [vmem:[%s9239_s8 + $0xd8] sm:$0xff]  ;;  %v99_v28 = vld [vmem:[%s9239_s8 + $0xe0] sm:$0xff]  ;;  %v101_v29 = vld [vmem:[%s9239_s8 + $0xe8] sm:$0xff] }
   0xb   :  { %62 = vst [vmem:[#allocation2 + $0x48] sm:$0xff] %v61_v9  ;;  %v103_v30 = vld [vmem:[%s9239_s8 + $0xf0] sm:$0xff]  ;;  %v105_v31 = vld [vmem:[%s9239_s8 + $0xf8] sm:$0xff]  ;;  %v107_v32 = vld [vmem:[%s9239_s8 + $0x100] sm:$0xff] }
   0xc   :  { %64 = vst [vmem:[#allocation2 + $0x50] sm:$0xff] %v63_v10  ;;  %v109_v33 = vld [vmem:[%s9239_s8 + $0x108] sm:$0xff]  ;;  %v111_v34 = vld [vmem:[%s9239_s8 + $0x110] sm:$0xff]  ;;  %v113_v35 = vld [vmem:[%s9239_s8 + $0x118] sm:$0xff] }
   0xd   :  { %66 = vst [vmem:[#allocation2 + $0x58] sm:$0xff] %v65_v11  ;;  %v115_v36 = vld [vmem:[%s9239_s8 + $0x120] sm:$0xff]  ;;  %v117_v37 = vld [vmem:[%s9239_s8 + $0x128] sm:$0xff]  ;;  %v119_v38 = vld [vmem:[%s9239_s8 + $0x130] sm:$0xff] }
   0xe   :  { %68 = vst [vmem:[#allocation2 + $0x60] sm:$0xff] %v67_v12  ;;  %v121_v39 = vld [vmem:[%s9239_s8 + $0x138] sm:$0xff]  ;;  %v123_v40 = vld [vmem:[%s9239_s8 + $0x140] sm:$0xff]  ;;  %v125_v41 = vld [vmem:[%s9239_s8 + $0x148] sm:$0xff] }
   0xf   :  { %70 = vst [vmem:[#allocation2 + $0x68] sm:$0xff] %v69_v13  ;;  %v127_v42 = vld [vmem:[%s9239_s8 + $0x150] sm:$0xff]  ;;  %v129_v43 = vld [vmem:[%s9239_s8 + $0x158] sm:$0xff]  ;;  %v131_v44 = vld [vmem:[%s9239_s8 + $0x160] sm:$0xff] }
  0x10   :  { %72 = vst [vmem:[#allocation2 + $0x70] sm:$0xff] %v71_v14  ;;  %v133_v45 = vld [vmem:[%s9239_s8 + $0x168] sm:$0xff]  ;;  %v135_v46 = vld [vmem:[%s9239_s8 + $0x170] sm:$0xff]  ;;  %v137_v47 = vld [vmem:[%s9239_s8 + $0x178] sm:$0xff] }
  0x11   :  { %74 = vst [vmem:[#allocation2 + $0x78] sm:$0xff] %v73_v15  ;;  %v139_v48 = vld [vmem:[%s9239_s8 + $0x180] sm:$0xff]  ;;  %v141_v49 = vld [vmem:[%s9239_s8 + $0x188] sm:$0xff]  ;;  %v143_v50 = vld [vmem:[%s9239_s8 + $0x190] sm:$0xff] }
  0x12   :  { %76 = vst [vmem:[#allocation2 + $0x80] sm:$0xff] %v75_v16  ;;  %v145_v51 = vld [vmem:[%s9239_s8 + $0x198] sm:$0xff]  ;;  %v147_v52 = vld [vmem:[%s9239_s8 + $0x1a0] sm:$0xff]  ;;  %v149_v53 = vld [vmem:[%s9239_s8 + $0x1a8] sm:$0xff] }
  0x13   :  { %78 = vst [vmem:[#allocation2 + $0x88] sm:$0xff] %v77_v17  ;;  %v151_v54 = vld [vmem:[%s9239_s8 + $0x1b0] sm:$0xff]  ;;  %v153_v55 = vld [vmem:[%s9239_s8 + $0x1b8] sm:$0xff]  ;;  %v155_v56 = vld [vmem:[%s9239_s8 + $0x1c0] sm:$0xff] }
  0x14   :  { %80 = vst [vmem:[#allocation2 + $0x90] sm:$0xff] %v79_v18  ;;  %v157_v57 = vld [vmem:[%s9239_s8 + $0x1c8] sm:$0xff]  ;;  %v159_v58 = vld [vmem:[%s9239_s8 + $0x1d0] sm:$0xff]  ;;  %v161_v59 = vld [vmem:[%s9239_s8 + $0x1d8] sm:$0xff] }
  0x15   :  { %82 = vst [vmem:[#allocation2 + $0x98] sm:$0xff] %v81_v19  ;;  %v163_v60 = vld [vmem:[%s9239_s8 + $0x1e0] sm:$0xff]  ;;  %v165_v61 = vld [vmem:[%s9239_s8 + $0x1e8] sm:$0xff]  ;;  %v167_v62 = vld [vmem:[%s9239_s8 + $0x1f0] sm:$0xff] }
  0x16   :  { %84 = vst [vmem:[#allocation2 + $0xa0] sm:$0xff] %v83_v20  ;;  %v169_v63 = vld [vmem:[%s9239_s8 + $0x1f8] sm:$0xff]  ;;  %v171_v0 = vld [vmem:[%s9239_s8 + $0x200] sm:$0xff]  ;;  %v173_v1 = vld [vmem:[%s9239_s8 + $0x208] sm:$0xff] }
  0x17   :  { %86 = vst [vmem:[#allocation2 + $0xa8] sm:$0xff] %v85_v21  ;;  %v175_v2 = vld [vmem:[%s9239_s8 + $0x210] sm:$0xff]  ;;  %v177_v3 = vld [vmem:[%s9239_s8 + $0x218] sm:$0xff]  ;;  %v179_v4 = vld [vmem:[%s9239_s8 + $0x220] sm:$0xff] }
  0x18   :  { %88 = vst [vmem:[#allocation2 + $0xb0] sm:$0xff] %v87_v22  ;;  %v181_v5 = vld [vmem:[%s9239_s8 + $0x228] sm:$0xff]  ;;  %v183_v6 = vld [vmem:[%s9239_s8 + $0x230] sm:$0xff]  ;;  %v185_v7 = vld [vmem:[%s9239_s8 + $0x238] sm:$0xff] }
  0x19   :  { %90 = vst [vmem:[#allocation2 + $0xb8] sm:$0xff] %v89_v23  ;;  %v187_v8 = vld [vmem:[%s9239_s8 + $0x240] sm:$0xff]  ;;  %v189_v9 = vld [vmem:[%s9239_s8 + $0x248] sm:$0xff]  ;;  %v191_v10 = vld [vmem:[%s9239_s8 + $0x250] sm:$0xff] }
  0x1a   :  { %92 = vst [vmem:[#allocation2 + $0xc0] sm:$0xff] %v91_v24  ;;  %v193_v11 = vld [vmem:[%s9239_s8 + $0x258] sm:$0xff]  ;;  %v195_v12 = vld [vmem:[%s9239_s8 + $0x260] sm:$0xff]  ;;  %v197_v13 = vld [vmem:[%s9239_s8 + $0x268] sm:$0xff] }
  0x1b   :  { %94 = vst [vmem:[#allocation2 + $0xc8] sm:$0xff] %v93_v25  ;;  %v199_v14 = vld [vmem:[%s9239_s8 + $0x270] sm:$0xff]  ;;  %v201_v15 = vld [vmem:[%s9239_s8 + $0x278] sm:$0xff]  ;;  %v203_v16 = vld [vmem:[%s9239_s8 + $0x280] sm:$0xff] }
  0x1c   :  { %96 = vst [vmem:[#allocation2 + $0xd0] sm:$0xff] %v95_v26  ;;  %v205_v17 = vld [vmem:[%s9239_s8 + $0x288] sm:$0xff]  ;;  %v207_v18 = vld [vmem:[%s9239_s8 + $0x290] sm:$0xff]  ;;  %v209_v19 = vld [vmem:[%s9239_s8 + $0x298] sm:$0xff] }
  0x1d   :  { %98 = vst [vmem:[#allocation2 + $0xd8] sm:$0xff] %v97_v27  ;;  %v211_v20 = vld [vmem:[%s9239_s8 + $0x2a0] sm:$0xff]  ;;  %v213_v21 = vld [vmem:[%s9239_s8 + $0x2a8] sm:$0xff]  ;;  %v215_v22 = vld [vmem:[%s9239_s8 + $0x2b0] sm:$0xff] }
  0x1e   :  { %100 = vst [vmem:[#allocation2 + $0xe0] sm:$0xff] %v99_v28  ;;  %v217_v23 = vld [vmem:[%s9239_s8 + $0x2b8] sm:$0xff]  ;;  %v219_v24 = vld [vmem:[%s9239_s8 + $0x2c0] sm:$0xff]  ;;  %v221_v25 = vld [vmem:[%s9239_s8 + $0x2c8] sm:$0xff] }
  0x1f   :  { %102 = vst [vmem:[#allocation2 + $0xe8] sm:$0xff] %v101_v29  ;;  %v223_v26 = vld [vmem:[%s9239_s8 + $0x2d0] sm:$0xff]  ;;  %v225_v27 = vld [vmem:[%s9239_s8 + $0x2d8] sm:$0xff]  ;;  %v227_v28 = vld [vmem:[%s9239_s8 + $0x2e0] sm:$0xff] }
  0x20   :  { %104 = vst [vmem:[#allocation2 + $0xf0] sm:$0xff] %v103_v30  ;;  %v229_v29 = vld [vmem:[%s9239_s8 + $0x2e8] sm:$0xff]  ;;  %v231_v30 = vld [vmem:[%s9239_s8 + $0x2f0] sm:$0xff] }
  0x21   :  { %106 = vst [vmem:[#allocation2 + $0xf8] sm:$0xff] %v105_v31  ;;  %v233_v31 = vld [vmem:[%s9239_s8 + $0x2f8] sm:$0xff] }
  0x22   :  { %108 = vst [vmem:[#allocation2 + $0x100] sm:$0xff] %v107_v32 }
  0x23   :  { %110 = vst [vmem:[#allocation2 + $0x108] sm:$0xff] %v109_v33 }
  0x24   :  { %112 = vst [vmem:[#allocation2 + $0x110] sm:$0xff] %v111_v34 }
  0x25   :  { %114 = vst [vmem:[#allocation2 + $0x118] sm:$0xff] %v113_v35 }
  0x26   :  { %116 = vst [vmem:[#allocation2 + $0x120] sm:$0xff] %v115_v36 }
  0x27   :  { %118 = vst [vmem:[#allocation2 + $0x128] sm:$0xff] %v117_v37 }
  0x28   :  { %120 = vst [vmem:[#allocation2 + $0x130] sm:$0xff] %v119_v38 }
  0x29   :  { %122 = vst [vmem:[#allocation2 + $0x138] sm:$0xff] %v121_v39 }
  0x2a   :  { %124 = vst [vmem:[#allocation2 + $0x140] sm:$0xff] %v123_v40 }
  0x2b   :  { %126 = vst [vmem:[#allocation2 + $0x148] sm:$0xff] %v125_v41 }
  0x2c   :  { %128 = vst [vmem:[#allocation2 + $0x150] sm:$0xff] %v127_v42 }
  0x2d   :  { %130 = vst [vmem:[#allocation2 + $0x158] sm:$0xff] %v129_v43 }
  0x2e   :  { %132 = vst [vmem:[#allocation2 + $0x160] sm:$0xff] %v131_v44 }
  0x2f   :  { %134 = vst [vmem:[#allocation2 + $0x168] sm:$0xff] %v133_v45 }
  0x30   :  { %136 = vst [vmem:[#allocation2 + $0x170] sm:$0xff] %v135_v46 }
  0x31   :  { %138 = vst [vmem:[#allocation2 + $0x178] sm:$0xff] %v137_v47 }
  0x32   :  { %140 = vst [vmem:[#allocation2 + $0x180] sm:$0xff] %v139_v48 }
  0x33   :  { %142 = vst [vmem:[#allocation2 + $0x188] sm:$0xff] %v141_v49 }
  0x34   :  { %144 = vst [vmem:[#allocation2 + $0x190] sm:$0xff] %v143_v50 }
  0x35   :  { %146 = vst [vmem:[#allocation2 + $0x198] sm:$0xff] %v145_v51 }
  0x36   :  { %148 = vst [vmem:[#allocation2 + $0x1a0] sm:$0xff] %v147_v52 }
  0x37   :  { %150 = vst [vmem:[#allocation2 + $0x1a8] sm:$0xff] %v149_v53 }
  0x38   :  { %152 = vst [vmem:[#allocation2 + $0x1b0] sm:$0xff] %v151_v54 }
  0x39   :  { %154 = vst [vmem:[#allocation2 + $0x1b8] sm:$0xff] %v153_v55 }
  0x3a   :  { %156 = vst [vmem:[#allocation2 + $0x1c0] sm:$0xff] %v155_v56 }
  0x3b   :  { %158 = vst [vmem:[#allocation2 + $0x1c8] sm:$0xff] %v157_v57 }
  0x3c   :  { %160 = vst [vmem:[#allocation2 + $0x1d0] sm:$0xff] %v159_v58 }
  0x3d   :  { %162 = vst [vmem:[#allocation2 + $0x1d8] sm:$0xff] %v161_v59 }
  0x3e   :  { %164 = vst [vmem:[#allocation2 + $0x1e0] sm:$0xff] %v163_v60 }
  0x3f   :  { %166 = vst [vmem:[#allocation2 + $0x1e8] sm:$0xff] %v165_v61 }
  0x40   :  { %168 = vst [vmem:[#allocation2 + $0x1f0] sm:$0xff] %v167_v62 }
  0x41   :  { %170 = vst [vmem:[#allocation2 + $0x1f8] sm:$0xff] %v169_v63 }
  0x42   :  { %172 = vst [vmem:[#allocation2 + $0x200] sm:$0xff] %v171_v0 }
  0x43   :  { %174 = vst [vmem:[#allocation2 + $0x208] sm:$0xff] %v173_v1 }
  0x44   :  { %176 = vst [vmem:[#allocation2 + $0x210] sm:$0xff] %v175_v2 }
  0x45   :  { %178 = vst [vmem:[#allocation2 + $0x218] sm:$0xff] %v177_v3 }
  0x46   :  { %180 = vst [vmem:[#allocation2 + $0x220] sm:$0xff] %v179_v4 }
  0x47   :  { %182 = vst [vmem:[#allocation2 + $0x228] sm:$0xff] %v181_v5 }
  0x48   :  { %184 = vst [vmem:[#allocation2 + $0x230] sm:$0xff] %v183_v6 }
  0x49   :  { %186 = vst [vmem:[#allocation2 + $0x238] sm:$0xff] %v185_v7 }
  0x4a   :  { %188 = vst [vmem:[#allocation2 + $0x240] sm:$0xff] %v187_v8 }
  0x4b   :  { %190 = vst [vmem:[#allocation2 + $0x248] sm:$0xff] %v189_v9 }
  0x4c   :  { %192 = vst [vmem:[#allocation2 + $0x250] sm:$0xff] %v191_v10 }
  0x4d   :  { %194 = vst [vmem:[#allocation2 + $0x258] sm:$0xff] %v193_v11 }
  0x4e   :  { %196 = vst [vmem:[#allocation2 + $0x260] sm:$0xff] %v195_v12 }
  0x4f   :  { %198 = vst [vmem:[#allocation2 + $0x268] sm:$0xff] %v197_v13 }
  0x50   :  { %200 = vst [vmem:[#allocation2 + $0x270] sm:$0xff] %v199_v14 }
  0x51   :  { %202 = vst [vmem:[#allocation2 + $0x278] sm:$0xff] %v201_v15 }
  0x52   :  { %204 = vst [vmem:[#allocation2 + $0x280] sm:$0xff] %v203_v16 }
  0x53   :  { %206 = vst [vmem:[#allocation2 + $0x288] sm:$0xff] %v205_v17 }
  0x54   :  { %208 = vst [vmem:[#allocation2 + $0x290] sm:$0xff] %v207_v18 }
  0x55   :  { %210 = vst [vmem:[#allocation2 + $0x298] sm:$0xff] %v209_v19 }
  0x56   :  { %212 = vst [vmem:[#allocation2 + $0x2a0] sm:$0xff] %v211_v20 }
  0x57   :  { %214 = vst [vmem:[#allocation2 + $0x2a8] sm:$0xff] %v213_v21 }
  0x58   :  { %216 = vst [vmem:[#allocation2 + $0x2b0] sm:$0xff] %v215_v22 }
  0x59   :  { %218 = vst [vmem:[#allocation2 + $0x2b8] sm:$0xff] %v217_v23 }
  0x5a   :  { %220 = vst [vmem:[#allocation2 + $0x2c0] sm:$0xff] %v219_v24 }
  0x5b   :  { %222 = vst [vmem:[#allocation2 + $0x2c8] sm:$0xff] %v221_v25 }
  0x5c   :  { %224 = vst [vmem:[#allocation2 + $0x2d0] sm:$0xff] %v223_v26 }
  0x5d   :  { %226 = vst [vmem:[#allocation2 + $0x2d8] sm:$0xff] %v225_v27 }
  0x5e   :  { %228 = vst [vmem:[#allocation2 + $0x2e0] sm:$0xff] %v227_v28 }
  0x5f   :  { %230 = vst [vmem:[#allocation2 + $0x2e8] sm:$0xff] %v229_v29 }
  0x60   :  { %232 = vst [vmem:[#allocation2 + $0x2f0] sm:$0xff] %v231_v30 }
  0x61   :  { %234 = vst [vmem:[#allocation2 + $0x2f8] sm:$0xff] %v233_v31 }
  0x62   :  { %240 = vsyncadd [#allocation4], 12288  ;;  %v252_v32 = vld [vmem:[%s9240_s9] sm:$0xff]  ;;  %v254_v33 = vld [vmem:[%s9240_s9 + $0x8] sm:$0xff]  ;;  %vm368_vm0 = vcmask 523264  }
  0x63   :  { %253 = vst [vmem:[#allocation3 + $0xb0] sm:$0xff] %v252_v32  ;;  %v256_v34 = vld [vmem:[%s9240_s9 + $0x10] sm:$0xff]  ;;  %v258_v35 = vld [vmem:[%s9240_s9 + $0x18] sm:$0xff]  ;;  %v260_v36 = vld [vmem:[%s9240_s9 + $0x20] sm:$0xff] }
  0x64   :  { %255 = vst [vmem:[#allocation3 + $0xd0] sm:$0xff] %v254_v33  ;;  %v262_v37 = vld [vmem:[%s9240_s9 + $0x28] sm:$0xff]  ;;  %v264_v38 = vld [vmem:[%s9240_s9 + $0x30] sm:$0xff]  ;;  %v266_v39 = vld [vmem:[%s9240_s9 + $0x38] sm:$0xff] }
  0x65   :  { %257 = vst [vmem:[#allocation3 + $0x10] sm:$0xff] %v256_v34  ;;  %v268_v40 = vld [vmem:[%s9240_s9 + $0x40] sm:$0xff]  ;;  %v270_v41 = vld [vmem:[%s9240_s9 + $0x48] sm:$0xff]  ;;  %v272_v42 = vld [vmem:[%s9240_s9 + $0x50] sm:$0xff] }
  0x66   :  { %259 = vst [vmem:[#allocation3 + $0x48] sm:$0xff] %v258_v35  ;;  %v274_v43 = vld [vmem:[%s9240_s9 + $0x58] sm:$0xff]  ;;  %v276_v44 = vld [vmem:[%s9240_s9 + $0x60] sm:$0xff]  ;;  %v278_v45 = vld [vmem:[%s9240_s9 + $0x68] sm:$0xff] }
  0x67   :  { %261 = vst [vmem:[#allocation3 + $0x160] sm:$0xff] %v260_v36  ;;  %v280_v46 = vld [vmem:[%s9240_s9 + $0x70] sm:$0xff]  ;;  %v282_v47 = vld [vmem:[%s9240_s9 + $0x78] sm:$0xff]  ;;  %v284_v48 = vld [vmem:[%s9240_s9 + $0x80] sm:$0xff] }
  0x68   :  { %263 = vst [vmem:[#allocation3 + $0x128] sm:$0xff] %v262_v37  ;;  %v286_v49 = vld [vmem:[%s9240_s9 + $0x88] sm:$0xff]  ;;  %v288_v50 = vld [vmem:[%s9240_s9 + $0x90] sm:$0xff]  ;;  %v290_v51 = vld [vmem:[%s9240_s9 + $0x98] sm:$0xff] }
  0x69   :  { %265 = vst [vmem:[#allocation3 + $0x40] sm:$0xff] %v264_v38  ;;  %v292_v52 = vld [vmem:[%s9240_s9 + $0xa0] sm:$0xff]  ;;  %v294_v53 = vld [vmem:[%s9240_s9 + $0xa8] sm:$0xff]  ;;  %v296_v54 = vld [vmem:[%s9240_s9 + $0xb0] sm:$0xff] }
  0x6a   :  { %267 = vst [vmem:[#allocation3 + $0x178] sm:$0xff] %v266_v39  ;;  %v298_v55 = vld [vmem:[%s9240_s9 + $0xb8] sm:$0xff]  ;;  %v300_v56 = vld [vmem:[%s9240_s9 + $0xc0] sm:$0xff]  ;;  %v302_v57 = vld [vmem:[%s9240_s9 + $0xc8] sm:$0xff] }
  0x6b   :  { %269 = vst [vmem:[#allocation3 + $0x108] sm:$0xff] %v268_v40  ;;  %v304_v58 = vld [vmem:[%s9240_s9 + $0xd0] sm:$0xff]  ;;  %v306_v59 = vld [vmem:[%s9240_s9 + $0xd8] sm:$0xff]  ;;  %v308_v60 = vld [vmem:[%s9240_s9 + $0xe0] sm:$0xff] }
  0x6c   :  { %271 = vst [vmem:[#allocation3 + $0x110] sm:$0xff] %v270_v41  ;;  %v310_v61 = vld [vmem:[%s9240_s9 + $0xe8] sm:$0xff]  ;;  %v312_v62 = vld [vmem:[%s9240_s9 + $0xf0] sm:$0xff]  ;;  %v314_v63 = vld [vmem:[%s9240_s9 + $0xf8] sm:$0xff] }
  0x6d   :  { %273 = vst [vmem:[#allocation3 + $0x90] sm:$0xff] %v272_v42  ;;  %v316_v0 = vld [vmem:[%s9240_s9 + $0x100] sm:$0xff]  ;;  %v318_v1 = vld [vmem:[%s9240_s9 + $0x108] sm:$0xff]  ;;  %v320_v2 = vld [vmem:[%s9240_s9 + $0x110] sm:$0xff] }
  0x6e   :  { %275 = vst [vmem:[#allocation3 + $0x118] sm:$0xff] %v274_v43  ;;  %v322_v3 = vld [vmem:[%s9240_s9 + $0x118] sm:$0xff]  ;;  %v324_v4 = vld [vmem:[%s9240_s9 + $0x120] sm:$0xff]  ;;  %v326_v5 = vld [vmem:[%s9240_s9 + $0x128] sm:$0xff] }
  0x6f   :  { %277 = vst [vmem:[#allocation3 + $0x148] sm:$0xff] %v276_v44  ;;  %v328_v6 = vld [vmem:[%s9240_s9 + $0x130] sm:$0xff]  ;;  %v330_v7 = vld [vmem:[%s9240_s9 + $0x138] sm:$0xff]  ;;  %v332_v8 = vld [vmem:[%s9240_s9 + $0x140] sm:$0xff] }
  0x70   :  { %279 = vst [vmem:[#allocation3 + $0x100] sm:$0xff] %v278_v45  ;;  %v334_v9 = vld [vmem:[%s9240_s9 + $0x148] sm:$0xff]  ;;  %v336_v10 = vld [vmem:[%s9240_s9 + $0x150] sm:$0xff]  ;;  %v338_v11 = vld [vmem:[%s9240_s9 + $0x158] sm:$0xff] }
  0x71   :  { %281 = vst [vmem:[#allocation3 + $0x58] sm:$0xff] %v280_v46  ;;  %v340_v12 = vld [vmem:[%s9240_s9 + $0x160] sm:$0xff]  ;;  %v342_v13 = vld [vmem:[%s9240_s9 + $0x168] sm:$0xff]  ;;  %v344_v14 = vld [vmem:[%s9240_s9 + $0x170] sm:$0xff] }
  0x72   :  { %283 = vst [vmem:[#allocation3 + $0xd8] sm:$0xff] %v282_v47  ;;  %v346_v15 = vld [vmem:[%s9240_s9 + $0x178] sm:$0xff]  ;;  %v366_v16 = vld [vmem:[%s9231_s0] sm:$0xff] }
  0x73   :  { %285 = vst [vmem:[#allocation3 + $0x80] sm:$0xff] %v284_v48 }
  0x74   :  { %287 = vst [vmem:[#allocation3 + $0x130] sm:$0xff] %v286_v49 }
  0x75   :  { %289 = vst [vmem:[#allocation3 + $0x138] sm:$0xff] %v288_v50 }
  0x76   :  { %291 = vst [vmem:[#allocation3 + $0x120] sm:$0xff] %v290_v51 }
  0x77   :  { %293 = vst [vmem:[#allocation3 + $0xe0] sm:$0xff] %v292_v52 }
  0x78   :  { %295 = vst [vmem:[#allocation3 + $0xa8] sm:$0xff] %v294_v53 }
  0x79   :  { %297 = vst [vmem:[#allocation3 + $0xb8] sm:$0xff] %v296_v54 }
  0x7a   :  { %299 = vst [vmem:[#allocation3 + $0x168] sm:$0xff] %v298_v55 }
  0x7b   :  { %301 = vst [vmem:[#allocation3 + $0xe8] sm:$0xff] %v300_v56 }
  0x7c   :  { %303 = vst [vmem:[#allocation3 + $0xf8] sm:$0xff] %v302_v57 }
  0x7d   :  { %305 = vst [vmem:[#allocation3 + $0x20] sm:$0xff] %v304_v58 }
  0x7e   :  { %307 = vst [vmem:[#allocation3 + $0x88] sm:$0xff] %v306_v59 }
  0x7f   :  { %309 = vst [vmem:[#allocation3 + $0xa0] sm:$0xff] %v308_v60 }
  0x80   :  { %311 = vst [vmem:[#allocation3 + $0x170] sm:$0xff] %v310_v61 }
  0x81   :  { %313 = vst [vmem:[#allocation3 + $0xf0] sm:$0xff] %v312_v62 }
  0x82   :  { %315 = vst [vmem:[#allocation3 + $0x140] sm:$0xff] %v314_v63 }
  0x83   :  { %317 = vst [vmem:[#allocation3 + $0x60] sm:$0xff] %v316_v0 }
  0x84   :  { %319 = vst [vmem:[#allocation3 + $0xc8] sm:$0xff] %v318_v1 }
  0x85   :  { %321 = vst [vmem:[#allocation3 + $0x28] sm:$0xff] %v320_v2 }
  0x86   :  { %323 = vst [vmem:[#allocation3 + $0x38] sm:$0xff] %v322_v3 }
  0x87   :  { %325 = vst [vmem:[#allocation3 + $0xc0] sm:$0xff] %v324_v4 }
  0x88   :  { %327 = vst [vmem:[#allocation3 + $0x18] sm:$0xff] %v326_v5 }
  0x89   :  { %329 = vst [vmem:[#allocation3 + $0x98] sm:$0xff] %v328_v6 }
  0x8a   :  { %331 = vst [vmem:[#allocation3 + $0x8] sm:$0xff] %v330_v7 }
  0x8b   :  { %333 = vst [vmem:[#allocation3] sm:$0xff] %v332_v8 }
  0x8c   :  { %335 = vst [vmem:[#allocation3 + $0x78] sm:$0xff] %v334_v9 }
  0x8d   :  { %337 = vst [vmem:[#allocation3 + $0x50] sm:$0xff] %v336_v10 }
  0x8e   :  { %339 = vst [vmem:[#allocation3 + $0x68] sm:$0xff] %v338_v11 }
  0x8f   :  { %341 = vst [vmem:[#allocation3 + $0x70] sm:$0xff] %v340_v12 }
  0x90   :  { %343 = vst [vmem:[#allocation3 + $0x30] sm:$0xff] %v342_v13 }
  0x91   :  { %345 = vst [vmem:[#allocation3 + $0x158] sm:$0xff] %v344_v14 }
  0x92   :  { %347 = vst [vmem:[#allocation3 + $0x150] sm:$0xff] %v346_v15 }
  0x93   :  { %353 = vsyncadd [#allocation4 + $0x1], 6144  ;;  %v369_v17 = vsel %vm368_vm0, %v366_v16, 0.0  ;;  %v367_v18 = vld [vmem:[%s9231_s0 + $0x8] sm:$0xff]  ;;  %v7534_v20 = vmov 64.0   ;;  %v8105_v14 = vld [vmem:[%s9233_s2] sm:$0xff] }
  0x94   :  { %370 = vadd.xlane.f32.xlu0 %v369_v17  ;;  %v372_v19 = vsel %vm368_vm0, %v367_v18, 0.0  ;;  %7318 = vrcp.f32 %v7534_v20  ;;  %v5865_v37 = vld [vmem:[%s9234_s3 + $0x30] sm:$0xf]  ;;  %v7076_v38 = vld [vmem:[%s9234_s3 + $0x34] sm:$0xf0]  ;;  %v420_v17 = vperm.slane %v8105_v14, 0 }
  0x95   :  { %v7075_v39 = vld [vmem:[%s9234_s3 + $0x34] sm:$0xf]  ;;  %v5866_v40 = vor.u32 %v7076_v38, %v5865_v37  ;;  %v5867_v41 = vld [vmem:[%s9234_s3 + $0x38] sm:$0xf0]  ;;  %v5857_v43 = vld [vmem:[%s9234_s3 + $0x20] sm:$0xf] }
  0x96   :  { %v5870_v42 = vor.u32 %v7075_v39, %v5867_v41  ;;  %v7074_v44 = vld [vmem:[%s9234_s3 + $0x24] sm:$0xf0]  ;;  %v7073_v45 = vld [vmem:[%s9234_s3 + $0x24] sm:$0xf]  ;;  %v5859_v47 = vld [vmem:[%s9234_s3 + $0x28] sm:$0xf0] }
  0x97   :  { %484 = vmatpush.bf16.msra.mxu0 %v5866_v40  ;;  %v5858_v46 = vor.u32 %v7074_v44, %v5857_v43  ;;  %v5862_v48 = vor.u32 %v7073_v45, %v5859_v47  ;;  %v5849_v49 = vld [vmem:[%s9234_s3 + $0x10] sm:$0xf]  ;;  %v7072_v50 = vld [vmem:[%s9234_s3 + $0x14] sm:$0xf0]  ;;  %v7071_v51 = vld [vmem:[%s9234_s3 + $0x14] sm:$0xf] }
  0x98   :  { %498 = vmatpush.bf16.msra.mxu1 %v5870_v42  ;;  %v5850_v52 = vor.u32 %v7072_v50, %v5849_v49  ;;  %v5851_v53 = vld [vmem:[%s9234_s3 + $0x18] sm:$0xf0]  ;;  %v5841_v54 = vld [vmem:[%s9234_s3] sm:$0xf]  ;;  %v7070_v55 = vld [vmem:[%s9234_s3 + $0x4] sm:$0xf0] }
  0x99   :  { %v5854_v56 = vor.u32 %v7071_v51, %v5851_v53  ;;  %v7069_v57 = vld [vmem:[%s9234_s3 + $0x4] sm:$0xf]  ;;  %v5843_v58 = vld [vmem:[%s9234_s3 + $0x8] sm:$0xf0]  ;;  %v5842_v60 = vor.u32 %v7070_v55, %v5841_v54  ;;  %s7535_s11 = smov 64   ;;  %s7536_s12 = smov 48  }
  0x9a   :  { %v7319_v21 = vpop.eup %7318  ;;  %v5846_v62 = vor.u32 %v7069_v57, %v5843_v58  ;;  %vm519_vm8 = vcmask 130048   ;;  %v363_v42 = vld [vmem:[%s9232_s1] sm:$0x3]  ;;  %vm579_vm9 = vcmask 64512   ;;  %s7537_s14 = smov 112   ;;  %s7538_s1 = smov 32  }
  0x9b   :  { %v376_v22 = vmul.f32 64.0, %v7319_v21  ;;  %vm380_vm1 = vweird.f32 %v7319_v21  ;;  %485 = vmatpush.bf16.msra.mxu0 %v5858_v46  ;;  %v8149_v43 = vperm.slane %v363_v42, 0  ;;  %v365_v51 = vrot.slane %v363_v42, 1  ;;  %s7539_s15 = smov 96   ;;  %s7540_s18 = smov 16  }
  0x9c   :  { %373 = vadd.xlane.f32.xlu0 %v372_v19  ;;  %499 = vmatpush.bf16.msra.mxu1 %v5862_v48  ;;  %s7541_s19 = smov 80  }
  0x9d   :  { %v377_v23 = vsub.f32 1.0, %v376_v22  ;;  %v423_v22 = vperm.slane %v8105_v14, 1 }
  0x9f   :  { %v378_v24 = vmul.f32 %v7319_v21, %v377_v23  ;;  %486 = vmatpush.bf16.msra.mxu0 %v5850_v52 }
  0xa0   :  { %500 = vmatpush.bf16.msra.mxu1 %v5854_v56  ;;  %v8158_v56 = vperm.slane %v365_v51, 0 }
  0xa1   :  { %v379_v25 = vadd.f32 %v7319_v21, %v378_v24 }
  0xa3   :  { %v8038_v26 = vsel %vm380_vm1, %v7319_v21, %v379_v25  ;;  %487 = vmatpush.bf16.msra.mxu0 %v5842_v60 }
  0xa4   :  { %501 = vmatpush.bf16.msra.mxu1 %v5846_v62 }
 0x107   :  { %v371_v27 = vpop.xlane.xlu0 %370 }
 0x108   :  { %v382_v28 = vmul.f32 %v8038_v26, %v371_v27 }
 0x10a   :  { %v8041_v29 = vsub.f32 %v366_v16, %v382_v28  ;;  %v355_v28 = vld [vmem:[%s9233_s2 + $0x8] sm:$0xff] }
 0x10c   :  { %v386_v30 = vmul.f32 %v8041_v29, %v8041_v29 }
 0x10e   :  { %v388_v31 = vsel %vm368_vm0, %v386_v30, 0.0  ;;  %v436_v30 = vperm.slane %v355_v28, 3 }
 0x10f   :  { %389 = vadd.xlane.f32.xlu1 %v388_v31  ;;  %v374_v32 = vpop.xlane.xlu0 %373 }
 0x110   :  { %v383_v33 = vmul.f32 %v8038_v26, %v374_v32 }
 0x112   :  { %v8047_v34 = vsub.f32 %v367_v18, %v383_v33 }
 0x114   :  { %v387_v35 = vmul.f32 %v8047_v34, %v8047_v34 }
 0x116   :  { %v391_v36 = vsel %vm368_vm0, %v387_v35, 0.0 }
 0x117   :  { %392 = vadd.xlane.f32.xlu1 %v391_v36 }
 0x182   :  { %v390_v59 = vpop.xlane.xlu1 %389 }
 0x183   :  { %v394_v61 = vmul.f32 %v390_v59, %v8038_v26 }
 0x185   :  { %v396_v63 = vadd.f32 1e-12, %v394_v61 }
 0x187   :  { %7320 = vrsqrt.f32 %v396_v63  ;;  %vm404_vm3 = vweird.f32 %v396_v63 }
 0x18a   :  { %v393_v0 = vpop.xlane.xlu1 %392 }
 0x18b   :  { %v395_v1 = vmul.f32 %v393_v0, %v8038_v26 }
 0x18d   :  { %v7321_v2 = vpop.eup %7320  ;;  %v397_v3 = vadd.f32 1e-12, %v395_v1 }
 0x18e   :  { %v399_v4 = vmul.f32 %v7321_v2, %v396_v63  ;;  %vm405_vm2 = vweird.f32 %v7321_v2 }
 0x18f   :  { %7322 = vrsqrt.f32 %v397_v3  ;;  %vm406_vm4 = vmor %vm404_vm3, %vm405_vm2  ;;  %vm414_vm6 = vweird.f32 %v397_v3 }
 0x190   :  { %v400_v5 = vmul.f32 %v7321_v2, %v399_v4 }
 0x192   :  { %v401_v6 = vmul.f32 0.5, %v400_v5 }
 0x194   :  { %v402_v7 = vsub.f32 1.5, %v401_v6 }
 0x195   :  { %v7323_v8 = vpop.eup %7322 }
 0x196   :  { %v403_v9 = vmul.f32 %v7321_v2, %v402_v7  ;;  %v409_v10 = vmul.f32 %v7323_v8, %v397_v3  ;;  %vm415_vm5 = vweird.f32 %v7323_v8 }
 0x197   :  { %vm416_vm7 = vmor %vm414_vm6, %vm415_vm5 }
 0x198   :  { %v410_v11 = vmul.f32 %v7323_v8, %v409_v10  ;;  %v407_v12 = vsel %vm406_vm4, %v7321_v2, %v403_v9 }
 0x199   :  { %v418_v16 = vmul.f32 %v407_v12, %v8041_v29  ;;  %v435_v29 = vperm.slane %v8105_v14, 3 }
 0x19a   :  { %v411_v13 = vmul.f32 0.5, %v410_v11 }
 0x19b   :  { %v421_v21 = vmul.f32 %v420_v17, %v418_v16 }
 0x19c   :  { %v412_v15 = vsub.f32 1.5, %v411_v13 }
 0x19d   :  { %v8111_v24 = vadd.f32 %v423_v22, %v421_v21 }
 0x19e   :  { %v413_v18 = vmul.f32 %v7323_v8, %v412_v15 }
 0x1a0   :  { %v417_v19 = vsel %vm416_vm7, %v7323_v8, %v413_v18 }
 0x1a1   :  { %v419_v20 = vmul.f32 %v417_v19, %v8047_v34 }
 0x1a3   :  { %v422_v23 = vmul.f32 %v420_v17, %v419_v20  ;;  %v7077_v17 = vld [vmem:[%s9235_s4] sm:$0xff] }
 0x1a5   :  { %v8113_v25 = vadd.f32 %v423_v22, %v422_v23 }
 0x1a7   :  { %v426_v27 = vpack.c.bf16 %v8113_v25, %v8111_v24 }
 0x1a9   :  { %5871 = vmatmul.msk.bf16.vlgmr.msra.gmra.mxu0 %vm368_vm0, %v426_v27  ;;  %5872 = vmatmul.msk.bf16.vlgmr.msra.gmra.mxu1 %vm368_vm0, %v426_v27 }
 0x226   :  { %v489_v31 = vpop.f32.mrf.mxu0  ;;  %v503_v32 = vpop.f32.mrf.mxu1 }
 0x227   :  { %v8123_v33 = vadd.f32 %v489_v31, %v435_v29  ;;  %v8125_v34 = vadd.f32 %v503_v32, %v436_v30 }
 0x229   :  { %620 = vmatpush.msra.mxu2 %v8125_v34  ;;  %517 = vrot.lane.b32.xlu2 %v8123_v33, %s7535_s11 }
 0x22e   :  { %v491_v35 = vpop.f32.mrf.mxu0  ;;  %v505_v38 = vpop.f32.mrf.mxu1 }
 0x22f   :  { %v8130_v36 = vadd.f32 %v491_v35, %v435_v29  ;;  %v8139_v39 = vadd.f32 %v505_v38, %v436_v30 }
 0x231   :  { %545 = vrot.lane.b32.xlu2 %v8130_v36, %s7535_s11 }
 0x239   :  { %651 = vrot.lane.b32.xlu2 %v8123_v33, %s7536_s12 }
 0x283   :  { %v518_v37 = vpop.permute.xlu2 %517 }
 0x284   :  { %5873 = vmatpush.xpose.msk.msrb.mxu1 %vm519_vm8, %v518_v37 }
 0x287   :  { %5874 = vmatmul.msk.f32.vlgmr.msrb.gmra.mxu1 %vm519_vm8, %v8123_v33 }
 0x288   :  { %825 = vmatpush.bf16.msra.mxu1 %v7077_v17 }
 0x28b   :  { %v546_v40 = vpop.permute.xlu2 %545 }
 0x28c   :  { %5875 = vmatpush.xpose.msk.msra.mxu3 %vm519_vm8, %v546_v40 }
 0x28f   :  { %5876 = vmatmul.msk.f32.vlgmr.msra.gmra.mxu3 %vm519_vm8, %v8130_v36 }
 0x290   :  { %643 = vmatpush.msrb.mxu3 %v8139_v39 }
 0x293   :  { %v652_v41 = vpop.permute.xlu2 %651 }
 0x294   :  { %5879 = vmatpush.xpose.msk.msrb.mxu2 %vm519_vm8, %v652_v41 }
 0x304   :  { %v541_v44 = vpop.f32.mrf.mxu1 }
 0x305   :  { %v571_v45 = vmul.f32 0.25, %v541_v44 }
 0x307   :  { %v577_v46 = vadd.f32 %v8149_v43, %v571_v45 }
 0x309   :  { %v580_v47 = vsel %vm579_vm9, %v577_v46, -inf }
 0x30a   :  { %581 = vmax.xlane.f32.xlu0 %v580_v47 }
 0x312   :  { %v568_v52 = vpop.f32.mrf.mxu3 }
 0x313   :  { %v572_v54 = vmul.f32 0.25, %v568_v52 }
 0x315   :  { %v578_v57 = vadd.f32 %v8158_v56, %v572_v54 }
 0x317   :  { %v583_v58 = vsel %vm579_vm9, %v578_v57, -inf }
 0x31e   :  { %649 = vrot.lane.b32.xlu0 %v8123_v33, %s7537_s14 }
 0x326   :  { %677 = vrot.lane.b32.xlu0 %v8130_v36, %s7537_s14 }
 0x37d   :  { %v582_v48 = vpop.xlane.xlu0 %581 }
 0x37e   :  { %v586_v49 = vsub.f32 %v577_v46, %v582_v48 }
 0x380   :  { %v588_v50 = vmul.f32 1.442695, %v586_v49 }
 0x382   :  { %7324 = vpow2.f32 %v588_v50 }
 0x388   :  { %v7325_v53 = vpop.eup %7324 }
 0x389   :  { %v592_v55 = vsel %vm579_vm9, %v7325_v53, 0.0 }
 0x38a   :  { %593 = vadd.xlane.f32.xlu1 %v592_v55 }
 0x390   :  { %v650_v1 = vpop.permute.xlu0 %649 }
 0x392   :  { %584 = vmax.xlane.f32.xlu1 %v583_v58 }
 0x398   :  { %v678_v15 = vpop.permute.xlu0 %677 }
 0x3ab   :  { %679 = vrot.lane.b32.xlu1 %v8130_v36, %s7536_s12 }
 0x3fd   :  { %v594_v59 = vpop.xlane.xlu1 %593 }
 0x3fe   :  { %7326 = vrcp.f32 %v594_v59 }
 0x404   :  { %v7327_v60 = vpop.eup %7326 }
 0x405   :  { %v585_v61 = vpop.xlane.xlu1 %584  ;;  %v600_v62 = vmul.f32 %v7327_v60, %v7325_v53 }
 0x406   :  { %v587_v63 = vsub.f32 %v578_v57, %v585_v61  ;;  %v7078_v57 = vld [vmem:[%s9235_s4 + $0x8] sm:$0xff] }
 0x407   :  { %5877 = vmatmul.msk.f32.vlgmr.msra.gmra.mxu2 %vm579_vm9, %v600_v62 }
 0x408   :  { %v590_v0 = vmul.f32 1.442695, %v587_v63 }
 0x40a   :  { %7328 = vpow2.f32 %v590_v0 }
 0x40f   :  { %5880 = vmatmul.msk.f32.vlgmr.msrb.gmra.mxu2 %vm519_vm8, %v650_v1 }
 0x410   :  { %v7329_v2 = vpop.eup %7328 }
 0x411   :  { %v595_v3 = vsel %vm579_vm9, %v7329_v2, 0.0 }
 0x412   :  { %596 = vadd.xlane.f32.xlu2 %v595_v3 }
 0x41d   :  { %v680_v4 = vpop.permute.xlu1 %679 }
 0x41e   :  { %5881 = vmatpush.xpose.msk.msra.mxu3 %vm519_vm8, %v680_v4 }
 0x42a   :  { %732 = vrot.lane.b32.xlu2 %v8125_v34, %s7537_s14 }
 0x432   :  { %834 = vrot.lane.b32.xlu2 %v8123_v33, %s7538_s1 }
 0x485   :  { %v597_v5 = vpop.xlane.xlu2 %596 }
 0x486   :  { %7330 = vrcp.f32 %v597_v5 }
 0x48a   :  { %v622_v6 = vpop.f32.mrf.mxu2 }
 0x48c   :  { %v7331_v7 = vpop.eup %7330 }
 0x48d   :  { %v733_v8 = vpop.permute.xlu2 %732  ;;  %v601_v9 = vmul.f32 %v7331_v7, %v7329_v2 }
 0x48e   :  { %753 = vmatpush.msra.mxu2 %v733_v8 }
 0x48f   :  { %5878 = vmatmul.msk.f32.vlgmr.msrb.gmra.mxu3 %vm579_vm9, %v601_v9 }
 0x492   :  { %v674_v10 = vpop.f32.mrf.mxu2 }
 0x493   :  { %v705_v11 = vmul.f32 0.25, %v674_v10 }
 0x495   :  { %v835_v12 = vpop.permute.xlu2 %834  ;;  %v707_v13 = vadd.f32 %v705_v11, %v8149_v43 }
 0x496   :  { %5895 = vmatpush.xpose.msk.msrb.mxu2 %vm519_vm8, %v835_v12 }
 0x497   :  { %5882 = vmatmul.msk.f32.vlgmr.msra.gmra.mxu3 %vm519_vm8, %v678_v15  ;;  %v709_v16 = vsel %vm579_vm9, %v707_v13, -inf }
 0x498   :  { %710 = vmax.xlane.f32.xlu0 %v709_v16 }
 0x4ac   :  { %832 = vrot.lane.b32.xlu0 %v8123_v33, %s7539_s15 }
 0x50b   :  { %v711_v18 = vpop.xlane.xlu0 %710 }
 0x50c   :  { %v715_v19 = vsub.f32 %v707_v13, %v711_v18 }
 0x50e   :  { %v717_v20 = vmul.f32 1.442695, %v715_v19 }
 0x510   :  { %7332 = vpow2.f32 %v717_v20 }
 0x512   :  { %v645_v21 = vpop.f32.mrf.mxu3 }
 0x513   :  { %v648_v22 = vpack.c.bf16 %v645_v21, %v622_v6 }
 0x515   :  { %5894 = vmatmul.msk.bf16.vlgmr.msra.gmra.mxu1 %vm519_vm8, %v648_v22 }
 0x516   :  { %v7333_v23 = vpop.eup %7332 }
 0x517   :  { %v721_v27 = vsel %vm579_vm9, %v7333_v23, 0.0 }
 0x518   :  { %722 = vadd.xlane.f32.xlu1 %v721_v27 }
 0x51a   :  { %v702_v28 = vpop.f32.mrf.mxu3 }
 0x51b   :  { %v706_v29 = vmul.f32 0.25, %v702_v28 }
 0x51d   :  { %v708_v30 = vadd.f32 %v706_v29, %v8158_v56 }
 0x51e   :  { %v833_v44 = vpop.permute.xlu0 %832 }
 0x51f   :  { %v712_v31 = vsel %vm579_vm9, %v708_v30, -inf }
 0x520   :  { %713 = vmax.xlane.f32.xlu2 %v712_v31 }
 0x538   :  { %862 = vrot.lane.b32.xlu2 %v8130_v36, %s7538_s1 }
 0x540   :  { %914 = vrot.lane.b32.xlu2 %v8125_v34, %s7539_s15 }
 0x548   :  { %994 = vrot.lane.b32.xlu2 %v8123_v33, %s7540_s18 }
 0x550   :  { %1020 = vrot.lane.b32.xlu2 %v8130_v36, %s7541_s19 }
 0x58b   :  { %v723_v32 = vpop.xlane.xlu1 %722 }
 0x58c   :  { %7334 = vrcp.f32 %v723_v32 }
 0x592   :  { %v7335_v35 = vpop.eup %7334  ;;  %v8217_v6 = vpop.f32.mrf.mxu1 }
 0x593   :  { %v729_v37 = vmul.f32 %v7335_v35, %v7333_v23  ;;  %v714_v38 = vpop.xlane.xlu2 %713 }
 0x594   :  { %v716_v40 = vsub.f32 %v708_v30, %v714_v38 }
 0x595   :  { %5883 = vmatmul.msk.f32.vlgmr.msra.gmra.mxu2 %vm579_vm9, %v729_v37 }
 0x596   :  { %v719_v41 = vmul.f32 1.442695, %v716_v40 }
 0x598   :  { %7336 = vpow2.f32 %v719_v41 }
 0x59a   :  { %v8220_v8 = vpop.f32.mrf.mxu1 }
 0x59b   :  { %v863_v42 = vpop.permute.xlu2 %862 }
 0x59d   :  { %5896 = vmatmul.msk.f32.vlgmr.msrb.gmra.mxu2 %vm519_vm8, %v833_v44 }
 0x59e   :  { %v7337_v45 = vpop.eup %7336 }
 0x59f   :  { %v724_v46 = vsel %vm579_vm9, %v7337_v45, 0.0 }
 0x5a0   :  { %725 = vadd.xlane.f32.xlu1 %v724_v46 }
 0x5a3   :  { %v915_v47 = vpop.permute.xlu2 %914 }
 0x5a4   :  { %935 = vmatpush.msra.mxu2 %v915_v47 }
 0x5ab   :  { %v995_v48 = vpop.permute.xlu2 %994 }
 0x5ac   :  { %5906 = vmatpush.xpose.msk.msrb.mxu1 %vm519_vm8, %v995_v48 }
 0x5b3   :  { %v1021_v12 = vpop.permute.xlu2 %1020 }
 0x5b9   :  { %759 = vrot.lane.b32.xlu1 %v8139_v39, %s7537_s14 }
 0x613   :  { %v726_v50 = vpop.xlane.xlu1 %725 }
 0x614   :  { %7338 = vrcp.f32 %v726_v50 }
 0x618   :  { %v755_v49 = vpop.f32.mrf.mxu2 }
 0x61a   :  { %v7339_v55 = vpop.eup %7338 }
 0x61b   :  { %v730_v58 = vmul.f32 %v7339_v55, %v7337_v45 }
 0x620   :  { %v857_v51 = vpop.f32.mrf.mxu2 }
 0x621   :  { %v888_v52 = vmul.f32 0.25, %v857_v51 }
 0x623   :  { %v890_v53 = vadd.f32 %v888_v52, %v8149_v43 }
 0x625   :  { %v892_v54 = vsel %vm579_vm9, %v890_v53, -inf }
 0x626   :  { %893 = vmax.xlane.f32.xlu0 %v892_v54 }
 0x62b   :  { %v760_v59 = vpop.permute.xlu1 %759 }
 0x62c   :  { %780 = vmatpush.msrb.mxu3 %v760_v59 }
 0x62d   :  { %5884 = vmatmul.msk.f32.vlgmr.msrb.gmra.mxu3 %vm579_vm9, %v730_v58  ;;  %v7079_v58 = vld [vmem:[%s9235_s4 + $0x10] sm:$0xff] }
 0x62e   :  { %802 = vmatpush.bf16.msra.mxu3 %v7078_v57  ;;  %983 = vmatpush.bf16.msrb.mxu0 %v7079_v58 }
 0x632   :  { %5897 = vmatpush.xpose.msk.msrb.mxu3 %vm519_vm8, %v863_v42 }
 0x63a   :  { %860 = vrot.lane.b32.xlu0 %v8130_v36, %s7539_s15 }
 0x642   :  { %992 = vrot.lane.b32.xlu0 %v8123_v33, %s7541_s19 }
 0x699   :  { %v894_v60 = vpop.xlane.xlu0 %893 }
 0x69a   :  { %v898_v61 = vsub.f32 %v890_v53, %v894_v60 }
 0x69c   :  { %v900_v62 = vmul.f32 1.442695, %v898_v61 }
 0x69e   :  { %7340 = vpow2.f32 %v900_v62 }
 0x6a4   :  { %v7341_v63 = vpop.eup %7340 }
 0x6a5   :  { %v904_v0 = vsel %vm579_vm9, %v7341_v63, 0.0 }
 0x6a6   :  { %905 = vadd.xlane.f32.xlu1 %v904_v0 }
 0x6ac   :  { %v861_v1 = vpop.permute.xlu0 %860 }
 0x6b0   :  { %v782_v2 = vpop.f32.mrf.mxu3 }
 0x6b1   :  { %v785_v3 = vpack.c.bf16 %v782_v2, %v755_v49 }
 0x6b3   :  { %5889 = vmatmul.msk.bf16.vlgmr.msra.gmra.mxu3 %vm519_vm8, %v785_v3 }
 0x6b4   :  { %v993_v4 = vpop.permute.xlu0 %992 }
 0x6b5   :  { %5907 = vmatmul.msk.f32.vlgmr.msrb.gmra.mxu1 %vm519_vm8, %v993_v4 }
 0x6bf   :  { %1022 = vrot.lane.b32.xlu1 %v8130_v36, %s7540_s18 }
 0x6c3   :  { %5898 = vmatmul.msk.f32.vlgmr.msrb.gmra.mxu3 %vm519_vm8, %v861_v1 }
 0x719   :  { %v906_v33 = vpop.xlane.xlu1 %905 }
 0x71a   :  { %7342 = vrcp.f32 %v906_v33 }
 0x720   :  { %v7343_v5 = vpop.eup %7342 }
 0x721   :  { %v912_v7 = vmul.f32 %v7343_v5, %v7341_v63  ;;  %v1152_v5 = vperm.slane %v8105_v14, 4 }
 0x723   :  { %5899 = vmatmul.msk.f32.vlgmr.msra.gmra.mxu2 %vm579_vm9, %v912_v7 }
 0x731   :  { %v1023_v9 = vpop.permute.xlu1 %1022 }
 0x732   :  { %v1017_v10 = vpop.f32.mrf.mxu1  ;;  %5908 = vmatpush.xpose.msk.msrb.mxu2 %vm519_vm8, %v1023_v9 }
 0x733   :  { %v1048_v11 = vmul.f32 0.25, %v1017_v10 }
 0x735   :  { %5909 = vmatmul.msk.f32.vlgmr.msrb.gmra.mxu2 %vm519_vm8, %v1021_v12  ;;  %v1050_v36 = vadd.f32 %v1048_v11, %v8149_v43 }
 0x736   :  { %v8225_v13 = vpop.f32.mrf.mxu3 }
 0x737   :  { %v1052_v15 = vsel %vm579_vm9, %v1050_v36, -inf  ;;  %v828_v4 = vadd.f32 %v8217_v6, %v8225_v13 }
 0x738   :  { %1053 = vmax.xlane.f32.xlu2 %v1052_v15 }
 0x73e   :  { %v8228_v16 = vpop.f32.mrf.mxu3 }
 0x73f   :  { %v830_v12 = vadd.f32 %v8220_v8, %v8228_v16 }
 0x746   :  { %v885_v17 = vpop.f32.mrf.mxu3 }
 0x747   :  { %v889_v18 = vmul.f32 0.25, %v885_v17 }
 0x749   :  { %v891_v19 = vadd.f32 %v889_v18, %v8158_v56 }
 0x74b   :  { %v895_v20 = vsel %vm579_vm9, %v891_v19, -inf }
 0x74c   :  { %896 = vmax.xlane.f32.xlu0 %v895_v20 }
 0x7a6   :  { %v937_v27 = vpop.f32.mrf.mxu2 }
 0x7ab   :  { %v1054_v21 = vpop.xlane.xlu2 %1053 }
 0x7ac   :  { %v1058_v22 = vsub.f32 %v1050_v36, %v1054_v21 }
 0x7ae   :  { %v1060_v23 = vmul.f32 1.442695, %v1058_v22 }
 0x7b0   :  { %7344 = vpow2.f32 %v1060_v23 }
 0x7b6   :  { %v7345_v28 = vpop.eup %7344 }
 0x7b7   :  { %v1064_v29 = vsel %vm579_vm9, %v7345_v28, 0.0 }
 0x7b8   :  { %v1045_v30 = vpop.f32.mrf.mxu2  ;;  %1065 = vadd.xlane.f32.xlu2 %v1064_v29 }
 0x7b9   :  { %v1049_v31 = vmul.f32 0.25, %v1045_v30 }
 0x7bb   :  { %v1051_v32 = vadd.f32 %v1049_v31, %v8158_v56  ;;  %v7083_v31 = vld [vmem:[%s9236_s5 + $0x10] sm:$0xff] }
 0x7bd   :  { %v1055_v35 = vsel %vm579_vm9, %v1051_v32, -inf }
 0x7be   :  { %1056 = vmax.xlane.f32.xlu1 %v1055_v35 }
 0x7bf   :  { %v897_v37 = vpop.xlane.xlu0 %896 }
 0x7c0   :  { %v899_v38 = vsub.f32 %v891_v19, %v897_v37 }
 0x7c2   :  { %v902_v40 = vmul.f32 1.442695, %v899_v38  ;;  %v7081_v38 = vld [vmem:[%s9236_s5] sm:$0xff] }
 0x7c4   :  { %7346 = vpow2.f32 %v902_v40 }
 0x7ca   :  { %v7347_v41 = vpop.eup %7346 }
 0x7cb   :  { %v907_v42 = vsel %vm579_vm9, %v7347_v41, 0.0 }
 0x7cc   :  { %908 = vadd.xlane.f32.xlu0 %v907_v42 }
 0x7d7   :  { %1074 = vrot.lane.b32.xlu1 %v8125_v34, %s7541_s19 }
 0x7e0   :  { %940 = vrot.lane.b32.xlu0 %v8139_v39, %s7539_s15 }
 0x82b   :  { %v1066_v50 = vpop.xlane.xlu2 %1065 }
 0x831   :  { %v1057_v44 = vpop.xlane.xlu1 %1056 }
 0x832   :  { %v1059_v45 = vsub.f32 %v1051_v32, %v1057_v44  ;;  %v7082_v32 = vld [vmem:[%s9236_s5 + $0x8] sm:$0xff] }
 0x834   :  { %v1062_v46 = vmul.f32 1.442695, %v1059_v45 }
 0x836   :  { %7348 = vpow2.f32 %v1062_v46 }
 0x83c   :  { %v7349_v47 = vpop.eup %7348 }
 0x83d   :  { %v1067_v48 = vsel %vm579_vm9, %v7349_v47, 0.0 }
 0x83e   :  { %1068 = vadd.xlane.f32.xlu2 %v1067_v48 }
 0x83f   :  { %v909_v49 = vpop.xlane.xlu0 %908 }
 0x840   :  { %7350 = vrcp.f32 %v909_v49 }
 0x841   :  { %7352 = vrcp.f32 %v1066_v50 }
 0x846   :  { %v7351_v51 = vpop.eup %7350 }
 0x847   :  { %v913_v52 = vmul.f32 %v7351_v51, %v7347_v41  ;;  %v7353_v54 = vpop.eup %7352 }
 0x848   :  { %v1072_v55 = vmul.f32 %v7353_v54, %v7345_v28 }
 0x849   :  { %v1075_v34 = vpop.permute.xlu1 %1074 }
 0x852   :  { %v941_v53 = vpop.permute.xlu0 %940 }
 0x853   :  { %961 = vmatpush.msra.mxu3 %v941_v53 }
 0x854   :  { %5900 = vmatmul.msk.f32.vlgmr.msra.gmra.mxu3 %vm579_vm9, %v913_v52 }
 0x855   :  { %1095 = vmatpush.msrb.mxu3 %v1075_v34 }
 0x856   :  { %1100 = vrot.lane.b32.xlu2 %v8139_v39, %s7541_s19  ;;  %v7080_v39 = vld [vmem:[%s9235_s4 + $0x18] sm:$0xff] }
 0x857   :  { %1143 = vmatpush.bf16.msra.mxu2 %v7080_v39 }
 0x85c   :  { %5910 = vmatmul.msk.f32.vlgmr.msrb.gmra.mxu3 %vm579_vm9, %v1072_v55 }
 0x8b1   :  { %v1069_v57 = vpop.xlane.xlu2 %1068 }
 0x8b2   :  { %7354 = vrcp.f32 %v1069_v57  ;;  %v1201_v57 = vperm.slane %v8105_v14, 5 }
 0x8b8   :  { %v7355_v59 = vpop.eup %7354 }
 0x8b9   :  { %v1073_v60 = vmul.f32 %v7355_v59, %v7349_v47  ;;  %v1101_v61 = vpop.permute.xlu2 %1100 }
 0x8ba   :  { %1121 = vmatpush.msra.mxu1 %v1101_v61  ;;  %v1204_v61 = vperm.slane %v8105_v14, 6 }
 0x8bb   :  { %5911 = vmatmul.msk.f32.vlgmr.msra.gmra.mxu1 %vm579_vm9, %v1073_v60 }
 0x8d7   :  { %v963_v62 = vpop.f32.mrf.mxu3 }
 0x8d8   :  { %v966_v63 = vpack.c.bf16 %v963_v62, %v937_v27 }
 0x8da   :  { %5905 = vmatmul.msk.bf16.vlgmr.msrb.gmra.mxu0 %vm519_vm8, %v966_v63 }
 0x8df   :  { %v1097_v0 = vpop.f32.mrf.mxu3 }
 0x938   :  { %v1123_v1 = vpop.f32.mrf.mxu1 }
 0x939   :  { %v1126_v2 = vpack.c.bf16 %v1123_v1, %v1097_v0 }
 0x93b   :  { %5916 = vmatmul.msk.bf16.vlgmr.msra.gmra.mxu2 %vm519_vm8, %v1126_v2 }
 0x957   :  { %v985_v3 = vpop.f32.mrf.mxu0 }
 0x958   :  { %v990_v33 = vadd.f32 %v985_v3, %v828_v4  ;;  %v7092_v3 = vld [vmem:[%s9237_s6 + $0x38] sm:$0xff]  ;;  %v7091_v4 = vld [vmem:[%s9237_s6 + $0x30] sm:$0xff] }
 0x959   :  { %1342 = vmatpush.bf16.msra.mxu3 %v7092_v3  ;;  %v7097_v3 = vld [vmem:[%s9234_s3 + $0x64] sm:$0xf] }
 0x95d   :  { %1343 = vmatpush.bf16.msra.mxu3 %v7091_v4 }
 0x95f   :  { %v987_v11 = vpop.f32.mrf.mxu0 }
 0x960   :  { %v991_v15 = vadd.f32 %v987_v11, %v830_v12  ;;  %v1216_v11 = vperm.slane %v8105_v14, 7 }
 0x9be   :  { %v1145_v7 = vpop.f32.mrf.mxu2 }
 0x9bf   :  { %v1150_v9 = vadd.f32 %v1145_v7, %v990_v33  ;;  %v7090_v33 = vld [vmem:[%s9237_s6 + $0x28] sm:$0xff]  ;;  %v7088_v7 = vld [vmem:[%s9237_s6 + $0x18] sm:$0xff] }
 0x9c0   :  { %1344 = vmatpush.bf16.msra.mxu3 %v7090_v33  ;;  %v5994_v33 = vld [vmem:[%s9234_s3 + $0x68] sm:$0xf0] }
 0x9c1   :  { %v1153_v10 = vadd.f32 %v1152_v5, %v1150_v9  ;;  %v7087_v9 = vld [vmem:[%s9237_s6 + $0x10] sm:$0xff] }
 0x9c3   :  { %v1155_v36 = vadd.f32 %v1153_v10, %v8111_v24  ;;  %v7086_v10 = vld [vmem:[%s9237_s6 + $0x8] sm:$0xff] }
 0x9c5   :  { %v1157_v17 = vsel %vm368_vm0, %v1155_v36, 0.0 }
 0x9c6   :  { %1158 = vadd.xlane.f32.xlu0 %v1157_v17  ;;  %v1147_v18 = vpop.f32.mrf.mxu2 }
 0x9c7   :  { %v1151_v19 = vadd.f32 %v1147_v18, %v991_v15 }
 0x9c9   :  { %v1154_v20 = vadd.f32 %v1152_v5, %v1151_v19  ;;  %v7089_v5 = vld [vmem:[%s9237_s6 + $0x20] sm:$0xff] }
 0x9ca   :  { %1345 = vmatpush.bf16.msra.mxu3 %v7089_v5  ;;  %v5997_v5 = vor.u32 %v7097_v3, %v5994_v33 }
 0x9cb   :  { %v1156_v6 = vadd.f32 %v1154_v20, %v8113_v25  ;;  %v7084_v25 = vld [vmem:[%s9236_s5 + $0x18] sm:$0xff] }
 0x9cc   :  { %1248 = vmatpush.bf16.msra.mxu0 %v7084_v25 }
 0x9cd   :  { %v1160_v13 = vsel %vm368_vm0, %v1156_v6, 0.0 }
 0x9ce   :  { %1161 = vadd.xlane.f32.xlu1 %v1160_v13  ;;  %1346 = vmatpush.bf16.msra.mxu3 %v7088_v7  ;;  %v5984_v7 = vld [vmem:[%s9234_s3 + $0x50] sm:$0xf] }
 0x9d0   :  { %1249 = vmatpush.bf16.msra.mxu0 %v7083_v31 }
 0x9d2   :  { %1347 = vmatpush.bf16.msra.mxu3 %v7087_v9  ;;  %v7096_v9 = vld [vmem:[%s9234_s3 + $0x54] sm:$0xf0] }
 0x9d4   :  { %1250 = vmatpush.bf16.msra.mxu0 %v7082_v32 }
 0x9d6   :  { %1348 = vmatpush.bf16.msra.mxu3 %v7086_v10  ;;  %v7095_v10 = vld [vmem:[%s9234_s3 + $0x54] sm:$0xf] }
 0x9d8   :  { %1251 = vmatpush.bf16.msra.mxu0 %v7081_v38  ;;  %v8312_v38 = vld [vmem:[%s9233_s2 + $0x10] sm:$0xff] }
 0xa39   :  { %v1159_v21 = vpop.xlane.xlu0 %1158 }
 0xa3a   :  { %v1163_v22 = vmul.f32 %v1159_v21, %v8038_v26 }
 0xa3c   :  { %v1165_v23 = vsub.f32 %v1155_v36, %v1163_v22  ;;  %v7085_v36 = vld [vmem:[%s9237_s6] sm:$0xff] }
 0xa3d   :  { %1349 = vmatpush.bf16.msra.mxu3 %v7085_v36 }
 0xa3e   :  { %v1167_v27 = vmul.f32 %v1165_v23, %v1165_v23 }
 0xa40   :  { %v1169_v8 = vsel %vm368_vm0, %v1167_v27, 0.0 }
 0xa41   :  { %1170 = vadd.xlane.f32.xlu2 %v1169_v8  ;;  %v1162_v24 = vpop.xlane.xlu1 %1161 }
 0xa42   :  { %v1164_v16 = vmul.f32 %v1162_v24, %v8038_v26 }
 0xa44   :  { %v1166_v28 = vsub.f32 %v1156_v6, %v1164_v16 }
 0xa46   :  { %v1168_v29 = vmul.f32 %v1166_v28, %v1166_v28 }
 0xa48   :  { %v1172_v30 = vsel %vm368_vm0, %v1168_v29, 0.0 }
 0xa49   :  { %1173 = vadd.xlane.f32.xlu0 %v1172_v30 }
 0xab4   :  { %v1171_v35 = vpop.xlane.xlu2 %1170 }
 0xab5   :  { %v1175_v37 = vmul.f32 %v1171_v35, %v8038_v26 }
 0xab7   :  { %v1177_v40 = vadd.f32 1e-12, %v1175_v37 }
 0xab9   :  { %7356 = vrsqrt.f32 %v1177_v40  ;;  %vm1185_vm11 = vweird.f32 %v1177_v40 }
 0xabc   :  { %v1174_v41 = vpop.xlane.xlu0 %1173 }
 0xabd   :  { %v1176_v42 = vmul.f32 %v1174_v41, %v8038_v26 }
 0xabf   :  { %v7357_v44 = vpop.eup %7356  ;;  %v1178_v45 = vadd.f32 1e-12, %v1176_v42 }
 0xac0   :  { %v1180_v46 = vmul.f32 %v7357_v44, %v1177_v40  ;;  %vm1186_vm10 = vweird.f32 %v7357_v44  ;;  %v1293_v40 = vperm.slane %v8312_v38, 0 }
 0xac1   :  { %7358 = vrsqrt.f32 %v1178_v45  ;;  %vm1187_vm12 = vmor %vm1185_vm11, %vm1186_vm10  ;;  %vm1195_vm14 = vweird.f32 %v1178_v45 }
 0xac2   :  { %v1181_v47 = vmul.f32 %v7357_v44, %v1180_v46 }
 0xac4   :  { %v1182_v48 = vmul.f32 0.5, %v1181_v47 }
 0xac6   :  { %v1183_v49 = vsub.f32 1.5, %v1182_v48 }
 0xac7   :  { %v7359_v50 = vpop.eup %7358 }
 0xac8   :  { %v1184_v51 = vmul.f32 %v7357_v44, %v1183_v49  ;;  %v1190_v52 = vmul.f32 %v7359_v50, %v1178_v45  ;;  %vm1196_vm13 = vweird.f32 %v7359_v50 }
 0xac9   :  { %vm1197_vm15 = vmor %vm1195_vm14, %vm1196_vm13 }
 0xaca   :  { %v1191_v53 = vmul.f32 %v7359_v50, %v1190_v52  ;;  %v1188_v34 = vsel %vm1187_vm12, %v7357_v44, %v1184_v51 }
 0xacb   :  { %v1199_v58 = vmul.f32 %v1188_v34, %v1165_v23 }
 0xacc   :  { %v1192_v54 = vmul.f32 0.5, %v1191_v53 }
 0xacd   :  { %v1202_v62 = vmul.f32 %v1201_v57, %v1199_v58 }
 0xace   :  { %v1193_v55 = vsub.f32 1.5, %v1192_v54 }
 0xacf   :  { %v1205_v0 = vadd.f32 %v1204_v61, %v1202_v62  ;;  %v7099_v62 = vld [vmem:[%s9234_s3 + $0x74] sm:$0xf] }
 0xad0   :  { %v1194_v59 = vmul.f32 %v7359_v50, %v1193_v55 }
 0xad2   :  { %v1198_v60 = vsel %vm1197_vm15, %v7359_v50, %v1194_v59 }
 0xad3   :  { %v1200_v63 = vmul.f32 %v1198_v60, %v1166_v28  ;;  %v6000_v60 = vld [vmem:[%s9234_s3 + $0x70] sm:$0xf] }
 0xad5   :  { %v1203_v39 = vmul.f32 %v1201_v57, %v1200_v63 }
 0xad7   :  { %v1206_v1 = vadd.f32 %v1204_v61, %v1203_v39  ;;  %v7100_v61 = vld [vmem:[%s9234_s3 + $0x74] sm:$0xf0]  ;;  %v6002_v39 = vld [vmem:[%s9234_s3 + $0x78] sm:$0xf0] }
 0xad8   :  { %v6001_v63 = vor.u32 %v7100_v61, %v6000_v60 }
 0xad9   :  { %v1207_v2 = vpack.c.bf16 %v1206_v1, %v1205_v0 }
 0xada   :  { %1467 = vmatpush.bf16.msrb.mxu1 %v6001_v63 }
 0xadb   :  { %5933 = vmatmul.msk.bf16.vlgmr.msra.gmra.mxu0 %vm368_vm0, %v1207_v2  ;;  %v7098_v2 = vld [vmem:[%s9234_s3 + $0x64] sm:$0xf0] }
 0xb58   :  { %v1253_v12 = vpop.f32.mrf.mxu0 }
 0xb59   :  { %v1254_v15 = vadd.f32 %v1253_v12, %v1216_v11  ;;  %v5986_v12 = vld [vmem:[%s9234_s3 + $0x58] sm:$0xf0] }
 0xb5b   :  { %v1258_v17 = vmul.f32 %v1254_v15, %v1254_v15 }
 0xb5d   :  { %v1260_v18 = vmul.f32 %v1258_v17, %v1254_v15 }
 0xb5f   :  { %v1262_v19 = vmul.f32 0.044715, %v1260_v18  ;;  %v5976_v18 = vld [vmem:[%s9234_s3 + $0x40] sm:$0xf] }
 0xb60   :  { %v1255_v20 = vpop.f32.mrf.mxu0 }
 0xb61   :  { %v1264_v6 = vadd.f32 %v1262_v19, %v1254_v15  ;;  %v1256_v13 = vadd.f32 %v1255_v20, %v1216_v11  ;;  %v5985_v11 = vor.u32 %v7096_v9, %v5984_v7  ;;  %v7094_v19 = vld [vmem:[%s9234_s3 + $0x44] sm:$0xf0]  ;;  %v7093_v20 = vld [vmem:[%s9234_s3 + $0x44] sm:$0xf] }
 0xb63   :  { %v1266_v21 = vmul.f32 0.7978846, %v1264_v6  ;;  %v1259_v22 = vmul.f32 %v1256_v13, %v1256_v13 }
 0xb65   :  { %v1261_v23 = vmul.f32 %v1259_v22, %v1256_v13  ;;  %7360 = vtanh.f32 %v1266_v21  ;;  %v5978_v21 = vld [vmem:[%s9234_s3 + $0x48] sm:$0xf0] }
 0xb66   :  { %v5981_v22 = vor.u32 %v7093_v20, %v5978_v21 }
 0xb67   :  { %v1263_v27 = vmul.f32 0.044715, %v1261_v23 }
 0xb69   :  { %v1265_v8 = vadd.f32 %v1263_v27, %v1256_v13 }
 0xb6b   :  { %v1267_v24 = vmul.f32 0.7978846, %v1265_v8  ;;  %v7361_v16 = vpop.eup %7360 }
 0xb6c   :  { %v1270_v28 = vadd.f32 1.0, %v7361_v16 }
 0xb6d   :  { %7362 = vtanh.f32 %v1267_v24 }
 0xb6e   :  { %v1272_v25 = vmul.f32 0.5, %v1270_v28 }
 0xb70   :  { %v1274_v35 = vmul.f32 %v1272_v25, %v1254_v15  ;;  %v5989_v15 = vor.u32 %v7095_v10, %v5986_v12 }
 0xb73   :  { %v7363_v29 = vpop.eup %7362 }
 0xb74   :  { %v1271_v30 = vadd.f32 1.0, %v7363_v29 }
 0xb76   :  { %v1273_v31 = vmul.f32 0.5, %v1271_v30 }
 0xb78   :  { %v1275_v32 = vmul.f32 %v1273_v31, %v1256_v13  ;;  %v5977_v13 = vor.u32 %v7094_v19, %v5976_v18 }
 0xb7a   :  { %v1276_v37 = vpack.c.bf16 %v1275_v32, %v1274_v35 }
 0xb7c   :  { %1350 = vmatmul.bf16.vlgmr.msra.gmra.mxu3 %v1276_v37 }
 0xbff   :  { %v1351_v41 = vpop.f32.mrf.mxu3 }
 0xc00   :  { %v1352_v42 = vadd.f32 %v1351_v41, %v1293_v40 }
 0xc02   :  { %v1356_v44 = vadd.f32 %v1352_v42, %v1205_v0  ;;  %v6005_v0 = vor.u32 %v7099_v62, %v6002_v39  ;;  %v1402_v42 = vperm.slane %v8312_v38, 1 }
 0xc04   :  { %v1358_v45 = vsel %vm368_vm0, %v1356_v44, 0.0  ;;  %1481 = vmatpush.bf16.msrb.mxu2 %v6005_v0 }
 0xc05   :  { %1359 = vadd.xlane.f32.xlu0 %v1358_v45 }
 0xc07   :  { %v1353_v46 = vpop.f32.mrf.mxu3 }
 0xc08   :  { %v1354_v47 = vadd.f32 %v1353_v46, %v1293_v40  ;;  %1482 = vmatpush.bf16.msrb.mxu2 %v5997_v5 }
 0xc0a   :  { %v1357_v48 = vadd.f32 %v1354_v47, %v1206_v1  ;;  %v5992_v1 = vld [vmem:[%s9234_s3 + $0x60] sm:$0xf]  ;;  %v1405_v47 = vperm.slane %v8312_v38, 2 }
 0xc0b   :  { %v5993_v4 = vor.u32 %v7098_v2, %v5992_v1 }
 0xc0c   :  { %v1361_v49 = vsel %vm368_vm0, %v1357_v48, 0.0  ;;  %1483 = vmatpush.bf16.msrb.mxu2 %v5989_v15 }
 0xc0d   :  { %1362 = vadd.xlane.f32.xlu1 %v1361_v49  ;;  %1468 = vmatpush.bf16.msrb.mxu1 %v5993_v4 }
 0xc10   :  { %1484 = vmatpush.bf16.msrb.mxu2 %v5981_v22 }
 0xc11   :  { %1469 = vmatpush.bf16.msrb.mxu1 %v5985_v11 }
 0xc15   :  { %1470 = vmatpush.bf16.msrb.mxu1 %v5977_v13 }
 0xc78   :  { %v1360_v50 = vpop.xlane.xlu0 %1359 }
 0xc79   :  { %v1364_v51 = vmul.f32 %v1360_v50, %v8038_v26 }
 0xc7b   :  { %v8318_v52 = vsub.f32 %v1356_v44, %v1364_v51 }
 0xc7d   :  { %v1368_v53 = vmul.f32 %v8318_v52, %v8318_v52 }
 0xc7f   :  { %v1370_v34 = vsel %vm368_vm0, %v1368_v53, 0.0 }
 0xc80   :  { %v1363_v54 = vpop.xlane.xlu1 %1362  ;;  %1371 = vadd.xlane.f32.xlu2 %v1370_v34 }
 0xc81   :  { %v1365_v55 = vmul.f32 %v1363_v54, %v8038_v26 }
 0xc83   :  { %v8324_v57 = vsub.f32 %v1357_v48, %v1365_v55  ;;  %v357_v55 = vld [vmem:[%s9233_s2 + $0x18] sm:$0xff] }
 0xc85   :  { %v1369_v58 = vmul.f32 %v8324_v57, %v8324_v57 }
 0xc87   :  { %v1373_v59 = vsel %vm368_vm0, %v1369_v58, 0.0  ;;  %v1419_v58 = vperm.slane %v357_v55, 3 }
 0xc88   :  { %1374 = vadd.xlane.f32.xlu0 %v1373_v59 }
 0xcf3   :  { %v1372_v36 = vpop.xlane.xlu2 %1371 }
 0xcf4   :  { %v1376_v17 = vmul.f32 %v1372_v36, %v8038_v26 }
 0xcf6   :  { %v1378_v6 = vadd.f32 1e-12, %v1376_v17 }
 0xcf8   :  { %7364 = vrsqrt.f32 %v1378_v6  ;;  %vm1386_vm2 = vweird.f32 %v1378_v6 }
 0xcfb   :  { %v1375_v23 = vpop.xlane.xlu0 %1374 }
 0xcfc   :  { %v1377_v27 = vmul.f32 %v1375_v23, %v8038_v26 }
 0xcfe   :  { %v7365_v8 = vpop.eup %7364  ;;  %v1379_v24 = vadd.f32 1e-12, %v1377_v27 }
 0xcff   :  { %v1381_v16 = vmul.f32 %v7365_v8, %v1378_v6  ;;  %vm1387_vm1 = vweird.f32 %v7365_v8 }
 0xd00   :  { %7366 = vrsqrt.f32 %v1379_v24  ;;  %vm1388_vm3 = vmor %vm1386_vm2, %vm1387_vm1  ;;  %vm1396_vm5 = vweird.f32 %v1379_v24 }
 0xd01   :  { %v1382_v28 = vmul.f32 %v7365_v8, %v1381_v16 }
 0xd03   :  { %v1383_v29 = vmul.f32 0.5, %v1382_v28 }
 0xd05   :  { %v1384_v30 = vsub.f32 1.5, %v1383_v29 }
 0xd06   :  { %v7367_v25 = vpop.eup %7366 }
 0xd07   :  { %v1385_v31 = vmul.f32 %v7365_v8, %v1384_v30  ;;  %v1391_v32 = vmul.f32 %v7367_v25, %v1379_v24  ;;  %vm1397_vm4 = vweird.f32 %v7367_v25 }
 0xd08   :  { %vm1398_vm6 = vmor %vm1396_vm5, %vm1397_vm4 }
 0xd09   :  { %v1392_v35 = vmul.f32 %v7367_v25, %v1391_v32  ;;  %v1389_v37 = vsel %vm1388_vm3, %v7365_v8, %v1385_v31 }
 0xd0a   :  { %v1400_v44 = vmul.f32 %v1389_v37, %v8318_v52  ;;  %v1418_v52 = vperm.slane %v8312_v38, 3 }
 0xd0b   :  { %v1393_v40 = vmul.f32 0.5, %v1392_v35 }
 0xd0c   :  { %v1403_v48 = vmul.f32 %v1402_v42, %v1400_v44 }
 0xd0d   :  { %v1394_v41 = vsub.f32 1.5, %v1393_v40 }
 0xd0e   :  { %v8383_v51 = vadd.f32 %v1405_v47, %v1403_v48 }
 0xd0f   :  { %v1395_v45 = vmul.f32 %v7367_v25, %v1394_v41 }
 0xd11   :  { %v1399_v46 = vsel %vm1398_vm6, %v7367_v25, %v1395_v45 }
 0xd12   :  { %v1401_v49 = vmul.f32 %v1399_v46, %v8324_v57 }
 0xd14   :  { %v1404_v50 = vmul.f32 %v1402_v42, %v1401_v49 }
 0xd16   :  { %v8385_v53 = vadd.f32 %v1405_v47, %v1404_v50 }
 0xd18   :  { %v1408_v34 = vpack.c.bf16 %v8385_v53, %v8383_v51 }
 0xd1a   :  { %6006 = vmatmul.msk.bf16.vlgmr.msrb.gmra.mxu1 %vm368_vm0, %v1408_v34  ;;  %6007 = vmatmul.msk.bf16.vlgmr.msrb.gmra.mxu2 %vm368_vm0, %v1408_v34  ;;  %v7101_v34 = vld [vmem:[%s9235_s4 + $0x20] sm:$0xff] }
 0xd97   :  { %v1472_v54 = vpop.f32.mrf.mxu1 }
 0xd98   :  { %v8395_v57 = vadd.f32 %v1472_v54, %v1418_v52 }
 0xd9a   :  { %1629 = vrot.lane.b32.xlu0 %v8395_v57, %s7536_s12  ;;  %1501 = vrot.lane.b32.xlu1 %v8395_v57, %s7535_s11 }
 0xd9d   :  { %v1486_v59 = vpop.f32.mrf.mxu2 }
 0xd9e   :  { %v8401_v60 = vadd.f32 %v1486_v59, %v1419_v58 }
 0xd9f   :  { %v1474_v61 = vpop.f32.mrf.mxu1 }
 0xda0   :  { %v8403_v62 = vadd.f32 %v1474_v61, %v1418_v52  ;;  %1598 = vmatpush.msra.mxu1 %v8401_v60 }
 0xda2   :  { %1528 = vrot.lane.b32.xlu2 %v8403_v62, %s7535_s11  ;;  %1627 = vrot.lane.b32.xlu0 %v8395_v57, %s7537_s14 }
 0xda5   :  { %v1488_v63 = vpop.f32.mrf.mxu2 }
 0xda6   :  { %v8410_v39 = vadd.f32 %v1488_v63, %v1419_v58 }
 0xda8   :  { %1621 = vmatpush.msra.mxu2 %v8410_v39 }
 0xdfc   :  { %v1529_v1 = vpop.permute.xlu2 %1528 }
 0xe0c   :  { %v1502_v0 = vpop.permute.xlu1 %1501  ;;  %v1630_v2 = vpop.permute.xlu0 %1629 }
 0xe0d   :  { %6016 = vmatpush.xpose.msk.msrb.mxu0 %vm519_vm8, %v1502_v0 }
 0xe10   :  { %6017 = vmatmul.msk.f32.vlgmr.msrb.gmra.mxu0 %vm519_vm8, %v8395_v57 }
 0xe11   :  { %6018 = vmatpush.xpose.msk.msra.mxu0 %vm519_vm8, %v1529_v1 }
 0xe14   :  { %v1628_v3 = vpop.permute.xlu0 %1627 }
 0xe15   :  { %6022 = vmatpush.xpose.msk.msrb.mxu0 %vm519_vm8, %v1630_v2 }
 0xe18   :  { %6019 = vmatmul.msk.f32.vlgmr.msra.gmra.mxu0 %vm519_vm8, %v8403_v62 }
 0xe20   :  { %6023 = vmatmul.msk.f32.vlgmr.msrb.gmra.mxu0 %vm519_vm8, %v1628_v3 }
 0xe8d   :  { %v1524_v4 = vpop.f32.mrf.mxu0 }
 0xe8e   :  { %v1554_v33 = vmul.f32 0.25, %v1524_v4 }
 0xe90   :  { %v1556_v5 = vadd.f32 %v1554_v33, %v8149_v43 }
 0xe92   :  { %v1558_v7 = vsel %vm579_vm9, %v1556_v5, -inf }
 0xe93   :  { %1559 = vmax.xlane.f32.xlu2 %v1558_v7 }
 0xe95   :  { %v1551_v9 = vpop.f32.mrf.mxu0 }
 0xe96   :  { %v1555_v10 = vmul.f32 0.25, %v1551_v9 }
 0xe98   :  { %v1557_v11 = vadd.f32 %v1555_v10, %v8158_v56 }
 0xe9a   :  { %v1561_v12 = vsel %vm579_vm9, %v1557_v11, -inf }
 0xe9b   :  { %1562 = vmax.xlane.f32.xlu1 %v1561_v12 }
 0xe9d   :  { %v1652_v36 = vpop.f32.mrf.mxu0 }
 0xe9e   :  { %v1683_v15 = vmul.f32 0.25, %v1652_v36 }
 0xea0   :  { %v1685_v17 = vadd.f32 %v1683_v15, %v8149_v43 }
 0xea2   :  { %v1687_v18 = vsel %vm579_vm9, %v1685_v17, -inf }
 0xea3   :  { %1688 = vmax.xlane.f32.xlu0 %v1687_v18 }
 0xeb4   :  { %1710 = vrot.lane.b32.xlu1 %v8401_v60, %s7537_s14 }
 0xeb7   :  { %1657 = vrot.lane.b32.xlu0 %v8403_v62, %s7536_s12 }
 0xebf   :  { %1812 = vrot.lane.b32.xlu0 %v8395_v57, %s7538_s1 }
 0xf06   :  { %v1560_v19 = vpop.xlane.xlu2 %1559 }
 0xf07   :  { %v1564_v20 = vsub.f32 %v1556_v5, %v1560_v19 }
 0xf09   :  { %v1566_v6 = vmul.f32 1.442695, %v1564_v20 }
 0xf0b   :  { %7368 = vpow2.f32 %v1566_v6 }
 0xf0e   :  { %v1563_v13 = vpop.xlane.xlu1 %1562 }
 0xf0f   :  { %v1565_v21 = vsub.f32 %v1557_v11, %v1563_v13 }
 0xf11   :  { %v7369_v22 = vpop.eup %7368  ;;  %v1568_v23 = vmul.f32 1.442695, %v1565_v21 }
 0xf12   :  { %v1570_v27 = vsel %vm579_vm9, %v7369_v22, 0.0 }
 0xf13   :  { %7370 = vpow2.f32 %v1568_v23  ;;  %1571 = vadd.xlane.f32.xlu2 %v1570_v27 }
 0xf16   :  { %v1689_v8 = vpop.xlane.xlu0 %1688 }
 0xf17   :  { %v1693_v24 = vsub.f32 %v1685_v17, %v1689_v8 }
 0xf19   :  { %v7371_v16 = vpop.eup %7370  ;;  %v1695_v28 = vmul.f32 1.442695, %v1693_v24 }
 0xf1a   :  { %v1573_v29 = vsel %vm579_vm9, %v7371_v16, 0.0 }
 0xf1b   :  { %7372 = vpow2.f32 %v1695_v28  ;;  %1574 = vadd.xlane.f32.xlu1 %v1573_v29  ;;  %v7102_v28 = vld [vmem:[%s9235_s4 + $0x28] sm:$0xff] }
 0xf1c   :  { %1780 = vmatpush.bf16.msra.mxu0 %v7102_v28  ;;  %v2130_v28 = vperm.slane %v8312_v38, 4 }
 0xf21   :  { %v7373_v30 = vpop.eup %7372 }
 0xf22   :  { %v1699_v25 = vsel %vm579_vm9, %v7373_v30, 0.0 }
 0xf23   :  { %1700 = vadd.xlane.f32.xlu2 %v1699_v25 }
 0xf26   :  { %v1711_v31 = vpop.permute.xlu1 %1710 }
 0xf27   :  { %1731 = vmatpush.msrb.mxu2 %v1711_v31 }
 0xf29   :  { %v1658_v32 = vpop.permute.xlu0 %1657 }
 0xf2a   :  { %6024 = vmatpush.xpose.msk.msrb.mxu1 %vm519_vm8, %v1658_v32 }
 0xf31   :  { %v1813_v46 = vpop.permute.xlu0 %1812 }
 0xf34   :  { %1810 = vrot.lane.b32.xlu1 %v8395_v57, %s7539_s15 }
 0xf3b   :  { %1655 = vrot.lane.b32.xlu2 %v8403_v62, %s7537_s14 }
 0xf3c   :  { %1840 = vrot.lane.b32.xlu1 %v8403_v62, %s7538_s1 }
 0xf86   :  { %v1572_v35 = vpop.xlane.xlu2 %1571 }
 0xf87   :  { %7374 = vrcp.f32 %v1572_v35 }
 0xf8d   :  { %v7375_v37 = vpop.eup %7374 }
 0xf8e   :  { %v1578_v40 = vmul.f32 %v7375_v37, %v7369_v22  ;;  %v1575_v41 = vpop.xlane.xlu1 %1574 }
 0xf8f   :  { %7376 = vrcp.f32 %v1575_v41 }
 0xf90   :  { %6020 = vmatmul.msk.f32.vlgmr.msra.gmra.mxu1 %vm579_vm9, %v1578_v40 }
 0xf91   :  { %1803 = vmatpush.bf16.msra.mxu1 %v7101_v34 }
 0xf95   :  { %v7377_v42 = vpop.eup %7376 }
 0xf96   :  { %v1579_v44 = vmul.f32 %v7377_v42, %v7371_v16  ;;  %v1701_v45 = vpop.xlane.xlu2 %1700 }
 0xf97   :  { %7378 = vrcp.f32 %v1701_v45 }
 0xf98   :  { %6021 = vmatmul.msk.f32.vlgmr.msra.gmra.mxu2 %vm579_vm9, %v1579_v44 }
 0xf99   :  { %6038 = vmatpush.xpose.msk.msra.mxu2 %vm519_vm8, %v1813_v46 }
 0xf9d   :  { %v7379_v47 = vpop.eup %7378 }
 0xf9e   :  { %v1707_v48 = vmul.f32 %v7379_v47, %v7373_v30  ;;  %v1656_v49 = vpop.permute.xlu2 %1655 }
 0xf9f   :  { %6025 = vmatmul.msk.f32.vlgmr.msrb.gmra.mxu1 %vm519_vm8, %v1656_v49 }
 0xfa0   :  { %6026 = vmatmul.msk.f32.vlgmr.msrb.gmra.mxu2 %vm579_vm9, %v1707_v48 }
 0xfa6   :  { %v1811_v50 = vpop.permute.xlu1 %1810 }
 0xfa8   :  { %6039 = vmatmul.msk.f32.vlgmr.msra.gmra.mxu2 %vm519_vm8, %v1811_v50 }
 0xfae   :  { %v1841_v17 = vpop.permute.xlu1 %1840 }
0x100d   :  { %v1600_v52 = vpop.f32.mrf.mxu1 }
0x101b   :  { %v1623_v54 = vpop.f32.mrf.mxu2 }
0x101c   :  { %v1626_v55 = vpack.c.bf16 %v1623_v54, %v1600_v52  ;;  %v1680_v58 = vpop.f32.mrf.mxu1 }
0x101d   :  { %v1684_v59 = vmul.f32 0.25, %v1680_v58 }
0x101e   :  { %6037 = vmatmul.msk.bf16.vlgmr.msra.gmra.mxu1 %vm519_vm8, %v1626_v55 }
0x101f   :  { %v1686_v61 = vadd.f32 %v1684_v59, %v8158_v56 }
0x1021   :  { %v1690_v63 = vsel %vm579_vm9, %v1686_v61, -inf }
0x1022   :  { %1691 = vmax.xlane.f32.xlu0 %v1690_v63 }
0x1023   :  { %v1733_v0 = vpop.f32.mrf.mxu2 }
0x102b   :  { %v1835_v1 = vpop.f32.mrf.mxu2 }
0x102c   :  { %v1866_v2 = vmul.f32 0.25, %v1835_v1 }
0x102e   :  { %v1868_v3 = vadd.f32 %v1866_v2, %v8149_v43 }
0x1030   :  { %v1870_v4 = vsel %vm579_vm9, %v1868_v3, -inf }
0x1031   :  { %1871 = vmax.xlane.f32.xlu2 %v1870_v4 }
0x1036   :  { %1737 = vrot.lane.b32.xlu0 %v8410_v39, %s7537_s14 }
0x103e   :  { %1892 = vrot.lane.b32.xlu0 %v8401_v60, %s7539_s15 }
0x1046   :  { %1972 = vrot.lane.b32.xlu0 %v8395_v57, %s7540_s18 }
0x1049   :  { %1838 = vrot.lane.b32.xlu2 %v8403_v62, %s7539_s15 }
0x104e   :  { %1998 = vrot.lane.b32.xlu0 %v8403_v62, %s7541_s19 }
0x1095   :  { %v1692_v33 = vpop.xlane.xlu0 %1691 }
0x1096   :  { %v1694_v5 = vsub.f32 %v1686_v61, %v1692_v33 }
0x1098   :  { %v1697_v7 = vmul.f32 1.442695, %v1694_v5 }
0x109a   :  { %7380 = vpow2.f32 %v1697_v7 }
0x109b   :  { %v8484_v29 = vpop.f32.mrf.mxu1 }
0x10a0   :  { %v7381_v9 = vpop.eup %7380 }
0x10a1   :  { %v1702_v10 = vsel %vm579_vm9, %v7381_v9, 0.0 }
0x10a2   :  { %1703 = vadd.xlane.f32.xlu1 %v1702_v10 }
0x10a3   :  { %v8486_v30 = vpop.f32.mrf.mxu1 }
0x10a4   :  { %v1872_v11 = vpop.xlane.xlu2 %1871 }
0x10a5   :  { %v1876_v12 = vsub.f32 %v1868_v3, %v1872_v11 }
0x10a7   :  { %v1878_v36 = vmul.f32 1.442695, %v1876_v12 }
0x10a8   :  { %v1738_v15 = vpop.permute.xlu0 %1737 }
0x10a9   :  { %7382 = vpow2.f32 %v1878_v36  ;;  %1758 = vmatpush.msrb.mxu3 %v1738_v15 }
0x10ab   :  { %6040 = vmatpush.xpose.msk.msra.mxu3 %vm519_vm8, %v1841_v17 }
0x10ac   :  { %v1839_v22 = vpop.permute.xlu2 %1838 }
0x10af   :  { %v7383_v18 = vpop.eup %7382 }
0x10b0   :  { %v1893_v19 = vpop.permute.xlu0 %1892  ;;  %v1882_v20 = vsel %vm579_vm9, %v7383_v18, 0.0 }
0x10b1   :  { %1913 = vmatpush.msrb.mxu2 %v1893_v19  ;;  %1883 = vadd.xlane.f32.xlu2 %v1882_v20 }
0x10b8   :  { %v1973_v6 = vpop.permute.xlu0 %1972 }
0x10b9   :  { %6049 = vmatpush.xpose.msk.msrb.mxu1 %vm519_vm8, %v1973_v6  ;;  %v7104_v6 = vld [vmem:[%s9235_s4 + $0x38] sm:$0xff] }
0x10bb   :  { %2000 = vrot.lane.b32.xlu1 %v8403_v62, %s7540_s18 }
0x10c9   :  { %1970 = vrot.lane.b32.xlu2 %v8395_v57, %s7541_s19  ;;  %v1999_v57 = vpop.permute.xlu0 %1998 }
0x1115   :  { %v1704_v13 = vpop.xlane.xlu1 %1703 }
0x1116   :  { %7384 = vrcp.f32 %v1704_v13 }
0x111c   :  { %v7385_v21 = vpop.eup %7384 }
0x111d   :  { %v1708_v23 = vmul.f32 %v7385_v21, %v7381_v9 }
0x111f   :  { %6027 = vmatmul.msk.f32.vlgmr.msrb.gmra.mxu3 %vm579_vm9, %v1708_v23 }
0x1124   :  { %v1884_v27 = vpop.xlane.xlu2 %1883 }
0x1125   :  { %7386 = vrcp.f32 %v1884_v27 }
0x1127   :  { %6041 = vmatmul.msk.f32.vlgmr.msra.gmra.mxu3 %vm519_vm8, %v1839_v22 }
0x112b   :  { %v7387_v8 = vpop.eup %7386 }
0x112c   :  { %v1890_v24 = vmul.f32 %v7387_v8, %v7383_v18  ;;  %v1971_v16 = vpop.permute.xlu2 %1970 }
0x112d   :  { %6050 = vmatmul.msk.f32.vlgmr.msrb.gmra.mxu1 %vm519_vm8, %v1971_v16  ;;  %v2001_v62 = vpop.permute.xlu1 %2000 }
0x112e   :  { %6042 = vmatmul.msk.f32.vlgmr.msrb.gmra.mxu2 %vm579_vm9, %v1890_v24 }
0x112f   :  { %6051 = vmatpush.xpose.msk.msra.mxu2 %vm519_vm8, %v2001_v62 }
0x1133   :  { %2121 = vmatpush.bf16.msrb.mxu2 %v7104_v6  ;;  %v2179_v6 = vperm.slane %v8312_v38, 5 }
0x1136   :  { %6052 = vmatmul.msk.f32.vlgmr.msra.gmra.mxu2 %vm519_vm8, %v1999_v57 }
0x11a2   :  { %v1760_v25 = vpop.f32.mrf.mxu3 }
0x11a3   :  { %v1763_v31 = vpack.c.bf16 %v1760_v25, %v1733_v0 }
0x11a5   :  { %6032 = vmatmul.msk.bf16.vlgmr.msra.gmra.mxu0 %vm519_vm8, %v1763_v31 }
0x11aa   :  { %v1863_v32 = vpop.f32.mrf.mxu3  ;;  %v1995_v35 = vpop.f32.mrf.mxu1 }
0x11ab   :  { %v1867_v37 = vmul.f32 0.25, %v1863_v32  ;;  %v2026_v40 = vmul.f32 0.25, %v1995_v35 }
0x11ad   :  { %v2028_v41 = vadd.f32 %v2026_v40, %v8149_v43  ;;  %v1869_v42 = vadd.f32 %v1867_v37, %v8158_v56 }
0x11af   :  { %v2030_v44 = vsel %vm579_vm9, %v2028_v41, -inf  ;;  %v1873_v45 = vsel %vm579_vm9, %v1869_v42, -inf }
0x11b0   :  { %2031 = vmax.xlane.f32.xlu2 %v2030_v44  ;;  %1874 = vmax.xlane.f32.xlu1 %v1873_v45 }
0x11b1   :  { %v1915_v46 = vpop.f32.mrf.mxu2 }
0x11b9   :  { %v2023_v47 = vpop.f32.mrf.mxu2 }
0x11ba   :  { %v2027_v48 = vmul.f32 0.25, %v2023_v47 }
0x11bc   :  { %v2029_v49 = vadd.f32 %v2027_v48, %v8158_v56 }
0x11be   :  { %v2033_v50 = vsel %vm579_vm9, %v2029_v49, -inf }
0x11bf   :  { %2034 = vmax.xlane.f32.xlu0 %v2033_v50 }
0x11d3   :  { %1918 = vrot.lane.b32.xlu0 %v8410_v39, %s7539_s15 }
0x1222   :  { %v1782_v8 = vpop.f32.mrf.mxu0 }
0x1223   :  { %v2032_v34 = vpop.xlane.xlu2 %2031  ;;  %v1875_v52 = vpop.xlane.xlu1 %1874  ;;  %v1806_v62 = vadd.f32 %v8484_v29, %v1782_v8 }
0x1224   :  { %v2036_v54 = vsub.f32 %v2028_v41, %v2032_v34  ;;  %v1877_v55 = vsub.f32 %v1869_v42, %v1875_v52 }
0x1226   :  { %v2038_v58 = vmul.f32 1.442695, %v2036_v54  ;;  %v1880_v59 = vmul.f32 1.442695, %v1877_v55 }
0x1228   :  { %7388 = vpow2.f32 %v2038_v58 }
0x1229   :  { %7390 = vpow2.f32 %v1880_v59 }
0x122a   :  { %v1784_v24 = vpop.f32.mrf.mxu0 }
0x122b   :  { %v1808_v37 = vadd.f32 %v8486_v30, %v1784_v24 }
0x122e   :  { %v7389_v61 = vpop.eup %7388 }
0x122f   :  { %v7391_v63 = vpop.eup %7390  ;;  %v2042_v0 = vsel %vm579_vm9, %v7389_v61, 0.0 }
0x1230   :  { %2043 = vadd.xlane.f32.xlu2 %v2042_v0  ;;  %v1885_v1 = vsel %vm579_vm9, %v7391_v63, 0.0  ;;  %v7106_v0 = vld [vmem:[%s9236_s5 + $0x28] sm:$0xff] }
0x1231   :  { %1886 = vadd.xlane.f32.xlu1 %v1885_v1 }
0x1232   :  { %v2035_v2 = vpop.xlane.xlu0 %2034 }
0x1233   :  { %v2037_v3 = vsub.f32 %v2029_v49, %v2035_v2 }
0x1235   :  { %v2040_v4 = vmul.f32 1.442695, %v2037_v3 }
0x1237   :  { %7392 = vpow2.f32 %v2040_v4  ;;  %v7105_v4 = vld [vmem:[%s9236_s5 + $0x20] sm:$0xff] }
0x123d   :  { %v7393_v33 = vpop.eup %7392 }
0x123e   :  { %v2045_v5 = vsel %vm579_vm9, %v7393_v33, 0.0 }
0x123f   :  { %2046 = vadd.xlane.f32.xlu1 %v2045_v5 }
0x1245   :  { %v1919_v7 = vpop.permute.xlu0 %1918 }
0x1246   :  { %1939 = vmatpush.msrb.mxu3 %v1919_v7 }
0x1248   :  { %2052 = vrot.lane.b32.xlu2 %v8401_v60, %s7541_s19 }
0x1258   :  { %2078 = vrot.lane.b32.xlu1 %v8410_v39, %s7541_s19  ;;  %v7103_v39 = vld [vmem:[%s9235_s4 + $0x30] sm:$0xff] }
0x1259   :  { %1961 = vmatpush.bf16.msrb.mxu0 %v7103_v39 }
0x12a3   :  { %v2044_v9 = vpop.xlane.xlu2 %2043 }
0x12a4   :  { %v1887_v10 = vpop.xlane.xlu1 %1886 }
0x12a5   :  { %7394 = vrcp.f32 %v1887_v10 }
0x12a6   :  { %7396 = vrcp.f32 %v2044_v9 }
0x12ab   :  { %v7395_v11 = vpop.eup %7394  ;;  %v2053_v12 = vpop.permute.xlu2 %2052 }
0x12ac   :  { %v1891_v36 = vmul.f32 %v7395_v11, %v7391_v63  ;;  %2073 = vmatpush.msra.mxu3 %v2053_v12  ;;  %v7397_v15 = vpop.eup %7396  ;;  %v7107_v63 = vld [vmem:[%s9236_s5 + $0x30] sm:$0xff] }
0x12ad   :  { %v2050_v17 = vmul.f32 %v7397_v15, %v7389_v61  ;;  %v7108_v61 = vld [vmem:[%s9236_s5 + $0x38] sm:$0xff] }
0x12ae   :  { %6043 = vmatmul.msk.f32.vlgmr.msrb.gmra.mxu3 %vm579_vm9, %v1891_v36  ;;  %2227 = vmatpush.bf16.msra.mxu0 %v7108_v61 }
0x12b2   :  { %v2047_v18 = vpop.xlane.xlu1 %2046  ;;  %2228 = vmatpush.bf16.msra.mxu0 %v7107_v63 }
0x12b3   :  { %7398 = vrcp.f32 %v2047_v18 }
0x12b6   :  { %6053 = vmatmul.msk.f32.vlgmr.msra.gmra.mxu3 %vm579_vm9, %v2050_v17  ;;  %2229 = vmatpush.bf16.msra.mxu0 %v7106_v0 }
0x12b9   :  { %v7399_v60 = vpop.eup %7398 }
0x12ba   :  { %v2051_v19 = vmul.f32 %v7399_v60, %v7393_v33  ;;  %2230 = vmatpush.bf16.msra.mxu0 %v7105_v4 }
0x12ca   :  { %v2079_v20 = vpop.permute.xlu1 %2078 }
0x12cb   :  { %2099 = vmatpush.msra.mxu1 %v2079_v20 }
0x12cc   :  { %6054 = vmatmul.msk.f32.vlgmr.msra.gmra.mxu1 %vm579_vm9, %v2051_v19 }
0x1331   :  { %v1941_v13 = vpop.f32.mrf.mxu3 }
0x1332   :  { %v1944_v21 = vpack.c.bf16 %v1941_v13, %v1915_v46 }
0x1334   :  { %6048 = vmatmul.msk.bf16.vlgmr.msrb.gmra.mxu0 %vm519_vm8, %v1944_v21 }
0x1339   :  { %v2075_v22 = vpop.f32.mrf.mxu3 }
0x1349   :  { %v2101_v23 = vpop.f32.mrf.mxu1 }
0x134a   :  { %v2104_v27 = vpack.c.bf16 %v2101_v23, %v2075_v22  ;;  %v2182_v23 = vperm.slane %v8312_v38, 6 }
0x134c   :  { %6059 = vmatmul.msk.bf16.vlgmr.msrb.gmra.mxu2 %vm519_vm8, %v2104_v27 }
0x13b1   :  { %v1963_v16 = vpop.f32.mrf.mxu0 }
0x13b2   :  { %v1968_v57 = vadd.f32 %v1963_v16, %v1806_v62 }
0x13b9   :  { %v1965_v35 = vpop.f32.mrf.mxu0 }
0x13ba   :  { %v1969_v41 = vadd.f32 %v1965_v35, %v1808_v37  ;;  %v7112_v35 = vld [vmem:[%s9237_s6 + $0x58] sm:$0xff]  ;;  %v7111_v37 = vld [vmem:[%s9237_s6 + $0x50] sm:$0xff] }
0x13cf   :  { %v2123_v25 = vpop.f32.mrf.mxu2 }
0x13d0   :  { %v2128_v31 = vadd.f32 %v2123_v25, %v1968_v57  ;;  %v7115_v25 = vld [vmem:[%s9237_s6 + $0x70] sm:$0xff] }
0x13d2   :  { %v2131_v32 = vadd.f32 %v2130_v28, %v2128_v31  ;;  %v7114_v31 = vld [vmem:[%s9237_s6 + $0x68] sm:$0xff] }
0x13d4   :  { %v2133_v40 = vadd.f32 %v2131_v32, %v8383_v51  ;;  %v7113_v32 = vld [vmem:[%s9237_s6 + $0x60] sm:$0xff] }
0x13d6   :  { %v2135_v42 = vsel %vm368_vm0, %v2133_v40, 0.0 }
0x13d7   :  { %2136 = vadd.xlane.f32.xlu0 %v2135_v42  ;;  %v2125_v44 = vpop.f32.mrf.mxu2 }
0x13d8   :  { %v2129_v45 = vadd.f32 %v2125_v44, %v1969_v41  ;;  %v2195_v41 = vperm.slane %v8312_v38, 7  ;;  %v7109_v44 = vld [vmem:[%s9237_s6 + $0x40] sm:$0xff] }
0x13da   :  { %v2132_v46 = vadd.f32 %v2130_v28, %v2129_v45  ;;  %v7116_v28 = vld [vmem:[%s9237_s6 + $0x78] sm:$0xff] }
0x13db   :  { %2322 = vmatpush.bf16.msrb.mxu3 %v7116_v28  ;;  %v6159_v28 = vld [vmem:[%s9234_s3 + $0xa0] sm:$0xf] }
0x13dc   :  { %v2134_v29 = vadd.f32 %v2132_v46, %v8385_v53 }
0x13de   :  { %v2138_v47 = vsel %vm368_vm0, %v2134_v29, 0.0 }
0x13df   :  { %2139 = vadd.xlane.f32.xlu2 %v2138_v47  ;;  %2323 = vmatpush.bf16.msrb.mxu3 %v7115_v25  ;;  %v7122_v25 = vld [vmem:[%s9234_s3 + $0xa4] sm:$0xf0] }
0x13e3   :  { %2324 = vmatpush.bf16.msrb.mxu3 %v7114_v31  ;;  %v7121_v31 = vld [vmem:[%s9234_s3 + $0xa4] sm:$0xf] }
0x13e7   :  { %2325 = vmatpush.bf16.msrb.mxu3 %v7113_v32  ;;  %v6160_v32 = vor.u32 %v7122_v25, %v6159_v28 }
0x13eb   :  { %2326 = vmatpush.bf16.msrb.mxu3 %v7112_v35  ;;  %v6161_v35 = vld [vmem:[%s9234_s3 + $0xa8] sm:$0xf0] }
0x13ef   :  { %2327 = vmatpush.bf16.msrb.mxu3 %v7111_v37  ;;  %v6164_v37 = vor.u32 %v7121_v31, %v6161_v35 }
0x144a   :  { %v2137_v48 = vpop.xlane.xlu0 %2136 }
0x144b   :  { %v2141_v49 = vmul.f32 %v2137_v48, %v8038_v26 }
0x144d   :  { %v2143_v50 = vsub.f32 %v2133_v40, %v2141_v49  ;;  %v7110_v40 = vld [vmem:[%s9237_s6 + $0x48] sm:$0xff] }
0x144e   :  { %2328 = vmatpush.bf16.msrb.mxu3 %v7110_v40  ;;  %v6151_v40 = vld [vmem:[%s9234_s3 + $0x90] sm:$0xf] }
0x144f   :  { %v2145_v34 = vmul.f32 %v2143_v50, %v2143_v50 }
0x1451   :  { %v2147_v30 = vsel %vm368_vm0, %v2145_v34, 0.0 }
0x1452   :  { %2148 = vadd.xlane.f32.xlu1 %v2147_v30  ;;  %v2140_v52 = vpop.xlane.xlu2 %2139  ;;  %2329 = vmatpush.bf16.msrb.mxu3 %v7109_v44 }
0x1453   :  { %v2142_v54 = vmul.f32 %v2140_v52, %v8038_v26 }
0x1455   :  { %v2144_v55 = vsub.f32 %v2134_v29, %v2142_v54 }
0x1457   :  { %v2146_v58 = vmul.f32 %v2144_v55, %v2144_v55 }
0x1459   :  { %v2150_v59 = vsel %vm368_vm0, %v2146_v58, 0.0 }
0x145a   :  { %2151 = vadd.xlane.f32.xlu0 %v2150_v59 }
0x14c5   :  { %v2149_v1 = vpop.xlane.xlu1 %2148 }
0x14c6   :  { %v2153_v2 = vmul.f32 %v2149_v1, %v8038_v26 }
0x14c8   :  { %v2155_v3 = vadd.f32 1e-12, %v2153_v2 }
0x14ca   :  { %7400 = vrsqrt.f32 %v2155_v3  ;;  %vm2163_vm10 = vweird.f32 %v2155_v3 }
0x14cd   :  { %v2152_v33 = vpop.xlane.xlu0 %2151 }
0x14ce   :  { %v2154_v5 = vmul.f32 %v2152_v33, %v8038_v26  ;;  %v8571_v33 = vld [vmem:[%s9233_s2 + $0x20] sm:$0xff] }
0x14d0   :  { %v7401_v7 = vpop.eup %7400  ;;  %v2156_v9 = vadd.f32 1e-12, %v2154_v5  ;;  %v2273_v5 = vperm.slane %v8571_v33, 0 }
0x14d1   :  { %v2158_v10 = vmul.f32 %v7401_v7, %v2155_v3  ;;  %vm2164_vm7 = vweird.f32 %v7401_v7 }
0x14d2   :  { %7402 = vrsqrt.f32 %v2156_v9  ;;  %vm2165_vm11 = vmor %vm2163_vm10, %vm2164_vm7  ;;  %vm2173_vm13 = vweird.f32 %v2156_v9 }
0x14d3   :  { %v2159_v11 = vmul.f32 %v7401_v7, %v2158_v10 }
0x14d5   :  { %v2160_v12 = vmul.f32 0.5, %v2159_v11 }
0x14d7   :  { %v2161_v36 = vsub.f32 1.5, %v2160_v12 }
0x14d8   :  { %v7403_v15 = vpop.eup %7402 }
0x14d9   :  { %v2162_v17 = vmul.f32 %v7401_v7, %v2161_v36  ;;  %v2168_v18 = vmul.f32 %v7403_v15, %v2156_v9  ;;  %vm2174_vm12 = vweird.f32 %v7403_v15 }
0x14da   :  { %vm2175_vm14 = vmor %vm2173_vm13, %vm2174_vm12 }
0x14db   :  { %v2169_v60 = vmul.f32 %v7403_v15, %v2168_v18  ;;  %v2166_v19 = vsel %vm2165_vm11, %v7401_v7, %v2162_v17 }
0x14dc   :  { %v2177_v13 = vmul.f32 %v2166_v19, %v2143_v50 }
0x14dd   :  { %v2170_v20 = vmul.f32 0.5, %v2169_v60 }
0x14de   :  { %v2180_v27 = vmul.f32 %v2179_v6, %v2177_v13 }
0x14df   :  { %v2171_v39 = vsub.f32 1.5, %v2170_v20 }
0x14e0   :  { %v2183_v16 = vadd.f32 %v2182_v23, %v2180_v27  ;;  %v6167_v27 = vld [vmem:[%s9234_s3 + $0xb0] sm:$0xf] }
0x14e1   :  { %v2172_v21 = vmul.f32 %v7403_v15, %v2171_v39 }
0x14e3   :  { %v2176_v22 = vsel %vm2175_vm14, %v7403_v15, %v2172_v21 }
0x14e4   :  { %v2178_v8 = vmul.f32 %v2176_v22, %v2144_v55 }
0x14e6   :  { %v2181_v24 = vmul.f32 %v2179_v6, %v2178_v8  ;;  %v7124_v8 = vld [vmem:[%s9234_s3 + $0xb4] sm:$0xf0] }
0x14e8   :  { %v2184_v62 = vadd.f32 %v2182_v23, %v2181_v24  ;;  %v7123_v24 = vld [vmem:[%s9234_s3 + $0xb4] sm:$0xf] }
0x14ea   :  { %v2185_v57 = vpack.c.bf16 %v2184_v62, %v2183_v16 }
0x14ec   :  { %6084 = vmatmul.msk.bf16.vlgmr.msra.gmra.mxu0 %vm368_vm0, %v2185_v57 }
0x1569   :  { %v2232_v42 = vpop.f32.mrf.mxu0 }
0x156a   :  { %v2233_v45 = vadd.f32 %v2232_v42, %v2195_v41  ;;  %v7119_v42 = vld [vmem:[%s9234_s3 + $0x94] sm:$0xf] }
0x156c   :  { %v2237_v46 = vmul.f32 %v2233_v45, %v2233_v45 }
0x156e   :  { %v2239_v29 = vmul.f32 %v2237_v46, %v2233_v45 }
0x1570   :  { %v2241_v47 = vmul.f32 0.044715, %v2239_v29 }
0x1571   :  { %v2234_v48 = vpop.f32.mrf.mxu0 }
0x1572   :  { %v2243_v49 = vadd.f32 %v2241_v47, %v2233_v45  ;;  %v2235_v50 = vadd.f32 %v2234_v48, %v2195_v41  ;;  %v7120_v41 = vld [vmem:[%s9234_s3 + $0x94] sm:$0xf0]  ;;  %v6143_v48 = vld [vmem:[%s9234_s3 + $0x80] sm:$0xf] }
0x1573   :  { %v6152_v44 = vor.u32 %v7120_v41, %v6151_v40 }
0x1574   :  { %v2245_v34 = vmul.f32 0.7978846, %v2243_v49  ;;  %v2238_v30 = vmul.f32 %v2235_v50, %v2235_v50  ;;  %v7118_v49 = vld [vmem:[%s9234_s3 + $0x84] sm:$0xf0] }
0x1576   :  { %v2240_v52 = vmul.f32 %v2238_v30, %v2235_v50  ;;  %7404 = vtanh.f32 %v2245_v34  ;;  %v6144_v30 = vor.u32 %v7118_v49, %v6143_v48 }
0x1578   :  { %v2242_v54 = vmul.f32 0.044715, %v2240_v52  ;;  %v6145_v52 = vld [vmem:[%s9234_s3 + $0x88] sm:$0xf0] }
0x157a   :  { %v2244_v38 = vadd.f32 %v2242_v54, %v2235_v50 }
0x157c   :  { %v2246_v55 = vmul.f32 0.7978846, %v2244_v38  ;;  %v7405_v58 = vpop.eup %7404 }
0x157d   :  { %v2249_v59 = vadd.f32 1.0, %v7405_v58 }
0x157e   :  { %7406 = vtanh.f32 %v2246_v55 }
0x157f   :  { %v2251_v63 = vmul.f32 0.5, %v2249_v59 }
0x1581   :  { %v2253_v2 = vmul.f32 %v2251_v63, %v2233_v45  ;;  %v6153_v45 = vld [vmem:[%s9234_s3 + $0x98] sm:$0xf0] }
0x1582   :  { %v6156_v29 = vor.u32 %v7119_v42, %v6153_v45 }
0x1584   :  { %v7407_v61 = vpop.eup %7406 }
0x1585   :  { %v2250_v0 = vadd.f32 1.0, %v7407_v61 }
0x1587   :  { %v2252_v1 = vmul.f32 0.5, %v2250_v0 }
0x1589   :  { %v2254_v3 = vmul.f32 %v2252_v1, %v2235_v50  ;;  %v7117_v50 = vld [vmem:[%s9234_s3 + $0x84] sm:$0xf] }
0x158a   :  { %v6148_v54 = vor.u32 %v7117_v50, %v6145_v52 }
0x158b   :  { %v2255_v4 = vpack.c.bf16 %v2254_v3, %v2253_v2 }
0x158d   :  { %2330 = vmatmul.bf16.vlgmr.msrb.gmra.mxu3 %v2255_v4 }
0x1610   :  { %v2331_v7 = vpop.f32.mrf.mxu3 }
0x1611   :  { %v2332_v9 = vadd.f32 %v2331_v7, %v2273_v5 }
0x1613   :  { %v2336_v10 = vadd.f32 %v2332_v9, %v2183_v16  ;;  %v6168_v16 = vor.u32 %v7124_v8, %v6167_v27 }
0x1615   :  { %v2338_v11 = vsel %vm368_vm0, %v2336_v10, 0.0  ;;  %2447 = vmatpush.bf16.msrb.mxu1 %v6168_v16 }
0x1616   :  { %2339 = vadd.xlane.f32.xlu0 %v2338_v11  ;;  %v2382_v11 = vperm.slane %v8571_v33, 1 }
0x1618   :  { %v2333_v12 = vpop.f32.mrf.mxu3 }
0x1619   :  { %v2334_v36 = vadd.f32 %v2333_v12, %v2273_v5  ;;  %2448 = vmatpush.bf16.msrb.mxu1 %v6160_v32 }
0x161b   :  { %v2337_v15 = vadd.f32 %v2334_v36, %v2184_v62  ;;  %v6169_v62 = vld [vmem:[%s9234_s3 + $0xb8] sm:$0xf0] }
0x161c   :  { %v6172_v57 = vor.u32 %v7123_v24, %v6169_v62 }
0x161d   :  { %v2341_v17 = vsel %vm368_vm0, %v2337_v15, 0.0  ;;  %2449 = vmatpush.bf16.msrb.mxu1 %v6152_v44 }
0x161e   :  { %2342 = vadd.xlane.f32.xlu2 %v2341_v17  ;;  %2461 = vmatpush.bf16.msra.mxu2 %v6172_v57  ;;  %v2385_v17 = vperm.slane %v8571_v33, 2 }
0x1621   :  { %2450 = vmatpush.bf16.msrb.mxu1 %v6144_v30 }
0x1622   :  { %2462 = vmatpush.bf16.msra.mxu2 %v6164_v37 }
0x1626   :  { %2463 = vmatpush.bf16.msra.mxu2 %v6156_v29 }
0x162a   :  { %2464 = vmatpush.bf16.msra.mxu2 %v6148_v54 }
0x1689   :  { %v2340_v18 = vpop.xlane.xlu0 %2339 }
0x168a   :  { %v2344_v60 = vmul.f32 %v2340_v18, %v8038_v26 }
0x168c   :  { %v8577_v19 = vsub.f32 %v2336_v10, %v2344_v60 }
0x168e   :  { %v2348_v20 = vmul.f32 %v8577_v19, %v8577_v19 }
0x1690   :  { %v2350_v39 = vsel %vm368_vm0, %v2348_v20, 0.0 }
0x1691   :  { %v2343_v6 = vpop.xlane.xlu2 %2342  ;;  %2351 = vadd.xlane.f32.xlu0 %v2350_v39 }
0x1692   :  { %v2345_v13 = vmul.f32 %v2343_v6, %v8038_v26 }
0x1694   :  { %v8583_v21 = vsub.f32 %v2337_v15, %v2345_v13 }
0x1696   :  { %v2349_v22 = vmul.f32 %v8583_v21, %v8583_v21 }
0x1698   :  { %v2353_v23 = vsel %vm368_vm0, %v2349_v22, 0.0 }
0x1699   :  { %2354 = vadd.xlane.f32.xlu1 %v2353_v23  ;;  %v359_v23 = vld [vmem:[%s9233_s2 + $0x28] sm:$0xff] }
0x169a   :  { %v2399_v27 = vperm.slane %v359_v23, 3 }
0x1704   :  { %v2352_v46 = vpop.xlane.xlu0 %2351 }
0x1705   :  { %v2356_v47 = vmul.f32 %v2352_v46, %v8038_v26 }
0x1707   :  { %v2358_v34 = vadd.f32 1e-12, %v2356_v47 }
0x1709   :  { %7408 = vrsqrt.f32 %v2358_v34  ;;  %vm2366_vm1 = vweird.f32 %v2358_v34 }
0x170c   :  { %v2355_v38 = vpop.xlane.xlu1 %2354 }
0x170d   :  { %v2357_v55 = vmul.f32 %v2355_v38, %v8038_v26 }
0x170f   :  { %v7409_v58 = vpop.eup %7408  ;;  %v2359_v59 = vadd.f32 1e-12, %v2357_v55 }
0x1710   :  { %v2361_v61 = vmul.f32 %v7409_v58, %v2358_v34  ;;  %vm2367_vm15 = vweird.f32 %v7409_v58 }
0x1711   :  { %7410 = vrsqrt.f32 %v2359_v59  ;;  %vm2368_vm2 = vmor %vm2366_vm1, %vm2367_vm15  ;;  %vm2376_vm4 = vweird.f32 %v2359_v59 }
0x1712   :  { %v2362_v63 = vmul.f32 %v7409_v58, %v2361_v61 }
0x1714   :  { %v2363_v0 = vmul.f32 0.5, %v2362_v63 }
0x1716   :  { %v2364_v1 = vsub.f32 1.5, %v2363_v0 }
0x1717   :  { %v7411_v2 = vpop.eup %7410 }
0x1718   :  { %v2365_v3 = vmul.f32 %v7409_v58, %v2364_v1  ;;  %v2371_v4 = vmul.f32 %v7411_v2, %v2359_v59  ;;  %vm2377_vm3 = vweird.f32 %v7411_v2 }
0x1719   :  { %vm2378_vm5 = vmor %vm2376_vm4, %vm2377_vm3 }
0x171a   :  { %v2372_v5 = vmul.f32 %v7411_v2, %v2371_v4  ;;  %v2369_v7 = vsel %vm2368_vm2, %v7409_v58, %v2365_v3 }
0x171b   :  { %v2380_v12 = vmul.f32 %v2369_v7, %v8577_v19  ;;  %v2398_v19 = vperm.slane %v8571_v33, 3 }
0x171c   :  { %v2373_v9 = vmul.f32 0.5, %v2372_v5 }
0x171d   :  { %v2383_v18 = vmul.f32 %v2382_v11, %v2380_v12 }
0x171e   :  { %v2374_v10 = vsub.f32 1.5, %v2373_v9 }
0x171f   :  { %v8642_v39 = vadd.f32 %v2385_v17, %v2383_v18 }
0x1720   :  { %v2375_v36 = vmul.f32 %v7411_v2, %v2374_v10 }
0x1722   :  { %v2379_v15 = vsel %vm2378_vm5, %v7411_v2, %v2375_v36 }
0x1723   :  { %v2381_v60 = vmul.f32 %v2379_v15, %v8583_v21 }
0x1725   :  { %v2384_v20 = vmul.f32 %v2382_v11, %v2381_v60 }
0x1727   :  { %v8644_v6 = vadd.f32 %v2385_v17, %v2384_v20 }
0x1729   :  { %v2388_v13 = vpack.c.bf16 %v8644_v6, %v8642_v39 }
0x172b   :  { %6173 = vmatmul.msk.bf16.vlgmr.msrb.gmra.mxu1 %vm368_vm0, %v2388_v13  ;;  %6174 = vmatmul.msk.bf16.vlgmr.msra.gmra.mxu2 %vm368_vm0, %v2388_v13 }
0x17a8   :  { %v2452_v22 = vpop.f32.mrf.mxu1 }
0x17a9   :  { %v8654_v21 = vadd.f32 %v2452_v22, %v2398_v19  ;;  %v7125_v22 = vld [vmem:[%s9235_s4 + $0x40] sm:$0xff] }
0x17ab   :  { %2609 = vrot.lane.b32.xlu1 %v8654_v21, %s7536_s12  ;;  %2481 = vrot.lane.b32.xlu2 %v8654_v21, %s7535_s11 }
0x17ae   :  { %v2466_v8 = vpop.f32.mrf.mxu2 }
0x17af   :  { %v8660_v24 = vadd.f32 %v2466_v8, %v2399_v27 }
0x17b0   :  { %v2454_v16 = vpop.f32.mrf.mxu1 }
0x17b1   :  { %v8662_v62 = vadd.f32 %v2454_v16, %v2398_v19  ;;  %2578 = vmatpush.msra.mxu1 %v8660_v24 }
0x17b3   :  { %2508 = vrot.lane.b32.xlu0 %v8662_v62, %s7535_s11  ;;  %2607 = vrot.lane.b32.xlu2 %v8654_v21, %s7537_s14 }
0x17b6   :  { %v2468_v57 = vpop.f32.mrf.mxu2 }
0x17b7   :  { %v8669_v28 = vadd.f32 %v2468_v57, %v2399_v27 }
0x17b9   :  { %2601 = vmatpush.msrb.mxu2 %v8669_v28 }
0x1805   :  { %v2482_v25 = vpop.permute.xlu2 %2481 }
0x1806   :  { %6183 = vmatpush.xpose.msk.msrb.mxu0 %vm519_vm8, %v2482_v25 }
0x1809   :  { %6184 = vmatmul.msk.f32.vlgmr.msrb.gmra.mxu0 %vm519_vm8, %v8654_v21 }
0x180d   :  { %v2608_v35 = vpop.permute.xlu2 %2607 }
0x181d   :  { %v2610_v32 = vpop.permute.xlu1 %2609 }
0x1825   :  { %v2509_v31 = vpop.permute.xlu0 %2508 }
0x1826   :  { %6185 = vmatpush.xpose.msk.msra.mxu0 %vm519_vm8, %v2509_v31 }
0x1829   :  { %6186 = vmatmul.msk.f32.vlgmr.msra.gmra.mxu0 %vm519_vm8, %v8662_v62 }
0x182a   :  { %6189 = vmatpush.xpose.msk.msrb.mxu0 %vm519_vm8, %v2610_v32 }
0x1831   :  { %6190 = vmatmul.msk.f32.vlgmr.msrb.gmra.mxu0 %vm519_vm8, %v2608_v35 }
0x1886   :  { %v2504_v37 = vpop.f32.mrf.mxu0 }
0x1887   :  { %v2534_v40 = vmul.f32 0.25, %v2504_v37 }
0x1889   :  { %v2536_v41 = vadd.f32 %v2534_v40, %v8149_v43 }
0x188b   :  { %v2538_v42 = vsel %vm579_vm9, %v2536_v41, -inf }
0x188c   :  { %2539 = vmax.xlane.f32.xlu0 %v2538_v42 }
0x18a0   :  { %2637 = vrot.lane.b32.xlu0 %v8662_v62, %s7536_s12 }
0x18a6   :  { %v2531_v44 = vpop.f32.mrf.mxu0 }
0x18a7   :  { %v2535_v45 = vmul.f32 0.25, %v2531_v44 }
0x18a9   :  { %v2537_v46 = vadd.f32 %v2535_v45, %v8158_v56 }
0x18ab   :  { %v2541_v29 = vsel %vm579_vm9, %v2537_v46, -inf }
0x18ac   :  { %2542 = vmax.xlane.f32.xlu2 %v2541_v29 }
0x18ae   :  { %v2632_v47 = vpop.f32.mrf.mxu0 }
0x18af   :  { %v2663_v48 = vmul.f32 0.25, %v2632_v47 }
0x18b1   :  { %v2665_v49 = vadd.f32 %v2663_v48, %v8149_v43 }
0x18b3   :  { %v2667_v50 = vsel %vm579_vm9, %v2665_v49, -inf }
0x18b4   :  { %2668 = vmax.xlane.f32.xlu1 %v2667_v50 }
0x18c4   :  { %2690 = vrot.lane.b32.xlu2 %v8660_v24, %s7537_s14 }
0x18ff   :  { %v2540_v34 = vpop.xlane.xlu0 %2539 }
0x1900   :  { %v2544_v30 = vsub.f32 %v2536_v41, %v2540_v34 }
0x1902   :  { %v2546_v52 = vmul.f32 1.442695, %v2544_v30 }
0x1904   :  { %7412 = vpow2.f32 %v2546_v52 }
0x190a   :  { %v7413_v54 = vpop.eup %7412 }
0x190b   :  { %v2550_v38 = vsel %vm579_vm9, %v7413_v54, 0.0 }
0x190c   :  { %2551 = vadd.xlane.f32.xlu0 %v2550_v38 }
0x1912   :  { %v2638_v55 = vpop.permute.xlu0 %2637 }
0x1913   :  { %6191 = vmatpush.xpose.msk.msrb.mxu1 %vm519_vm8, %v2638_v55 }
0x191f   :  { %v2543_v58 = vpop.xlane.xlu2 %2542 }
0x1920   :  { %v2545_v59 = vsub.f32 %v2537_v46, %v2543_v58  ;;  %2792 = vrot.lane.b32.xlu0 %v8654_v21, %s7538_s1 }
0x1922   :  { %v2548_v61 = vmul.f32 1.442695, %v2545_v59 }
0x1924   :  { %7414 = vpow2.f32 %v2548_v61 }
0x1927   :  { %v2669_v63 = vpop.xlane.xlu1 %2668  ;;  %v2691_v0 = vpop.permute.xlu2 %2690 }
0x1928   :  { %v2673_v1 = vsub.f32 %v2665_v49, %v2669_v63  ;;  %2711 = vmatpush.msra.mxu2 %v2691_v0 }
0x192a   :  { %v7415_v2 = vpop.eup %7414  ;;  %v2675_v3 = vmul.f32 1.442695, %v2673_v1 }
0x192b   :  { %v2553_v4 = vsel %vm579_vm9, %v7415_v2, 0.0 }
0x192c   :  { %7416 = vpow2.f32 %v2675_v3  ;;  %2554 = vadd.xlane.f32.xlu2 %v2553_v4  ;;  %v7126_v3 = vld [vmem:[%s9235_s4 + $0x48] sm:$0xff] }
0x192d   :  { %2760 = vmatpush.bf16.msra.mxu0 %v7126_v3 }
0x1932   :  { %v7417_v5 = vpop.eup %7416 }
0x1933   :  { %v2679_v7 = vsel %vm579_vm9, %v7417_v5, 0.0 }
0x1934   :  { %2680 = vadd.xlane.f32.xlu1 %v2679_v7 }
0x1944   :  { %2790 = vrot.lane.b32.xlu2 %v8654_v21, %s7539_s15 }
0x194c   :  { %2820 = vrot.lane.b32.xlu2 %v8662_v62, %s7538_s1 }
0x194d   :  { %2635 = vrot.lane.b32.xlu1 %v8662_v62, %s7537_s14 }
0x197f   :  { %v2552_v9 = vpop.xlane.xlu0 %2551 }
0x1980   :  { %7418 = vrcp.f32 %v2552_v9 }
0x1986   :  { %v7419_v10 = vpop.eup %7418 }
0x1987   :  { %v2558_v11 = vmul.f32 %v7419_v10, %v7413_v54 }
0x1989   :  { %6187 = vmatmul.msk.f32.vlgmr.msra.gmra.mxu1 %vm579_vm9, %v2558_v11 }
0x198a   :  { %2783 = vmatpush.bf16.msra.mxu1 %v7125_v22 }
0x1992   :  { %v2793_v18 = vpop.permute.xlu0 %2792 }
0x199f   :  { %v2555_v12 = vpop.xlane.xlu2 %2554 }
0x19a0   :  { %7420 = vrcp.f32 %v2555_v12 }
0x19a6   :  { %v7421_v36 = vpop.eup %7420 }
0x19a7   :  { %v2559_v15 = vmul.f32 %v7421_v36, %v7415_v2  ;;  %v2681_v17 = vpop.xlane.xlu1 %2680  ;;  %v2791_v13 = vpop.permute.xlu2 %2790 }
0x19a8   :  { %7422 = vrcp.f32 %v2681_v17 }
0x19a9   :  { %6188 = vmatmul.msk.f32.vlgmr.msrb.gmra.mxu2 %vm579_vm9, %v2559_v15 }
0x19aa   :  { %6205 = vmatpush.xpose.msk.msrb.mxu2 %vm519_vm8, %v2793_v18 }
0x19ae   :  { %v7423_v60 = vpop.eup %7422 }
0x19af   :  { %v2687_v20 = vmul.f32 %v7423_v60, %v7417_v5  ;;  %v2821_v52 = vpop.permute.xlu2 %2820 }
0x19b1   :  { %6193 = vmatmul.msk.f32.vlgmr.msra.gmra.mxu2 %vm579_vm9, %v2687_v20 }
0x19b9   :  { %6206 = vmatmul.msk.f32.vlgmr.msrb.gmra.mxu2 %vm519_vm8, %v2791_v13 }
0x19bf   :  { %v2636_v19 = vpop.permute.xlu1 %2635 }
0x19c0   :  { %6192 = vmatmul.msk.f32.vlgmr.msrb.gmra.mxu1 %vm519_vm8, %v2636_v19 }
0x1a06   :  { %v2580_v23 = vpop.f32.mrf.mxu1 }
0x1a2c   :  { %v2603_v27 = vpop.f32.mrf.mxu2 }
0x1a2d   :  { %v2606_v8 = vpack.c.bf16 %v2603_v27, %v2580_v23 }
0x1a2f   :  { %6204 = vmatmul.msk.bf16.vlgmr.msra.gmra.mxu1 %vm519_vm8, %v2606_v8 }
0x1a34   :  { %v8712_v16 = vpop.f32.mrf.mxu2 }
0x1a3c   :  { %v2815_v57 = vpop.f32.mrf.mxu2 }
0x1a3d   :  { %v2846_v25 = vmul.f32 0.25, %v2815_v57  ;;  %v2660_v31 = vpop.f32.mrf.mxu1 }
0x1a3e   :  { %v2664_v32 = vmul.f32 0.25, %v2660_v31 }
0x1a3f   :  { %v2848_v35 = vadd.f32 %v2846_v25, %v8149_v43 }
0x1a40   :  { %v2666_v37 = vadd.f32 %v2664_v32, %v8158_v56 }
0x1a41   :  { %v2850_v40 = vsel %vm579_vm9, %v2848_v35, -inf }
0x1a42   :  { %2851 = vmax.xlane.f32.xlu1 %v2850_v40  ;;  %v2670_v41 = vsel %vm579_vm9, %v2666_v37, -inf }
0x1a43   :  { %2671 = vmax.xlane.f32.xlu0 %v2670_v41 }
0x1a57   :  { %2717 = vrot.lane.b32.xlu0 %v8669_v28, %s7537_s14 }
0x1a5b   :  { %2818 = vrot.lane.b32.xlu1 %v8662_v62, %s7539_s15 }
0x1a5f   :  { %2872 = vrot.lane.b32.xlu0 %v8660_v24, %s7539_s15 }
0x1a67   :  { %2952 = vrot.lane.b32.xlu0 %v8654_v21, %s7540_s18 }
0x1a6f   :  { %2978 = vrot.lane.b32.xlu0 %v8662_v62, %s7541_s19 }
0x1aac   :  { %v8745_v4 = vpop.f32.mrf.mxu1 }
0x1ab4   :  { %v8749_v7 = vpop.f32.mrf.mxu1 }
0x1ab5   :  { %v2852_v42 = vpop.xlane.xlu1 %2851 }
0x1ab6   :  { %v2856_v44 = vsub.f32 %v2848_v35, %v2852_v42  ;;  %v2672_v45 = vpop.xlane.xlu0 %2671 }
0x1ab7   :  { %v2674_v46 = vsub.f32 %v2666_v37, %v2672_v45 }
0x1ab8   :  { %v2858_v29 = vmul.f32 1.442695, %v2856_v44 }
0x1ab9   :  { %v2677_v47 = vmul.f32 1.442695, %v2674_v46 }
0x1aba   :  { %7424 = vpow2.f32 %v2858_v29 }
0x1abb   :  { %7426 = vpow2.f32 %v2677_v47 }
0x1ac0   :  { %v7425_v48 = vpop.eup %7424 }
0x1ac1   :  { %v7427_v49 = vpop.eup %7426  ;;  %v2862_v50 = vsel %vm579_vm9, %v7425_v48, 0.0 }
0x1ac2   :  { %2863 = vadd.xlane.f32.xlu1 %v2862_v50  ;;  %v2682_v34 = vsel %vm579_vm9, %v7427_v49, 0.0 }
0x1ac3   :  { %2683 = vadd.xlane.f32.xlu2 %v2682_v34 }
0x1ac9   :  { %v2718_v30 = vpop.permute.xlu0 %2717 }
0x1aca   :  { %2738 = vmatpush.msra.mxu3 %v2718_v30 }
0x1acc   :  { %6207 = vmatpush.xpose.msk.msrb.mxu3 %vm519_vm8, %v2821_v52 }
0x1acd   :  { %v2819_v55 = vpop.permute.xlu1 %2818 }
0x1ad1   :  { %v2873_v54 = vpop.permute.xlu0 %2872 }
0x1ad2   :  { %2893 = vmatpush.msra.mxu2 %v2873_v54 }
0x1ad9   :  { %v2953_v38 = vpop.permute.xlu0 %2952 }
0x1ada   :  { %6216 = vmatpush.xpose.msk.msrb.mxu1 %vm519_vm8, %v2953_v38 }
0x1adb   :  { %2980 = vrot.lane.b32.xlu2 %v8662_v62, %s7540_s18  ;;  %2950 = vrot.lane.b32.xlu1 %v8654_v21, %s7541_s19 }
0x1ae1   :  { %v2979_v62 = vpop.permute.xlu0 %2978 }
0x1b35   :  { %v2864_v58 = vpop.xlane.xlu1 %2863 }
0x1b36   :  { %7428 = vrcp.f32 %v2864_v58  ;;  %v2684_v59 = vpop.xlane.xlu2 %2683  ;;  %v7128_v58 = vld [vmem:[%s9235_s4 + $0x58] sm:$0xff] }
0x1b37   :  { %7430 = vrcp.f32 %v2684_v59 }
0x1b3c   :  { %v7429_v61 = vpop.eup %7428 }
0x1b3d   :  { %v7431_v63 = vpop.eup %7430  ;;  %v2870_v0 = vmul.f32 %v7429_v61, %v7425_v48 }
0x1b3e   :  { %v2688_v1 = vmul.f32 %v7431_v63, %v7427_v49  ;;  %v2981_v2 = vpop.permute.xlu2 %2980 }
0x1b3f   :  { %6209 = vmatmul.msk.f32.vlgmr.msra.gmra.mxu2 %vm579_vm9, %v2870_v0 }
0x1b40   :  { %6218 = vmatpush.xpose.msk.msrb.mxu2 %vm519_vm8, %v2981_v2  ;;  %6194 = vmatmul.msk.f32.vlgmr.msra.gmra.mxu3 %vm579_vm9, %v2688_v1 }
0x1b44   :  { %3101 = vmatpush.bf16.msra.mxu2 %v7128_v58 }
0x1b47   :  { %6219 = vmatmul.msk.f32.vlgmr.msrb.gmra.mxu2 %vm519_vm8, %v2979_v62 }
0x1b48   :  { %6208 = vmatmul.msk.f32.vlgmr.msrb.gmra.mxu3 %vm519_vm8, %v2819_v55 }
0x1b4d   :  { %v2951_v21 = vpop.permute.xlu1 %2950 }
0x1b4e   :  { %6217 = vmatmul.msk.f32.vlgmr.msrb.gmra.mxu1 %vm519_vm8, %v2951_v21 }
0x1bc2   :  { %v8747_v5 = vpop.f32.mrf.mxu2 }
0x1bc3   :  { %v2740_v9 = vpop.f32.mrf.mxu3 }
0x1bc4   :  { %v2743_v10 = vpack.c.bf16 %v2740_v9, %v8712_v16 }
0x1bc6   :  { %6199 = vmatmul.msk.bf16.vlgmr.msra.gmra.mxu0 %vm519_vm8, %v2743_v10  ;;  %v3110_v10 = vperm.slane %v8571_v33, 4 }
0x1bca   :  { %v3003_v11 = vpop.f32.mrf.mxu2 }
0x1bcb   :  { %v3007_v12 = vmul.f32 0.25, %v3003_v11  ;;  %v2843_v36 = vpop.f32.mrf.mxu3  ;;  %v2975_v15 = vpop.f32.mrf.mxu1 }
0x1bcc   :  { %v2847_v17 = vmul.f32 0.25, %v2843_v36  ;;  %v3006_v18 = vmul.f32 0.25, %v2975_v15 }
0x1bcd   :  { %v3009_v60 = vadd.f32 %v3007_v12, %v8158_v56 }
0x1bce   :  { %v3008_v20 = vadd.f32 %v3006_v18, %v8149_v43  ;;  %v2849_v13 = vadd.f32 %v2847_v17, %v8158_v56 }
0x1bcf   :  { %v3013_v19 = vsel %vm579_vm9, %v3009_v60, -inf }
0x1bd0   :  { %3014 = vmax.xlane.f32.xlu0 %v3013_v19  ;;  %v3010_v22 = vsel %vm579_vm9, %v3008_v20, -inf  ;;  %v2853_v23 = vsel %vm579_vm9, %v2849_v13, -inf }
0x1bd1   :  { %3011 = vmax.xlane.f32.xlu1 %v3010_v22  ;;  %2854 = vmax.xlane.f32.xlu2 %v2853_v23 }
0x1be4   :  { %2898 = vrot.lane.b32.xlu0 %v8669_v28, %s7539_s15 }
0x1c43   :  { %v3015_v16 = vpop.xlane.xlu0 %3014  ;;  %v2762_v2 = vpop.f32.mrf.mxu0 }
0x1c44   :  { %v3012_v27 = vpop.xlane.xlu1 %3011  ;;  %v2855_v8 = vpop.xlane.xlu2 %2854  ;;  %v3017_v35 = vsub.f32 %v3009_v60, %v3015_v16  ;;  %v2786_v3 = vadd.f32 %v8745_v4, %v2762_v2  ;;  %v3162_v2 = vperm.slane %v8571_v33, 6 }
0x1c45   :  { %v3016_v57 = vsub.f32 %v3008_v20, %v3012_v27  ;;  %v2857_v25 = vsub.f32 %v2849_v13, %v2855_v8 }
0x1c46   :  { %v3020_v37 = vmul.f32 1.442695, %v3017_v35 }
0x1c47   :  { %v3018_v31 = vmul.f32 1.442695, %v3016_v57  ;;  %v2860_v32 = vmul.f32 1.442695, %v2857_v25 }
0x1c49   :  { %7432 = vpow2.f32 %v3018_v31 }
0x1c4a   :  { %7434 = vpow2.f32 %v2860_v32 }
0x1c4b   :  { %7436 = vpow2.f32 %v3020_v37  ;;  %v2764_v62 = vpop.f32.mrf.mxu0  ;;  %v7132_v37 = vld [vmem:[%s9236_s5 + $0x58] sm:$0xff] }
0x1c4f   :  { %v7433_v40 = vpop.eup %7432 }
0x1c50   :  { %v7435_v41 = vpop.eup %7434  ;;  %v3022_v42 = vsel %vm579_vm9, %v7433_v40, 0.0 }
0x1c51   :  { %3023 = vadd.xlane.f32.xlu1 %v3022_v42  ;;  %v2865_v44 = vsel %vm579_vm9, %v7435_v41, 0.0  ;;  %v7437_v45 = vpop.eup %7436 }
0x1c52   :  { %2866 = vadd.xlane.f32.xlu2 %v2865_v44  ;;  %v3025_v29 = vsel %vm579_vm9, %v7437_v45, 0.0 }
0x1c56   :  { %v2899_v46 = vpop.permute.xlu0 %2898 }
0x1c57   :  { %2919 = vmatpush.msra.mxu3 %v2899_v46  ;;  %v7129_v46 = vld [vmem:[%s9236_s5 + $0x40] sm:$0xff] }
0x1c5a   :  { %3026 = vadd.xlane.f32.xlu2 %v3025_v29 }
0x1c6a   :  { %3032 = vrot.lane.b32.xlu1 %v8660_v24, %s7541_s19 }
0x1c72   :  { %3058 = vrot.lane.b32.xlu2 %v8669_v28, %s7541_s19  ;;  %v7127_v28 = vld [vmem:[%s9235_s4 + $0x50] sm:$0xff] }
0x1c73   :  { %2941 = vmatpush.bf16.msrb.mxu0 %v7127_v28 }
0x1c77   :  { %3207 = vmatpush.bf16.msra.mxu0 %v7132_v37 }
0x1cc4   :  { %v3024_v34 = vpop.xlane.xlu1 %3023 }
0x1cc5   :  { %v2867_v47 = vpop.xlane.xlu2 %2866 }
0x1cc6   :  { %7438 = vrcp.f32 %v2867_v47 }
0x1ccc   :  { %v7439_v48 = vpop.eup %7438 }
0x1ccd   :  { %v2871_v49 = vmul.f32 %v7439_v48, %v7435_v41  ;;  %v3027_v50 = vpop.xlane.xlu2 %3026  ;;  %v7130_v41 = vld [vmem:[%s9236_s5 + $0x48] sm:$0xff] }
0x1cce   :  { %7440 = vrcp.f32 %v3027_v50 }
0x1ccf   :  { %6210 = vmatmul.msk.f32.vlgmr.msra.gmra.mxu3 %vm579_vm9, %v2871_v49  ;;  %7442 = vrcp.f32 %v3024_v34 }
0x1cd4   :  { %v7441_v30 = vpop.eup %7440 }
0x1cd5   :  { %v3031_v52 = vmul.f32 %v7441_v30, %v7437_v45  ;;  %v3059_v54 = vpop.permute.xlu2 %3058  ;;  %v7443_v24 = vpop.eup %7442 }
0x1cd6   :  { %3079 = vmatpush.msra.mxu1 %v3059_v54  ;;  %v3030_v38 = vmul.f32 %v7443_v24, %v7433_v40  ;;  %v7131_v40 = vld [vmem:[%s9236_s5 + $0x50] sm:$0xff] }
0x1cd7   :  { %6221 = vmatmul.msk.f32.vlgmr.msra.gmra.mxu1 %vm579_vm9, %v3031_v52  ;;  %3208 = vmatpush.bf16.msra.mxu0 %v7131_v40 }
0x1cdb   :  { %3209 = vmatpush.bf16.msra.mxu0 %v7130_v41 }
0x1cdc   :  { %v3033_v55 = vpop.permute.xlu1 %3032 }
0x1cdd   :  { %3053 = vmatpush.msrb.mxu3 %v3033_v55 }
0x1cde   :  { %6220 = vmatmul.msk.f32.vlgmr.msrb.gmra.mxu3 %vm579_vm9, %v3030_v38 }
0x1cdf   :  { %3210 = vmatpush.bf16.msra.mxu0 %v7129_v46 }
0x1d52   :  { %v2921_v59 = vpop.f32.mrf.mxu3 }
0x1d53   :  { %v2924_v61 = vpack.c.bf16 %v2921_v59, %v8747_v5  ;;  %v2788_v5 = vadd.f32 %v8749_v7, %v2764_v62 }
0x1d54   :  { %v3081_v63 = vpop.f32.mrf.mxu1 }
0x1d55   :  { %6215 = vmatmul.msk.bf16.vlgmr.msrb.gmra.mxu0 %vm519_vm8, %v2924_v61  ;;  %v3159_v61 = vperm.slane %v8571_v33, 5 }
0x1d61   :  { %v3055_v0 = vpop.f32.mrf.mxu3 }
0x1d62   :  { %v3084_v1 = vpack.c.bf16 %v3081_v63, %v3055_v0 }
0x1d64   :  { %6226 = vmatmul.msk.bf16.vlgmr.msra.gmra.mxu2 %vm519_vm8, %v3084_v1 }
0x1dd2   :  { %v2943_v21 = vpop.f32.mrf.mxu0 }
0x1dd3   :  { %v2948_v9 = vadd.f32 %v2943_v21, %v2786_v3 }
0x1dda   :  { %v2945_v15 = vpop.f32.mrf.mxu0 }
0x1ddb   :  { %v2949_v18 = vadd.f32 %v2945_v15, %v2788_v5  ;;  %v7138_v15 = vld [vmem:[%s9237_s6 + $0xa8] sm:$0xff]  ;;  %v7137_v5 = vld [vmem:[%s9237_s6 + $0xa0] sm:$0xff] }
0x1de7   :  { %v3103_v11 = vpop.f32.mrf.mxu2 }
0x1de8   :  { %v3108_v12 = vadd.f32 %v3103_v11, %v2948_v9 }
0x1dea   :  { %v3111_v36 = vadd.f32 %v3110_v10, %v3108_v12  ;;  %v7140_v12 = vld [vmem:[%s9237_s6 + $0xb8] sm:$0xff] }
0x1deb   :  { %3302 = vmatpush.bf16.msra.mxu3 %v7140_v12  ;;  %v6336_v12 = vld [vmem:[%s9234_s3 + $0xf8] sm:$0xf0] }
0x1dec   :  { %v3113_v17 = vadd.f32 %v3111_v36, %v8642_v39  ;;  %v7139_v36 = vld [vmem:[%s9237_s6 + $0xb0] sm:$0xff] }
0x1dee   :  { %v3115_v60 = vsel %vm368_vm0, %v3113_v17, 0.0 }
0x1def   :  { %3116 = vadd.xlane.f32.xlu0 %v3115_v60  ;;  %v3105_v20 = vpop.f32.mrf.mxu2  ;;  %3303 = vmatpush.bf16.msra.mxu3 %v7139_v36  ;;  %v7134_v60 = vld [vmem:[%s9237_s6 + $0x88] sm:$0xff] }
0x1df0   :  { %v3109_v13 = vadd.f32 %v3105_v20, %v2949_v18  ;;  %v7135_v18 = vld [vmem:[%s9237_s6 + $0x90] sm:$0xff]  ;;  %v3175_v20 = vperm.slane %v8571_v33, 7 }
0x1df2   :  { %v3112_v19 = vadd.f32 %v3110_v10, %v3109_v13 }
0x1df3   :  { %3304 = vmatpush.bf16.msra.mxu3 %v7138_v15  ;;  %v6326_v15 = vld [vmem:[%s9234_s3 + $0xe0] sm:$0xf] }
0x1df4   :  { %v3114_v4 = vadd.f32 %v3112_v19, %v8644_v6  ;;  %v7133_v19 = vld [vmem:[%s9237_s6 + $0x80] sm:$0xff] }
0x1df6   :  { %v3118_v22 = vsel %vm368_vm0, %v3114_v4, 0.0 }
0x1df7   :  { %3119 = vadd.xlane.f32.xlu1 %v3118_v22  ;;  %3305 = vmatpush.bf16.msra.mxu3 %v7137_v5  ;;  %v7146_v5 = vld [vmem:[%s9234_s3 + $0xe4] sm:$0xf0] }
0x1e62   :  { %v3117_v23 = vpop.xlane.xlu0 %3116 }
0x1e63   :  { %v3121_v27 = vmul.f32 %v3117_v23, %v8038_v26 }
0x1e65   :  { %v3123_v8 = vsub.f32 %v3113_v17, %v3121_v27  ;;  %v7136_v17 = vld [vmem:[%s9237_s6 + $0x98] sm:$0xff] }
0x1e66   :  { %3306 = vmatpush.bf16.msra.mxu3 %v7136_v17  ;;  %v7145_v17 = vld [vmem:[%s9234_s3 + $0xe4] sm:$0xf] }
0x1e67   :  { %v3125_v16 = vmul.f32 %v3123_v8, %v3123_v8 }
0x1e69   :  { %v3127_v7 = vsel %vm368_vm0, %v3125_v16, 0.0 }
0x1e6a   :  { %3128 = vadd.xlane.f32.xlu2 %v3127_v7  ;;  %v3120_v57 = vpop.xlane.xlu1 %3119  ;;  %3307 = vmatpush.bf16.msra.mxu3 %v7135_v18  ;;  %v6327_v18 = vor.u32 %v7146_v5, %v6326_v15 }
0x1e6b   :  { %v3122_v25 = vmul.f32 %v3120_v57, %v8038_v26 }
0x1e6d   :  { %v3124_v31 = vsub.f32 %v3114_v4, %v3122_v25 }
0x1e6e   :  { %3308 = vmatpush.bf16.msra.mxu3 %v7134_v60  ;;  %v6328_v60 = vld [vmem:[%s9234_s3 + $0xe8] sm:$0xf0] }
0x1e6f   :  { %v3126_v32 = vmul.f32 %v3124_v31, %v3124_v31 }
0x1e71   :  { %v3130_v35 = vsel %vm368_vm0, %v3126_v32, 0.0 }
0x1e72   :  { %3131 = vadd.xlane.f32.xlu0 %v3130_v35  ;;  %3309 = vmatpush.bf16.msra.mxu3 %v7133_v19  ;;  %v7144_v19 = vld [vmem:[%s9234_s3 + $0xd4] sm:$0xf0] }
0x1edd   :  { %v3129_v42 = vpop.xlane.xlu2 %3128 }
0x1ede   :  { %v3133_v44 = vmul.f32 %v3129_v42, %v8038_v26 }
0x1ee0   :  { %v3135_v45 = vadd.f32 1e-12, %v3133_v44 }
0x1ee2   :  { %7444 = vrsqrt.f32 %v3135_v45  ;;  %vm3143_vm7 = vweird.f32 %v3135_v45 }
0x1ee5   :  { %v3132_v29 = vpop.xlane.xlu0 %3131 }
0x1ee6   :  { %v3134_v47 = vmul.f32 %v3132_v29, %v8038_v26 }
0x1ee8   :  { %v7445_v48 = vpop.eup %7444  ;;  %v3136_v49 = vadd.f32 1e-12, %v3134_v47 }
0x1ee9   :  { %v3138_v50 = vmul.f32 %v7445_v48, %v3135_v45  ;;  %vm3144_vm6 = vweird.f32 %v7445_v48 }
0x1eea   :  { %7446 = vrsqrt.f32 %v3136_v49  ;;  %vm3145_vm10 = vmor %vm3143_vm7, %vm3144_vm6  ;;  %vm3153_vm12 = vweird.f32 %v3136_v49 }
0x1eeb   :  { %v3139_v34 = vmul.f32 %v7445_v48, %v3138_v50 }
0x1eed   :  { %v3140_v30 = vmul.f32 0.5, %v3139_v34 }
0x1eef   :  { %v3141_v52 = vsub.f32 1.5, %v3140_v30 }
0x1ef0   :  { %v7447_v54 = vpop.eup %7446 }
0x1ef1   :  { %v3142_v24 = vmul.f32 %v7445_v48, %v3141_v52  ;;  %v3148_v38 = vmul.f32 %v7447_v54, %v3136_v49  ;;  %vm3154_vm11 = vweird.f32 %v7447_v54 }
0x1ef2   :  { %vm3155_vm13 = vmor %vm3153_vm12, %vm3154_vm11 }
0x1ef3   :  { %v3149_v55 = vmul.f32 %v7447_v54, %v3148_v38  ;;  %v3146_v28 = vsel %vm3145_vm10, %v7445_v48, %v3142_v24  ;;  %v8836_v48 = vld [vmem:[%s9233_s2 + $0x30] sm:$0xff] }
0x1ef4   :  { %v3157_v63 = vmul.f32 %v3146_v28, %v3123_v8  ;;  %v3253_v49 = vperm.slane %v8836_v48, 0 }
0x1ef5   :  { %v3150_v58 = vmul.f32 0.5, %v3149_v55 }
0x1ef6   :  { %v3160_v62 = vmul.f32 %v3159_v61, %v3157_v63 }
0x1ef7   :  { %v3151_v59 = vsub.f32 1.5, %v3150_v58 }
0x1ef8   :  { %v3163_v9 = vadd.f32 %v3162_v2, %v3160_v62 }
0x1ef9   :  { %v3152_v0 = vmul.f32 %v7447_v54, %v3151_v59 }
0x1efb   :  { %v3156_v1 = vsel %vm3155_vm13, %v7447_v54, %v3152_v0 }
0x1efc   :  { %v3158_v21 = vmul.f32 %v3156_v1, %v3124_v31 }
0x1efe   :  { %v3161_v3 = vmul.f32 %v3159_v61, %v3158_v21 }
0x1f00   :  { %v3164_v10 = vadd.f32 %v3162_v2, %v3161_v3  ;;  %v6334_v3 = vld [vmem:[%s9234_s3 + $0xf0] sm:$0xf] }
0x1f02   :  { %v3165_v11 = vpack.c.bf16 %v3164_v10, %v3163_v9 }
0x1f04   :  { %6251 = vmatmul.msk.bf16.vlgmr.msra.gmra.mxu0 %vm368_vm0, %v3165_v11 }
0x1f81   :  { %v3212_v13 = vpop.f32.mrf.mxu0 }
0x1f82   :  { %v3213_v4 = vadd.f32 %v3212_v13, %v3175_v20  ;;  %v6318_v13 = vld [vmem:[%s9234_s3 + $0xd0] sm:$0xf] }
0x1f84   :  { %v3217_v22 = vmul.f32 %v3213_v4, %v3213_v4 }
0x1f86   :  { %v3219_v23 = vmul.f32 %v3217_v22, %v3213_v4  ;;  %v6319_v22 = vor.u32 %v7144_v19, %v6318_v13 }
0x1f88   :  { %v3221_v27 = vmul.f32 0.044715, %v3219_v23  ;;  %v6320_v23 = vld [vmem:[%s9234_s3 + $0xd8] sm:$0xf0] }
0x1f89   :  { %v3214_v8 = vpop.f32.mrf.mxu0 }
0x1f8a   :  { %v3223_v16 = vadd.f32 %v3221_v27, %v3213_v4  ;;  %v3215_v7 = vadd.f32 %v3214_v8, %v3175_v20  ;;  %v6331_v20 = vor.u32 %v7145_v17, %v6328_v60 }
0x1f8c   :  { %v3225_v57 = vmul.f32 0.7978846, %v3223_v16  ;;  %v3218_v25 = vmul.f32 %v3215_v7, %v3215_v7 }
0x1f8e   :  { %v3220_v31 = vmul.f32 %v3218_v25, %v3215_v7  ;;  %7448 = vtanh.f32 %v3225_v57  ;;  %v7142_v57 = vld [vmem:[%s9234_s3 + $0xc4] sm:$0xf0]  ;;  %v7141_v25 = vld [vmem:[%s9234_s3 + $0xc4] sm:$0xf] }
0x1f90   :  { %v3222_v32 = vmul.f32 0.044715, %v3220_v31 }
0x1f92   :  { %v3224_v33 = vadd.f32 %v3222_v32, %v3215_v7 }
0x1f94   :  { %v3226_v35 = vmul.f32 0.7978846, %v3224_v33  ;;  %v7449_v37 = vpop.eup %7448  ;;  %v6312_v33 = vld [vmem:[%s9234_s3 + $0xc8] sm:$0xf0] }
0x1f95   :  { %v3229_v40 = vadd.f32 1.0, %v7449_v37 }
0x1f96   :  { %7450 = vtanh.f32 %v3226_v35  ;;  %v6315_v35 = vor.u32 %v7141_v25, %v6312_v33 }
0x1f97   :  { %v3231_v42 = vmul.f32 0.5, %v3229_v40 }
0x1f99   :  { %v3233_v46 = vmul.f32 %v3231_v42, %v3213_v4  ;;  %v7143_v4 = vld [vmem:[%s9234_s3 + $0xd4] sm:$0xf] }
0x1f9a   :  { %v6323_v8 = vor.u32 %v7143_v4, %v6320_v23 }
0x1f9c   :  { %v7451_v41 = vpop.eup %7450 }
0x1f9d   :  { %v3230_v44 = vadd.f32 1.0, %v7451_v41 }
0x1f9f   :  { %v3232_v45 = vmul.f32 0.5, %v3230_v44 }
0x1fa1   :  { %v3234_v29 = vmul.f32 %v3232_v45, %v3215_v7  ;;  %v6310_v7 = vld [vmem:[%s9234_s3 + $0xc0] sm:$0xf] }
0x1fa2   :  { %v6311_v32 = vor.u32 %v7142_v57, %v6310_v7 }
0x1fa3   :  { %v3235_v47 = vpack.c.bf16 %v3234_v29, %v3233_v46 }
0x1fa5   :  { %3310 = vmatmul.bf16.vlgmr.msra.gmra.mxu3 %v3235_v47 }
0x2028   :  { %v3311_v50 = vpop.f32.mrf.mxu3 }
0x2029   :  { %v3312_v34 = vadd.f32 %v3311_v50, %v3253_v49 }
0x202b   :  { %v3316_v30 = vadd.f32 %v3312_v34, %v3163_v9  ;;  %v7148_v9 = vld [vmem:[%s9234_s3 + $0xf4] sm:$0xf0] }
0x202c   :  { %v6335_v11 = vor.u32 %v7148_v9, %v6334_v3  ;;  %v361_v9 = vld [vmem:[%s9233_s2 + $0x38] sm:$0xff] }
0x202d   :  { %v3318_v52 = vsel %vm368_vm0, %v3316_v30, 0.0 }
0x202e   :  { %3319 = vadd.xlane.f32.xlu0 %v3318_v52  ;;  %3427 = vmatpush.bf16.msrb.mxu1 %v6335_v11 }
0x2030   :  { %v3313_v54 = vpop.f32.mrf.mxu3 }
0x2031   :  { %v3314_v24 = vadd.f32 %v3313_v54, %v3253_v49 }
0x2032   :  { %3428 = vmatpush.bf16.msrb.mxu1 %v6327_v18 }
0x2033   :  { %v3317_v38 = vadd.f32 %v3314_v24, %v3164_v10  ;;  %v7147_v10 = vld [vmem:[%s9234_s3 + $0xf4] sm:$0xf]  ;;  %v3362_v24 = vperm.slane %v8836_v48, 1 }
0x2034   :  { %v6339_v36 = vor.u32 %v7147_v10, %v6336_v12  ;;  %v3379_v10 = vperm.slane %v361_v9, 3 }
0x2035   :  { %v3321_v55 = vsel %vm368_vm0, %v3317_v38, 0.0 }
0x2036   :  { %3322 = vadd.xlane.f32.xlu1 %v3321_v55  ;;  %3441 = vmatpush.bf16.msrb.mxu2 %v6339_v36 }
0x2037   :  { %3429 = vmatpush.bf16.msrb.mxu1 %v6319_v22 }
0x203a   :  { %3442 = vmatpush.bf16.msrb.mxu2 %v6331_v20 }
0x203b   :  { %3430 = vmatpush.bf16.msrb.mxu1 %v6311_v32 }
0x203e   :  { %3443 = vmatpush.bf16.msrb.mxu2 %v6323_v8 }
0x2042   :  { %3444 = vmatpush.bf16.msrb.mxu2 %v6315_v35 }
0x20a1   :  { %v3320_v28 = vpop.xlane.xlu0 %3319 }
0x20a2   :  { %v3324_v58 = vmul.f32 %v3320_v28, %v8038_v26 }
0x20a4   :  { %v8842_v59 = vsub.f32 %v3316_v30, %v3324_v58  ;;  %v3365_v58 = vperm.slane %v8836_v48, 2 }
0x20a6   :  { %v3328_v61 = vmul.f32 %v8842_v59, %v8842_v59 }
0x20a8   :  { %v3330_v63 = vsel %vm368_vm0, %v3328_v61, 0.0 }
0x20a9   :  { %v3323_v0 = vpop.xlane.xlu1 %3322  ;;  %3331 = vadd.xlane.f32.xlu2 %v3330_v63 }
0x20aa   :  { %v3325_v1 = vmul.f32 %v3323_v0, %v8038_v26 }
0x20ac   :  { %v8848_v2 = vsub.f32 %v3317_v38, %v3325_v1 }
0x20ae   :  { %v3329_v62 = vmul.f32 %v8848_v2, %v8848_v2 }
0x20b0   :  { %v3333_v21 = vsel %vm368_vm0, %v3329_v62, 0.0 }
0x20b1   :  { %3334 = vadd.xlane.f32.xlu0 %v3333_v21 }
0x211c   :  { %v3332_v27 = vpop.xlane.xlu2 %3331 }
0x211d   :  { %v3336_v16 = vmul.f32 %v3332_v27, %v8038_v26 }
0x211f   :  { %v3338_v31 = vadd.f32 1e-12, %v3336_v16 }
0x2121   :  { %7452 = vrsqrt.f32 %v3338_v31  ;;  %vm3346_vm15 = vweird.f32 %v3338_v31 }
0x2124   :  { %v3335_v37 = vpop.xlane.xlu0 %3334 }
0x2125   :  { %v3337_v40 = vmul.f32 %v3335_v37, %v8038_v26 }
0x2127   :  { %v7453_v41 = vpop.eup %7452  ;;  %v3339_v42 = vadd.f32 1e-12, %v3337_v40 }
0x2128   :  { %v3341_v44 = vmul.f32 %v7453_v41, %v3338_v31  ;;  %vm3347_vm14 = vweird.f32 %v7453_v41 }
0x2129   :  { %7454 = vrsqrt.f32 %v3339_v42  ;;  %vm3348_vm1 = vmor %vm3346_vm15, %vm3347_vm14  ;;  %vm3356_vm3 = vweird.f32 %v3339_v42 }
0x212a   :  { %v3342_v45 = vmul.f32 %v7453_v41, %v3341_v44 }
0x212c   :  { %v3343_v46 = vmul.f32 0.5, %v3342_v45 }
0x212e   :  { %v3344_v29 = vsub.f32 1.5, %v3343_v46 }
0x212f   :  { %v7455_v47 = vpop.eup %7454 }
0x2130   :  { %v3345_v49 = vmul.f32 %v7453_v41, %v3344_v29  ;;  %v3351_v50 = vmul.f32 %v7455_v47, %v3339_v42  ;;  %vm3357_vm2 = vweird.f32 %v7455_v47 }
0x2131   :  { %vm3358_vm4 = vmor %vm3356_vm3, %vm3357_vm2 }
0x2132   :  { %v3352_v34 = vmul.f32 %v7455_v47, %v3351_v50  ;;  %v3349_v30 = vsel %vm3348_vm1, %v7453_v41, %v3345_v49 }
0x2133   :  { %v3360_v38 = vmul.f32 %v3349_v30, %v8842_v59  ;;  %v3378_v59 = vperm.slane %v8836_v48, 3 }
0x2134   :  { %v3353_v52 = vmul.f32 0.5, %v3352_v34 }
0x2135   :  { %v3363_v61 = vmul.f32 %v3362_v24, %v3360_v38 }
0x2136   :  { %v3354_v54 = vsub.f32 1.5, %v3353_v52 }
0x2137   :  { %v8907_v1 = vadd.f32 %v3365_v58, %v3363_v61 }
0x2138   :  { %v3355_v55 = vmul.f32 %v7455_v47, %v3354_v54 }
0x213a   :  { %v3359_v28 = vsel %vm3358_vm4, %v7455_v47, %v3355_v55 }
0x213b   :  { %v3361_v63 = vmul.f32 %v3359_v28, %v8848_v2 }
0x213d   :  { %v3364_v0 = vmul.f32 %v3362_v24, %v3361_v63 }
0x213f   :  { %v8909_v62 = vadd.f32 %v3365_v58, %v3364_v0 }
0x2141   :  { %v3368_v21 = vpack.c.bf16 %v8909_v62, %v8907_v1 }
0x2143   :  { %6340 = vmatmul.msk.bf16.vlgmr.msrb.gmra.mxu1 %vm368_vm0, %v3368_v21  ;;  %6341 = vmatmul.msk.bf16.vlgmr.msrb.gmra.mxu2 %vm368_vm0, %v3368_v21 }
0x21c0   :  { %v3432_v3 = vpop.f32.mrf.mxu1 }
0x21c1   :  { %v8919_v2 = vadd.f32 %v3432_v3, %v3378_v59 }
0x21c3   :  { %3589 = vrot.lane.b32.xlu0 %v8919_v2, %s7536_s12  ;;  %3461 = vrot.lane.b32.xlu1 %v8919_v2, %s7535_s11 }
0x21c6   :  { %v3446_v11 = vpop.f32.mrf.mxu2 }
0x21c7   :  { %v8925_v12 = vadd.f32 %v3446_v11, %v3379_v10 }
0x21c8   :  { %v3434_v36 = vpop.f32.mrf.mxu1 }
0x21c9   :  { %v8927_v15 = vadd.f32 %v3434_v36, %v3378_v59  ;;  %3558 = vmatpush.msra.mxu1 %v8925_v12 }
0x21cb   :  { %3488 = vrot.lane.b32.xlu2 %v8927_v15, %s7535_s11  ;;  %3587 = vrot.lane.b32.xlu0 %v8919_v2, %s7537_s14 }
0x21ce   :  { %v3448_v5 = vpop.f32.mrf.mxu2 }
0x21cf   :  { %v8934_v17 = vadd.f32 %v3448_v5, %v3379_v10  ;;  %v7149_v10 = vld [vmem:[%s9235_s4 + $0x60] sm:$0xff] }
0x21d1   :  { %3581 = vmatpush.msra.mxu2 %v8934_v17 }
0x2225   :  { %v3489_v60 = vpop.permute.xlu2 %3488 }
0x2235   :  { %v3462_v18 = vpop.permute.xlu1 %3461  ;;  %v3590_v20 = vpop.permute.xlu0 %3589 }
0x2236   :  { %6350 = vmatpush.xpose.msk.msrb.mxu0 %vm519_vm8, %v3462_v18 }
0x2239   :  { %6351 = vmatmul.msk.f32.vlgmr.msrb.gmra.mxu0 %vm519_vm8, %v8919_v2 }
0x223a   :  { %6352 = vmatpush.xpose.msk.msra.mxu0 %vm519_vm8, %v3489_v60 }
0x223d   :  { %v3588_v13 = vpop.permute.xlu0 %3587 }
0x223e   :  { %6356 = vmatpush.xpose.msk.msrb.mxu0 %vm519_vm8, %v3590_v20 }
0x2241   :  { %6353 = vmatmul.msk.f32.vlgmr.msra.gmra.mxu0 %vm519_vm8, %v8927_v15 }
0x2249   :  { %6357 = vmatmul.msk.f32.vlgmr.msrb.gmra.mxu0 %vm519_vm8, %v3588_v13 }
0x22b6   :  { %v3484_v19 = vpop.f32.mrf.mxu0 }
0x22b7   :  { %v3514_v4 = vmul.f32 0.25, %v3484_v19 }
0x22b9   :  { %v3516_v22 = vadd.f32 %v3514_v4, %v8149_v43 }
0x22bb   :  { %v3518_v23 = vsel %vm579_vm9, %v3516_v22, -inf }
0x22bc   :  { %3519 = vmax.xlane.f32.xlu2 %v3518_v23 }
0x22be   :  { %v3511_v27 = vpop.f32.mrf.mxu0 }
0x22bf   :  { %v3515_v8 = vmul.f32 0.25, %v3511_v27 }
0x22c1   :  { %v3517_v16 = vadd.f32 %v3515_v8, %v8158_v56 }
0x22c3   :  { %v3521_v7 = vsel %vm579_vm9, %v3517_v16, -inf }
0x22c4   :  { %3522 = vmax.xlane.f32.xlu1 %v3521_v7 }
0x22c6   :  { %v3612_v57 = vpop.f32.mrf.mxu0 }
0x22c7   :  { %v3643_v25 = vmul.f32 0.25, %v3612_v57 }
0x22c9   :  { %v3645_v31 = vadd.f32 %v3643_v25, %v8149_v43 }
0x22cb   :  { %v3647_v32 = vsel %vm579_vm9, %v3645_v31, -inf }
0x22cc   :  { %3648 = vmax.xlane.f32.xlu0 %v3647_v32 }
0x22dd   :  { %3670 = vrot.lane.b32.xlu1 %v8925_v12, %s7537_s14 }
0x22e0   :  { %3617 = vrot.lane.b32.xlu0 %v8927_v15, %s7536_s12 }
0x22e8   :  { %3772 = vrot.lane.b32.xlu0 %v8919_v2, %s7538_s1 }
0x232f   :  { %v3520_v33 = vpop.xlane.xlu2 %3519 }
0x2330   :  { %v3524_v35 = vsub.f32 %v3516_v22, %v3520_v33 }
0x2332   :  { %v3526_v37 = vmul.f32 1.442695, %v3524_v35 }
0x2334   :  { %7456 = vpow2.f32 %v3526_v37 }
0x2337   :  { %v3523_v40 = vpop.xlane.xlu1 %3522 }
0x2338   :  { %v3525_v41 = vsub.f32 %v3517_v16, %v3523_v40 }
0x233a   :  { %v7457_v42 = vpop.eup %7456  ;;  %v3528_v44 = vmul.f32 1.442695, %v3525_v41 }
0x233b   :  { %v3530_v45 = vsel %vm579_vm9, %v7457_v42, 0.0 }
0x233c   :  { %7458 = vpow2.f32 %v3528_v44  ;;  %3531 = vadd.xlane.f32.xlu2 %v3530_v45 }
0x233f   :  { %v3649_v46 = vpop.xlane.xlu0 %3648 }
0x2340   :  { %v3653_v29 = vsub.f32 %v3645_v31, %v3649_v46 }
0x2342   :  { %v7459_v47 = vpop.eup %7458  ;;  %v3655_v49 = vmul.f32 1.442695, %v3653_v29 }
0x2343   :  { %v3533_v50 = vsel %vm579_vm9, %v7459_v47, 0.0 }
0x2344   :  { %7460 = vpow2.f32 %v3655_v49  ;;  %3534 = vadd.xlane.f32.xlu1 %v3533_v50 }
0x234a   :  { %v7461_v34 = vpop.eup %7460 }
0x234b   :  { %v3659_v30 = vsel %vm579_vm9, %v7461_v34, 0.0 }
0x234c   :  { %3660 = vadd.xlane.f32.xlu2 %v3659_v30 }
0x234f   :  { %v3671_v52 = vpop.permute.xlu1 %3670 }
0x2350   :  { %3691 = vmatpush.msrb.mxu2 %v3671_v52  ;;  %v7150_v52 = vld [vmem:[%s9235_s4 + $0x68] sm:$0xff] }
0x2351   :  { %3740 = vmatpush.bf16.msra.mxu0 %v7150_v52 }
0x2352   :  { %v3618_v54 = vpop.permute.xlu0 %3617 }
0x2353   :  { %6358 = vmatpush.xpose.msk.msrb.mxu1 %vm519_vm8, %v3618_v54 }
0x235a   :  { %v3773_v0 = vpop.permute.xlu0 %3772 }
0x235d   :  { %3770 = vrot.lane.b32.xlu1 %v8919_v2, %s7539_s15 }
0x2364   :  { %3615 = vrot.lane.b32.xlu2 %v8927_v15, %s7537_s14 }
0x2365   :  { %3800 = vrot.lane.b32.xlu1 %v8927_v15, %s7538_s1 }
0x23af   :  { %v3532_v24 = vpop.xlane.xlu2 %3531 }
0x23b0   :  { %7462 = vrcp.f32 %v3532_v24 }
0x23b6   :  { %v7463_v38 = vpop.eup %7462 }
0x23b7   :  { %v3538_v55 = vmul.f32 %v7463_v38, %v7457_v42  ;;  %v3535_v28 = vpop.xlane.xlu1 %3534 }
0x23b8   :  { %7464 = vrcp.f32 %v3535_v28 }
0x23b9   :  { %6354 = vmatmul.msk.f32.vlgmr.msra.gmra.mxu1 %vm579_vm9, %v3538_v55 }
0x23ba   :  { %3763 = vmatpush.bf16.msra.mxu1 %v7149_v10 }
0x23be   :  { %v7465_v58 = vpop.eup %7464 }
0x23bf   :  { %v3539_v61 = vmul.f32 %v7465_v58, %v7459_v47  ;;  %v3661_v63 = vpop.xlane.xlu2 %3660 }
0x23c0   :  { %7466 = vrcp.f32 %v3661_v63 }
0x23c1   :  { %6355 = vmatmul.msk.f32.vlgmr.msra.gmra.mxu2 %vm579_vm9, %v3539_v61 }
0x23c2   :  { %6372 = vmatpush.xpose.msk.msra.mxu2 %vm519_vm8, %v3773_v0 }
0x23c6   :  { %v7467_v21 = vpop.eup %7466 }
0x23c7   :  { %v3667_v59 = vmul.f32 %v7467_v21, %v7461_v34  ;;  %v3616_v3 = vpop.permute.xlu2 %3615 }
0x23c8   :  { %6359 = vmatmul.msk.f32.vlgmr.msrb.gmra.mxu1 %vm519_vm8, %v3616_v3 }
0x23c9   :  { %6360 = vmatmul.msk.f32.vlgmr.msrb.gmra.mxu2 %vm579_vm9, %v3667_v59 }
0x23cf   :  { %v3771_v9 = vpop.permute.xlu1 %3770 }
0x23d1   :  { %6373 = vmatmul.msk.f32.vlgmr.msra.gmra.mxu2 %vm519_vm8, %v3771_v9 }
0x23d7   :  { %v3801_v37 = vpop.permute.xlu1 %3800 }
0x2436   :  { %v3560_v11 = vpop.f32.mrf.mxu1 }
0x2444   :  { %v3583_v36 = vpop.f32.mrf.mxu2 }
0x2445   :  { %v3586_v5 = vpack.c.bf16 %v3583_v36, %v3560_v11  ;;  %v3640_v18 = vpop.f32.mrf.mxu1 }
0x2446   :  { %v3644_v60 = vmul.f32 0.25, %v3640_v18 }
0x2447   :  { %6371 = vmatmul.msk.bf16.vlgmr.msra.gmra.mxu1 %vm519_vm8, %v3586_v5 }
0x2448   :  { %v3646_v20 = vadd.f32 %v3644_v60, %v8158_v56 }
0x244a   :  { %v3650_v13 = vsel %vm579_vm9, %v3646_v20, -inf }
0x244b   :  { %3651 = vmax.xlane.f32.xlu0 %v3650_v13 }
0x244c   :  { %v3693_v19 = vpop.f32.mrf.mxu2 }
0x2454   :  { %v3795_v4 = vpop.f32.mrf.mxu2 }
0x2455   :  { %v3826_v22 = vmul.f32 0.25, %v3795_v4 }
0x2457   :  { %v3828_v23 = vadd.f32 %v3826_v22, %v8149_v43 }
0x2459   :  { %v3830_v27 = vsel %vm579_vm9, %v3828_v23, -inf }
0x245a   :  { %3831 = vmax.xlane.f32.xlu2 %v3830_v27 }
0x245f   :  { %3697 = vrot.lane.b32.xlu0 %v8934_v17, %s7537_s14 }
0x2467   :  { %3852 = vrot.lane.b32.xlu0 %v8925_v12, %s7539_s15 }
0x246f   :  { %3932 = vrot.lane.b32.xlu0 %v8919_v2, %s7540_s18 }
0x2472   :  { %3798 = vrot.lane.b32.xlu2 %v8927_v15, %s7539_s15 }
0x2477   :  { %3958 = vrot.lane.b32.xlu0 %v8927_v15, %s7541_s19 }
0x24be   :  { %v3652_v8 = vpop.xlane.xlu0 %3651 }
0x24bf   :  { %v3654_v16 = vsub.f32 %v3646_v20, %v3652_v8 }
0x24c1   :  { %v3657_v7 = vmul.f32 1.442695, %v3654_v16 }
0x24c3   :  { %7468 = vpow2.f32 %v3657_v7 }
0x24c4   :  { %v9008_v54 = vpop.f32.mrf.mxu1 }
0x24c9   :  { %v7469_v57 = vpop.eup %7468 }
0x24ca   :  { %v3662_v25 = vsel %vm579_vm9, %v7469_v57, 0.0 }
0x24cb   :  { %3663 = vadd.xlane.f32.xlu1 %v3662_v25 }
0x24cc   :  { %v9010_v24 = vpop.f32.mrf.mxu1 }
0x24cd   :  { %v3832_v31 = vpop.xlane.xlu2 %3831 }
0x24ce   :  { %v3836_v32 = vsub.f32 %v3828_v23, %v3832_v31 }
0x24d0   :  { %v3838_v33 = vmul.f32 1.442695, %v3836_v32 }
0x24d1   :  { %v3698_v35 = vpop.permute.xlu0 %3697 }
0x24d2   :  { %7470 = vpow2.f32 %v3838_v33  ;;  %3718 = vmatpush.msrb.mxu3 %v3698_v35 }
0x24d4   :  { %6374 = vmatpush.xpose.msk.msra.mxu3 %vm519_vm8, %v3801_v37 }
0x24d5   :  { %v3799_v29 = vpop.permute.xlu2 %3798 }
0x24d8   :  { %v7471_v40 = vpop.eup %7470 }
0x24d9   :  { %v3853_v41 = vpop.permute.xlu0 %3852  ;;  %v3842_v42 = vsel %vm579_vm9, %v7471_v40, 0.0 }
0x24da   :  { %3873 = vmatpush.msrb.mxu2 %v3853_v41  ;;  %3843 = vadd.xlane.f32.xlu2 %v3842_v42 }
0x24e1   :  { %v3933_v44 = vpop.permute.xlu0 %3932 }
0x24e2   :  { %6383 = vmatpush.xpose.msk.msrb.mxu1 %vm519_vm8, %v3933_v44 }
0x24e4   :  { %3960 = vrot.lane.b32.xlu1 %v8927_v15, %s7540_s18 }
0x24f2   :  { %3930 = vrot.lane.b32.xlu2 %v8919_v2, %s7541_s19  ;;  %v3959_v2 = vpop.permute.xlu0 %3958 }
0x253e   :  { %v3664_v45 = vpop.xlane.xlu1 %3663 }
0x253f   :  { %7472 = vrcp.f32 %v3664_v45 }
0x2545   :  { %v7473_v46 = vpop.eup %7472 }
0x2546   :  { %v3668_v47 = vmul.f32 %v7473_v46, %v7469_v57  ;;  %v7152_v46 = vld [vmem:[%s9235_s4 + $0x78] sm:$0xff] }
0x2548   :  { %6361 = vmatmul.msk.f32.vlgmr.msrb.gmra.mxu3 %vm579_vm9, %v3668_v47 }
0x254d   :  { %v3844_v49 = vpop.xlane.xlu2 %3843 }
0x254e   :  { %7474 = vrcp.f32 %v3844_v49 }
0x2550   :  { %6375 = vmatmul.msk.f32.vlgmr.msra.gmra.mxu3 %vm519_vm8, %v3799_v29 }
0x2554   :  { %v7475_v50 = vpop.eup %7474 }
0x2555   :  { %v3850_v34 = vmul.f32 %v7475_v50, %v7471_v40  ;;  %v3931_v30 = vpop.permute.xlu2 %3930 }
0x2556   :  { %6384 = vmatmul.msk.f32.vlgmr.msrb.gmra.mxu1 %vm519_vm8, %v3931_v30  ;;  %v3961_v15 = vpop.permute.xlu1 %3960 }
0x2557   :  { %6376 = vmatmul.msk.f32.vlgmr.msrb.gmra.mxu2 %vm579_vm9, %v3850_v34 }
0x2558   :  { %6385 = vmatpush.xpose.msk.msra.mxu2 %vm519_vm8, %v3961_v15 }
0x255c   :  { %4081 = vmatpush.bf16.msrb.mxu2 %v7152_v46 }
0x255f   :  { %6386 = vmatmul.msk.f32.vlgmr.msra.gmra.mxu2 %vm519_vm8, %v3959_v2 }
0x25cb   :  { %v3720_v38 = vpop.f32.mrf.mxu3 }
0x25cc   :  { %v3723_v55 = vpack.c.bf16 %v3720_v38, %v3693_v19 }
0x25ce   :  { %6366 = vmatmul.msk.bf16.vlgmr.msra.gmra.mxu0 %vm519_vm8, %v3723_v55  ;;  %v4090_v55 = vperm.slane %v8836_v48, 4 }
0x25d3   :  { %v3823_v28 = vpop.f32.mrf.mxu3  ;;  %v3955_v58 = vpop.f32.mrf.mxu1 }
0x25d4   :  { %v3827_v61 = vmul.f32 0.25, %v3823_v28  ;;  %v3986_v63 = vmul.f32 0.25, %v3955_v58 }
0x25d6   :  { %v3829_v0 = vadd.f32 %v3827_v61, %v8158_v56  ;;  %v3988_v21 = vadd.f32 %v3986_v63, %v8149_v43 }
0x25d8   :  { %v3990_v59 = vsel %vm579_vm9, %v3988_v21, -inf  ;;  %v3833_v3 = vsel %vm579_vm9, %v3829_v0, -inf }
0x25d9   :  { %3991 = vmax.xlane.f32.xlu2 %v3990_v59  ;;  %3834 = vmax.xlane.f32.xlu1 %v3833_v3 }
0x25da   :  { %v3875_v9 = vpop.f32.mrf.mxu2 }
0x25e2   :  { %v3983_v10 = vpop.f32.mrf.mxu2 }
0x25e3   :  { %v3987_v11 = vmul.f32 0.25, %v3983_v10 }
0x25e5   :  { %v3989_v36 = vadd.f32 %v3987_v11, %v8158_v56 }
0x25e7   :  { %v3993_v5 = vsel %vm579_vm9, %v3989_v36, -inf }
0x25e8   :  { %3994 = vmax.xlane.f32.xlu0 %v3993_v5 }
0x25fc   :  { %3878 = vrot.lane.b32.xlu0 %v8934_v17, %s7539_s15 }
0x264b   :  { %v3742_v30 = vpop.f32.mrf.mxu0 }
0x264c   :  { %v3992_v18 = vpop.xlane.xlu2 %3991  ;;  %v3835_v60 = vpop.xlane.xlu1 %3834  ;;  %v3766_v52 = vadd.f32 %v9008_v54, %v3742_v30  ;;  %v4142_v30 = vperm.slane %v8836_v48, 6 }
0x264d   :  { %v3996_v43 = vsub.f32 %v3988_v21, %v3992_v18  ;;  %v3837_v20 = vsub.f32 %v3829_v0, %v3835_v60 }
0x264f   :  { %v3998_v13 = vmul.f32 1.442695, %v3996_v43  ;;  %v3840_v19 = vmul.f32 1.442695, %v3837_v20 }
0x2651   :  { %7476 = vpow2.f32 %v3998_v13 }
0x2652   :  { %7478 = vpow2.f32 %v3840_v19 }
0x2653   :  { %v3744_v15 = vpop.f32.mrf.mxu0 }
0x2654   :  { %v3768_v0 = vadd.f32 %v9010_v24, %v3744_v15 }
0x2657   :  { %v7477_v4 = vpop.eup %7476 }
0x2658   :  { %v7479_v22 = vpop.eup %7478  ;;  %v4002_v23 = vsel %vm579_vm9, %v7477_v4, 0.0 }
0x2659   :  { %4003 = vadd.xlane.f32.xlu2 %v4002_v23  ;;  %v3845_v56 = vsel %vm579_vm9, %v7479_v22, 0.0  ;;  %v7156_v23 = vld [vmem:[%s9236_s5 + $0x78] sm:$0xff] }
0x265a   :  { %3846 = vadd.xlane.f32.xlu1 %v3845_v56  ;;  %v7155_v56 = vld [vmem:[%s9236_s5 + $0x70] sm:$0xff] }
0x265b   :  { %v3995_v27 = vpop.xlane.xlu0 %3994 }
0x265c   :  { %v3997_v8 = vsub.f32 %v3989_v36, %v3995_v27  ;;  %v7154_v27 = vld [vmem:[%s9236_s5 + $0x68] sm:$0xff] }
0x265e   :  { %v4000_v16 = vmul.f32 1.442695, %v3997_v8 }
0x2660   :  { %7480 = vpow2.f32 %v4000_v16 }
0x2666   :  { %v7481_v7 = vpop.eup %7480 }
0x2667   :  { %v4005_v57 = vsel %vm579_vm9, %v7481_v7, 0.0 }
0x2668   :  { %4006 = vadd.xlane.f32.xlu1 %v4005_v57  ;;  %v7153_v57 = vld [vmem:[%s9236_s5 + $0x60] sm:$0xff] }
0x266e   :  { %v3879_v25 = vpop.permute.xlu0 %3878 }
0x266f   :  { %3899 = vmatpush.msrb.mxu3 %v3879_v25 }
0x2671   :  { %4012 = vrot.lane.b32.xlu2 %v8925_v12, %s7541_s19 }
0x2681   :  { %4038 = vrot.lane.b32.xlu1 %v8934_v17, %s7541_s19  ;;  %v7151_v17 = vld [vmem:[%s9235_s4 + $0x70] sm:$0xff] }
0x2682   :  { %3921 = vmatpush.bf16.msrb.mxu0 %v7151_v17 }
0x2686   :  { %4187 = vmatpush.bf16.msra.mxu0 %v7156_v23 }
0x268a   :  { %4188 = vmatpush.bf16.msra.mxu0 %v7155_v56 }
0x268e   :  { %4189 = vmatpush.bf16.msra.mxu0 %v7154_v27 }
0x2692   :  { %4190 = vmatpush.bf16.msra.mxu0 %v7153_v57 }
0x26cc   :  { %v4004_v31 = vpop.xlane.xlu2 %4003 }
0x26cd   :  { %v3847_v32 = vpop.xlane.xlu1 %3846 }
0x26ce   :  { %7482 = vrcp.f32 %v3847_v32 }
0x26cf   :  { %7484 = vrcp.f32 %v4004_v31 }
0x26d4   :  { %v7483_v33 = vpop.eup %7482  ;;  %v4013_v35 = vpop.permute.xlu2 %4012 }
0x26d5   :  { %v3851_v37 = vmul.f32 %v7483_v33, %v7479_v22  ;;  %4033 = vmatpush.msra.mxu3 %v4013_v35  ;;  %v7485_v40 = vpop.eup %7484 }
0x26d6   :  { %v4010_v41 = vmul.f32 %v7485_v40, %v7477_v4 }
0x26d7   :  { %6377 = vmatmul.msk.f32.vlgmr.msrb.gmra.mxu3 %vm579_vm9, %v3851_v37 }
0x26db   :  { %v4007_v42 = vpop.xlane.xlu1 %4006 }
0x26dc   :  { %7486 = vrcp.f32 %v4007_v42 }
0x26df   :  { %6387 = vmatmul.msk.f32.vlgmr.msra.gmra.mxu3 %vm579_vm9, %v4010_v41 }
0x26e2   :  { %v7487_v12 = vpop.eup %7486 }
0x26e3   :  { %v4011_v44 = vmul.f32 %v7487_v12, %v7481_v7 }
0x26f3   :  { %v4039_v45 = vpop.permute.xlu1 %4038 }
0x26f4   :  { %4059 = vmatpush.msra.mxu1 %v4039_v45 }
0x26f5   :  { %6388 = vmatmul.msk.f32.vlgmr.msra.gmra.mxu1 %vm579_vm9, %v4011_v44 }
0x275a   :  { %v3901_v29 = vpop.f32.mrf.mxu3 }
0x275b   :  { %v3904_v47 = vpack.c.bf16 %v3901_v29, %v3875_v9 }
0x275d   :  { %6382 = vmatmul.msk.bf16.vlgmr.msrb.gmra.mxu0 %vm519_vm8, %v3904_v47  ;;  %v4139_v47 = vperm.slane %v8836_v48, 5 }
0x2762   :  { %v4035_v49 = vpop.f32.mrf.mxu3 }
0x2772   :  { %v4061_v50 = vpop.f32.mrf.mxu1 }
0x2773   :  { %v4064_v34 = vpack.c.bf16 %v4061_v50, %v4035_v49 }
0x2775   :  { %6393 = vmatmul.msk.bf16.vlgmr.msrb.gmra.mxu2 %vm519_vm8, %v4064_v34 }
0x27da   :  { %v3923_v2 = vpop.f32.mrf.mxu0 }
0x27db   :  { %v3928_v38 = vadd.f32 %v3923_v2, %v3766_v52 }
0x27e2   :  { %v3925_v63 = vpop.f32.mrf.mxu0 }
0x27e3   :  { %v3929_v59 = vadd.f32 %v3925_v63, %v3768_v0  ;;  %v7162_v63 = vld [vmem:[%s9237_s6 + $0xe8] sm:$0xff]  ;;  %v7161_v0 = vld [vmem:[%s9237_s6 + $0xe0] sm:$0xff] }
0x27f8   :  { %v4083_v28 = vpop.f32.mrf.mxu2 }
0x27f9   :  { %v4088_v58 = vadd.f32 %v4083_v28, %v3928_v38 }
0x27fb   :  { %v4091_v61 = vadd.f32 %v4090_v55, %v4088_v58  ;;  %v7164_v58 = vld [vmem:[%s9237_s6 + $0xf8] sm:$0xff] }
0x27fc   :  { %4282 = vmatpush.bf16.msrb.mxu3 %v7164_v58 }
0x27fd   :  { %v4093_v21 = vadd.f32 %v4091_v61, %v8907_v1  ;;  %v7163_v61 = vld [vmem:[%s9237_s6 + $0xf0] sm:$0xff] }
0x27ff   :  { %v4095_v3 = vsel %vm368_vm0, %v4093_v21, 0.0 }
0x2800   :  { %4096 = vadd.xlane.f32.xlu0 %v4095_v3  ;;  %v4085_v9 = vpop.f32.mrf.mxu2  ;;  %4283 = vmatpush.bf16.msrb.mxu3 %v7163_v61  ;;  %v7158_v3 = vld [vmem:[%s9237_s6 + $0xc8] sm:$0xff] }
0x2801   :  { %v4089_v10 = vadd.f32 %v4085_v9, %v3929_v59  ;;  %v7159_v59 = vld [vmem:[%s9237_s6 + $0xd0] sm:$0xff]  ;;  %v4155_v9 = vperm.slane %v8836_v48, 7 }
0x2803   :  { %v4092_v11 = vadd.f32 %v4090_v55, %v4089_v10 }
0x2804   :  { %4284 = vmatpush.bf16.msrb.mxu3 %v7162_v63 }
0x2805   :  { %v4094_v54 = vadd.f32 %v4092_v11, %v8909_v62  ;;  %v7157_v11 = vld [vmem:[%s9237_s6 + $0xc0] sm:$0xff] }
0x2807   :  { %v4098_v36 = vsel %vm368_vm0, %v4094_v54, 0.0 }
0x2808   :  { %4099 = vadd.xlane.f32.xlu2 %v4098_v36  ;;  %4285 = vmatpush.bf16.msrb.mxu3 %v7161_v0 }
0x2873   :  { %v4097_v5 = vpop.xlane.xlu0 %4096 }
0x2874   :  { %v4101_v18 = vmul.f32 %v4097_v5, %v8038_v26 }
0x2876   :  { %v4103_v60 = vsub.f32 %v4093_v21, %v4101_v18  ;;  %v7160_v21 = vld [vmem:[%s9237_s6 + $0xd8] sm:$0xff] }
0x2877   :  { %4286 = vmatpush.bf16.msrb.mxu3 %v7160_v21 }
0x2878   :  { %v4105_v43 = vmul.f32 %v4103_v60, %v4103_v60 }
0x287a   :  { %v4107_v24 = vsel %vm368_vm0, %v4105_v43, 0.0 }
0x287b   :  { %4108 = vadd.xlane.f32.xlu1 %v4107_v24  ;;  %v4100_v20 = vpop.xlane.xlu2 %4099  ;;  %4287 = vmatpush.bf16.msrb.mxu3 %v7159_v59 }
0x287c   :  { %v4102_v13 = vmul.f32 %v4100_v20, %v8038_v26 }
0x287e   :  { %v4104_v19 = vsub.f32 %v4094_v54, %v4102_v13 }
0x287f   :  { %4288 = vmatpush.bf16.msrb.mxu3 %v7158_v3 }
0x2880   :  { %v4106_v4 = vmul.f32 %v4104_v19, %v4104_v19 }
0x2882   :  { %v4110_v22 = vsel %vm368_vm0, %v4106_v4, 0.0 }
0x2883   :  { %4111 = vadd.xlane.f32.xlu0 %v4110_v22  ;;  %4289 = vmatpush.bf16.msrb.mxu3 %v7157_v11 }
0x28ee   :  { %v4109_v8 = vpop.xlane.xlu1 %4108 }
0x28ef   :  { %v4113_v16 = vmul.f32 %v4109_v8, %v8038_v26 }
0x28f1   :  { %v4115_v7 = vadd.f32 1e-12, %v4113_v16 }
0x28f3   :  { %7488 = vrsqrt.f32 %v4115_v7  ;;  %vm4123_vm9 = vweird.f32 %v4115_v7 }
0x28f6   :  { %v4112_v25 = vpop.xlane.xlu0 %4111 }
0x28f7   :  { %v4114_v31 = vmul.f32 %v4112_v25, %v8038_v26 }
0x28f9   :  { %v7489_v32 = vpop.eup %7488  ;;  %v4116_v33 = vadd.f32 1e-12, %v4114_v31 }
0x28fa   :  { %v4118_v35 = vmul.f32 %v7489_v32, %v4115_v7  ;;  %vm4124_vm8 = vweird.f32 %v7489_v32 }
0x28fb   :  { %7490 = vrsqrt.f32 %v4116_v33  ;;  %vm4125_vm5 = vmor %vm4123_vm9, %vm4124_vm8  ;;  %vm4133_vm7 = vweird.f32 %v4116_v33 }
0x28fc   :  { %v4119_v37 = vmul.f32 %v7489_v32, %v4118_v35 }
0x28fe   :  { %v4120_v40 = vmul.f32 0.5, %v4119_v37 }
0x2900   :  { %v4121_v41 = vsub.f32 1.5, %v4120_v40 }
0x2901   :  { %v7491_v42 = vpop.eup %7490 }
0x2902   :  { %v4122_v12 = vmul.f32 %v7489_v32, %v4121_v41  ;;  %v4128_v44 = vmul.f32 %v7491_v42, %v4116_v33  ;;  %vm4134_vm6 = vweird.f32 %v7491_v42 }
0x2903   :  { %vm4135_vm10 = vmor %vm4133_vm7, %vm4134_vm6 }
0x2904   :  { %v4129_v45 = vmul.f32 %v7491_v42, %v4128_v44  ;;  %v4126_v17 = vsel %vm4125_vm5, %v7489_v32, %v4122_v12  ;;  %v362_v32 = vld [vmem:[%s9233_s2 + $0x40] sm:$0x7] }
0x2905   :  { %v4137_v49 = vmul.f32 %v4126_v17, %v4103_v60  ;;  %v4233_v33 = vperm.slane %v362_v32, 0 }
0x2906   :  { %v4130_v46 = vmul.f32 0.5, %v4129_v45 }
0x2907   :  { %v4140_v15 = vmul.f32 %v4139_v47, %v4137_v49 }
0x2908   :  { %v4131_v29 = vsub.f32 1.5, %v4130_v46 }
0x2909   :  { %v4143_v38 = vadd.f32 %v4142_v30, %v4140_v15 }
0x290a   :  { %v4132_v50 = vmul.f32 %v7491_v42, %v4131_v29 }
0x290c   :  { %v4136_v34 = vsel %vm4135_vm10, %v7491_v42, %v4132_v50 }
0x290d   :  { %v4138_v2 = vmul.f32 %v4136_v34, %v4104_v19 }
0x290f   :  { %v4141_v52 = vmul.f32 %v4139_v47, %v4138_v2 }
0x2911   :  { %v4144_v55 = vadd.f32 %v4142_v30, %v4141_v52 }
0x2913   :  { %v4145_v28 = vpack.c.bf16 %v4144_v55, %v4143_v38 }
0x2915   :  { %6418 = vmatmul.msk.bf16.vlgmr.msra.gmra.mxu0 %vm368_vm0, %v4145_v28 }
0x2992   :  { %v4192_v10 = vpop.f32.mrf.mxu0 }
0x2993   :  { %v4193_v54 = vadd.f32 %v4192_v10, %v4155_v9 }
0x2995   :  { %v4197_v36 = vmul.f32 %v4193_v54, %v4193_v54 }
0x2997   :  { %v4199_v5 = vmul.f32 %v4197_v36, %v4193_v54 }
0x2999   :  { %v4201_v18 = vmul.f32 0.044715, %v4199_v5 }
0x299a   :  { %v4194_v60 = vpop.f32.mrf.mxu0 }
0x299b   :  { %v4203_v43 = vadd.f32 %v4201_v18, %v4193_v54  ;;  %v4195_v24 = vadd.f32 %v4194_v60, %v4155_v9  ;;  %v4345_v18 = vperm.slane %v362_v32, 2 }
0x299d   :  { %v4205_v20 = vmul.f32 0.7978846, %v4203_v43  ;;  %v4198_v13 = vmul.f32 %v4195_v24, %v4195_v24 }
0x299f   :  { %v4200_v19 = vmul.f32 %v4198_v13, %v4195_v24  ;;  %7492 = vtanh.f32 %v4205_v20 }
0x29a1   :  { %v4202_v4 = vmul.f32 0.044715, %v4200_v19 }
0x29a3   :  { %v4204_v48 = vadd.f32 %v4202_v4, %v4195_v24 }
0x29a5   :  { %v4206_v22 = vmul.f32 0.7978846, %v4204_v48  ;;  %v7493_v23 = vpop.eup %7492 }
0x29a6   :  { %v4209_v56 = vadd.f32 1.0, %v7493_v23 }
0x29a7   :  { %7494 = vtanh.f32 %v4206_v22 }
0x29a8   :  { %v4211_v8 = vmul.f32 0.5, %v4209_v56 }
0x29aa   :  { %v4213_v57 = vmul.f32 %v4211_v8, %v4193_v54  ;;  %v4342_v54 = vperm.slane %v362_v32, 1 }
0x29ad   :  { %v7495_v27 = vpop.eup %7494 }
0x29ae   :  { %v4210_v16 = vadd.f32 1.0, %v7495_v27 }
0x29b0   :  { %v4212_v7 = vmul.f32 0.5, %v4210_v16 }
0x29b2   :  { %v4214_v25 = vmul.f32 %v4212_v7, %v4195_v24 }
0x29b4   :  { %v4215_v31 = vpack.c.bf16 %v4214_v25, %v4213_v57 }
0x29b6   :  { %4290 = vmatmul.bf16.vlgmr.msrb.gmra.mxu3 %v4215_v31 }
0x2a39   :  { %v4291_v35 = vpop.f32.mrf.mxu3 }
0x2a3a   :  { %v4292_v37 = vadd.f32 %v4291_v35, %v4233_v33 }
0x2a3c   :  { %v4296_v40 = vadd.f32 %v4292_v37, %v4143_v38 }
0x2a3e   :  { %v4298_v41 = vsel %vm368_vm0, %v4296_v40, 0.0 }
0x2a3f   :  { %4299 = vadd.xlane.f32.xlu0 %v4298_v41 }
0x2a41   :  { %v4293_v42 = vpop.f32.mrf.mxu3 }
0x2a42   :  { %v4294_v12 = vadd.f32 %v4293_v42, %v4233_v33 }
0x2a44   :  { %v4297_v44 = vadd.f32 %v4294_v12, %v4144_v55 }
0x2a46   :  { %v4301_v45 = vsel %vm368_vm0, %v4297_v44, 0.0 }
0x2a47   :  { %4302 = vadd.xlane.f32.xlu2 %v4301_v45 }
0x2ab2   :  { %v4300_v17 = vpop.xlane.xlu0 %4299 }
0x2ab3   :  { %v4304_v46 = vmul.f32 %v4300_v17, %v8038_v26 }
0x2ab5   :  { %v4306_v29 = vsub.f32 %v4296_v40, %v4304_v46 }
0x2ab7   :  { %v4308_v47 = vmul.f32 %v4306_v29, %v4306_v29 }
0x2ab9   :  { %v4310_v49 = vsel %vm368_vm0, %v4308_v47, 0.0 }
0x2aba   :  { %v4303_v50 = vpop.xlane.xlu2 %4302  ;;  %4311 = vadd.xlane.f32.xlu0 %v4310_v49 }
0x2abb   :  { %v4305_v34 = vmul.f32 %v4303_v50, %v8038_v26 }
0x2abd   :  { %v4307_v30 = vsub.f32 %v4297_v44, %v4305_v34 }
0x2abf   :  { %v4309_v15 = vmul.f32 %v4307_v30, %v4307_v30 }
0x2ac1   :  { %v4313_v2 = vsel %vm368_vm0, %v4309_v15, 0.0 }
0x2ac2   :  { %4314 = vadd.xlane.f32.xlu1 %v4313_v2 }
0x2b2d   :  { %v4312_v52 = vpop.xlane.xlu0 %4311 }
0x2b2e   :  { %v4316_v38 = vmul.f32 %v4312_v52, %v8038_v26 }
0x2b30   :  { %v4318_v55 = vadd.f32 1e-12, %v4316_v38 }
0x2b32   :  { %7496 = vrsqrt.f32 %v4318_v55  ;;  %vm4326_vm12 = vweird.f32 %v4318_v55 }
0x2b35   :  { %v4315_v28 = vpop.xlane.xlu1 %4314 }
0x2b36   :  { %v4317_v58 = vmul.f32 %v4315_v28, %v8038_v26 }
0x2b38   :  { %v7497_v61 = vpop.eup %7496  ;;  %v4319_v63 = vadd.f32 1e-12, %v4317_v58 }
0x2b39   :  { %v4321_v0 = vmul.f32 %v7497_v61, %v4318_v55  ;;  %vm4327_vm11 = vweird.f32 %v7497_v61 }
0x2b3a   :  { %7498 = vrsqrt.f32 %v4319_v63  ;;  %vm4328_vm13 = vmor %vm4326_vm12, %vm4327_vm11  ;;  %vm4336_vm15 = vweird.f32 %v4319_v63 }
0x2b3b   :  { %v4322_v21 = vmul.f32 %v7497_v61, %v4321_v0 }
0x2b3d   :  { %v4323_v59 = vmul.f32 0.5, %v4322_v21 }
0x2b3f   :  { %v4324_v3 = vsub.f32 1.5, %v4323_v59 }
0x2b40   :  { %v7499_v9 = vpop.eup %7498 }
0x2b41   :  { %v4325_v10 = vmul.f32 %v7497_v61, %v4324_v3  ;;  %v4331_v11 = vmul.f32 %v7499_v9, %v4319_v63  ;;  %vm4337_vm14 = vweird.f32 %v7499_v9 }
0x2b42   :  { %vm4338_vm1 = vmor %vm4336_vm15, %vm4337_vm14 }
0x2b43   :  { %v4329_v36 = vsel %vm4328_vm13, %v7497_v61, %v4325_v10  ;;  %v4332_v5 = vmul.f32 %v7499_v9, %v4331_v11 }
0x2b44   :  { %v4340_v60 = vmul.f32 %v4329_v36, %v4306_v29 }
0x2b45   :  { %v4333_v43 = vmul.f32 0.5, %v4332_v5 }
0x2b46   :  { %v4343_v26 = vmul.f32 %v4342_v54, %v4340_v60 }
0x2b47   :  { %v4334_v24 = vsub.f32 1.5, %v4333_v43 }
0x2b48   :  { %v9103_v20 = vadd.f32 %v4345_v18, %v4343_v26 }
0x2b49   :  { %v4335_v13 = vmul.f32 %v7499_v9, %v4334_v24 }
0x2b4b   :  { %v4339_v19 = vsel %vm4338_vm1, %v7499_v9, %v4335_v13 }
0x2b4c   :  { %v4341_v4 = vmul.f32 %v4339_v19, %v4307_v30 }
0x2b4e   :  { %v4344_v48 = vmul.f32 %v4342_v54, %v4341_v4 }
0x2b50   :  { %v9105_v22 = vadd.f32 %v4345_v18, %v4344_v48 }
0x2b51   :  { %7528 = dma.done.wait [#allocation4], 12288 }
0x2b52   :  { %7529 = vsyncadd [#allocation4], 4294955008 }
0x2b53   :  { %7530 = dma.done.wait [#allocation4 + $0x1], 6144 }
0x2b54   :  { %7531 = vsyncadd [#allocation4 + $0x1], 4294961152  ;;  %v4388_v23 = vrot.slane %v8909_v62, 7  ;;  %v4358_v56 = vrot.slane %v9105_v22, 7  ;;  %v6541_v27 = vld [vmem:[#allocation2 + $0x150] sm:$0xf] }
0x2b55   :  { %v7210_v8 = vld [vmem:[#allocation2 + $0x164] sm:$0xf0]  ;;  %v7207_v16 = vld [vmem:[#allocation2 + $0x154] sm:$0xf]  ;;  %vm4360_vm2 = vcmask 1040384   ;;  %s5809_s17 = sshll.u32 %s9241_s10, 4  ;;  %s5810_s17 = int_to_ptr.hbm [resolvable:$true] %s5809_s17 }
0x2b56   :  { %v6542_v7 = vor.u32 %v7210_v8, %v6541_v27  ;;  %v6543_v57 = vld [vmem:[#allocation2 + $0x168] sm:$0xf0]  ;;  %v6549_v25 = vld [vmem:[#allocation2 + $0x158] sm:$0xf]  ;;  %v7211_v31 = vld [vmem:[#allocation2 + $0x16c] sm:$0xf0]  ;;  %v4390_v60 = vsel %vm4360_vm2, %v8907_v1, %v4388_v23  ;;  %v4361_v27 = vsel %vm4360_vm2, %v9103_v20, %v4358_v56 }
0x2b57   :  { %v6546_v32 = vor.u32 %v7207_v16, %v6543_v57  ;;  %v6550_v33 = vor.u32 %v7211_v31, %v6549_v25  ;;  %v6643_v35 = vld [vmem:[#allocation2 + $0x90] sm:$0xf]  ;;  %v7186_v37 = vld [vmem:[#allocation2 + $0xa4] sm:$0xf0]  ;;  %v6517_v40 = vld [vmem:[#allocation2 + $0x120] sm:$0xf]  ;;  %v9115_v57 = vpack.c.bf16 %v4390_v60, %v4390_v60 }
0x2b58   :  { %4544 = vmatpush.bf16.msrb.mxu1 %v6542_v7  ;;  %v6644_v41 = vor.u32 %v7186_v37, %v6643_v35  ;;  %v7204_v42 = vld [vmem:[#allocation2 + $0x134] sm:$0xf0]  ;;  %v7201_v12 = vld [vmem:[#allocation2 + $0x124] sm:$0xf]  ;;  %v6519_v62 = vld [vmem:[#allocation2 + $0x138] sm:$0xf0]  ;;  %v9117_v35 = vpack.c.bf16 %v4361_v27, %v4361_v27 }
0x2b59   :  { %4557 = vmatpush.bf16.msra.mxu2 %v6546_v32  ;;  %4570 = vmatpush.bf16.msrb.mxu0 %v6550_v33  ;;  %v6518_v44 = vor.u32 %v7204_v42, %v6517_v40  ;;  %v6522_v45 = vor.u32 %v7201_v12, %v6519_v62  ;;  %v6525_v17 = vld [vmem:[#allocation2 + $0x128] sm:$0xf]  ;;  %v7205_v46 = vld [vmem:[#allocation2 + $0x13c] sm:$0xf0]  ;;  %v7180_v49 = vld [vmem:[#allocation2 + $0x74] sm:$0xf0] }
0x2b5a   :  { %v6619_v29 = vld [vmem:[#allocation2 + $0x60] sm:$0xf]  ;;  %4745 = vmatpush.bf16.msra.mxu3 %v6644_v41  ;;  %v6526_v47 = vor.u32 %v7205_v46, %v6525_v17  ;;  %v6493_v50 = vld [vmem:[#allocation2 + $0xf0] sm:$0xf]  ;;  %v7198_v34 = vld [vmem:[#allocation2 + $0x104] sm:$0xf0] }
0x2b5b   :  { %v6620_v30 = vor.u32 %v7180_v49, %v6619_v29  ;;  %v7195_v15 = vld [vmem:[#allocation2 + $0xf4] sm:$0xf]  ;;  %v6495_v2 = vld [vmem:[#allocation2 + $0x108] sm:$0xf0]  ;;  %v6501_v52 = vld [vmem:[#allocation2 + $0xf8] sm:$0xf]  ;;  %v6494_v38 = vor.u32 %v7198_v34, %v6493_v50 }
0x2b5c   :  { %4545 = vmatpush.bf16.msrb.mxu1 %v6518_v44  ;;  %v7199_v55 = vld [vmem:[#allocation2 + $0x10c] sm:$0xf0]  ;;  %v7174_v58 = vld [vmem:[#allocation2 + $0x44] sm:$0xf0]  ;;  %v6498_v61 = vor.u32 %v7195_v15, %v6495_v2  ;;  %v6469_v0 = vld [vmem:[#allocation2 + $0xc0] sm:$0xf] }
0x2b5d   :  { %v6595_v28 = vld [vmem:[#allocation2 + $0x30] sm:$0xf]  ;;  %4558 = vmatpush.bf16.msra.mxu2 %v6522_v45  ;;  %4571 = vmatpush.bf16.msrb.mxu0 %v6526_v47  ;;  %v6502_v63 = vor.u32 %v7199_v55, %v6501_v52  ;;  %v7192_v21 = vld [vmem:[#allocation2 + $0xd4] sm:$0xf0]  ;;  %v7189_v59 = vld [vmem:[#allocation2 + $0xc4] sm:$0xf] }
0x2b5e   :  { %4746 = vmatpush.bf16.msra.mxu3 %v6620_v30  ;;  %v6596_v3 = vor.u32 %v7174_v58, %v6595_v28  ;;  %v6471_v9 = vld [vmem:[#allocation2 + $0xd8] sm:$0xf0]  ;;  %v6477_v10 = vld [vmem:[#allocation2 + $0xc8] sm:$0xf]  ;;  %v7193_v11 = vld [vmem:[#allocation2 + $0xdc] sm:$0xf0]  ;;  %v6470_v18 = vor.u32 %v7192_v21, %v6469_v0 }
0x2b5f   :  { %v6571_v54 = vld [vmem:[#allocation2] sm:$0xf]  ;;  %v7168_v36 = vld [vmem:[#allocation2 + $0x14] sm:$0xf0]  ;;  %v6474_v26 = vor.u32 %v7189_v59, %v6471_v9  ;;  %v6478_v24 = vor.u32 %v7193_v11, %v6477_v10  ;;  %v7209_v13 = vld [vmem:[#allocation2 + $0x164] sm:$0xf] }
0x2b60   :  { %v6557_v5 = vld [vmem:[#allocation2 + $0x160] sm:$0xf]  ;;  %4546 = vmatpush.bf16.msrb.mxu1 %v6494_v38  ;;  %v7212_v43 = vld [vmem:[#allocation2 + $0x174] sm:$0xf0]  ;;  %v6559_v19 = vld [vmem:[#allocation2 + $0x178] sm:$0xf0]  ;;  %v6572_v4 = vor.u32 %v7168_v36, %v6571_v54 }
0x2b61   :  { %4559 = vmatpush.bf16.msra.mxu2 %v6498_v61  ;;  %4572 = vmatpush.bf16.msrb.mxu0 %v6502_v63  ;;  %v6558_v48 = vor.u32 %v7212_v43, %v6557_v5  ;;  %v7208_v8 = vld [vmem:[#allocation2 + $0x15c] sm:$0xf]  ;;  %v6551_v16 = vld [vmem:[#allocation2 + $0x170] sm:$0xf0]  ;;  %v6659_v7 = vld [vmem:[#allocation2 + $0xa0] sm:$0xf]  ;;  %v6562_v1 = vor.u32 %v7209_v13, %v6559_v19 }
0x2b62   :  { %4747 = vmatpush.bf16.msra.mxu3 %v6596_v3  ;;  %v7188_v23 = vld [vmem:[#allocation2 + $0xb4] sm:$0xf0]  ;;  %v6533_v25 = vld [vmem:[#allocation2 + $0x130] sm:$0xf]  ;;  %v7206_v31 = vld [vmem:[#allocation2 + $0x144] sm:$0xf0]  ;;  %v6554_v22 = vor.u32 %v7208_v8, %v6551_v16 }
0x2b63   :  { %v7203_v32 = vld [vmem:[#allocation2 + $0x134] sm:$0xf]  ;;  %v6535_v33 = vld [vmem:[#allocation2 + $0x148] sm:$0xf0]  ;;  %v6660_v20 = vor.u32 %v7188_v23, %v6659_v7  ;;  %v6534_v56 = vor.u32 %v7206_v31, %v6533_v25  ;;  %v6527_v40 = vld [vmem:[#allocation2 + $0x140] sm:$0xf0] }
0x2b64   :  { %4547 = vmatpush.bf16.msrb.mxu1 %v6470_v18  ;;  %v7202_v37 = vld [vmem:[#allocation2 + $0x12c] sm:$0xf]  ;;  %v6635_v41 = vld [vmem:[#allocation2 + $0x70] sm:$0xf]  ;;  %v6538_v42 = vor.u32 %v7203_v32, %v6535_v33  ;;  %v7182_v12 = vld [vmem:[#allocation2 + $0x84] sm:$0xf0] }
0x2b65   :  { %4560 = vmatpush.bf16.msra.mxu2 %v6474_v26  ;;  %4573 = vmatpush.bf16.msrb.mxu0 %v6478_v24  ;;  %v6509_v62 = vld [vmem:[#allocation2 + $0x100] sm:$0xf]  ;;  %v7200_v44 = vld [vmem:[#allocation2 + $0x114] sm:$0xf0]  ;;  %v7197_v45 = vld [vmem:[#allocation2 + $0x104] sm:$0xf]  ;;  %v6530_v46 = vor.u32 %v7202_v37, %v6527_v40  ;;  %v6636_v47 = vor.u32 %v7182_v12, %v6635_v41 }
0x2b66   :  { %4748 = vmatpush.bf16.msra.mxu3 %v6572_v4  ;;  %v6511_v17 = vld [vmem:[#allocation2 + $0x118] sm:$0xf0]  ;;  %v6510_v49 = vor.u32 %v7200_v44, %v6509_v62  ;;  %v6503_v50 = vld [vmem:[#allocation2 + $0x110] sm:$0xf0]  ;;  %v6611_v34 = vld [vmem:[#allocation2 + $0x40] sm:$0xf] }
0x2b67   :  { %6563 = vmatmul.msk.bf16.vlgmr.msrb.gmra.mxu1 %vm368_vm0, %v9115_v57  ;;  %v7196_v29 = vld [vmem:[#allocation2 + $0xfc] sm:$0xf]  ;;  %v7176_v30 = vld [vmem:[#allocation2 + $0x54] sm:$0xf0]  ;;  %v6514_v15 = vor.u32 %v7197_v45, %v6511_v17  ;;  %v6485_v2 = vld [vmem:[#allocation2 + $0xd0] sm:$0xf] }
0x2b68   :  { %6564 = vmatmul.msk.bf16.vlgmr.msra.gmra.mxu2 %vm368_vm0, %v9115_v57  ;;  %6565 = vmatmul.msk.bf16.vlgmr.msrb.gmra.mxu0 %vm368_vm0, %v9115_v57  ;;  %v7194_v52 = vld [vmem:[#allocation2 + $0xe4] sm:$0xf0]  ;;  %v7191_v38 = vld [vmem:[#allocation2 + $0xd4] sm:$0xf]  ;;  %v6487_v55 = vld [vmem:[#allocation2 + $0xe8] sm:$0xf0]  ;;  %v6506_v61 = vor.u32 %v7196_v29, %v6503_v50  ;;  %v6612_v59 = vor.u32 %v7176_v30, %v6611_v34 }
0x2b69   :  { %4596 = vmatpush.bf16.msrb.mxu2 %v6558_v48  ;;  %4609 = vmatpush.bf16.msra.mxu0 %v6562_v1  ;;  %v6651_v28 = vld [vmem:[#allocation2 + $0x98] sm:$0xf]  ;;  %v7187_v58 = vld [vmem:[#allocation2 + $0xac] sm:$0xf0]  ;;  %v7190_v63 = vld [vmem:[#allocation2 + $0xcc] sm:$0xf]  ;;  %v6486_v3 = vor.u32 %v7194_v52, %v6485_v2  ;;  %v6490_v54 = vor.u32 %v7191_v38, %v6487_v55 }
0x2b6a   :  { %6665 = vmatmul.msk.bf16.vlgmr.msra.gmra.mxu3 %vm368_vm0, %v9117_v35  ;;  %4583 = vmatpush.bf16.msra.mxu1 %v6554_v22  ;;  %v7184_v0 = vld [vmem:[#allocation2 + $0x9c] sm:$0xf]  ;;  %v6653_v21 = vld [vmem:[#allocation2 + $0xb0] sm:$0xf0]  ;;  %v6479_v9 = vld [vmem:[#allocation2 + $0xe0] sm:$0xf0]  ;;  %v6652_v36 = vor.u32 %v7187_v58, %v6651_v28 }
0x2b6b   :  { %4797 = vmatpush.bf16.msrb.mxu3 %v6660_v20  ;;  %v6587_v10 = vld [vmem:[#allocation2 + $0x10] sm:$0xf]  ;;  %v7170_v11 = vld [vmem:[#allocation2 + $0x24] sm:$0xf0]  ;;  %v7183_v5 = vld [vmem:[#allocation2 + $0x94] sm:$0xf]  ;;  %v6656_v43 = vor.u32 %v7184_v0, %v6653_v21  ;;  %v6482_v19 = vor.u32 %v7190_v63, %v6479_v9 }
0x2b6c   :  { %v6645_v18 = vld [vmem:[#allocation2 + $0xa8] sm:$0xf0]  ;;  %v6753_v60 = vld [vmem:[#allocation2 + $0x218] sm:$0xf]  ;;  %v7235_v26 = vld [vmem:[#allocation2 + $0x22c] sm:$0xf0]  ;;  %v6588_v4 = vor.u32 %v7170_v11, %v6587_v10 }
0x2b6d   :  { %4597 = vmatpush.bf16.msrb.mxu2 %v6534_v56  ;;  %4610 = vmatpush.bf16.msra.mxu0 %v6538_v42  ;;  %v6627_v24 = vld [vmem:[#allocation2 + $0x68] sm:$0xf]  ;;  %v7181_v13 = vld [vmem:[#allocation2 + $0x7c] sm:$0xf0]  ;;  %v6648_v48 = vor.u32 %v7183_v5, %v6645_v18  ;;  %v7177_v27 = vld [vmem:[#allocation2 + $0x64] sm:$0xf]  ;;  %v6754_v16 = vor.u32 %v7235_v26, %v6753_v60 }
0x2b6e   :  { %4584 = vmatpush.bf16.msra.mxu1 %v6530_v46  ;;  %v6621_v8 = vld [vmem:[#allocation2 + $0x78] sm:$0xf0]  ;;  %v6628_v7 = vor.u32 %v7181_v13, %v6627_v24  ;;  %v7178_v1 = vld [vmem:[#allocation2 + $0x6c] sm:$0xf]  ;;  %v6629_v23 = vld [vmem:[#allocation2 + $0x80] sm:$0xf0] }
0x2b6f   :  { %4798 = vmatpush.bf16.msrb.mxu3 %v6636_v47  ;;  %v6729_v25 = vld [vmem:[#allocation2 + $0x1e8] sm:$0xf]  ;;  %v7229_v31 = vld [vmem:[#allocation2 + $0x1fc] sm:$0xf0]  ;;  %v6603_v32 = vld [vmem:[#allocation2 + $0x38] sm:$0xf]  ;;  %v6624_v22 = vor.u32 %v7177_v27, %v6621_v8  ;;  %v6632_v20 = vor.u32 %v7178_v1, %v6629_v23 }
0x2b70   :  { %v7175_v33 = vld [vmem:[#allocation2 + $0x4c] sm:$0xf0]  ;;  %v7171_v56 = vld [vmem:[#allocation2 + $0x34] sm:$0xf]  ;;  %v6597_v37 = vld [vmem:[#allocation2 + $0x48] sm:$0xf0]  ;;  %v6730_v40 = vor.u32 %v7229_v31, %v6729_v25 }
0x2b71   :  { %4598 = vmatpush.bf16.msrb.mxu2 %v6510_v49  ;;  %4611 = vmatpush.bf16.msra.mxu0 %v6514_v15  ;;  %v6604_v41 = vor.u32 %v7175_v33, %v6603_v32  ;;  %v7172_v42 = vld [vmem:[#allocation2 + $0x3c] sm:$0xf]  ;;  %v6605_v12 = vld [vmem:[#allocation2 + $0x50] sm:$0xf0]  ;;  %v6705_v62 = vld [vmem:[#allocation2 + $0x1b8] sm:$0xf]  ;;  %v6600_v47 = vor.u32 %v7171_v56, %v6597_v37 }
0x2b72   :  { %4585 = vmatpush.bf16.msra.mxu1 %v6506_v61  ;;  %v7223_v44 = vld [vmem:[#allocation2 + $0x1cc] sm:$0xf0]  ;;  %v6579_v45 = vld [vmem:[#allocation2 + $0x8] sm:$0xf]  ;;  %v7169_v17 = vld [vmem:[#allocation2 + $0x1c] sm:$0xf0]  ;;  %v6608_v49 = vor.u32 %v7172_v42, %v6605_v12 }
0x2b73   :  { %4799 = vmatpush.bf16.msrb.mxu3 %v6612_v59  ;;  %v6745_v46 = vld [vmem:[#allocation2 + $0x210] sm:$0xf]  ;;  %v7234_v29 = vld [vmem:[#allocation2 + $0x224] sm:$0xf0]  ;;  %v7165_v50 = vld [vmem:[#allocation2 + $0x4] sm:$0xf]  ;;  %v6706_v15 = vor.u32 %v7223_v44, %v6705_v62  ;;  %v6580_v2 = vor.u32 %v7169_v17, %v6579_v45 }
0x2b74   :  { %v6573_v34 = vld [vmem:[#allocation2 + $0x18] sm:$0xf0]  ;;  %v7166_v30 = vld [vmem:[#allocation2 + $0xc] sm:$0xf]  ;;  %v6581_v52 = vld [vmem:[#allocation2 + $0x20] sm:$0xf0] }
0x2b75   :  { %4599 = vmatpush.bf16.msrb.mxu2 %v6486_v3  ;;  %4612 = vmatpush.bf16.msra.mxu0 %v6490_v54  ;;  %v6681_v38 = vld [vmem:[#allocation2 + $0x188] sm:$0xf]  ;;  %v7217_v55 = vld [vmem:[#allocation2 + $0x19c] sm:$0xf0]  ;;  %v7185_v28 = vld [vmem:[#allocation2 + $0xa4] sm:$0xf]  ;;  %v6576_v59 = vor.u32 %v7165_v50, %v6573_v34  ;;  %v6584_v3 = vor.u32 %v7166_v30, %v6581_v52 }
0x2b76   :  { %4586 = vmatpush.bf16.msra.mxu1 %v6482_v19  ;;  %v6661_v58 = vld [vmem:[#allocation2 + $0xb8] sm:$0xf0]  ;;  %v7231_v61 = vld [vmem:[#allocation2 + $0x214] sm:$0xf]  ;;  %v6747_v63 = vld [vmem:[#allocation2 + $0x228] sm:$0xf0]  ;;  %v6682_v54 = vor.u32 %v7217_v55, %v6681_v38 }
0x2b77   :  { %4800 = vmatpush.bf16.msrb.mxu3 %v6588_v4  ;;  %v6847_v0 = vld [vmem:[#allocation2 + $0x2d0] sm:$0xf]  ;;  %v7258_v21 = vld [vmem:[#allocation2 + $0x2e4] sm:$0xf0]  ;;  %v4820_v9 = vrot.slane %v8644_v6, 7  ;;  %v6750_v5 = vor.u32 %v7231_v61, %v6747_v63 }
0x2b78   :  { %6567 = vmatmul.msk.bf16.vlgmr.msrb.gmra.mxu2 %vm368_vm0, %v9115_v57  ;;  %6568 = vmatmul.msk.bf16.vlgmr.msra.gmra.mxu0 %vm368_vm0, %v9115_v57  ;;  %v6721_v10 = vld [vmem:[#allocation2 + $0x1e0] sm:$0xf]  ;;  %v7228_v11 = vld [vmem:[#allocation2 + $0x1f4] sm:$0xf0]  ;;  %v6848_v18 = vor.u32 %v7258_v21, %v6847_v0  ;;  %v7179_v60 = vld [vmem:[#allocation2 + $0x74] sm:$0xf] }
0x2b79   :  { %4771 = vmatpush.bf16.msra.mxu2 %v6652_v36  ;;  %4784 = vmatpush.bf16.msrb.mxu0 %v6656_v43  ;;  %v6664_v36 = vor.u32 %v7185_v28, %v6661_v58  ;;  %v6637_v43 = vld [vmem:[#allocation2 + $0x88] sm:$0xf0]  ;;  %v6722_v26 = vor.u32 %v7228_v11, %v6721_v10  ;;  %v4822_v24 = vsel %vm4360_vm2, %v8642_v39, %v4820_v9  ;;  %v7225_v13 = vld [vmem:[#allocation2 + $0x1e4] sm:$0xf]  ;;  %v6723_v19 = vld [vmem:[#allocation2 + $0x1f8] sm:$0xf0] }
0x2b7a   :  { %4758 = vmatpush.bf16.msrb.mxu1 %v6648_v48  ;;  %6669 = vmatmul.msk.bf16.vlgmr.msrb.gmra.mxu3 %vm368_vm0, %v9117_v35  ;;  %v6640_v6 = vor.u32 %v7179_v60, %v6637_v43  ;;  %v6823_v4 = vld [vmem:[#allocation2 + $0x2a0] sm:$0xf]  ;;  %v7252_v48 = vld [vmem:[#allocation2 + $0x2b4] sm:$0xf0]  ;;  %v6697_v27 = vld [vmem:[#allocation2 + $0x1b0] sm:$0xf]  ;;  %v9138_v1 = vpack.c.bf16 %v4822_v24, %v4822_v24  ;;  %v6726_v23 = vor.u32 %v7225_v13, %v6723_v19 }
0x2b7b   :  { %5002 = vmatpush.bf16.msra.mxu3 %v6754_v16  ;;  %6566 = vmatmul.msk.bf16.vlgmr.msra.gmra.mxu1 %vm368_vm0, %v9115_v57  ;;  %v6746_v57 = vor.u32 %v7234_v29, %v6745_v46  ;;  %v7222_v8 = vld [vmem:[#allocation2 + $0x1c4] sm:$0xf0]  ;;  %v7173_v16 = vld [vmem:[#allocation2 + $0x44] sm:$0xf]  ;;  %v6824_v25 = vor.u32 %v7252_v48, %v6823_v4  ;;  %v7219_v31 = vld [vmem:[#allocation2 + $0x1b4] sm:$0xf] }
0x2b7c   :  { %v6699_v39 = vld [vmem:[#allocation2 + $0x1c8] sm:$0xf0]  ;;  %v6799_v32 = vld [vmem:[#allocation2 + $0x270] sm:$0xf]  ;;  %v6698_v33 = vor.u32 %v7222_v8, %v6697_v27  ;;  %v6673_v56 = vld [vmem:[#allocation2 + $0x180] sm:$0xf] }
0x2b7d   :  { %4772 = vmatpush.bf16.msra.mxu2 %v6628_v7  ;;  %4785 = vmatpush.bf16.msrb.mxu0 %v6632_v20  ;;  %v6613_v7 = vld [vmem:[#allocation2 + $0x58] sm:$0xf0]  ;;  %v7246_v20 = vld [vmem:[#allocation2 + $0x284] sm:$0xf0]  ;;  %v7216_v37 = vld [vmem:[#allocation2 + $0x194] sm:$0xf0]  ;;  %v6702_v45 = vor.u32 %v7219_v31, %v6699_v39 }
0x2b7e   :  { %4759 = vmatpush.bf16.msrb.mxu1 %v6624_v22  ;;  %v6616_v22 = vor.u32 %v7173_v16, %v6613_v7  ;;  %v6761_v42 = vld [vmem:[#allocation2 + $0x220] sm:$0xf]  ;;  %v7236_v12 = vld [vmem:[#allocation2 + $0x234] sm:$0xf0]  ;;  %v7232_v62 = vld [vmem:[#allocation2 + $0x21c] sm:$0xf]  ;;  %v6800_v17 = vor.u32 %v7246_v20, %v6799_v32 }
0x2b7f   :  { %5003 = vmatpush.bf16.msra.mxu3 %v6730_v40  ;;  %v7167_v40 = vld [vmem:[#allocation2 + $0x14] sm:$0xf]  ;;  %v7213_v46 = vld [vmem:[#allocation2 + $0x184] sm:$0xf]  ;;  %v6675_v29 = vld [vmem:[#allocation2 + $0x198] sm:$0xf0] }
0x2b80   :  { %v6755_v44 = vld [vmem:[#allocation2 + $0x230] sm:$0xf0]  ;;  %v7240_v34 = vld [vmem:[#allocation2 + $0x254] sm:$0xf0]  ;;  %v7233_v30 = vld [vmem:[#allocation2 + $0x224] sm:$0xf]  ;;  %v6678_v63 = vor.u32 %v7213_v46, %v6675_v29 }
0x2b81   :  { %4773 = vmatpush.bf16.msra.mxu2 %v6604_v41  ;;  %4786 = vmatpush.bf16.msrb.mxu0 %v6608_v49  ;;  %v6589_v41 = vld [vmem:[#allocation2 + $0x28] sm:$0xf0]  ;;  %v6674_v49 = vor.u32 %v7216_v37, %v6673_v56  ;;  %v6758_v52 = vor.u32 %v7232_v62, %v6755_v44  ;;  %v6863_v38 = vld [vmem:[#allocation2 + $0x2e0] sm:$0xf]  ;;  %v7260_v55 = vld [vmem:[#allocation2 + $0x2f4] sm:$0xf0] }
0x2b82   :  { %4760 = vmatpush.bf16.msrb.mxu1 %v6600_v47  ;;  %v6775_v47 = vld [vmem:[#allocation2 + $0x240] sm:$0xf]  ;;  %v6592_v50 = vor.u32 %v7167_v40, %v6589_v41  ;;  %v7230_v28 = vld [vmem:[#allocation2 + $0x204] sm:$0xf0]  ;;  %v7226_v58 = vld [vmem:[#allocation2 + $0x1ec] sm:$0xf] }
0x2b83   :  { %5004 = vmatpush.bf16.msra.mxu3 %v6706_v15  ;;  %v6763_v15 = vld [vmem:[#allocation2 + $0x238] sm:$0xf0]  ;;  %v6731_v61 = vld [vmem:[#allocation2 + $0x200] sm:$0xf0]  ;;  %v6776_v0 = vor.u32 %v7240_v34, %v6775_v47  ;;  %v5057_v21 = vrot.slane %v8385_v53, 7 }
0x2b84   :  { %v7227_v9 = vld [vmem:[#allocation2 + $0x1f4] sm:$0xf]  ;;  %v6734_v11 = vor.u32 %v7226_v58, %v6731_v61  ;;  %v6713_v60 = vld [vmem:[#allocation2 + $0x1c0] sm:$0xf]  ;;  %v7224_v43 = vld [vmem:[#allocation2 + $0x1d4] sm:$0xf0] }
0x2b85   :  { %4774 = vmatpush.bf16.msra.mxu2 %v6580_v2  ;;  %4787 = vmatpush.bf16.msrb.mxu0 %v6584_v3  ;;  %v6762_v2 = vor.u32 %v7236_v12, %v6761_v42  ;;  %v6864_v3 = vor.u32 %v7260_v55, %v6863_v38  ;;  %v7220_v24 = vld [vmem:[#allocation2 + $0x1bc] sm:$0xf]  ;;  %v6707_v13 = vld [vmem:[#allocation2 + $0x1d0] sm:$0xf0]  ;;  %v7221_v19 = vld [vmem:[#allocation2 + $0x1c4] sm:$0xf]  ;;  %v6714_v8 = vor.u32 %v7224_v43, %v6713_v60 }
0x2b86   :  { %4761 = vmatpush.bf16.msrb.mxu1 %v6576_v59  ;;  %v6766_v59 = vor.u32 %v7233_v30, %v6763_v15  ;;  %v6815_v4 = vld [vmem:[#allocation2 + $0x280] sm:$0xf]  ;;  %v7248_v48 = vld [vmem:[#allocation2 + $0x294] sm:$0xf0]  ;;  %v6710_v16 = vor.u32 %v7220_v24, %v6707_v13  ;;  %v6689_v7 = vld [vmem:[#allocation2 + $0x190] sm:$0xf] }
0x2b87   :  { %5005 = vmatpush.bf16.msra.mxu3 %v6682_v54  ;;  %v6739_v54 = vld [vmem:[#allocation2 + $0x208] sm:$0xf0]  ;;  %v6816_v31 = vor.u32 %v7248_v48, %v6815_v4  ;;  %v6683_v39 = vld [vmem:[#allocation2 + $0x1a0] sm:$0xf0]  ;;  %v7215_v32 = vld [vmem:[#allocation2 + $0x194] sm:$0xf] }
0x2b88   :  { %6667 = vmatmul.msk.bf16.vlgmr.msra.gmra.mxu2 %vm368_vm0, %v9117_v35  ;;  %6668 = vmatmul.msk.bf16.vlgmr.msrb.gmra.mxu0 %vm368_vm0, %v9117_v35  ;;  %v6742_v53 = vor.u32 %v7227_v9, %v6739_v54  ;;  %v7242_v20 = vld [vmem:[#allocation2 + $0x264] sm:$0xf0]  ;;  %v6855_v56 = vld [vmem:[#allocation2 + $0x2d8] sm:$0xf]  ;;  %v7259_v37 = vld [vmem:[#allocation2 + $0x2ec] sm:$0xf0] }
0x2b89   :  { %4976 = vmatpush.bf16.msrb.mxu2 %v6746_v57  ;;  %4989 = vmatpush.bf16.msra.mxu0 %v6750_v5  ;;  %v6737_v57 = vld [vmem:[#allocation2 + $0x1f0] sm:$0xf]  ;;  %v7254_v5 = vld [vmem:[#allocation2 + $0x2c4] sm:$0xf0]  ;;  %v7255_v40 = vld [vmem:[#allocation2 + $0x2d4] sm:$0xf] }
0x2b8a   :  { %4810 = vmatpush.bf16.msra.mxu1 %v6664_v36  ;;  %6769 = vmatmul.msk.bf16.vlgmr.msra.gmra.mxu3 %vm368_vm0, %v9138_v1  ;;  %v6738_v10 = vor.u32 %v7230_v28, %v6737_v57  ;;  %v6839_v36 = vld [vmem:[#allocation2 + $0x2b0] sm:$0xf]  ;;  %v6849_v41 = vld [vmem:[#allocation2 + $0x2e8] sm:$0xf0]  ;;  %v6857_v62 = vld [vmem:[#allocation2 + $0x2f0] sm:$0xf0] }
0x2b8b   :  { %5213 = vmatpush.bf16.msrb.mxu3 %v6848_v18  ;;  %6666 = vmatmul.msk.bf16.vlgmr.msrb.gmra.mxu1 %vm368_vm0, %v9117_v35  ;;  %v5059_v18 = vsel %vm4360_vm2, %v8383_v51, %v5057_v21  ;;  %v7218_v51 = vld [vmem:[#allocation2 + $0x1a4] sm:$0xf0]  ;;  %v6852_v46 = vor.u32 %v7255_v40, %v6849_v41  ;;  %v6825_v34 = vld [vmem:[#allocation2 + $0x2b8] sm:$0xf0]  ;;  %v7250_v30 = vld [vmem:[#allocation2 + $0x2ac] sm:$0xf] }
0x2b8c   :  { %v9151_v27 = vpack.c.bf16 %v5059_v18, %v5059_v18  ;;  %v6690_v42 = vor.u32 %v7218_v51, %v6689_v7  ;;  %v6831_v29 = vld [vmem:[#allocation2 + $0x2a8] sm:$0xf]  ;;  %v6833_v15 = vld [vmem:[#allocation2 + $0x2c0] sm:$0xf0]  ;;  %v6807_v55 = vld [vmem:[#allocation2 + $0x278] sm:$0xf] }
0x2b8d   :  { %4977 = vmatpush.bf16.msrb.mxu2 %v6722_v26  ;;  %4990 = vmatpush.bf16.msra.mxu0 %v6726_v23  ;;  %v6840_v26 = vor.u32 %v7254_v5, %v6839_v36  ;;  %v7214_v23 = vld [vmem:[#allocation2 + $0x18c] sm:$0xf]  ;;  %v6836_v38 = vor.u32 %v7250_v30, %v6833_v15  ;;  %v7247_v57 = vld [vmem:[#allocation2 + $0x28c] sm:$0xf0]  ;;  %v7243_v28 = vld [vmem:[#allocation2 + $0x274] sm:$0xf] }
0x2b8e   :  { %4811 = vmatpush.bf16.msra.mxu1 %v6640_v6  ;;  %v6715_v6 = vld [vmem:[#allocation2 + $0x1d8] sm:$0xf0]  ;;  %v6686_v12 = vor.u32 %v7214_v23, %v6683_v39  ;;  %v6801_v58 = vld [vmem:[#allocation2 + $0x288] sm:$0xf0]  ;;  %v6785_v36 = vld [vmem:[#allocation2 + $0x260] sm:$0xf0] }
0x2b8f   :  { %5214 = vmatpush.bf16.msrb.mxu3 %v6824_v25  ;;  %v6718_v25 = vor.u32 %v7221_v19, %v6715_v6  ;;  %v7244_v61 = vld [vmem:[#allocation2 + $0x27c] sm:$0xf]  ;;  %v6804_v21 = vor.u32 %v7243_v28, %v6801_v58  ;;  %v7238_v54 = vld [vmem:[#allocation2 + $0x24c] sm:$0xf]  ;;  %v7257_v5 = vld [vmem:[#allocation2 + $0x2e4] sm:$0xf] }
0x2b90   :  { %v6865_v18 = vld [vmem:[#allocation2 + $0x2f8] sm:$0xf0]  ;;  %v7251_v24 = vld [vmem:[#allocation2 + $0x2b4] sm:$0xf]  ;;  %v6841_v13 = vld [vmem:[#allocation2 + $0x2c8] sm:$0xf0] }
0x2b91   :  { %4978 = vmatpush.bf16.msrb.mxu2 %v6698_v33  ;;  %4991 = vmatpush.bf16.msra.mxu0 %v6702_v45  ;;  %v6691_v33 = vld [vmem:[#allocation2 + $0x1a8] sm:$0xf0]  ;;  %v6844_v19 = vor.u32 %v7251_v24, %v6841_v13  ;;  %v7245_v6 = vld [vmem:[#allocation2 + $0x284] sm:$0xf]  ;;  %v6817_v4 = vld [vmem:[#allocation2 + $0x298] sm:$0xf0] }
0x2b92   :  { %4812 = vmatpush.bf16.msra.mxu1 %v6616_v22  ;;  %v6791_v22 = vld [vmem:[#allocation2 + $0x250] sm:$0xf]  ;;  %v6694_v44 = vor.u32 %v7215_v32, %v6691_v33  ;;  %v7239_v48 = vld [vmem:[#allocation2 + $0x254] sm:$0xf]  ;;  %v7268_v7 = vld [vmem:[#allocation3 + $0x178] sm:$0xff] }
0x2b93   :  { %5215 = vmatpush.bf16.msrb.mxu3 %v6800_v17  ;;  %v6792_v45 = vor.u32 %v7242_v20, %v6791_v22  ;;  %v6856_v17 = vor.u32 %v7259_v37, %v6855_v56  ;;  %v7267_v51 = vld [vmem:[#allocation3 + $0x40] sm:$0xff]  ;;  %v7266_v23 = vld [vmem:[#allocation3 + $0x128] sm:$0xff]  ;;  %v7263_v56 = vld [vmem:[#allocation3 + $0x10] sm:$0xff] }
0x2b94   :  { %v7265_v39 = vld [vmem:[#allocation3 + $0x160] sm:$0xff]  ;;  %v7264_v32 = vld [vmem:[#allocation3 + $0x48] sm:$0xff]  ;;  %v7276_v37 = vld [vmem:[#allocation3 + $0xd8] sm:$0xff] }
0x2b95   :  { %4979 = vmatpush.bf16.msrb.mxu2 %v6674_v49  ;;  %4992 = vmatpush.bf16.msra.mxu0 %v6678_v63  ;;  %v7253_v49 = vld [vmem:[#allocation2 + $0x2bc] sm:$0xf0]  ;;  %v6809_v63 = vld [vmem:[#allocation2 + $0x290] sm:$0xf0]  ;;  %v7298_v15 = vld [vmem:[#allocation3 + $0x18] sm:$0xff] }
0x2b96   :  { %4813 = vmatpush.bf16.msra.mxu1 %v6592_v50  ;;  %v7249_v50 = vld [vmem:[#allocation2 + $0x2a4] sm:$0xf]  ;;  %v6812_v9 = vor.u32 %v7244_v61, %v6809_v63  ;;  %v7262_v40 = vld [vmem:[#allocation3 + $0xd0] sm:$0xff]  ;;  %v7284_v28 = vld [vmem:[#allocation3 + $0x168] sm:$0xff] }
0x2b97   :  { %5216 = vmatpush.bf16.msrb.mxu3 %v6776_v0  ;;  %v6808_v0 = vor.u32 %v7247_v57, %v6807_v55  ;;  %v7292_v30 = vld [vmem:[#allocation3 + $0x140] sm:$0xff]  ;;  %v7271_v61 = vld [vmem:[#allocation3 + $0x90] sm:$0xff] }
0x2b98   :  { %6767 = vmatmul.msk.bf16.vlgmr.msrb.gmra.mxu2 %vm368_vm0, %v9138_v1  ;;  %6768 = vmatmul.msk.bf16.vlgmr.msra.gmra.mxu0 %vm368_vm0, %v9138_v1  ;;  %v7281_v24 = vld [vmem:[#allocation3 + $0xe0] sm:$0xff] }
0x2b99   :  { %5028 = vmatpush.bf16.msra.mxu2 %v6762_v2  ;;  %5041 = vmatpush.bf16.msrb.mxu0 %v6766_v59  ;;  %v6832_v2 = vor.u32 %v7253_v49, %v6831_v29  ;;  %v6783_v59 = vld [vmem:[#allocation2 + $0x248] sm:$0xf]  ;;  %v7287_v13 = vld [vmem:[#allocation3 + $0x20] sm:$0xff] }
0x2b9a   :  { %5015 = vmatpush.bf16.msrb.mxu1 %v6758_v52  ;;  %6869 = vmatmul.msk.bf16.vlgmr.msrb.gmra.mxu3 %vm368_vm0, %v9151_v27  ;;  %v6828_v52 = vor.u32 %v7249_v50, %v6825_v34  ;;  %v7273_v50 = vld [vmem:[#allocation3 + $0x148] sm:$0xff] }
0x2b9b   :  { %5265 = vmatpush.bf16.msra.mxu3 %v6864_v3  ;;  %6670 = vmatmul.msk.bf16.vlgmr.msra.gmra.mxu1 %vm368_vm0, %v9117_v35  ;;  %v7256_v35 = vld [vmem:[#allocation2 + $0x2dc] sm:$0xf]  ;;  %v7241_v3 = vld [vmem:[#allocation2 + $0x25c] sm:$0xf0] }
0x2b9c   :  { %v6860_v47 = vor.u32 %v7256_v35, %v6857_v62  ;;  %v6784_v60 = vor.u32 %v7241_v3, %v6783_v59  ;;  %v7261_v35 = vld [vmem:[#allocation3 + $0xb0] sm:$0xff]  ;;  %v7275_v62 = vld [vmem:[#allocation3 + $0x58] sm:$0xff] }
0x2b9d   :  { %5029 = vmatpush.bf16.msra.mxu2 %v6738_v10  ;;  %5042 = vmatpush.bf16.msrb.mxu0 %v6742_v53  ;;  %v7237_v10 = vld [vmem:[#allocation2 + $0x244] sm:$0xf]  ;;  %v6788_v53 = vor.u32 %v7238_v54, %v6785_v36  ;;  %v7283_v59 = vld [vmem:[#allocation3 + $0xb8] sm:$0xff]  ;;  %v7270_v3 = vld [vmem:[#allocation3 + $0x110] sm:$0xff] }
0x2b9e   :  { %5016 = vmatpush.bf16.msrb.mxu1 %v6734_v11  ;;  %v6777_v11 = vld [vmem:[#allocation2 + $0x258] sm:$0xf0]  ;;  %v7282_v36 = vld [vmem:[#allocation3 + $0xa8] sm:$0xff] }
0x2b9f   :  { %5266 = vmatpush.bf16.msra.mxu3 %v6840_v26  ;;  %v6780_v43 = vor.u32 %v7237_v10, %v6777_v11  ;;  %v6868_v26 = vor.u32 %v7257_v5, %v6865_v18  ;;  %v7295_v10 = vld [vmem:[#allocation3 + $0x28] sm:$0xff] }
0x2ba0   :  { %v7269_v18 = vld [vmem:[#allocation3 + $0x108] sm:$0xff] }
0x2ba1   :  { %5030 = vmatpush.bf16.msra.mxu2 %v6714_v8  ;;  %5043 = vmatpush.bf16.msrb.mxu0 %v6718_v25  ;;  %v6793_v8 = vld [vmem:[#allocation2 + $0x268] sm:$0xf0] }
0x2ba2   :  { %5017 = vmatpush.bf16.msrb.mxu1 %v6710_v16  ;;  %v6796_v16 = vor.u32 %v7239_v48, %v6793_v8  ;;  %v7280_v48 = vld [vmem:[#allocation3 + $0x120] sm:$0xff] }
0x2ba3   :  { %5267 = vmatpush.bf16.msra.mxu3 %v6816_v31 }
0x2ba5   :  { %5031 = vmatpush.bf16.msra.mxu2 %v6690_v42  ;;  %5044 = vmatpush.bf16.msrb.mxu0 %v6694_v44 }
0x2ba6   :  { %5018 = vmatpush.bf16.msrb.mxu1 %v6686_v12 }
0x2ba7   :  { %5268 = vmatpush.bf16.msra.mxu3 %v6792_v45  ;;  %v7300_v45 = vld [vmem:[#allocation3 + $0x8] sm:$0xff] }
0x2ba8   :  { %6771 = vmatmul.msk.bf16.vlgmr.msra.gmra.mxu2 %vm368_vm0, %v9138_v1  ;;  %6772 = vmatmul.msk.bf16.vlgmr.msrb.gmra.mxu0 %vm368_vm0, %v9138_v1 }
0x2ba9   :  { %5239 = vmatpush.bf16.msrb.mxu2 %v6856_v17  ;;  %5252 = vmatpush.bf16.msra.mxu0 %v6860_v47  ;;  %v7274_v17 = vld [vmem:[#allocation3 + $0x100] sm:$0xff] }
0x2baa   :  { %5226 = vmatpush.bf16.msra.mxu1 %v6852_v46  ;;  %6873 = vmatmul.msk.bf16.vlgmr.msra.gmra.mxu3 %vm368_vm0, %v9151_v27  ;;  %v7299_v46 = vld [vmem:[#allocation3 + $0x98] sm:$0xff] }
0x2bab   :  { %6770 = vmatmul.msk.bf16.vlgmr.msrb.gmra.mxu1 %vm368_vm0, %v9138_v1  ;;  %v6820_v1 = vor.u32 %v7245_v6, %v6817_v4  ;;  %5736 = vmatpush.bf16.msrb.mxu3 %v7284_v28  ;;  %v7307_v6 = vld [vmem:[#allocation3 + $0x158] sm:$0xff] }
0x2bad   :  { %5240 = vmatpush.bf16.msrb.mxu2 %v6832_v2  ;;  %5253 = vmatpush.bf16.msra.mxu0 %v6836_v38  ;;  %v7272_v2 = vld [vmem:[#allocation3 + $0x118] sm:$0xff]  ;;  %v7297_v38 = vld [vmem:[#allocation3 + $0xc0] sm:$0xff] }
0x2bae   :  { %5227 = vmatpush.bf16.msra.mxu1 %v6828_v52  ;;  %v7291_v52 = vld [vmem:[#allocation3 + $0xf0] sm:$0xff] }
0x2baf   :  { %5737 = vmatpush.bf16.msrb.mxu3 %v7283_v59 }
0x2bb1   :  { %5241 = vmatpush.bf16.msrb.mxu2 %v6808_v0  ;;  %5254 = vmatpush.bf16.msra.mxu0 %v6812_v9  ;;  %v7290_v0 = vld [vmem:[#allocation3 + $0x170] sm:$0xff]  ;;  %v7289_v9 = vld [vmem:[#allocation3 + $0xa0] sm:$0xff] }
0x2bb2   :  { %5228 = vmatpush.bf16.msra.mxu1 %v6804_v21  ;;  %v7296_v21 = vld [vmem:[#allocation3 + $0x38] sm:$0xff] }
0x2bb3   :  { %5738 = vmatpush.bf16.msrb.mxu3 %v7282_v36 }
0x2bb5   :  { %5242 = vmatpush.bf16.msrb.mxu2 %v6784_v60  ;;  %5255 = vmatpush.bf16.msra.mxu0 %v6788_v53  ;;  %v7294_v53 = vld [vmem:[#allocation3 + $0xc8] sm:$0xff] }
0x2bb6   :  { %5229 = vmatpush.bf16.msra.mxu1 %v6780_v43  ;;  %v7288_v43 = vld [vmem:[#allocation3 + $0x88] sm:$0xff] }
0x2bb7   :  { %5739 = vmatpush.bf16.msrb.mxu3 %v7281_v24 }
0x2bb8   :  { %6871 = vmatmul.msk.bf16.vlgmr.msrb.gmra.mxu2 %vm368_vm0, %v9151_v27  ;;  %6872 = vmatmul.msk.bf16.vlgmr.msra.gmra.mxu0 %vm368_vm0, %v9151_v27 }
0x2bb9   :  { %5710 = vmatpush.bf16.msra.mxu2 %v7268_v7  ;;  %5723 = vmatpush.bf16.msrb.mxu0 %v7276_v37  ;;  %v7286_v7 = vld [vmem:[#allocation3 + $0xf8] sm:$0xff] }
0x2bba   :  { %5278 = vmatpush.bf16.msrb.mxu1 %v6868_v26  ;;  %v7308_v26 = vld [vmem:[#allocation3 + $0x150] sm:$0xff] }
0x2bbb   :  { %6870 = vmatmul.msk.bf16.vlgmr.msra.gmra.mxu1 %vm368_vm0, %v9151_v27  ;;  %5740 = vmatpush.bf16.msrb.mxu3 %v7280_v48 }
0x2bbd   :  { %5711 = vmatpush.bf16.msra.mxu2 %v7267_v51  ;;  %5724 = vmatpush.bf16.msrb.mxu0 %v7275_v62  ;;  %v7306_v51 = vld [vmem:[#allocation3 + $0x30] sm:$0xff] }
0x2bbe   :  { %5279 = vmatpush.bf16.msrb.mxu1 %v6844_v19  ;;  %v7293_v19 = vld [vmem:[#allocation3 + $0x60] sm:$0xff] }
0x2bc1   :  { %5712 = vmatpush.bf16.msra.mxu2 %v7266_v23  ;;  %5725 = vmatpush.bf16.msrb.mxu0 %v7274_v17  ;;  %v7279_v23 = vld [vmem:[#allocation3 + $0x138] sm:$0xff]  ;;  %v7304_v17 = vld [vmem:[#allocation3 + $0x68] sm:$0xff] }
0x2bc2   :  { %5280 = vmatpush.bf16.msrb.mxu1 %v6820_v1  ;;  %5741 = vmatpush.bf16.msrb.mxu3 %v7279_v23 }
0x2bc5   :  { %5713 = vmatpush.bf16.msra.mxu2 %v7265_v39  ;;  %5726 = vmatpush.bf16.msrb.mxu0 %v7273_v50  ;;  %v9206_v39 = vld [vmem:[%s9238_s7] sm:$0x3f]  ;;  %s7542_s7 = smov [#allocation5]  }
0x2bc6   :  { %5281 = vmatpush.bf16.msrb.mxu1 %v6796_v16  ;;  %v5298_v24 = vperm.slane %v9206_v39, 3  ;;  %s5807_s13 = sshll.u32 %s7542_s7, 4  ;;  %s5808_s13 = int_to_ptr.vmem [resolvable:$true] %s5807_s13 }
0x2bc9   :  { %5714 = vmatpush.bf16.msra.mxu2 %v7264_v32  ;;  %5727 = vmatpush.bf16.msrb.mxu0 %v7272_v2 }
0x2bca   :  { %5749 = vmatpush.bf16.msra.mxu1 %v7292_v30 }
0x2bcb   :  { %6874 = vmatmul.msk.bf16.vlgmr.msrb.gmra.mxu1 %vm368_vm0, %v9151_v27  ;;  %vm5788_vm0 = vcmask 1041408  }
0x2bcd   :  { %5715 = vmatpush.bf16.msra.mxu2 %v7263_v56  ;;  %5728 = vmatpush.bf16.msrb.mxu0 %v7271_v61 }
0x2bce   :  { %5750 = vmatpush.bf16.msra.mxu1 %v7291_v52  ;;  %v7302_v52 = vld [vmem:[#allocation3 + $0x78] sm:$0xff] }
0x2bd1   :  { %5716 = vmatpush.bf16.msra.mxu2 %v7262_v40  ;;  %5729 = vmatpush.bf16.msrb.mxu0 %v7270_v3 }
0x2bd2   :  { %5751 = vmatpush.bf16.msra.mxu1 %v7290_v0  ;;  %v5299_v0 = vperm.slane %v9206_v39, 4 }
0x2bd5   :  { %5717 = vmatpush.bf16.msra.mxu2 %v7261_v35  ;;  %5730 = vmatpush.bf16.msrb.mxu0 %v7269_v18 }
0x2bd6   :  { %5752 = vmatpush.bf16.msra.mxu1 %v7289_v9 }
0x2bd9   :  { %5762 = vmatpush.bf16.msrb.mxu2 %v7300_v45  ;;  %5775 = vmatpush.bf16.msra.mxu0 %v7308_v26 }
0x2bda   :  { %5753 = vmatpush.bf16.msra.mxu1 %v7288_v43 }
0x2bdd   :  { %5763 = vmatpush.bf16.msrb.mxu2 %v7299_v46  ;;  %5776 = vmatpush.bf16.msra.mxu0 %v7307_v6 }
0x2bde   :  { %5754 = vmatpush.bf16.msra.mxu1 %v7287_v13 }
0x2be1   :  { %5764 = vmatpush.bf16.msrb.mxu2 %v7298_v15  ;;  %5777 = vmatpush.bf16.msra.mxu0 %v7306_v51 }
0x2be2   :  { %5755 = vmatpush.bf16.msra.mxu1 %v7286_v7 }
0x2be4   :  { %v9177_v25 = vpop.f32.mrf.mxu1 }
0x2be5   :  { %v9179_v31 = vpop.f32.mrf.mxu0  ;;  %5765 = vmatpush.bf16.msrb.mxu2 %v7297_v38 }
0x2be9   :  { %5766 = vmatpush.bf16.msrb.mxu2 %v7296_v21 }
0x2beb   :  { %v9181_v33 = vpop.f32.mrf.mxu2 }
0x2bec   :  { %v4551_v20 = vpop.f32.mrf.mxu1 }
0x2bed   :  { %v9183_v22 = vpop.f32.mrf.mxu3  ;;  %v4577_v27 = vpop.f32.mrf.mxu0  ;;  %5767 = vmatpush.bf16.msrb.mxu2 %v7295_v10  ;;  %v7285_v20 = vld [vmem:[#allocation3 + $0xe8] sm:$0xff] }
0x2bee   :  { %v4751_v32 = vadd.f32 %v9183_v22, %v9177_v25  ;;  %v7305_v27 = vld [vmem:[#allocation3 + $0x70] sm:$0xff]  ;;  %5756 = vmatpush.bf16.msra.mxu1 %v7285_v20 }
0x2bef   :  { %5778 = vmatpush.bf16.msra.mxu0 %v7305_v27  ;;  %v7303_v22 = vld [vmem:[#allocation3 + $0x50] sm:$0xff] }
0x2bf1   :  { %5768 = vmatpush.bf16.msrb.mxu2 %v7294_v53 }
0x2bf3   :  { %v4564_v41 = vpop.f32.mrf.mxu2  ;;  %5779 = vmatpush.bf16.msra.mxu0 %v7304_v17 }
0x2bf4   :  { %v5295_v41 = vperm.slane %v9206_v39, 0 }
0x2bf5   :  { %v4752_v42 = vpop.f32.mrf.mxu3  ;;  %v9187_v44 = vpop.f32.mrf.mxu0  ;;  %5769 = vmatpush.bf16.msrb.mxu2 %v7293_v19 }
0x2bf6   :  { %v7278_v42 = vld [vmem:[#allocation3 + $0x130] sm:$0xff] }
0x2bf7   :  { %5742 = vmatpush.bf16.msrb.mxu3 %v7278_v42  ;;  %5780 = vmatpush.bf16.msra.mxu0 %v7303_v22 }
0x2bf8   :  { %v9185_v12 = vpop.f32.mrf.mxu1 }
0x2bfb   :  { %v9189_v29 = vpop.f32.mrf.mxu2  ;;  %5781 = vmatpush.bf16.msra.mxu0 %v7302_v52 }
0x2bfd   :  { %v9191_v47 = vpop.f32.mrf.mxu3  ;;  %v4616_v34 = vpop.f32.mrf.mxu0 }
0x2bfe   :  { %v4803_v38 = vadd.f32 %v9191_v47, %v9189_v29 }
0x2c00   :  { %v4590_v49 = vpop.f32.mrf.mxu1 }
0x2c01   :  { %v7277_v49 = vld [vmem:[#allocation3 + $0x80] sm:$0xff] }
0x2c02   :  { %5743 = vmatpush.bf16.msrb.mxu3 %v7277_v49 }
0x2c03   :  { %v4603_v55 = vpop.f32.mrf.mxu2 }
0x2c04   :  { %v7301_v55 = vld [vmem:[#allocation3] sm:$0xff] }
0x2c05   :  { %v4804_v57 = vpop.f32.mrf.mxu3  ;;  %v9195_v63 = vpop.f32.mrf.mxu0  ;;  %5782 = vmatpush.bf16.msra.mxu0 %v7301_v55 }
0x2c08   :  { %v9193_v58 = vpop.f32.mrf.mxu1 }
0x2c09   :  { %v4764_v10 = vadd.f32 %v9193_v58, %v9181_v33 }
0x2c0b   :  { %v9197_v11 = vpop.f32.mrf.mxu2 }
0x2c0c   :  { %v4777_v13 = vadd.f32 %v9197_v11, %v9179_v31 }
0x2c0d   :  { %v9199_v54 = vpop.f32.mrf.mxu3  ;;  %v4791_v60 = vpop.f32.mrf.mxu0 }
0x2c0e   :  { %v5296_v60 = vperm.slane %v9206_v39, 1 }
0x2c10   :  { %v4765_v5 = vpop.f32.mrf.mxu1 }
0x2c11   :  { %v4790_v5 = vadd.f32 %v9195_v63, %v9185_v12  ;;  %v5052_v12 = vadd.f32 %v9199_v54, %v4777_v13 }
0x2c13   :  { %v4778_v4 = vpop.f32.mrf.mxu2 }
0x2c15   :  { %v5009_v1 = vpop.f32.mrf.mxu3  ;;  %v4994_v16 = vpop.f32.mrf.mxu0 }
0x2c16   :  { %v5051_v29 = vadd.f32 %v4994_v16, %v4764_v10  ;;  %v5297_v1 = vperm.slane %v9206_v39, 2 }
0x2c18   :  { %v9201_v8 = vpop.f32.mrf.mxu1 }
0x2c19   :  { %v4816_v27 = vadd.f32 %v9201_v8, %v9187_v44  ;;  %v5421_v44 = vperm.slane %v8105_v14, 2 }
0x2c1b   :  { %v4981_v56 = vpop.f32.mrf.mxu2 }
0x2c1c   :  { %v5050_v37 = vadd.f32 %v4981_v56, %v4751_v32 }
0x2c1d   :  { %v5218_v40 = vpop.f32.mrf.mxu3  ;;  %v4996_v62 = vpop.f32.mrf.mxu0 }
0x2c1e   :  { %v5287_v45 = vadd.f32 %v5218_v40, %v5050_v37  ;;  %v5300_v40 = vperm.slane %v9206_v39, 5 }
0x2c20   :  { %v4817_v35 = vpop.f32.mrf.mxu1  ;;  %v5307_v46 = vadd.f32 %v5295_v41, %v5287_v45 }
0x2c22   :  { %v5313_v25 = vmax.f32 %v5307_v46, 0.0 }
0x2c23   :  { %v4983_v50 = vpop.f32.mrf.mxu2 }
0x2c24   :  { %v5319_v34 = vpack.c.bf16 %v5313_v25, %v5313_v25 }
0x2c25   :  { %v5220_v30 = vpop.f32.mrf.mxu3  ;;  %v5046_v2 = vpop.f32.mrf.mxu0 }
0x2c26   :  { %5718 = vmatmul.bf16.vlgmr.msra.gmra.mxu2 %v5319_v34  ;;  %v5055_v54 = vadd.f32 %v5046_v2, %v4816_v27 }
0x2c28   :  { %v5020_v15 = vpop.f32.mrf.mxu1 }
0x2c29   :  { %v5053_v53 = vadd.f32 %v5020_v15, %v4790_v5 }
0x2c2b   :  { %v5033_v57 = vpop.f32.mrf.mxu2 }
0x2c2c   :  { %v5054_v28 = vadd.f32 %v5033_v57, %v4803_v38 }
0x2c2d   :  { %v5270_v61 = vpop.f32.mrf.mxu3  ;;  %v5048_v59 = vpop.f32.mrf.mxu0 }
0x2c2e   :  { %v5291_v3 = vadd.f32 %v5270_v61, %v5054_v28 }
0x2c30   :  { %v5022_v21 = vpop.f32.mrf.mxu1  ;;  %v5311_v9 = vadd.f32 %v5299_v0, %v5291_v3 }
0x2c32   :  { %v5317_v36 = vmax.f32 %v5311_v9, 0.0 }
0x2c33   :  { %v5035_v18 = vpop.f32.mrf.mxu2 }
0x2c34   :  { %v5323_v47 = vpack.c.bf16 %v5317_v36, %v5317_v36 }
0x2c35   :  { %v5272_v43 = vpop.f32.mrf.mxu3  ;;  %v5257_v6 = vpop.f32.mrf.mxu0 }
0x2c36   :  { %5770 = vmatmul.bf16.vlgmr.msrb.gmra.mxu2 %v5323_v47  ;;  %v5290_v33 = vadd.f32 %v5257_v6, %v5053_v53 }
0x2c38   :  { %v5231_v26 = vpop.f32.mrf.mxu1  ;;  %v5310_v4 = vadd.f32 %v5298_v24, %v5290_v33 }
0x2c39   :  { %v5288_v19 = vadd.f32 %v5231_v26, %v5051_v29 }
0x2c3a   :  { %v5316_v48 = vmax.f32 %v5310_v4, 0.0 }
0x2c3b   :  { %v5308_v58 = vadd.f32 %v5296_v60, %v5288_v19  ;;  %v5244_v16 = vpop.f32.mrf.mxu2 }
0x2c3c   :  { %v5289_v51 = vadd.f32 %v5244_v16, %v5052_v12  ;;  %v5322_v23 = vpack.c.bf16 %v5316_v48, %v5316_v48 }
0x2c3d   :  { %v5314_v63 = vmax.f32 %v5308_v58, 0.0  ;;  %v5259_v31 = vpop.f32.mrf.mxu0 }
0x2c3e   :  { %v5309_v20 = vadd.f32 %v5297_v1, %v5289_v51  ;;  %5757 = vmatmul.bf16.vlgmr.msra.gmra.mxu1 %v5322_v23 }
0x2c3f   :  { %v5320_v7 = vpack.c.bf16 %v5314_v63, %v5314_v63 }
0x2c40   :  { %v5233_v32 = vpop.f32.mrf.mxu1  ;;  %v5315_v11 = vmax.f32 %v5309_v20, 0.0 }
0x2c41   :  { %5731 = vmatmul.bf16.vlgmr.msrb.gmra.mxu0 %v5320_v7 }
0x2c42   :  { %v5321_v56 = vpack.c.bf16 %v5315_v11, %v5315_v11 }
0x2c43   :  { %v5246_v37 = vpop.f32.mrf.mxu2 }
0x2c44   :  { %5744 = vmatmul.bf16.vlgmr.msrb.gmra.mxu3 %v5321_v56 }
0x2c48   :  { %v5283_v41 = vpop.f32.mrf.mxu1 }
0x2c49   :  { %v5292_v42 = vadd.f32 %v5283_v41, %v5055_v54 }
0x2c4b   :  { %v5312_v35 = vadd.f32 %v5300_v40, %v5292_v42 }
0x2c4d   :  { %v5318_v62 = vmax.f32 %v5312_v35, 0.0 }
0x2c4f   :  { %v5324_v45 = vpack.c.bf16 %v5318_v62, %v5318_v62 }
0x2c50   :  { %v5285_v17 = vpop.f32.mrf.mxu1 }
0x2c51   :  { %5783 = vmatmul.bf16.vlgmr.msra.gmra.mxu0 %v5324_v45 }
0x2ca9   :  { %v5719_v46 = vpop.f32.mrf.mxu2 }
0x2caa   :  { %v5720_v30 = vadd.f32 %v5719_v46, %v5421_v44 }
0x2cb1   :  { %v5721_v49 = vpop.f32.mrf.mxu2 }
0x2cb9   :  { %v5771_v25 = vpop.f32.mrf.mxu2 }
0x2cbb   :  { %v5758_v50 = vpop.f32.mrf.mxu1 }
0x2cbe   :  { %v5732_v22 = vpop.f32.mrf.mxu0 }
0x2cbf   :  { %v5733_v2 = vadd.f32 %v5732_v22, %v5720_v30 }
0x2cc1   :  { %v5773_v8 = vpop.f32.mrf.mxu2 }
0x2cc3   :  { %v5760_v15 = vpop.f32.mrf.mxu1 }
0x2cc6   :  { %v5734_v34 = vpop.f32.mrf.mxu0 }
0x2cc7   :  { %v5745_v39 = vpop.f32.mrf.mxu3 }
0x2cc8   :  { %v5746_v52 = vadd.f32 %v5745_v39, %v5733_v2 }
0x2cca   :  { %v5759_v38 = vadd.f32 %v5758_v50, %v5746_v52 }
0x2ccc   :  { %v5772_v57 = vadd.f32 %v5771_v25, %v5759_v38 }
0x2cce   :  { %v5784_v55 = vpop.f32.mrf.mxu0 }
0x2ccf   :  { %v5785_v28 = vadd.f32 %v5784_v55, %v5772_v57  ;;  %v5747_v61 = vpop.f32.mrf.mxu3 }
0x2cd1   :  { %v5789_v0 = vsel %vm5788_vm0, %v5785_v28, -inf }
0x2cd2   :  { %5790 = vmax.xlane.f32.xlu0 %v5789_v0 }
0x2cd6   :  { %v5786_v21 = vpop.f32.mrf.mxu0 }
0x2d45   :  { %v5791_v59 = vpop.xlane.xlu0 %5790 }
0x2d46   :  { %v5792_v3 = vsub.f32 %v5785_v28, %v5791_v59 }
0x2d48   :  { %v5793_v9 = vmul.f32 1.442695, %v5792_v3 }
0x2d4a   :  { %7500 = vpow2.f32 %v5793_v9 }
0x2d50   :  { %v7501_v14 = vpop.eup %7500 }
0x2d51   :  { %v5795_v10 = vsel %vm5788_vm0, %v7501_v14, 0.0 }
0x2d52   :  { %5796 = vadd.xlane.f32.xlu0 %v5795_v10 }
0x2dc5   :  { %v5797_v36 = vpop.xlane.xlu0 %5796 }
0x2dc6   :  { %7502 = vlog2.f32 %v5797_v36 }
0x2dcc   :  { %v7503_v5 = vpop.eup %7502 }
0x2dcd   :  { %v5799_v18 = vmul.f32 0.6931472, %v7503_v5 }
0x2dcf   :  { %v5800_v29 = vsub.f32 %v5792_v3, %v5799_v18 }
0x2dd1   :  { %5801 = vst [vmem:[#allocation5] sm:$0x3] %v5800_v29 }
0x2dd2   :  { %5812 = dma.vmem_to_hbm [thread:$0]  %s5808_s13, 32, %s5810_s17, [#allocation6]  }
0x2dd3   :  { %7532 = dma.done.wait [#allocation6], 32  }
0x2dd4   :  { %7533 = vsyncadd [#allocation6], 4294967264 }
0x2dd5   :  { %5817 = vsyncpa [#allocation6], 1 }
0x2dd6   :  { %5818 = vsyncmov [#allocation4] }
0x2dd9   :  { %s5819_s0 = vpop.sfrf %5818 }
0x2dda   :  { %p7067_p0 = scmp.ne.s32.totalorder %s5819_s0, 0 }
0x2ddc   :  { %5823 = shalt.err (%p7067_p0)  }
0x2ddd   :  { %5825 = vsyncmov [#allocation4 + $0x1] }
0x2de0   :  { %s5826_s9 = vpop.sfrf %5825 }
0x2de1   :  { %p7068_p1 = scmp.ne.s32.totalorder %s5826_s9, 0 }
0x2de3   :  { %5830 = shalt.err (%p7068_p1)  }

</bundles_post_ra>
